<compile_context>
chip_gen: v7x
topology: tpu7x:2x2x1
jax: 0.10.0
libtpu: 0.0.40
codegen_flags: <defaults>
</compile_context>

<pallas_src>
import functools

import jax
import jax.numpy as jnp
from jax.experimental import pallas as pl
from jax.experimental.pallas import tpu as pltpu


# ----------------------- fused conv stage (one pallas_call) ------------------

_WOFF = 8  # left halo offset inside the conv1 scratch (sublane-tile aligned
           # so interior stores are unmasked; halo column lives at _WOFF - 1)


def _conv_stage_kernel(xp_ref, w1_ref, w2_ref, feat_ref, h1pad_ref, *, H, W, HC):
    """conv1+ReLU -> conv2+ReLU -> (identity 16x16 pool) -> bf16 features.

    xp_ref:    (1, H+2, W+2, Cin)   f32  zero-padded NHWC input (one image)
    w1_ref:    (9, Cin, C1)         f32  conv1 taps, tap-major (kh*3 + kw)
    w2_ref:    (9, C1, C2)          f32  conv2 taps, tap-major
    feat_ref:  (1, H*W, C2)         bf16 pooled features, NHWC flatten order
    h1pad_ref: (H+2, W+2*_WOFF, C1) f32  VMEM scratch: zero-padded conv1 output
                                         (interior columns [_WOFF, _WOFF+W))
    """
    Cin = xp_ref.shape[3]
    C1 = w1_ref.shape[2]
    C2 = w2_ref.shape[2]

    # Zero once; the halo ring around the conv1 output stays zero afterwards.
    h1pad_ref[...] = jnp.zeros_like(h1pad_ref)

    # ---- conv1 + ReLU -> padded VMEM scratch (never touches HBM) ----
    for c in range(H // HC):                        # HC-row chunks bound vregs
        acc = jnp.zeros((HC * W, C1), jnp.float32)
        for kw in range(3):
            # one sublane-shift relayout per kw (hoisted out of the kh loop)
            xw = xp_ref[0, c * HC:c * HC + HC + 2, kw:kw + W, :].reshape(
                (HC + 2) * W, Cin)
            for kh in range(3):
                acc = acc + jnp.dot(xw[kh * W:(kh + HC) * W, :],
                                    w1_ref[kh * 3 + kw],
                                    preferred_element_type=jnp.float32)
        # interior store is sublane-tile aligned (_WOFF = 8, W multiple of 8)
        h1pad_ref[1 + c * HC:1 + (c + 1) * HC, _WOFF:_WOFF + W, :] = \
            jnp.maximum(acc, 0.0).reshape(HC, W, C1)

    # ---- conv2 + ReLU (+ identity 16x16 pool) -> bf16 feature output ----
    for c in range(H // HC):
        acc = jnp.zeros((HC * W, C2), jnp.float32)
        for kw in range(3):
            hw = h1pad_ref[c * HC:c * HC + HC + 2,
                           _WOFF - 1 + kw:_WOFF - 1 + kw + W, :].reshape(
                (HC + 2) * W, C1)
            for kh in range(3):
                acc = acc + jnp.dot(hw[kh * W:(kh + HC) * W, :],
                                    w2_ref[kh * 3 + kw],
                                    preferred_element_type=jnp.float32)
        feat_ref[0, c * HC * W:(c + 1) * HC * W, :] = \
            jnp.maximum(acc, 0.0).astype(feat_ref.dtype)


def conv_stage(x_nchw, w1_tap, w2_tap, *, hc=8):
    """Fused convs/pool/flatten: (B,Cin,16,16) NCHW -> (B, 256, C2) bf16 NHWC."""
    B, Cin, H, W = x_nchw.shape
    # TODO(synk): AdaptiveMaxPool2d((16,16)) for spatial sizes != 16x16 (real
    # downsampling / overlapping windows) is not implemented in the fused path.
    assert H == 16 and W == 16, "fused conv stage supports 16x16 spatial only"
    C1 = w1_tap.shape[2]
    C2 = w2_tap.shape[2]
    hc = min(hc, H)
    assert H % hc == 0
    x = jnp.transpose(x_nchw, (0, 2, 3, 1))                 # NCHW -> NHWC (6 KB)
    xp = jnp.pad(x, ((0, 0), (1, 1), (1, 1), (0, 0)))       # halo pad (tiny)
    return pl.pallas_call(
        functools.partial(_conv_stage_kernel, H=H, W=W, HC=hc),
        out_shape=jax.ShapeDtypeStruct((B, H * W, C2), jnp.bfloat16),
        grid_spec=pltpu.PrefetchScalarGridSpec(
            num_scalar_prefetch=0,
            grid=(B,),                                       # parallel over batch
            in_specs=[
                pl.BlockSpec((1, H + 2, W + 2, Cin), lambda b: (b, 0, 0, 0)),
                pl.BlockSpec((9, Cin, C1), lambda b: (0, 0, 0)),
                pl.BlockSpec((9, C1, C2), lambda b: (0, 0, 0)),
            ],
            out_specs=pl.BlockSpec((1, H * W, C2), lambda b: (b, 0, 0)),
            scratch_shapes=[pltpu.VMEM((H + 2, W + 2 * _WOFF, C1), jnp.float32)],
        ),
        compiler_params=pltpu.CompilerParams(dimension_semantics=("parallel",)),
    )(xp, w1_tap, w2_tap)


# ------------------------------- fc1 (pre_linear[0]) -------------------------

def _fc1_kernel(x_ref, w_ref, o_ref):
    # grid = (N//tn, K//tk); K innermost so the f32 output block stays resident.
    # x_ref: (M, tk) bf16, w_ref: (tk, tn) bf16, o_ref: (M, tn) f32 accumulator.
    k = pl.program_id(1)

    @pl.when(k == 0)
    def _():
        o_ref[...] = jnp.zeros_like(o_ref)

    o_ref[...] += jnp.dot(x_ref[...], w_ref[...],
                          preferred_element_type=jnp.float32)

    @pl.when(k == pl.num_programs(1) - 1)
    def _():
        o_ref[...] = jnp.maximum(o_ref[...], 0.0)            # fused ReLU


def _single_tensorcore_chip():
    """v5e / v6e have one TensorCore per chip; prefer a full-N tile there."""
    try:
        kind = jax.devices()[0].device_kind.lower()
    except Exception:
        return False
    return any(t in kind for t in ("v5 lite", "v5lite", "v5e", "v6 lite", "v6e"))


def fc1_matmul_relu(x_bf16, w_kn_bf16, *, tk=8192, tn=None):
    """(M,K)@(K,N) + ReLU; bf16 weight streaming, f32 accumulation/output."""
    M, K = x_bf16.shape
    N = w_kn_bf16.shape[1]
    if tn is None:
        # 2-way N split keeps both v7x TensorCores streaming weight; on
        # single-TC chips (v5e/v6e) use the full N so the grid is just K//tk.
        tn = N if _single_tensorcore_chip() else min(128, N)
    tk = min(tk, K)
    tn = min(tn, N)
    assert K % tk == 0 and N % tn == 0
    return pl.pallas_call(
        _fc1_kernel,
        out_shape=jax.ShapeDtypeStruct((M, N), jnp.float32),
        grid_spec=pltpu.PrefetchScalarGridSpec(
            num_scalar_prefetch=0,
            grid=(N // tn, K // tk),                 # K innermost (accumulation)
            in_specs=[
                pl.BlockSpec((M, tk), lambda n, k: (0, k)),
                pl.BlockSpec((tk, tn), lambda n, k: (k, n)),
            ],
            out_specs=pl.BlockSpec((M, tn), lambda n, k: (0, n)),
        ),
        compiler_params=pltpu.CompilerParams(
            dimension_semantics=("parallel", "arbitrary")),
    )(x_bf16, w_kn_bf16)


# ----------------------- fused fc2 + output (tail) ---------------------------

def _tail_kernel(e_ref, w2_ref, wo_ref, out_ref, emb_ref):
    # Fused: fc2(256x256)+ReLU then output(256 x num_classes). All blocks in VMEM.
    e = jnp.maximum(
        jnp.dot(e_ref[...], w2_ref[...], preferred_element_type=jnp.float32), 0.0)
    emb_ref[...] = e.astype(emb_ref.dtype)
    out_ref[...] = jnp.dot(e, wo_ref[...],
                           preferred_element_type=jnp.float32).astype(out_ref.dtype)


def fc_tail(e1, w2_kn, wo_kn):
    """Fused pre_linear[2]+ReLU and output conv1x1. Returns (logits, embedding)."""
    M, D = e1.shape
    Dm = w2_kn.shape[1]
    N = wo_kn.shape[1]
    out, emb = pl.pallas_call(
        _tail_kernel,
        out_shape=(jax.ShapeDtypeStruct((M, N), jnp.float32),
                   jax.ShapeDtypeStruct((M, Dm), jnp.float32)),
        grid_spec=pltpu.PrefetchScalarGridSpec(
            num_scalar_prefetch=0,
            grid=(1,),
            in_specs=[
                pl.BlockSpec((M, D), lambda i: (0, 0)),
                pl.BlockSpec((D, Dm), lambda i: (0, 0)),
                pl.BlockSpec((Dm, N), lambda i: (0, 0)),
            ],
            out_specs=[pl.BlockSpec((M, N), lambda i: (0, 0)),
                       pl.BlockSpec((M, Dm), lambda i: (0, 0))],
        ),
        compiler_params=pltpu.CompilerParams(dimension_semantics=("arbitrary",)),
    )(e1, w2_kn, wo_kn)
    return out, emb


# ------------------------------ params / glue ---------------------------------

def init_params(key, num_classes=10, channels=3):
    """Deterministic init matching the PyTorch default bound 1/sqrt(fan_in)."""
    ks = jax.random.split(key, 5)

    def u(k, shape, fan_in):
        b = 1.0 / jnp.sqrt(jnp.float32(fan_in))
        return jax.random.uniform(k, shape, jnp.float32, -b, b)

    return dict(
        w_conv1=u(ks[0], (64, channels, 3, 3), channels * 9),
        w_conv2=u(ks[1], (64, 64, 3, 3), 64 * 9),
        w_fc1=u(ks[2], (256, 64 * 16 * 16), 64 * 16 * 16),   # conv1x1(16384 -> 256)
        w_fc2=u(ks[3], (256, 256), 256),                     # conv1x1(256 -> 256)
        w_out=u(ks[4], (num_classes, 256), 256),             # conv1x1(256 -> classes)
    )


def prepare_params(params):
    """One-time layout/dtype prep so the hot path never re-transposes weights."""
    cout1, cin1 = params["w_conv1"].shape[:2]
    cout2, cin2 = params["w_conv2"].shape[:2]
    d_emb, k_fc1 = params["w_fc1"].shape          # (256, C2*16*16), torch CHW order
    p = 16
    assert k_fc1 == cout2 * p * p
    # Permute w_fc1 rows from torch's NCHW flatten (c*256 + h*16 + w) to the
    # kernel's NHWC flatten ((h*16 + w)*C2 + c): feat.reshape(B,-1) is then a
    # free view, no activation transpose on the hot path.
    w_fc1_perm = (params["w_fc1"]
                  .reshape(d_emb, cout2, p, p)
                  .transpose(2, 3, 1, 0)
                  .reshape(p * p * cout2, d_emb)
                  .astype(jnp.bfloat16))
    return dict(
        # (Cout,Cin,3,3) -> (kh,kw,Cin,Cout) -> (9, Cin, Cout), tap-major kh*3+kw
        w_conv1_tap=jnp.transpose(params["w_conv1"], (2, 3, 1, 0)).reshape(9, cin1, cout1),
        w_conv2_tap=jnp.transpose(params["w_conv2"], (2, 3, 1, 0)).reshape(9, cin2, cout2),
        w_fc1=w_fc1_perm,                                     # (16384, 256) bf16
        w_fc2=jnp.transpose(params["w_fc2"]),                 # (256, 256) f32
        w_out=jnp.transpose(params["w_out"]),                 # (256, classes) f32
    )


def conv2_forward(prep, x_nchw, last=False):
    B = x_nchw.shape[0]
    feat3 = conv_stage(x_nchw, prep["w_conv1_tap"], prep["w_conv2_tap"])
    feat = feat3.reshape(B, -1)                                # free view (bf16)
    e1 = fc1_matmul_relu(feat, prep["w_fc1"], tk=8192)         # pre_linear[0]+ReLU
    out, emb = fc_tail(e1, prep["w_fc2"], prep["w_out"])       # pre_linear[2]+ReLU, output
    if last:
        return out, emb
    return out


# ----------------------------- reference (JAX) --------------------------------

def reference_forward(params, x_nchw):
    dn = ("NCHW", "OIHW", "NCHW")
    hp = jax.lax.Precision.HIGHEST
    h = jax.lax.conv_general_dilated(x_nchw, params["w_conv1"], (1, 1),
                                     ((1, 1), (1, 1)), dimension_numbers=dn,
                                     precision=hp)
    h = jnp.maximum(h, 0.0)
    h = jax.lax.conv_general_dilated(h, params["w_conv2"], (1, 1),
                                     ((1, 1), (1, 1)), dimension_numbers=dn,
                                     precision=hp)
    h = jnp.maximum(h, 0.0)
    B, C, H, W = h.shape
    h = h.reshape(B, C, 16, H // 16, 16, W // 16).max(axis=(3, 5))
    feat = h.reshape(B, -1)
    e = jnp.maximum(jnp.dot(feat, params["w_fc1"].T, precision=hp), 0.0)
    e = jnp.maximum(jnp.dot(e, params["w_fc2"].T, precision=hp), 0.0)
    out = jnp.dot(e, params["w_out"].T, precision=hp)
    return out, e


# --------------------------------- main ---------------------------------------

if __name__ == "__main__":
    key = jax.random.PRNGKey(0)
    pkey, xkey = jax.random.split(key)
    params = init_params(pkey, num_classes=10, channels=3)
    prep = prepare_params(params)        # one-time transposes / permutes / bf16 cast

    # Spatial 16x16 so AdaptiveMaxPool2d((16,16)) is well-posed (identity here).
    x = jax.random.normal(xkey, (2, 3, 16, 16), jnp.float32)   # NCHW like PyTorch

    fwd = jax.jit(functools.partial(conv2_forward, last=True))
    out, emb = fwd(prep, x)
    out = jax.block_until_ready(out)
    emb = jax.block_until_ready(emb)

    assert out.shape == (2, 10), out.shape
    assert emb.shape == (2, 256), emb.shape

    ref_out, ref_emb = reference_forward(params, x)
    assert jnp.allclose(out, ref_out, rtol=2e-2, atol=2e-3), \
        f"logits mismatch: {jnp.max(jnp.abs(out - ref_out))}"
    assert jnp.allclose(emb, ref_emb, rtol=2e-2, atol=2e-3), \
        f"embedding mismatch: {jnp.max(jnp.abs(emb - ref_emb))}"

    print("KERNEL_OK")
</pallas_src>

<mosaic_0001>
module attributes {stable_mosaic.version = 11 : i64} {
  func.func @_conv_stage_kernel(%arg0: i32, %arg1: memref<1x18x18x3xf32, #tpu.memory_space<vmem>>, %arg2: memref<9x3x64xf32, #tpu.memory_space<vmem>>, %arg3: memref<9x64x64xf32, #tpu.memory_space<vmem>>, %arg4: memref<1x256x64xbf16, #tpu.memory_space<vmem>>, %arg5: memref<18x32x64xf32, #tpu.memory_space<vmem>>) attributes {dimension_semantics = [#tpu.dimension_semantics<parallel>], iteration_bounds = array<i64: 2>, scalar_prefetch = 0 : i64, scratch_operands = 1 : i64, tpu.core_type = #tpu.core_type<tc>, window_params = [{transform_indices = @transform_0, window_bounds = array<i64: 1, 18, 18, 3>}, {pipeline_mode = #tpu.pipeline_mode<synchronous>, transform_indices = @transform_1, window_bounds = array<i64: 9, 3, 64>}, {pipeline_mode = #tpu.pipeline_mode<synchronous>, transform_indices = @transform_2, window_bounds = array<i64: 9, 64, 64>}, {transform_indices = @transform_3, window_bounds = array<i64: 1, 256, 64>}]} {
    %cst = arith.constant 0.000000e+00 : f32
    %0 = vector.broadcast %cst : f32 to vector<18x32x64xf32>
    %c0 = arith.constant 0 : index
    %c0_0 = arith.constant 0 : index
    %c0_1 = arith.constant 0 : index
    %1 = vector.load %arg5[%c0, %c0_0, %c0_1] : memref<18x32x64xf32, #tpu.memory_space<vmem>>, vector<18x32x64xf32>
    tpu.vector_store %arg5[%c0, %c0_0, %c0_1], %0 {strides = array<i32>} : memref<18x32x64xf32, #tpu.memory_space<vmem>>, vector<18x32x64xf32>,
    %cst_2 = arith.constant 0.000000e+00 : f32
    %2 = vector.broadcast %cst_2 : f32 to vector<128x64xf32>
    %c0_3 = arith.constant 0 : index
    %c0_4 = arith.constant 0 : index
    %c0_5 = arith.constant 0 : index
    %c0_6 = arith.constant 0 : index
    %3 = vector.load %arg1[%c0_3, %c0_4, %c0_5, %c0_6] : memref<1x18x18x3xf32, #tpu.memory_space<vmem>>, vector<1x10x16x3xf32>
    %4 = vector.shape_cast %3 : vector<1x10x16x3xf32> to vector<10x16x3xf32>
    %5 = vector.shape_cast %4 : vector<10x16x3xf32> to vector<160x3xf32>
    %6 = vector.extract_strided_slice %5 {offsets = [0, 0], sizes = [128, 3], strides = [1, 1]} : vector<160x3xf32> to vector<128x3xf32>
    %c0_7 = arith.constant 0 : index
    %c0_8 = arith.constant 0 : index
    %c0_9 = arith.constant 0 : index
    %7 = vector.load %arg2[%c0_7, %c0_8, %c0_9] : memref<9x3x64xf32, #tpu.memory_space<vmem>>, vector<1x3x64xf32>
    %8 = vector.shape_cast %7 : vector<1x3x64xf32> to vector<3x64xf32>
    %cst_10 = arith.constant dense<0.000000e+00> : vector<128x64xf32>
    %9 = tpu.matmul %6, %8, %cst_10 {dimension_numbers = #tpu.dot_dimension_numbers<[1], [0], [0], [1], [0, 0, 1, 1], [], []>} : vector<128x3xf32>, vector<3x64xf32>, vector<128x64xf32> -> vector<128x64xf32>
    %10 = arith.addf %2, %9 : vector<128x64xf32>
    %11 = vector.extract_strided_slice %5 {offsets = [16, 0], sizes = [128, 3], strides = [1, 1]} : vector<160x3xf32> to vector<128x3xf32>
    %c3 = arith.constant 3 : index
    %c0_11 = arith.constant 0 : index
    %c0_12 = arith.constant 0 : index
    %12 = vector.load %arg2[%c3, %c0_11, %c0_12] : memref<9x3x64xf32, #tpu.memory_space<vmem>>, vector<1x3x64xf32>
    %13 = vector.shape_cast %12 : vector<1x3x64xf32> to vector<3x64xf32>
    %cst_13 = arith.constant dense<0.000000e+00> : vector<128x64xf32>
    %14 = tpu.matmul %11, %13, %cst_13 {dimension_numbers = #tpu.dot_dimension_numbers<[1], [0], [0], [1], [0, 0, 1, 1], [], []>} : vector<128x3xf32>, vector<3x64xf32>, vector<128x64xf32> -> vector<128x64xf32>
    %15 = arith.addf %10, %14 : vector<128x64xf32>
    %16 = vector.extract_strided_slice %5 {offsets = [32, 0], sizes = [128, 3], strides = [1, 1]} : vector<160x3xf32> to vector<128x3xf32>
    %c6 = arith.constant 6 : index
    %c0_14 = arith.constant 0 : index
    %c0_15 = arith.constant 0 : index
    %17 = vector.load %arg2[%c6, %c0_14, %c0_15] : memref<9x3x64xf32, #tpu.memory_space<vmem>>, vector<1x3x64xf32>
    %18 = vector.shape_cast %17 : vector<1x3x64xf32> to vector<3x64xf32>
    %cst_16 = arith.constant dense<0.000000e+00> : vector<128x64xf32>
    %19 = tpu.matmul %16, %18, %cst_16 {dimension_numbers = #tpu.dot_dimension_numbers<[1], [0], [0], [1], [0, 0, 1, 1], [], []>} : vector<128x3xf32>, vector<3x64xf32>, vector<128x64xf32> -> vector<128x64xf32>
    %20 = arith.addf %15, %19 : vector<128x64xf32>
    %c0_17 = arith.constant 0 : index
    %c0_18 = arith.constant 0 : index
    %c1 = arith.constant 1 : index
    %c0_19 = arith.constant 0 : index
    %21 = vector.load %arg1[%c0_17, %c0_18, %c1, %c0_19] : memref<1x18x18x3xf32, #tpu.memory_space<vmem>>, vector<1x10x16x3xf32>
    %22 = vector.shape_cast %21 : vector<1x10x16x3xf32> to vector<10x16x3xf32>
    %23 = vector.shape_cast %22 : vector<10x16x3xf32> to vector<160x3xf32>
    %24 = vector.extract_strided_slice %23 {offsets = [0, 0], sizes = [128, 3], strides = [1, 1]} : vector<160x3xf32> to vector<128x3xf32>
    %c1_20 = arith.constant 1 : index
    %c0_21 = arith.constant 0 : index
    %c0_22 = arith.constant 0 : index
    %25 = vector.load %arg2[%c1_20, %c0_21, %c0_22] : memref<9x3x64xf32, #tpu.memory_space<vmem>>, vector<1x3x64xf32>
    %26 = vector.shape_cast %25 : vector<1x3x64xf32> to vector<3x64xf32>
    %cst_23 = arith.constant dense<0.000000e+00> : vector<128x64xf32>
    %27 = tpu.matmul %24, %26, %cst_23 {dimension_numbers = #tpu.dot_dimension_numbers<[1], [0], [0], [1], [0, 0, 1, 1], [], []>} : vector<128x3xf32>, vector<3x64xf32>, vector<128x64xf32> -> vector<128x64xf32>
    %28 = arith.addf %20, %27 : vector<128x64xf32>
    %29 = vector.extract_strided_slice %23 {offsets = [16, 0], sizes = [128, 3], strides = [1, 1]} : vector<160x3xf32> to vector<128x3xf32>
    %c4 = arith.constant 4 : index
    %c0_24 = arith.constant 0 : index
    %c0_25 = arith.constant 0 : index
    %30 = vector.load %arg2[%c4, %c0_24, %c0_25] : memref<9x3x64xf32, #tpu.memory_space<vmem>>, vector<1x3x64xf32>
    %31 = vector.shape_cast %30 : vector<1x3x64xf32> to vector<3x64xf32>
    %cst_26 = arith.constant dense<0.000000e+00> : vector<128x64xf32>
    %32 = tpu.matmul %29, %31, %cst_26 {dimension_numbers = #tpu.dot_dimension_numbers<[1], [0], [0], [1], [0, 0, 1, 1], [], []>} : vector<128x3xf32>, vector<3x64xf32>, vector<128x64xf32> -> vector<128x64xf32>
    %33 = arith.addf %28, %32 : vector<128x64xf32>
    %34 = vector.extract_strided_slice %23 {offsets = [32, 0], sizes = [128, 3], strides = [1, 1]} : vector<160x3xf32> to vector<128x3xf32>
    %c7 = arith.constant 7 : index
    %c0_27 = arith.constant 0 : index
    %c0_28 = arith.constant 0 : index
    %35 = vector.load %arg2[%c7, %c0_27, %c0_28] : memref<9x3x64xf32, #tpu.memory_space<vmem>>, vector<1x3x64xf32>
    %36 = vector.shape_cast %35 : vector<1x3x64xf32> to vector<3x64xf32>
    %cst_29 = arith.constant dense<0.000000e+00> : vector<128x64xf32>
    %37 = tpu.matmul %34, %36, %cst_29 {dimension_numbers = #tpu.dot_dimension_numbers<[1], [0], [0], [1], [0, 0, 1, 1], [], []>} : vector<128x3xf32>, vector<3x64xf32>, vector<128x64xf32> -> vector<128x64xf32>
    %38 = arith.addf %33, %37 : vector<128x64xf32>
    %c0_30 = arith.constant 0 : index
    %c0_31 = arith.constant 0 : index
    %c2 = arith.constant 2 : index
    %c0_32 = arith.constant 0 : index
    %39 = vector.load %arg1[%c0_30, %c0_31, %c2, %c0_32] : memref<1x18x18x3xf32, #tpu.memory_space<vmem>>, vector<1x10x16x3xf32>
    %40 = vector.shape_cast %39 : vector<1x10x16x3xf32> to vector<10x16x3xf32>
    %41 = vector.shape_cast %40 : vector<10x16x3xf32> to vector<160x3xf32>
    %42 = vector.extract_strided_slice %41 {offsets = [0, 0], sizes = [128, 3], strides = [1, 1]} : vector<160x3xf32> to vector<128x3xf32>
    %c2_33 = arith.constant 2 : index
    %c0_34 = arith.constant 0 : index
    %c0_35 = arith.constant 0 : index
    %43 = vector.load %arg2[%c2_33, %c0_34, %c0_35] : memref<9x3x64xf32, #tpu.memory_space<vmem>>, vector<1x3x64xf32>
    %44 = vector.shape_cast %43 : vector<1x3x64xf32> to vector<3x64xf32>
    %cst_36 = arith.constant dense<0.000000e+00> : vector<128x64xf32>
    %45 = tpu.matmul %42, %44, %cst_36 {dimension_numbers = #tpu.dot_dimension_numbers<[1], [0], [0], [1], [0, 0, 1, 1], [], []>} : vector<128x3xf32>, vector<3x64xf32>, vector<128x64xf32> -> vector<128x64xf32>
    %46 = arith.addf %38, %45 : vector<128x64xf32>
    %47 = vector.extract_strided_slice %41 {offsets = [16, 0], sizes = [128, 3], strides = [1, 1]} : vector<160x3xf32> to vector<128x3xf32>
    %c5 = arith.constant 5 : index
    %c0_37 = arith.constant 0 : index
    %c0_38 = arith.constant 0 : index
    %48 = vector.load %arg2[%c5, %c0_37, %c0_38] : memref<9x3x64xf32, #tpu.memory_space<vmem>>, vector<1x3x64xf32>
    %49 = vector.shape_cast %48 : vector<1x3x64xf32> to vector<3x64xf32>
    %cst_39 = arith.constant dense<0.000000e+00> : vector<128x64xf32>
    %50 = tpu.matmul %47, %49, %cst_39 {dimension_numbers = #tpu.dot_dimension_numbers<[1], [0], [0], [1], [0, 0, 1, 1], [], []>} : vector<128x3xf32>, vector<3x64xf32>, vector<128x64xf32> -> vector<128x64xf32>
    %51 = arith.addf %46, %50 : vector<128x64xf32>
    %52 = vector.extract_strided_slice %41 {offsets = [32, 0], sizes = [128, 3], strides = [1, 1]} : vector<160x3xf32> to vector<128x3xf32>
    %c8 = arith.constant 8 : index
    %c0_40 = arith.constant 0 : index
    %c0_41 = arith.constant 0 : index
    %53 = vector.load %arg2[%c8, %c0_40, %c0_41] : memref<9x3x64xf32, #tpu.memory_space<vmem>>, vector<1x3x64xf32>
    %54 = vector.shape_cast %53 : vector<1x3x64xf32> to vector<3x64xf32>
    %cst_42 = arith.constant dense<0.000000e+00> : vector<128x64xf32>
    %55 = tpu.matmul %52, %54, %cst_42 {dimension_numbers = #tpu.dot_dimension_numbers<[1], [0], [0], [1], [0, 0, 1, 1], [], []>} : vector<128x3xf32>, vector<3x64xf32>, vector<128x64xf32> -> vector<128x64xf32>
    %56 = arith.addf %51, %55 : vector<128x64xf32>
    %cst_43 = arith.constant 0.000000e+00 : f32
    %57 = vector.broadcast %cst_43 : f32 to vector<128x64xf32>
    %58 = arith.maximumf %56, %57 : vector<128x64xf32>
    %59 = vector.shape_cast %58 : vector<128x64xf32> to vector<8x16x64xf32>
    %c1_44 = arith.constant 1 : index
    %c8_45 = arith.constant 8 : index
    %c0_46 = arith.constant 0 : index
    %60 = vector.load %arg5[%c1_44, %c8_45, %c0_46] : memref<18x32x64xf32, #tpu.memory_space<vmem>>, vector<8x16x64xf32>
    tpu.vector_store %arg5[%c1_44, %c8_45, %c0_46], %59 {strides = array<i32>} : memref<18x32x64xf32, #tpu.memory_space<vmem>>, vector<8x16x64xf32>,
    %cst_47 = arith.constant 0.000000e+00 : f32
    %61 = vector.broadcast %cst_47 : f32 to vector<128x64xf32>
    %c0_48 = arith.constant 0 : index
    %c8_49 = arith.constant 8 : index
    %c0_50 = arith.constant 0 : index
    %c0_51 = arith.constant 0 : index
    %62 = vector.load %arg1[%c0_48, %c8_49, %c0_50, %c0_51] : memref<1x18x18x3xf32, #tpu.memory_space<vmem>>, vector<1x10x16x3xf32>
    %63 = vector.shape_cast %62 : vector<1x10x16x3xf32> to vector<10x16x3xf32>
    %64 = vector.shape_cast %63 : vector<10x16x3xf32> to vector<160x3xf32>
    %65 = vector.extract_strided_slice %64 {offsets = [0, 0], sizes = [128, 3], strides = [1, 1]} : vector<160x3xf32> to vector<128x3xf32>
    %c0_52 = arith.constant 0 : index
    %c0_53 = arith.constant 0 : index
    %c0_54 = arith.constant 0 : index
    %66 = vector.load %arg2[%c0_52, %c0_53, %c0_54] : memref<9x3x64xf32, #tpu.memory_space<vmem>>, vector<1x3x64xf32>
    %67 = vector.shape_cast %66 : vector<1x3x64xf32> to vector<3x64xf32>
    %cst_55 = arith.constant dense<0.000000e+00> : vector<128x64xf32>
    %68 = tpu.matmul %65, %67, %cst_55 {dimension_numbers = #tpu.dot_dimension_numbers<[1], [0], [0], [1], [0, 0, 1, 1], [], []>} : vector<128x3xf32>, vector<3x64xf32>, vector<128x64xf32> -> vector<128x64xf32>
    %69 = arith.addf %61, %68 : vector<128x64xf32>
    %70 = vector.extract_strided_slice %64 {offsets = [16, 0], sizes = [128, 3], strides = [1, 1]} : vector<160x3xf32> to vector<128x3xf32>
    %c3_56 = arith.constant 3 : index
    %c0_57 = arith.constant 0 : index
    %c0_58 = arith.constant 0 : index
    %71 = vector.load %arg2[%c3_56, %c0_57, %c0_58] : memref<9x3x64xf32, #tpu.memory_space<vmem>>, vector<1x3x64xf32>
    %72 = vector.shape_cast %71 : vector<1x3x64xf32> to vector<3x64xf32>
    %cst_59 = arith.constant dense<0.000000e+00> : vector<128x64xf32>
    %73 = tpu.matmul %70, %72, %cst_59 {dimension_numbers = #tpu.dot_dimension_numbers<[1], [0], [0], [1], [0, 0, 1, 1], [], []>} : vector<128x3xf32>, vector<3x64xf32>, vector<128x64xf32> -> vector<128x64xf32>
    %74 = arith.addf %69, %73 : vector<128x64xf32>
    %75 = vector.extract_strided_slice %64 {offsets = [32, 0], sizes = [128, 3], strides = [1, 1]} : vector<160x3xf32> to vector<128x3xf32>
    %c6_60 = arith.constant 6 : index
    %c0_61 = arith.constant 0 : index
    %c0_62 = arith.constant 0 : index
    %76 = vector.load %arg2[%c6_60, %c0_61, %c0_62] : memref<9x3x64xf32, #tpu.memory_space<vmem>>, vector<1x3x64xf32>
    %77 = vector.shape_cast %76 : vector<1x3x64xf32> to vector<3x64xf32>
    %cst_63 = arith.constant dense<0.000000e+00> : vector<128x64xf32>
    %78 = tpu.matmul %75, %77, %cst_63 {dimension_numbers = #tpu.dot_dimension_numbers<[1], [0], [0], [1], [0, 0, 1, 1], [], []>} : vector<128x3xf32>, vector<3x64xf32>, vector<128x64xf32> -> vector<128x64xf32>
    %79 = arith.addf %74, %78 : vector<128x64xf32>
    %c0_64 = arith.constant 0 : index
    %c8_65 = arith.constant 8 : index
    %c1_66 = arith.constant 1 : index
    %c0_67 = arith.constant 0 : index
    %80 = vector.load %arg1[%c0_64, %c8_65, %c1_66, %c0_67] : memref<1x18x18x3xf32, #tpu.memory_space<vmem>>, vector<1x10x16x3xf32>
    %81 = vector.shape_cast %80 : vector<1x10x16x3xf32> to vector<10x16x3xf32>
    %82 = vector.shape_cast %81 : vector<10x16x3xf32> to vector<160x3xf32>
    %83 = vector.extract_strided_slice %82 {offsets = [0, 0], sizes = [128, 3], strides = [1, 1]} : vector<160x3xf32> to vector<128x3xf32>
    %c1_68 = arith.constant 1 : index
    %c0_69 = arith.constant 0 : index
    %c0_70 = arith.constant 0 : index
    %84 = vector.load %arg2[%c1_68, %c0_69, %c0_70] : memref<9x3x64xf32, #tpu.memory_space<vmem>>, vector<1x3x64xf32>
    %85 = vector.shape_cast %84 : vector<1x3x64xf32> to vector<3x64xf32>
    %cst_71 = arith.constant dense<0.000000e+00> : vector<128x64xf32>
    %86 = tpu.matmul %83, %85, %cst_71 {dimension_numbers = #tpu.dot_dimension_numbers<[1], [0], [0], [1], [0, 0, 1, 1], [], []>} : vector<128x3xf32>, vector<3x64xf32>, vector<128x64xf32> -> vector<128x64xf32>
    %87 = arith.addf %79, %86 : vector<128x64xf32>
    %88 = vector.extract_strided_slice %82 {offsets = [16, 0], sizes = [128, 3], strides = [1, 1]} : vector<160x3xf32> to vector<128x3xf32>
    %c4_72 = arith.constant 4 : index
    %c0_73 = arith.constant 0 : index
    %c0_74 = arith.constant 0 : index
    %89 = vector.load %arg2[%c4_72, %c0_73, %c0_74] : memref<9x3x64xf32, #tpu.memory_space<vmem>>, vector<1x3x64xf32>
    %90 = vector.shape_cast %89 : vector<1x3x64xf32> to vector<3x64xf32>
    %cst_75 = arith.constant dense<0.000000e+00> : vector<128x64xf32>
    %91 = tpu.matmul %88, %90, %cst_75 {dimension_numbers = #tpu.dot_dimension_numbers<[1], [0], [0], [1], [0, 0, 1, 1], [], []>} : vector<128x3xf32>, vector<3x64xf32>, vector<128x64xf32> -> vector<128x64xf32>
    %92 = arith.addf %87, %91 : vector<128x64xf32>
    %93 = vector.extract_strided_slice %82 {offsets = [32, 0], sizes = [128, 3], strides = [1, 1]} : vector<160x3xf32> to vector<128x3xf32>
    %c7_76 = arith.constant 7 : index
    %c0_77 = arith.constant 0 : index
    %c0_78 = arith.constant 0 : index
    %94 = vector.load %arg2[%c7_76, %c0_77, %c0_78] : memref<9x3x64xf32, #tpu.memory_space<vmem>>, vector<1x3x64xf32>
    %95 = vector.shape_cast %94 : vector<1x3x64xf32> to vector<3x64xf32>
    %cst_79 = arith.constant dense<0.000000e+00> : vector<128x64xf32>
    %96 = tpu.matmul %93, %95, %cst_79 {dimension_numbers = #tpu.dot_dimension_numbers<[1], [0], [0], [1], [0, 0, 1, 1], [], []>} : vector<128x3xf32>, vector<3x64xf32>, vector<128x64xf32> -> vector<128x64xf32>
    %97 = arith.addf %92, %96 : vector<128x64xf32>
    %c0_80 = arith.constant 0 : index
    %c8_81 = arith.constant 8 : index
    %c2_82 = arith.constant 2 : index
    %c0_83 = arith.constant 0 : index
    %98 = vector.load %arg1[%c0_80, %c8_81, %c2_82, %c0_83] : memref<1x18x18x3xf32, #tpu.memory_space<vmem>>, vector<1x10x16x3xf32>
    %99 = vector.shape_cast %98 : vector<1x10x16x3xf32> to vector<10x16x3xf32>
    %100 = vector.shape_cast %99 : vector<10x16x3xf32> to vector<160x3xf32>
    %101 = vector.extract_strided_slice %100 {offsets = [0, 0], sizes = [128, 3], strides = [1, 1]} : vector<160x3xf32> to vector<128x3xf32>
    %c2_84 = arith.constant 2 : index
    %c0_85 = arith.constant 0 : index
    %c0_86 = arith.constant 0 : index
    %102 = vector.load %arg2[%c2_84, %c0_85, %c0_86] : memref<9x3x64xf32, #tpu.memory_space<vmem>>, vector<1x3x64xf32>
    %103 = vector.shape_cast %102 : vector<1x3x64xf32> to vector<3x64xf32>
    %cst_87 = arith.constant dense<0.000000e+00> : vector<128x64xf32>
    %104 = tpu.matmul %101, %103, %cst_87 {dimension_numbers = #tpu.dot_dimension_numbers<[1], [0], [0], [1], [0, 0, 1, 1], [], []>} : vector<128x3xf32>, vector<3x64xf32>, vector<128x64xf32> -> vector<128x64xf32>
    %105 = arith.addf %97, %104 : vector<128x64xf32>
    %106 = vector.extract_strided_slice %100 {offsets = [16, 0], sizes = [128, 3], strides = [1, 1]} : vector<160x3xf32> to vector<128x3xf32>
    %c5_88 = arith.constant 5 : index
    %c0_89 = arith.constant 0 : index
    %c0_90 = arith.constant 0 : index
    %107 = vector.load %arg2[%c5_88, %c0_89, %c0_90] : memref<9x3x64xf32, #tpu.memory_space<vmem>>, vector<1x3x64xf32>
    %108 = vector.shape_cast %107 : vector<1x3x64xf32> to vector<3x64xf32>
    %cst_91 = arith.constant dense<0.000000e+00> : vector<128x64xf32>
    %109 = tpu.matmul %106, %108, %cst_91 {dimension_numbers = #tpu.dot_dimension_numbers<[1], [0], [0], [1], [0, 0, 1, 1], [], []>} : vector<128x3xf32>, vector<3x64xf32>, vector<128x64xf32> -> vector<128x64xf32>
    %110 = arith.addf %105, %109 : vector<128x64xf32>
    %111 = vector.extract_strided_slice %100 {offsets = [32, 0], sizes = [128, 3], strides = [1, 1]} : vector<160x3xf32> to vector<128x3xf32>
    %c8_92 = arith.constant 8 : index
    %c0_93 = arith.constant 0 : index
    %c0_94 = arith.constant 0 : index
    %112 = vector.load %arg2[%c8_92, %c0_93, %c0_94] : memref<9x3x64xf32, #tpu.memory_space<vmem>>, vector<1x3x64xf32>
    %113 = vector.shape_cast %112 : vector<1x3x64xf32> to vector<3x64xf32>
    %cst_95 = arith.constant dense<0.000000e+00> : vector<128x64xf32>
    %114 = tpu.matmul %111, %113, %cst_95 {dimension_numbers = #tpu.dot_dimension_numbers<[1], [0], [0], [1], [0, 0, 1, 1], [], []>} : vector<128x3xf32>, vector<3x64xf32>, vector<128x64xf32> -> vector<128x64xf32>
    %115 = arith.addf %110, %114 : vector<128x64xf32>
    %cst_96 = arith.constant 0.000000e+00 : f32
    %116 = vector.broadcast %cst_96 : f32 to vector<128x64xf32>
    %117 = arith.maximumf %115, %116 : vector<128x64xf32>
    %118 = vector.shape_cast %117 : vector<128x64xf32> to vector<8x16x64xf32>
    %c9 = arith.constant 9 : index
    %c8_97 = arith.constant 8 : index
    %c0_98 = arith.constant 0 : index
    %119 = vector.load %arg5[%c9, %c8_97, %c0_98] : memref<18x32x64xf32, #tpu.memory_space<vmem>>, vector<8x16x64xf32>
    tpu.vector_store %arg5[%c9, %c8_97, %c0_98], %118 {strides = array<i32>} : memref<18x32x64xf32, #tpu.memory_space<vmem>>, vector<8x16x64xf32>,
    %cst_99 = arith.constant 0.000000e+00 : f32
    %120 = vector.broadcast %cst_99 : f32 to vector<128x64xf32>
    %c0_100 = arith.constant 0 : index
    %c7_101 = arith.constant 7 : index
    %c0_102 = arith.constant 0 : index
    %121 = vector.load %arg5[%c0_100, %c7_101, %c0_102] : memref<18x32x64xf32, #tpu.memory_space<vmem>>, vector<10x16x64xf32>
    %122 = vector.shape_cast %121 : vector<10x16x64xf32> to vector<160x64xf32>
    %123 = vector.extract_strided_slice %122 {offsets = [0, 0], sizes = [128, 64], strides = [1, 1]} : vector<160x64xf32> to vector<128x64xf32>
    %c0_103 = arith.constant 0 : index
    %c0_104 = arith.constant 0 : index
    %c0_105 = arith.constant 0 : index
    %124 = vector.load %arg3[%c0_103, %c0_104, %c0_105] : memref<9x64x64xf32, #tpu.memory_space<vmem>>, vector<1x64x64xf32>
    %125 = vector.shape_cast %124 : vector<1x64x64xf32> to vector<64x64xf32>
    %cst_106 = arith.constant dense<0.000000e+00> : vector<128x64xf32>
    %126 = tpu.matmul %123, %125, %cst_106 {dimension_numbers = #tpu.dot_dimension_numbers<[1], [0], [0], [1], [0, 0, 1, 1], [], []>} : vector<128x64xf32>, vector<64x64xf32>, vector<128x64xf32> -> vector<128x64xf32>
    %127 = arith.addf %120, %126 : vector<128x64xf32>
    %128 = vector.extract_strided_slice %122 {offsets = [16, 0], sizes = [128, 64], strides = [1, 1]} : vector<160x64xf32> to vector<128x64xf32>
    %c3_107 = arith.constant 3 : index
    %c0_108 = arith.constant 0 : index
    %c0_109 = arith.constant 0 : index
    %129 = vector.load %arg3[%c3_107, %c0_108, %c0_109] : memref<9x64x64xf32, #tpu.memory_space<vmem>>, vector<1x64x64xf32>
    %130 = vector.shape_cast %129 : vector<1x64x64xf32> to vector<64x64xf32>
    %cst_110 = arith.constant dense<0.000000e+00> : vector<128x64xf32>
    %131 = tpu.matmul %128, %130, %cst_110 {dimension_numbers = #tpu.dot_dimension_numbers<[1], [0], [0], [1], [0, 0, 1, 1], [], []>} : vector<128x64xf32>, vector<64x64xf32>, vector<128x64xf32> -> vector<128x64xf32>
    %132 = arith.addf %127, %131 : vector<128x64xf32>
    %133 = vector.extract_strided_slice %122 {offsets = [32, 0], sizes = [128, 64], strides = [1, 1]} : vector<160x64xf32> to vector<128x64xf32>
    %c6_111 = arith.constant 6 : index
    %c0_112 = arith.constant 0 : index
    %c0_113 = arith.constant 0 : index
    %134 = vector.load %arg3[%c6_111, %c0_112, %c0_113] : memref<9x64x64xf32, #tpu.memory_space<vmem>>, vector<1x64x64xf32>
    %135 = vector.shape_cast %134 : vector<1x64x64xf32> to vector<64x64xf32>
    %cst_114 = arith.constant dense<0.000000e+00> : vector<128x64xf32>
    %136 = tpu.matmul %133, %135, %cst_114 {dimension_numbers = #tpu.dot_dimension_numbers<[1], [0], [0], [1], [0, 0, 1, 1], [], []>} : vector<128x64xf32>, vector<64x64xf32>, vector<128x64xf32> -> vector<128x64xf32>
    %137 = arith.addf %132, %136 : vector<128x64xf32>
    %c0_115 = arith.constant 0 : index
    %c8_116 = arith.constant 8 : index
    %c0_117 = arith.constant 0 : index
    %138 = vector.load %arg5[%c0_115, %c8_116, %c0_117] : memref<18x32x64xf32, #tpu.memory_space<vmem>>, vector<10x16x64xf32>
    %139 = vector.shape_cast %138 : vector<10x16x64xf32> to vector<160x64xf32>
    %140 = vector.extract_strided_slice %139 {offsets = [0, 0], sizes = [128, 64], strides = [1, 1]} : vector<160x64xf32> to vector<128x64xf32>
    %c1_118 = arith.constant 1 : index
    %c0_119 = arith.constant 0 : index
    %c0_120 = arith.constant 0 : index
    %141 = vector.load %arg3[%c1_118, %c0_119, %c0_120] : memref<9x64x64xf32, #tpu.memory_space<vmem>>, vector<1x64x64xf32>
    %142 = vector.shape_cast %141 : vector<1x64x64xf32> to vector<64x64xf32>
    %cst_121 = arith.constant dense<0.000000e+00> : vector<128x64xf32>
    %143 = tpu.matmul %140, %142, %cst_121 {dimension_numbers = #tpu.dot_dimension_numbers<[1], [0], [0], [1], [0, 0, 1, 1], [], []>} : vector<128x64xf32>, vector<64x64xf32>, vector<128x64xf32> -> vector<128x64xf32>
    %144 = arith.addf %137, %143 : vector<128x64xf32>
    %145 = vector.extract_strided_slice %139 {offsets = [16, 0], sizes = [128, 64], strides = [1, 1]} : vector<160x64xf32> to vector<128x64xf32>
    %c4_122 = arith.constant 4 : index
    %c0_123 = arith.constant 0 : index
    %c0_124 = arith.constant 0 : index
    %146 = vector.load %arg3[%c4_122, %c0_123, %c0_124] : memref<9x64x64xf32, #tpu.memory_space<vmem>>, vector<1x64x64xf32>
    %147 = vector.shape_cast %146 : vector<1x64x64xf32> to vector<64x64xf32>
    %cst_125 = arith.constant dense<0.000000e+00> : vector<128x64xf32>
    %148 = tpu.matmul %145, %147, %cst_125 {dimension_numbers = #tpu.dot_dimension_numbers<[1], [0], [0], [1], [0, 0, 1, 1], [], []>} : vector<128x64xf32>, vector<64x64xf32>, vector<128x64xf32> -> vector<128x64xf32>
    %149 = arith.addf %144, %148 : vector<128x64xf32>
    %150 = vector.extract_strided_slice %139 {offsets = [32, 0], sizes = [128, 64], strides = [1, 1]} : vector<160x64xf32> to vector<128x64xf32>
    %c7_126 = arith.constant 7 : index
    %c0_127 = arith.constant 0 : index
    %c0_128 = arith.constant 0 : index
    %151 = vector.load %arg3[%c7_126, %c0_127, %c0_128] : memref<9x64x64xf32, #tpu.memory_space<vmem>>, vector<1x64x64xf32>
    %152 = vector.shape_cast %151 : vector<1x64x64xf32> to vector<64x64xf32>
    %cst_129 = arith.constant dense<0.000000e+00> : vector<128x64xf32>
    %153 = tpu.matmul %150, %152, %cst_129 {dimension_numbers = #tpu.dot_dimension_numbers<[1], [0], [0], [1], [0, 0, 1, 1], [], []>} : vector<128x64xf32>, vector<64x64xf32>, vector<128x64xf32> -> vector<128x64xf32>
    %154 = arith.addf %149, %153 : vector<128x64xf32>
    %c0_130 = arith.constant 0 : index
    %c9_131 = arith.constant 9 : index
    %c0_132 = arith.constant 0 : index
    %155 = vector.load %arg5[%c0_130, %c9_131, %c0_132] : memref<18x32x64xf32, #tpu.memory_space<vmem>>, vector<10x16x64xf32>
    %156 = vector.shape_cast %155 : vector<10x16x64xf32> to vector<160x64xf32>
    %157 = vector.extract_strided_slice %156 {offsets = [0, 0], sizes = [128, 64], strides = [1, 1]} : vector<160x64xf32> to vector<128x64xf32>
    %c2_133 = arith.constant 2 : index
    %c0_134 = arith.constant 0 : index
    %c0_135 = arith.constant 0 : index
    %158 = vector.load %arg3[%c2_133, %c0_134, %c0_135] : memref<9x64x64xf32, #tpu.memory_space<vmem>>, vector<1x64x64xf32>
    %159 = vector.shape_cast %158 : vector<1x64x64xf32> to vector<64x64xf32>
    %cst_136 = arith.constant dense<0.000000e+00> : vector<128x64xf32>
    %160 = tpu.matmul %157, %159, %cst_136 {dimension_numbers = #tpu.dot_dimension_numbers<[1], [0], [0], [1], [0, 0, 1, 1], [], []>} : vector<128x64xf32>, vector<64x64xf32>, vector<128x64xf32> -> vector<128x64xf32>
    %161 = arith.addf %154, %160 : vector<128x64xf32>
    %162 = vector.extract_strided_slice %156 {offsets = [16, 0], sizes = [128, 64], strides = [1, 1]} : vector<160x64xf32> to vector<128x64xf32>
    %c5_137 = arith.constant 5 : index
    %c0_138 = arith.constant 0 : index
    %c0_139 = arith.constant 0 : index
    %163 = vector.load %arg3[%c5_137, %c0_138, %c0_139] : memref<9x64x64xf32, #tpu.memory_space<vmem>>, vector<1x64x64xf32>
    %164 = vector.shape_cast %163 : vector<1x64x64xf32> to vector<64x64xf32>
    %cst_140 = arith.constant dense<0.000000e+00> : vector<128x64xf32>
    %165 = tpu.matmul %162, %164, %cst_140 {dimension_numbers = #tpu.dot_dimension_numbers<[1], [0], [0], [1], [0, 0, 1, 1], [], []>} : vector<128x64xf32>, vector<64x64xf32>, vector<128x64xf32> -> vector<128x64xf32>
    %166 = arith.addf %161, %165 : vector<128x64xf32>
    %167 = vector.extract_strided_slice %156 {offsets = [32, 0], sizes = [128, 64], strides = [1, 1]} : vector<160x64xf32> to vector<128x64xf32>
    %c8_141 = arith.constant 8 : index
    %c0_142 = arith.constant 0 : index
    %c0_143 = arith.constant 0 : index
    %168 = vector.load %arg3[%c8_141, %c0_142, %c0_143] : memref<9x64x64xf32, #tpu.memory_space<vmem>>, vector<1x64x64xf32>
    %169 = vector.shape_cast %168 : vector<1x64x64xf32> to vector<64x64xf32>
    %cst_144 = arith.constant dense<0.000000e+00> : vector<128x64xf32>
    %170 = tpu.matmul %167, %169, %cst_144 {dimension_numbers = #tpu.dot_dimension_numbers<[1], [0], [0], [1], [0, 0, 1, 1], [], []>} : vector<128x64xf32>, vector<64x64xf32>, vector<128x64xf32> -> vector<128x64xf32>
    %171 = arith.addf %166, %170 : vector<128x64xf32>
    %cst_145 = arith.constant 0.000000e+00 : f32
    %172 = vector.broadcast %cst_145 : f32 to vector<128x64xf32>
    %173 = arith.maximumf %171, %172 : vector<128x64xf32>
    %174 = arith.truncf %173 : vector<128x64xf32> to vector<128x64xbf16>
    %c0_146 = arith.constant 0 : index
    %c0_147 = arith.constant 0 : index
    %c0_148 = arith.constant 0 : index
    %175 = vector.load %arg4[%c0_146, %c0_147, %c0_148] : memref<1x256x64xbf16, #tpu.memory_space<vmem>>, vector<1x128x64xbf16>
    %176 = vector.shape_cast %175 : vector<1x128x64xbf16> to vector<128x64xbf16>
    %177 = vector.shape_cast %174 : vector<128x64xbf16> to vector<1x128x64xbf16>
    tpu.vector_store %arg4[%c0_146, %c0_147, %c0_148], %177 {strides = array<i32>} : memref<1x256x64xbf16, #tpu.memory_space<vmem>>, vector<1x128x64xbf16>,
    %cst_149 = arith.constant 0.000000e+00 : f32
    %178 = vector.broadcast %cst_149 : f32 to vector<128x64xf32>
    %c8_150 = arith.constant 8 : index
    %c7_151 = arith.constant 7 : index
    %c0_152 = arith.constant 0 : index
    %179 = vector.load %arg5[%c8_150, %c7_151, %c0_152] : memref<18x32x64xf32, #tpu.memory_space<vmem>>, vector<10x16x64xf32>
    %180 = vector.shape_cast %179 : vector<10x16x64xf32> to vector<160x64xf32>
    %181 = vector.extract_strided_slice %180 {offsets = [0, 0], sizes = [128, 64], strides = [1, 1]} : vector<160x64xf32> to vector<128x64xf32>
    %c0_153 = arith.constant 0 : index
    %c0_154 = arith.constant 0 : index
    %c0_155 = arith.constant 0 : index
    %182 = vector.load %arg3[%c0_153, %c0_154, %c0_155] : memref<9x64x64xf32, #tpu.memory_space<vmem>>, vector<1x64x64xf32>
    %183 = vector.shape_cast %182 : vector<1x64x64xf32> to vector<64x64xf32>
    %cst_156 = arith.constant dense<0.000000e+00> : vector<128x64xf32>
    %184 = tpu.matmul %181, %183, %cst_156 {dimension_numbers = #tpu.dot_dimension_numbers<[1], [0], [0], [1], [0, 0, 1, 1], [], []>} : vector<128x64xf32>, vector<64x64xf32>, vector<128x64xf32> -> vector<128x64xf32>
    %185 = arith.addf %178, %184 : vector<128x64xf32>
    %186 = vector.extract_strided_slice %180 {offsets = [16, 0], sizes = [128, 64], strides = [1, 1]} : vector<160x64xf32> to vector<128x64xf32>
    %c3_157 = arith.constant 3 : index
    %c0_158 = arith.constant 0 : index
    %c0_159 = arith.constant 0 : index
    %187 = vector.load %arg3[%c3_157, %c0_158, %c0_159] : memref<9x64x64xf32, #tpu.memory_space<vmem>>, vector<1x64x64xf32>
    %188 = vector.shape_cast %187 : vector<1x64x64xf32> to vector<64x64xf32>
    %cst_160 = arith.constant dense<0.000000e+00> : vector<128x64xf32>
    %189 = tpu.matmul %186, %188, %cst_160 {dimension_numbers = #tpu.dot_dimension_numbers<[1], [0], [0], [1], [0, 0, 1, 1], [], []>} : vector<128x64xf32>, vector<64x64xf32>, vector<128x64xf32> -> vector<128x64xf32>
    %190 = arith.addf %185, %189 : vector<128x64xf32>
    %191 = vector.extract_strided_slice %180 {offsets = [32, 0], sizes = [128, 64], strides = [1, 1]} : vector<160x64xf32> to vector<128x64xf32>
    %c6_161 = arith.constant 6 : index
    %c0_162 = arith.constant 0 : index
    %c0_163 = arith.constant 0 : index
    %192 = vector.load %arg3[%c6_161, %c0_162, %c0_163] : memref<9x64x64xf32, #tpu.memory_space<vmem>>, vector<1x64x64xf32>
    %193 = vector.shape_cast %192 : vector<1x64x64xf32> to vector<64x64xf32>
    %cst_164 = arith.constant dense<0.000000e+00> : vector<128x64xf32>
    %194 = tpu.matmul %191, %193, %cst_164 {dimension_numbers = #tpu.dot_dimension_numbers<[1], [0], [0], [1], [0, 0, 1, 1], [], []>} : vector<128x64xf32>, vector<64x64xf32>, vector<128x64xf32> -> vector<128x64xf32>
    %195 = arith.addf %190, %194 : vector<128x64xf32>
    %c8_165 = arith.constant 8 : index
    %c8_166 = arith.constant 8 : index
    %c0_167 = arith.constant 0 : index
    %196 = vector.load %arg5[%c8_165, %c8_166, %c0_167] : memref<18x32x64xf32, #tpu.memory_space<vmem>>, vector<10x16x64xf32>
    %197 = vector.shape_cast %196 : vector<10x16x64xf32> to vector<160x64xf32>
    %198 = vector.extract_strided_slice %197 {offsets = [0, 0], sizes = [128, 64], strides = [1, 1]} : vector<160x64xf32> to vector<128x64xf32>
    %c1_168 = arith.constant 1 : index
    %c0_169 = arith.constant 0 : index
    %c0_170 = arith.constant 0 : index
    %199 = vector.load %arg3[%c1_168, %c0_169, %c0_170] : memref<9x64x64xf32, #tpu.memory_space<vmem>>, vector<1x64x64xf32>
    %200 = vector.shape_cast %199 : vector<1x64x64xf32> to vector<64x64xf32>
    %cst_171 = arith.constant dense<0.000000e+00> : vector<128x64xf32>
    %201 = tpu.matmul %198, %200, %cst_171 {dimension_numbers = #tpu.dot_dimension_numbers<[1], [0], [0], [1], [0, 0, 1, 1], [], []>} : vector<128x64xf32>, vector<64x64xf32>, vector<128x64xf32> -> vector<128x64xf32>
    %202 = arith.addf %195, %201 : vector<128x64xf32>
    %203 = vector.extract_strided_slice %197 {offsets = [16, 0], sizes = [128, 64], strides = [1, 1]} : vector<160x64xf32> to vector<128x64xf32>
    %c4_172 = arith.constant 4 : index
    %c0_173 = arith.constant 0 : index
    %c0_174 = arith.constant 0 : index
    %204 = vector.load %arg3[%c4_172, %c0_173, %c0_174] : memref<9x64x64xf32, #tpu.memory_space<vmem>>, vector<1x64x64xf32>
    %205 = vector.shape_cast %204 : vector<1x64x64xf32> to vector<64x64xf32>
    %cst_175 = arith.constant dense<0.000000e+00> : vector<128x64xf32>
    %206 = tpu.matmul %203, %205, %cst_175 {dimension_numbers = #tpu.dot_dimension_numbers<[1], [0], [0], [1], [0, 0, 1, 1], [], []>} : vector<128x64xf32>, vector<64x64xf32>, vector<128x64xf32> -> vector<128x64xf32>
    %207 = arith.addf %202, %206 : vector<128x64xf32>
    %208 = vector.extract_strided_slice %197 {offsets = [32, 0], sizes = [128, 64], strides = [1, 1]} : vector<160x64xf32> to vector<128x64xf32>
    %c7_176 = arith.constant 7 : index
    %c0_177 = arith.constant 0 : index
    %c0_178 = arith.constant 0 : index
    %209 = vector.load %arg3[%c7_176, %c0_177, %c0_178] : memref<9x64x64xf32, #tpu.memory_space<vmem>>, vector<1x64x64xf32>
    %210 = vector.shape_cast %209 : vector<1x64x64xf32> to vector<64x64xf32>
    %cst_179 = arith.constant dense<0.000000e+00> : vector<128x64xf32>
    %211 = tpu.matmul %208, %210, %cst_179 {dimension_numbers = #tpu.dot_dimension_numbers<[1], [0], [0], [1], [0, 0, 1, 1], [], []>} : vector<128x64xf32>, vector<64x64xf32>, vector<128x64xf32> -> vector<128x64xf32>
    %212 = arith.addf %207, %211 : vector<128x64xf32>
    %c8_180 = arith.constant 8 : index
    %c9_181 = arith.constant 9 : index
    %c0_182 = arith.constant 0 : index
    %213 = vector.load %arg5[%c8_180, %c9_181, %c0_182] : memref<18x32x64xf32, #tpu.memory_space<vmem>>, vector<10x16x64xf32>
    %214 = vector.shape_cast %213 : vector<10x16x64xf32> to vector<160x64xf32>
    %215 = vector.extract_strided_slice %214 {offsets = [0, 0], sizes = [128, 64], strides = [1, 1]} : vector<160x64xf32> to vector<128x64xf32>
    %c2_183 = arith.constant 2 : index
    %c0_184 = arith.constant 0 : index
    %c0_185 = arith.constant 0 : index
    %216 = vector.load %arg3[%c2_183, %c0_184, %c0_185] : memref<9x64x64xf32, #tpu.memory_space<vmem>>, vector<1x64x64xf32>
    %217 = vector.shape_cast %216 : vector<1x64x64xf32> to vector<64x64xf32>
    %cst_186 = arith.constant dense<0.000000e+00> : vector<128x64xf32>
    %218 = tpu.matmul %215, %217, %cst_186 {dimension_numbers = #tpu.dot_dimension_numbers<[1], [0], [0], [1], [0, 0, 1, 1], [], []>} : vector<128x64xf32>, vector<64x64xf32>, vector<128x64xf32> -> vector<128x64xf32>
    %219 = arith.addf %212, %218 : vector<128x64xf32>
    %220 = vector.extract_strided_slice %214 {offsets = [16, 0], sizes = [128, 64], strides = [1, 1]} : vector<160x64xf32> to vector<128x64xf32>
    %c5_187 = arith.constant 5 : index
    %c0_188 = arith.constant 0 : index
    %c0_189 = arith.constant 0 : index
    %221 = vector.load %arg3[%c5_187, %c0_188, %c0_189] : memref<9x64x64xf32, #tpu.memory_space<vmem>>, vector<1x64x64xf32>
    %222 = vector.shape_cast %221 : vector<1x64x64xf32> to vector<64x64xf32>
    %cst_190 = arith.constant dense<0.000000e+00> : vector<128x64xf32>
    %223 = tpu.matmul %220, %222, %cst_190 {dimension_numbers = #tpu.dot_dimension_numbers<[1], [0], [0], [1], [0, 0, 1, 1], [], []>} : vector<128x64xf32>, vector<64x64xf32>, vector<128x64xf32> -> vector<128x64xf32>
    %224 = arith.addf %219, %223 : vector<128x64xf32>
    %225 = vector.extract_strided_slice %214 {offsets = [32, 0], sizes = [128, 64], strides = [1, 1]} : vector<160x64xf32> to vector<128x64xf32>
    %c8_191 = arith.constant 8 : index
    %c0_192 = arith.constant 0 : index
    %c0_193 = arith.constant 0 : index
    %226 = vector.load %arg3[%c8_191, %c0_192, %c0_193] : memref<9x64x64xf32, #tpu.memory_space<vmem>>, vector<1x64x64xf32>
    %227 = vector.shape_cast %226 : vector<1x64x64xf32> to vector<64x64xf32>
    %cst_194 = arith.constant dense<0.000000e+00> : vector<128x64xf32>
    %228 = tpu.matmul %225, %227, %cst_194 {dimension_numbers = #tpu.dot_dimension_numbers<[1], [0], [0], [1], [0, 0, 1, 1], [], []>} : vector<128x64xf32>, vector<64x64xf32>, vector<128x64xf32> -> vector<128x64xf32>
    %229 = arith.addf %224, %228 : vector<128x64xf32>
    %cst_195 = arith.constant 0.000000e+00 : f32
    %230 = vector.broadcast %cst_195 : f32 to vector<128x64xf32>
    %231 = arith.maximumf %229, %230 : vector<128x64xf32>
    %232 = arith.truncf %231 : vector<128x64xf32> to vector<128x64xbf16>
    %c0_196 = arith.constant 0 : index
    %c128 = arith.constant 128 : index
    %c0_197 = arith.constant 0 : index
    %233 = vector.load %arg4[%c0_196, %c128, %c0_197] : memref<1x256x64xbf16, #tpu.memory_space<vmem>>, vector<1x128x64xbf16>
    %234 = vector.shape_cast %233 : vector<1x128x64xbf16> to vector<128x64xbf16>
    %235 = vector.shape_cast %232 : vector<128x64xbf16> to vector<1x128x64xbf16>
    tpu.vector_store %arg4[%c0_196, %c128, %c0_197], %235 {strides = array<i32>} : memref<1x256x64xbf16, #tpu.memory_space<vmem>>, vector<1x128x64xbf16>,
    return
  }
  func.func @transform_0(%arg0: i32) -> (i32, i32, i32, i32) {
    %c0_i32 = arith.constant 0 : i32
    %c0_i32_0 = arith.constant 0 : i32
    %c0_i32_1 = arith.constant 0 : i32
    %c0_i32_2 = arith.constant 0 : i32
    return %arg0, %c0_i32, %c0_i32_0, %c0_i32_1 : i32, i32, i32, i32
  }
  func.func @transform_1(%arg0: i32) -> (i32, i32, i32) {
    %c0_i32 = arith.constant 0 : i32
    %c0_i32_0 = arith.constant 0 : i32
    %c0_i32_1 = arith.constant 0 : i32
    %c0_i32_2 = arith.constant 0 : i32
    return %c0_i32, %c0_i32_0, %c0_i32_1 : i32, i32, i32
  }
  func.func @transform_2(%arg0: i32) -> (i32, i32, i32) {
    %c0_i32 = arith.constant 0 : i32
    %c0_i32_0 = arith.constant 0 : i32
    %c0_i32_1 = arith.constant 0 : i32
    %c0_i32_2 = arith.constant 0 : i32
    return %c0_i32, %c0_i32_0, %c0_i32_1 : i32, i32, i32
  }
  func.func @transform_3(%arg0: i32) -> (i32, i32, i32) {
    %c0_i32 = arith.constant 0 : i32
    %c0_i32_0 = arith.constant 0 : i32
    %c0_i32_1 = arith.constant 0 : i32
    return %arg0, %c0_i32, %c0_i32_0 : i32, i32, i32
  }
}

module attributes {stable_mosaic.version = 11 : i64} {
  func.func @_fc1_kernel(%arg0: i32, %arg1: i32, %arg2: memref<2x8192xbf16, #tpu.memory_space<vmem>>, %arg3: memref<8192x128xbf16, #tpu.memory_space<vmem>>, %arg4: memref<2x128xf32, #tpu.memory_space<vmem>>) attributes {dimension_semantics = [#tpu.dimension_semantics<parallel>, #tpu.dimension_semantics<arbitrary>], iteration_bounds = array<i64: 2, 2>, scalar_prefetch = 0 : i64, scratch_operands = 0 : i64, tpu.core_type = #tpu.core_type<tc>, window_params = [{transform_indices = @transform_0, window_bounds = array<i64: 2, 8192>}, {transform_indices = @transform_1, window_bounds = array<i64: 8192, 128>}, {transform_indices = @transform_2, window_bounds = array<i64: 2, 128>}]} {
    %c0_i32 = arith.constant 0 : i32
    %0 = arith.cmpi eq, %arg1, %c0_i32 : i32
    %1 = arith.extui %0 : i1 to i32
    %c0_i32_0 = arith.constant 0 : i32
    %2 = arith.cmpi ne, %1, %c0_i32_0 : i32
    scf.if %2 {
      %cst_9 = arith.constant 0.000000e+00 : f32
      %12 = vector.broadcast %cst_9 : f32 to vector<2x128xf32>
      %c0_10 = arith.constant 0 : index
      %c0_11 = arith.constant 0 : index
      %13 = vector.load %arg4[%c0_10, %c0_11] : memref<2x128xf32, #tpu.memory_space<vmem>>, vector<2x128xf32>
      tpu.vector_store %arg4[%c0_10, %c0_11], %12 {strides = array<i32>} : memref<2x128xf32, #tpu.memory_space<vmem>>, vector<2x128xf32>,
    } else {
    }
    %c0 = arith.constant 0 : index
    %c0_1 = arith.constant 0 : index
    %3 = vector.load %arg4[%c0, %c0_1] : memref<2x128xf32, #tpu.memory_space<vmem>>, vector<2x128xf32>
    %c0_2 = arith.constant 0 : index
    %c0_3 = arith.constant 0 : index
    %4 = vector.load %arg2[%c0_2, %c0_3] : memref<2x8192xbf16, #tpu.memory_space<vmem>>, vector<2x8192xbf16>
    %c0_4 = arith.constant 0 : index
    %c0_5 = arith.constant 0 : index
    %5 = vector.load %arg3[%c0_4, %c0_5] : memref<8192x128xbf16, #tpu.memory_space<vmem>>, vector<8192x128xbf16>
    %cst = arith.constant dense<0.000000e+00> : vector<2x128xf32>
    %6 = tpu.matmul %4, %5, %cst {dimension_numbers = #tpu.dot_dimension_numbers<[1], [0], [0], [1], [0, 0, 1, 1], [], []>} : vector<2x8192xbf16>, vector<8192x128xbf16>, vector<2x128xf32> -> vector<2x128xf32>
    %7 = arith.addf %3, %6 : vector<2x128xf32>
    %c0_6 = arith.constant 0 : index
    %c0_7 = arith.constant 0 : index
    %8 = vector.load %arg4[%c0_6, %c0_7] : memref<2x128xf32, #tpu.memory_space<vmem>>, vector<2x128xf32>
    tpu.vector_store %arg4[%c0_6, %c0_7], %7 {strides = array<i32>} : memref<2x128xf32, #tpu.memory_space<vmem>>, vector<2x128xf32>,
    %c1_i32 = arith.constant 1 : i32
    %9 = arith.cmpi eq, %arg1, %c1_i32 : i32
    %10 = arith.extui %9 : i1 to i32
    %c0_i32_8 = arith.constant 0 : i32
    %11 = arith.cmpi ne, %10, %c0_i32_8 : i32
    scf.if %11 {
      %c0_9 = arith.constant 0 : index
      %c0_10 = arith.constant 0 : index
      %12 = vector.load %arg4[%c0_9, %c0_10] : memref<2x128xf32, #tpu.memory_space<vmem>>, vector<2x128xf32>
      %cst_11 = arith.constant 0.000000e+00 : f32
      %13 = vector.broadcast %cst_11 : f32 to vector<2x128xf32>
      %14 = arith.maximumf %12, %13 : vector<2x128xf32>
      %c0_12 = arith.constant 0 : index
      %c0_13 = arith.constant 0 : index
      %15 = vector.load %arg4[%c0_12, %c0_13] : memref<2x128xf32, #tpu.memory_space<vmem>>, vector<2x128xf32>
      tpu.vector_store %arg4[%c0_12, %c0_13], %14 {strides = array<i32>} : memref<2x128xf32, #tpu.memory_space<vmem>>, vector<2x128xf32>,
    } else {
    }
    return
  }
  func.func @transform_0(%arg0: i32, %arg1: i32) -> (i32, i32) {
    %c0_i32 = arith.constant 0 : i32
    %c0_i32_0 = arith.constant 0 : i32
    return %c0_i32, %arg1 : i32, i32
  }
  func.func @transform_1(%arg0: i32, %arg1: i32) -> (i32, i32) {
    %c0_i32 = arith.constant 0 : i32
    return %arg1, %arg0 : i32, i32
  }
  func.func @transform_2(%arg0: i32, %arg1: i32) -> (i32, i32) {
    %c0_i32 = arith.constant 0 : i32
    %c0_i32_0 = arith.constant 0 : i32
    return %c0_i32, %arg0 : i32, i32
  }
}

module attributes {stable_mosaic.version = 11 : i64} {
  func.func @_tail_kernel(%arg0: i32, %arg1: memref<2x256xf32, #tpu.memory_space<vmem>>, %arg2: memref<256x256xf32, #tpu.memory_space<vmem>>, %arg3: memref<256x10xf32, #tpu.memory_space<vmem>>, %arg4: memref<2x10xf32, #tpu.memory_space<vmem>>, %arg5: memref<2x256xf32, #tpu.memory_space<vmem>>) attributes {dimension_semantics = [#tpu.dimension_semantics<arbitrary>], iteration_bounds = array<i64: 1>, scalar_prefetch = 0 : i64, scratch_operands = 0 : i64, tpu.core_type = #tpu.core_type<tc>, window_params = [{pipeline_mode = #tpu.pipeline_mode<synchronous>, transform_indices = @transform_0, window_bounds = array<i64: 2, 256>}, {pipeline_mode = #tpu.pipeline_mode<synchronous>, transform_indices = @transform_1, window_bounds = array<i64: 256, 256>}, {pipeline_mode = #tpu.pipeline_mode<synchronous>, transform_indices = @transform_2, window_bounds = array<i64: 256, 10>}, {pipeline_mode = #tpu.pipeline_mode<synchronous>, transform_indices = @transform_3, window_bounds = array<i64: 2, 10>}, {pipeline_mode = #tpu.pipeline_mode<synchronous>, transform_indices = @transform_4, window_bounds = array<i64: 2, 256>}]} {
    %c0 = arith.constant 0 : index
    %c0_0 = arith.constant 0 : index
    %0 = vector.load %arg1[%c0, %c0_0] : memref<2x256xf32, #tpu.memory_space<vmem>>, vector<2x256xf32>
    %c0_1 = arith.constant 0 : index
    %c0_2 = arith.constant 0 : index
    %1 = vector.load %arg2[%c0_1, %c0_2] : memref<256x256xf32, #tpu.memory_space<vmem>>, vector<256x256xf32>
    %cst = arith.constant dense<0.000000e+00> : vector<2x256xf32>
    %2 = tpu.matmul %0, %1, %cst {dimension_numbers = #tpu.dot_dimension_numbers<[1], [0], [0], [1], [0, 0, 1, 1], [], []>} : vector<2x256xf32>, vector<256x256xf32>, vector<2x256xf32> -> vector<2x256xf32>
    %cst_3 = arith.constant 0.000000e+00 : f32
    %3 = vector.broadcast %cst_3 : f32 to vector<2x256xf32>
    %4 = arith.maximumf %2, %3 : vector<2x256xf32>
    %c0_4 = arith.constant 0 : index
    %c0_5 = arith.constant 0 : index
    %5 = vector.load %arg5[%c0_4, %c0_5] : memref<2x256xf32, #tpu.memory_space<vmem>>, vector<2x256xf32>
    tpu.vector_store %arg5[%c0_4, %c0_5], %4 {strides = array<i32>} : memref<2x256xf32, #tpu.memory_space<vmem>>, vector<2x256xf32>,
    %c0_6 = arith.constant 0 : index
    %c0_7 = arith.constant 0 : index
    %6 = vector.load %arg3[%c0_6, %c0_7] : memref<256x10xf32, #tpu.memory_space<vmem>>, vector<256x10xf32>
    %cst_8 = arith.constant dense<0.000000e+00> : vector<2x10xf32>
    %7 = tpu.matmul %4, %6, %cst_8 {dimension_numbers = #tpu.dot_dimension_numbers<[1], [0], [0], [1], [0, 0, 1, 1], [], []>} : vector<2x256xf32>, vector<256x10xf32>, vector<2x10xf32> -> vector<2x10xf32>
    %c0_9 = arith.constant 0 : index
    %c0_10 = arith.constant 0 : index
    %8 = vector.load %arg4[%c0_9, %c0_10] : memref<2x10xf32, #tpu.memory_space<vmem>>, vector<2x10xf32>
    tpu.vector_store %arg4[%c0_9, %c0_10], %7 {strides = array<i32>} : memref<2x10xf32, #tpu.memory_space<vmem>>, vector<2x10xf32>,
    return
  }
  func.func @transform_0(%arg0: i32) -> (i32, i32) {
    %c0_i32 = arith.constant 0 : i32
    %c0_i32_0 = arith.constant 0 : i32
    %c0_i32_1 = arith.constant 0 : i32
    return %c0_i32, %c0_i32_0 : i32, i32
  }
  func.func @transform_1(%arg0: i32) -> (i32, i32) {
    %c0_i32 = arith.constant 0 : i32
    %c0_i32_0 = arith.constant 0 : i32
    %c0_i32_1 = arith.constant 0 : i32
    return %c0_i32, %c0_i32_0 : i32, i32
  }
  func.func @transform_2(%arg0: i32) -> (i32, i32) {
    %c0_i32 = arith.constant 0 : i32
    %c0_i32_0 = arith.constant 0 : i32
    %c0_i32_1 = arith.constant 0 : i32
    return %c0_i32, %c0_i32_0 : i32, i32
  }
  func.func @transform_3(%arg0: i32) -> (i32, i32) {
    %c0_i32 = arith.constant 0 : i32
    %c0_i32_0 = arith.constant 0 : i32
    %c0_i32_1 = arith.constant 0 : i32
    return %c0_i32, %c0_i32_0 : i32, i32
  }
  func.func @transform_4(%arg0: i32) -> (i32, i32) {
    %c0_i32 = arith.constant 0 : i32
    %c0_i32_0 = arith.constant 0 : i32
    %c0_i32_1 = arith.constant 0 : i32
    return %c0_i32, %c0_i32_0 : i32, i32
  }
}

</mosaic_0001>

<bundles_post_ra>
// kernel: conv2_forward.5
= control target key start
LH: loop header
LB: loop body
LE: loop exit
PB: predicated region body
PF: predicated region fallthrough
CT: control target
= control target key end

     0   :  { %10 = vsyncpa [#allocation3], 0  ;;  %s841_s0 = inlined_call_operand.vmem [shape: f32[2,256], index: 0, kind: input, shape index: {}]   ;;  %s842_s1 = inlined_call_operand.vmem [shape: f32[256,256], index: 1, kind: input, shape index: {}]   ;;  %s843_s2 = inlined_call_operand.vmem [shape: f32[256,10], index: 2, kind: input, shape index: {}]   ;;  %s844_s3 = inlined_call_operand.hbm [shape: f32[2,10], index: 3, kind: output, shape index: {0}]   ;;  %s845_s4 = inlined_call_operand.hbm [shape: f32[2,256], index: 4, kind: output, shape index: {1}]  }
   0x1   :  { %v20_v0 = vld [vmem:[%s842_s1 + $0x8] sm:$0xff]  ;;  %v22_v1 = vld [vmem:[%s842_s1 + $0x18] sm:$0xff]  ;;  %v19_v2 = vld [vmem:[%s842_s1] sm:$0xff] }
   0x2   :  { %v348_v3 = vpack.c.bf16 %v22_v1, %v20_v0  ;;  %v21_v4 = vld [vmem:[%s842_s1 + $0x10] sm:$0xff]  ;;  %v24_v5 = vld [vmem:[%s842_s1 + $0x28] sm:$0xff]  ;;  %v26_v6 = vld [vmem:[%s842_s1 + $0x38] sm:$0xff] }
   0x3   :  { %v350_v7 = vpack.c.bf16 %v21_v4, %v19_v2  ;;  %v352_v8 = vpack.c.bf16 %v26_v6, %v24_v5  ;;  %v23_v9 = vld [vmem:[%s842_s1 + $0x20] sm:$0xff]  ;;  %v25_v10 = vld [vmem:[%s842_s1 + $0x30] sm:$0xff]  ;;  %v28_v11 = vld [vmem:[%s842_s1 + $0x48] sm:$0xff] }
   0x4   :  { %349 = vmatprep.subr.bf16.mxu0 %v348_v3  ;;  %v30_v12 = vld [vmem:[%s842_s1 + $0x58] sm:$0xff]  ;;  %v354_v13 = vpack.c.bf16 %v25_v10, %v23_v9  ;;  %v27_v15 = vld [vmem:[%s842_s1 + $0x40] sm:$0xff]  ;;  %v29_v16 = vld [vmem:[%s842_s1 + $0x50] sm:$0xff] }
   0x5   :  { %351 = vmatpush1.bf16.msra.mxu0 %v350_v7  ;;  %v356_v14 = vpack.c.bf16 %v30_v12, %v28_v11  ;;  %v32_v17 = vld [vmem:[%s842_s1 + $0x68] sm:$0xff]  ;;  %v34_v18 = vld [vmem:[%s842_s1 + $0x78] sm:$0xff]  ;;  %v358_v19 = vpack.c.bf16 %v29_v16, %v27_v15  ;;  %v31_v21 = vld [vmem:[%s842_s1 + $0x60] sm:$0xff] }
   0x6   :  { %353 = vmatprep.subr.bf16.mxu0 %v352_v8  ;;  %v360_v20 = vpack.c.bf16 %v34_v18, %v32_v17  ;;  %v33_v22 = vld [vmem:[%s842_s1 + $0x70] sm:$0xff]  ;;  %v36_v23 = vld [vmem:[%s842_s1 + $0x88] sm:$0xff]  ;;  %v38_v24 = vld [vmem:[%s842_s1 + $0x98] sm:$0xff] }
   0x7   :  { %v362_v25 = vpack.c.bf16 %v33_v22, %v31_v21  ;;  %v364_v26 = vpack.c.bf16 %v38_v24, %v36_v23  ;;  %v35_v27 = vld [vmem:[%s842_s1 + $0x80] sm:$0xff]  ;;  %v37_v28 = vld [vmem:[%s842_s1 + $0x90] sm:$0xff]  ;;  %v40_v29 = vld [vmem:[%s842_s1 + $0xa8] sm:$0xff] }
   0x8   :  { %v42_v30 = vld [vmem:[%s842_s1 + $0xb8] sm:$0xff]  ;;  %v366_v31 = vpack.c.bf16 %v37_v28, %v35_v27  ;;  %v39_v33 = vld [vmem:[%s842_s1 + $0xa0] sm:$0xff]  ;;  %v41_v34 = vld [vmem:[%s842_s1 + $0xb0] sm:$0xff] }
   0x9   :  { %355 = vmatpush1.bf16.msra.mxu0 %v354_v13  ;;  %v368_v32 = vpack.c.bf16 %v42_v30, %v40_v29  ;;  %v44_v35 = vld [vmem:[%s842_s1 + $0xc8] sm:$0xff]  ;;  %v46_v36 = vld [vmem:[%s842_s1 + $0xd8] sm:$0xff]  ;;  %v370_v37 = vpack.c.bf16 %v41_v34, %v39_v33  ;;  %v43_v38 = vld [vmem:[%s842_s1 + $0xc0] sm:$0xff] }
   0xa   :  { %357 = vmatprep.subr.bf16.mxu0 %v356_v14  ;;  %v45_v39 = vld [vmem:[%s842_s1 + $0xd0] sm:$0xff]  ;;  %v48_v40 = vld [vmem:[%s842_s1 + $0xe8] sm:$0xff]  ;;  %v372_v41 = vpack.c.bf16 %v46_v36, %v44_v35  ;;  %v50_v42 = vld [vmem:[%s842_s1 + $0xf8] sm:$0xff] }
   0xb   :  { %v614_v43 = vld.sshfl [vmem:[%s841_s0] sm:$0x33 pattern:$0x76325410]  ;;  %v196_v46 = vld [vmem:[%s843_s2 + $0x88] sm:$0xff]  ;;  %v197_v51 = vld [vmem:[%s843_s2 + $0x90] sm:$0xff]  ;;  %v374_v54 = vpack.c.bf16 %v45_v39, %v43_v38  ;;  %v376_v59 = vpack.c.bf16 %v50_v42, %v48_v40 }
   0xc   :  { %v195_v44 = vld [vmem:[%s843_s2 + $0x80] sm:$0xff]  ;;  %v91_v45 = vcombine.high %v614_v43, %v614_v43  ;;  %v180_v48 = vld [vmem:[%s843_s2 + $0x8] sm:$0xff]  ;;  %v198_v52 = vld [vmem:[%s843_s2 + $0x98] sm:$0xff] }
   0xd   :  { %359 = vmatpush1.bf16.msra.mxu0 %v358_v19  ;;  %v179_v47 = vld [vmem:[%s843_s2] sm:$0xff]  ;;  %v412_v49 = vpack.c.bf16 %v196_v46, %v195_v44  ;;  %v181_v53 = vld [vmem:[%s843_s2 + $0x10] sm:$0xff]  ;;  %v416_v55 = vpack.c.bf16 %v198_v52, %v197_v51  ;;  %v182_v56 = vld [vmem:[%s843_s2 + $0x18] sm:$0xff] }
   0xe   :  { %361 = vmatprep.subr.bf16.mxu0 %v360_v20  ;;  %v414_v50 = vpack.c.bf16 %v180_v48, %v179_v47  ;;  %158 = vmatprep.mubr.f32.mxu0 %v91_v45  ;;  %v199_v57 = vld [vmem:[%s843_s2 + $0xa0] sm:$0xff]  ;;  %v200_v58 = vld [vmem:[%s843_s2 + $0xa8] sm:$0xff]  ;;  %v49_v61 = vld [vmem:[%s842_s1 + $0xf0] sm:$0xff]  ;;  %v418_v0 = vpack.c.bf16 %v182_v56, %v181_v53 }
   0xf   :  { %v47_v60 = vld [vmem:[%s842_s1 + $0xe0] sm:$0xff]  ;;  %413 = vmatprep.subr.bf16.mxu1 %v412_v49  ;;  %v52_v62 = vld [vmem:[%s842_s1 + $0x108] sm:$0xff]  ;;  %v54_v63 = vld [vmem:[%s842_s1 + $0x118] sm:$0xff]  ;;  %v420_v1 = vpack.c.bf16 %v200_v58, %v199_v57 }
  0x10   :  { %415 = vmatpush3.bf16.msra.mxu1 %v414_v50  ;;  %v183_v2 = vld [vmem:[%s843_s2 + $0x20] sm:$0xff]  ;;  %v184_v3 = vld [vmem:[%s843_s2 + $0x28] sm:$0xff]  ;;  %v378_v4 = vpack.c.bf16 %v49_v61, %v47_v60  ;;  %v201_v5 = vld [vmem:[%s843_s2 + $0xb0] sm:$0xff]  ;;  %v380_v7 = vpack.c.bf16 %v54_v63, %v52_v62 }
  0x11   :  { %363 = vmatpush1.bf16.msra.mxu0 %v362_v25  ;;  %417 = vmatprep.subr.bf16.mxu1 %v416_v55  ;;  %v202_v6 = vld [vmem:[%s843_s2 + $0xb8] sm:$0xff]  ;;  %v51_v8 = vld [vmem:[%s842_s1 + $0x100] sm:$0xff]  ;;  %v53_v9 = vld [vmem:[%s842_s1 + $0x110] sm:$0xff]  ;;  %v422_v12 = vpack.c.bf16 %v184_v3, %v183_v2 }
  0x12   :  { %365 = vmatprep.subr.bf16.mxu0 %v364_v26  ;;  %v56_v10 = vld [vmem:[%s842_s1 + $0x128] sm:$0xff]  ;;  %v58_v11 = vld [vmem:[%s842_s1 + $0x138] sm:$0xff]  ;;  %v424_v13 = vpack.c.bf16 %v202_v6, %v201_v5  ;;  %v185_v14 = vld [vmem:[%s843_s2 + $0x30] sm:$0xff] }
  0x13   :  { %v186_v15 = vld [vmem:[%s843_s2 + $0x38] sm:$0xff] }
  0x14   :  { %419 = vmatpush3.bf16.msra.mxu1 %v418_v0 }
  0x15   :  { %367 = vmatpush1.bf16.msra.mxu0 %v366_v31  ;;  %421 = vmatprep.subr.bf16.mxu1 %v420_v1 }
  0x16   :  { %369 = vmatprep.subr.bf16.mxu0 %v368_v32 }
  0x19   :  { %371 = vmatpush1.bf16.msra.mxu0 %v370_v37 }
  0x1a   :  { %373 = vmatprep.subr.bf16.mxu0 %v372_v41 }
  0x1d   :  { %375 = vmatpush1.bf16.msra.mxu0 %v374_v54 }
  0x1e   :  { %377 = vmatprep.subr.bf16.mxu0 %v376_v59 }
  0x1f   :  { %11 = vsyncpa [#allocation5], 0  ;;  %v382_v16 = vpack.c.bf16 %v53_v9, %v51_v8  ;;  %v203_v17 = vld [vmem:[%s843_s2 + $0xc0] sm:$0xff]  ;;  %v204_v18 = vld [vmem:[%s843_s2 + $0xc8] sm:$0xff]  ;;  %v384_v19 = vpack.c.bf16 %v58_v11, %v56_v10  ;;  %423 = vmatpush3.bf16.msra.mxu1 %v422_v12  ;;  %v426_v24 = vpack.c.bf16 %v186_v15, %v185_v14  ;;  %s494_s21 = smov [#allocation4]  }
  0x20   :  { %v55_v20 = vld [vmem:[%s842_s1 + $0x120] sm:$0xff]  ;;  %v57_v21 = vld [vmem:[%s842_s1 + $0x130] sm:$0xff]  ;;  %v60_v22 = vld [vmem:[%s842_s1 + $0x148] sm:$0xff]  ;;  %425 = vmatprep.subr.bf16.mxu1 %v424_v13  ;;  %v428_v25 = vpack.c.bf16 %v204_v18, %v203_v17  ;;  %s299_s22 = sshll.u32 %s494_s21, 4  ;;  %s300_s22 = int_to_ptr.vmem [resolvable:$true] %s299_s22 }
  0x21   :  { %379 = vmatpush1.bf16.msra.mxu0 %v378_v4  ;;  %v62_v23 = vld [vmem:[%s842_s1 + $0x158] sm:$0xff]  ;;  %v187_v26 = vld [vmem:[%s843_s2 + $0x40] sm:$0xff]  ;;  %v188_v27 = vld [vmem:[%s843_s2 + $0x48] sm:$0xff]  ;;  %v386_v28 = vpack.c.bf16 %v57_v21, %v55_v20  ;;  %s446_s23 = scalar_lea.vmem %s300_s22, 64  ;;  %p451_p1 = scmp.lt.s32.totalorder %s300_s22, %s300_s22 }
  0x22   :  { %381 = vmatprep.subr.bf16.mxu0 %v380_v7  ;;  %v205_v29 = vld [vmem:[%s843_s2 + $0xd0] sm:$0xff]  ;;  %v206_v30 = vld [vmem:[%s843_s2 + $0xd8] sm:$0xff]  ;;  %v388_v31 = vpack.c.bf16 %v62_v23, %v60_v22  ;;  %v59_v32 = vld [vmem:[%s842_s1 + $0x140] sm:$0xff]  ;;  %v430_v36 = vpack.c.bf16 %v188_v27, %v187_v26  ;;  %p447_p0 = scmp.ne.s32.totalorder %s300_s22, %s446_s23  ;;  %p452_p2 = scmp.lt.s32.totalorder %s446_s23, %s446_s23 }
  0x23   :  { %v61_v33 = vld [vmem:[%s842_s1 + $0x150] sm:$0xff]  ;;  %v64_v34 = vld [vmem:[%s842_s1 + $0x168] sm:$0xff]  ;;  %v66_v35 = vld [vmem:[%s842_s1 + $0x178] sm:$0xff]  ;;  %427 = vmatpush3.bf16.msra.mxu1 %v426_v24  ;;  %v432_v37 = vpack.c.bf16 %v206_v30, %v205_v29 }
  0x24   :  { %429 = vmatprep.subr.bf16.mxu1 %v428_v25  ;;  %v189_v38 = vld [vmem:[%s843_s2 + $0x50] sm:$0xff]  ;;  %v190_v39 = vld [vmem:[%s843_s2 + $0x58] sm:$0xff]  ;;  %v390_v40 = vpack.c.bf16 %v61_v33, %v59_v32  ;;  %v207_v41 = vld [vmem:[%s843_s2 + $0xe0] sm:$0xff]  ;;  %v392_v44 = vpack.c.bf16 %v66_v35, %v64_v34  ;;  %p453_p3 = por %p452_p2, %p451_p1 }
  0x25   :  { %383 = vmatpush1.bf16.msra.mxu0 %v382_v16  ;;  %v208_v42 = vld [vmem:[%s843_s2 + $0xe8] sm:$0xff]  ;;  %v63_v45 = vld [vmem:[%s842_s1 + $0x160] sm:$0xff]  ;;  %v65_v46 = vld [vmem:[%s842_s1 + $0x170] sm:$0xff]  ;;  %v434_v49 = vpack.c.bf16 %v190_v39, %v189_v38 }
  0x26   :  { %385 = vmatprep.subr.bf16.mxu0 %v384_v19  ;;  %v68_v47 = vld [vmem:[%s842_s1 + $0x188] sm:$0xff]  ;;  %v70_v48 = vld [vmem:[%s842_s1 + $0x198] sm:$0xff]  ;;  %v436_v50 = vpack.c.bf16 %v208_v42, %v207_v41  ;;  %v191_v51 = vld [vmem:[%s843_s2 + $0x60] sm:$0xff]  ;;  %v394_v53 = vpack.c.bf16 %v65_v46, %v63_v45  ;;  %p454_p4 = pnand %p453_p3, %p447_p0 }
  0x27   :  { %431 = vmatpush3.bf16.msra.mxu1 %v430_v36  ;;  %v192_v52 = vld [vmem:[%s843_s2 + $0x68] sm:$0xff]  ;;  %v396_v54 = vpack.c.bf16 %v70_v48, %v68_v47  ;;  %v67_v55 = vld [vmem:[%s842_s1 + $0x180] sm:$0xff]  ;;  %v69_v56 = vld [vmem:[%s842_s1 + $0x190] sm:$0xff] }
  0x28   :  { %433 = vmatprep.subr.bf16.mxu1 %v432_v37  ;;  %v72_v57 = vld [vmem:[%s842_s1 + $0x1a8] sm:$0xff]  ;;  %v74_v58 = vld [vmem:[%s842_s1 + $0x1b8] sm:$0xff]  ;;  %v438_v59 = vpack.c.bf16 %v192_v52, %v191_v51  ;;  %v398_v60 = vpack.c.bf16 %v69_v56, %v67_v55  ;;  %v71_v62 = vld [vmem:[%s842_s1 + $0x1a0] sm:$0xff] }
  0x29   :  { %387 = vmatpush1.bf16.msra.mxu0 %v386_v28  ;;  %v400_v61 = vpack.c.bf16 %v74_v58, %v72_v57  ;;  %v73_v63 = vld [vmem:[%s842_s1 + $0x1b0] sm:$0xff]  ;;  %v76_v0 = vld [vmem:[%s842_s1 + $0x1c8] sm:$0xff]  ;;  %v78_v1 = vld [vmem:[%s842_s1 + $0x1d8] sm:$0xff] }
  0x2a   :  { %389 = vmatprep.subr.bf16.mxu0 %v388_v31  ;;  %v402_v2 = vpack.c.bf16 %v73_v63, %v71_v62  ;;  %v404_v3 = vpack.c.bf16 %v78_v1, %v76_v0  ;;  %v75_v4 = vld [vmem:[%s842_s1 + $0x1c0] sm:$0xff]  ;;  %v77_v5 = vld [vmem:[%s842_s1 + $0x1d0] sm:$0xff]  ;;  %v80_v6 = vld [vmem:[%s842_s1 + $0x1e8] sm:$0xff] }
  0x2b   :  { %435 = vmatpush3.bf16.msra.mxu1 %v434_v49  ;;  %v82_v7 = vld [vmem:[%s842_s1 + $0x1f8] sm:$0xff]  ;;  %v406_v8 = vpack.c.bf16 %v77_v5, %v75_v4  ;;  %v79_v10 = vld [vmem:[%s842_s1 + $0x1e0] sm:$0xff]  ;;  %v81_v11 = vld [vmem:[%s842_s1 + $0x1f0] sm:$0xff] }
  0x2c   :  { %437 = vmatprep.subr.bf16.mxu1 %v436_v50  ;;  %v408_v9 = vpack.c.bf16 %v82_v7, %v80_v6  ;;  %v410_v12 = vpack.c.bf16 %v81_v11, %v79_v10  ;;  %v209_v13 = vld [vmem:[%s843_s2 + $0xf0] sm:$0xff]  ;;  %v210_v14 = vld [vmem:[%s843_s2 + $0xf8] sm:$0xff] }
  0x2d   :  { %391 = vmatpush1.bf16.msra.mxu0 %v390_v40  ;;  %v440_v15 = vpack.c.bf16 %v210_v14, %v209_v13  ;;  %v193_v16 = vld [vmem:[%s843_s2 + $0x70] sm:$0xff]  ;;  %v194_v17 = vld [vmem:[%s843_s2 + $0x78] sm:$0xff] }
  0x2e   :  { %393 = vmatprep.subr.bf16.mxu0 %v392_v44  ;;  %v442_v18 = vpack.c.bf16 %v194_v17, %v193_v16 }
  0x2f   :  { %439 = vmatpush3.bf16.msra.mxu1 %v438_v59 }
  0x30   :  { %441 = vmatprep.subr.bf16.mxu1 %v440_v15 }
  0x31   :  { %395 = vmatpush1.bf16.msra.mxu0 %v394_v53 }
  0x32   :  { %397 = vmatprep.subr.bf16.mxu0 %v396_v54 }
  0x33   :  { %443 = vmatpush3.bf16.msra.mxu1 %v442_v18 }
  0x35   :  { %399 = vmatpush1.bf16.msra.mxu0 %v398_v60 }
  0x36   :  { %401 = vmatprep.subr.bf16.mxu0 %v400_v61 }
  0x39   :  { %403 = vmatpush1.bf16.msra.mxu0 %v402_v2 }
  0x3a   :  { %405 = vmatprep.subr.bf16.mxu0 %v404_v3 }
  0x3d   :  { %407 = vmatpush1.bf16.msra.mxu0 %v406_v8 }
  0x3e   :  { %409 = vmatprep.subr.bf16.mxu0 %v408_v9 }
  0x41   :  { %411 = vmatpush1.bf16.msra.mxu0 %v410_v12 }
  0x44   :  { %159 = vmatmul.mubr.f32.vlgmr.msra.gmra.mrb[0].mxu0 %v614_v43 }
 0x117   :  { %v160_v43 = vpop.f32.mrb[0].mxu0 }
 0x118   :  { %v165_v19 = vmax.f32 %v160_v43, 0.0  ;;  %v162_v20 = vpop.f32.mrb[1].mxu0 }
 0x119   :  { %v166_v21 = vmax.f32 %v162_v20, 0.0 }
 0x11b   :  { %v169_v22 = vcombine.low %v165_v19, %v166_v21  ;;  %275 = vmatprep.mubr.f32.mxu1 %v166_v21 }
 0x11c   :  { %276 = vmatmul.mubr.f32.vlgmr.msra.gmra.mrb[0].mxu1 %v165_v19 }
 0x11d   :  { %312 = vst.sshfl [vmem:[#allocation4] sm:$0x33 pattern:$0x76325410] %v169_v22 }
 0x11e   :  { %457 = shalt.err (!%p454_p4)
}
 0x11f   :  { %s458_s25 = scalar_lea.hbm %s845_s4, 64 }
 0x120   :  { %p459_p5 = scmp.ne.s32.totalorder %s845_s4, %s458_s25  ;;  %p462_p6 = scmp.lt.u32.totalorder %s458_s25, %s845_s4 }
 0x122   :  { %p464_p7 = pnand %p462_p6, %p459_p5 }
 0x124   :  { %467 = shalt.err (!%p464_p7)
}
 0x125   :  { %302 = dma.vmem_to_hbm [thread:$0]  %s300_s22, 64, %s845_s4, [#allocation5]   ;;  %vm281_vm0 = vcmask 74752  }
 0x126   :  { %s495_s6 = smov [#allocation2]  }
 0x127   :  { %s289_s0 = sshll.u32 %s495_s6, 4  ;;  %s290_s0 = int_to_ptr.vmem [resolvable:$true] %s289_s0 }
 0x128   :  { %s468_s7 = scalar_lea.vmem %s290_s0, 32  ;;  %p473_p9 = scmp.lt.s32.totalorder %s290_s0, %s290_s0 }
 0x129   :  { %p469_p8 = scmp.ne.s32.totalorder %s290_s0, %s468_s7  ;;  %p474_p10 = scmp.lt.s32.totalorder %s468_s7, %s468_s7 }
 0x12b   :  { %p475_p11 = por %p474_p10, %p473_p9 }
 0x12d   :  { %p476_p12 = pnand %p475_p11, %p469_p8 }
 0x1ef   :  { %v345_v23 = vpop.f32.mrb[0].mxu1 }
 0x1f0   :  { %v346_v24 = vpop.f32.mrb[1].mxu1 }
 0x1f1   :  { %v347_v25 = vadd.f32 %v346_v24, %v345_v23 }
 0x1f3   :  { %282 = vst.msk [vmem:[#allocation2] sm:$0x3] %vm281_vm0, %v347_v25 }
 0x1f4   :  { %479 = shalt.err (!%p476_p12)
}
 0x1f5   :  { %s480_s10 = scalar_lea.hbm %s844_s3, 32 }
 0x1f6   :  { %p481_p13 = scmp.ne.s32.totalorder %s844_s3, %s480_s10  ;;  %p484_p0 = scmp.lt.u32.totalorder %s480_s10, %s844_s3 }
 0x1f8   :  { %p486_p1 = pnand %p484_p0, %p481_p13 }
 0x1fa   :  { %489 = shalt.err (!%p486_p1)
}
 0x1fb   :  { %292 = dma.vmem_to_hbm [thread:$0]  %s290_s0, 32, %s844_s3, [#allocation3]  }
 0x1fc   :  { %490 = dma.done.wait [#allocation3], 32  }
 0x1fd   :  { %491 = vsyncadd [#allocation3], 4294967264 }
 0x1fe   :  { %492 = dma.done.wait [#allocation5], 64  }
 0x1ff   :  { %493 = vsyncadd [#allocation5], 4294967232 }
 0x200   :  { %309 = vsyncpa [#allocation3], 1 }
 0x201   :  { %310 = vsyncpa [#allocation5], 1 }

// kernel: conv2_forward.4
= control target key start
LH: loop header
LB: loop body
LE: loop exit
PB: predicated region body
PF: predicated region fallthrough
CT: control target
= control target key end

     0   :  { %7 = vsyncpa [#allocation3], 0  ;;  %s8899_s0 = inlined_call_operand.vmem [shape: bf16[2,16384], index: 0, kind: input, shape index: {}]   ;;  %s8900_s1 = inlined_call_operand.hbm [shape: bf16[16384,256], index: 1, kind: input, shape index: {}]   ;;  %s8901_s2 = inlined_call_operand.vmem [shape: f32[2,256], index: 2, kind: output, shape index: {}]  }
   0x1   :  { %9 = vsyncpa [#allocation3 + $0x1], 0  ;;  %s8097_s9 = smov 0   ;;  %s8099_s10 = smov 0  }
   0x2   :  { %s8101_s11 = smov 0   ;;  %s8103_s12 = smov 0  }
   0x3   :  { %s8105_s13 = smov 0   ;;  %s8107_s14 = smov 0  }
   0x4   :  { %s8109_s15 = smov 0   ;;  %s8111_s16 = smov 0  }
   0x5 LB: > { %s6149_s17 = sadd.s32 4294967295, %s8074_s16   ;;  %s24_s18 = sadd.s32 1, %s8066_s14  ;;  %s8074_s16 = sphi %s8111_s16, %s15_s16   ;;  %s8070_s15 = sphi %s8109_s15, %s8912_s15   ;;  %s8066_s14 = sphi %s8107_s14, %s8911_s14   ;;  %s8062_s13 = sphi %s8105_s13, %s8910_s13   ;;  %s8058_s12 = sphi %s8103_s12, %s8909_s12   ;;  %s8054_s11 = sphi %s8101_s11, %s8908_s11   ;;  %s8050_s10 = sphi %s8099_s10, %s8907_s10   ;;  %s8046_s9 = sphi %s8097_s9, %s8906_s9  }
   0x6   : > { %p25_p0 = scmp.ge.s32.totalorder %s24_s18, 2  ;;  %s27_s19 = sadd.s32 1, %s8070_s15 }
   0x7   : > { %s62_s20 = sadd.s32 1, %s8054_s11  ;;  %p69_p1 = scmp.ne.s32.totalorder %s8054_s11, %s8050_s10 }
   0x8   : > { %s8914_s18 = smov (%p25_p0, %s24_s18), 0  ;;  %s8916_s19 = smov (!%p25_p0, %s27_s19), %s8070_s15 }
   0x9   : > { %s57_s21 = ssub.s32 %s8066_s14, %s8914_s18  ;;  %p70_p2 = scmp.eq.s32.totalorder %s8074_s16, 0 }
   0xa   : > { %p29_p3 = scmp.ge.s32.totalorder %s8916_s19, 2  ;;  %p75_p4 = scmp.ne.s32.totalorder %s8050_s10, %s8046_s9 }
   0xb   : > { %p8148_p5 = por %p70_p2, %p69_p1  ;;  %p76_p6 = scmp.eq.s32.totalorder %s6149_s17, 0 }
   0xc   : > { %s8918_s19 = smov (%p29_p3, %s8916_s19), 0  ;;  %p7388_p8 = scmp.lt.s32.totalorder %s8074_s16, 4 }
   0xd   : > { %p8154_p7 = por %p76_p6, %p75_p4  ;;  %s58_s24 = ssub.s32 %s8070_s15, %s8918_s19 }
   0xe   : > { %s59_s25 = sor.u32 %s58_s24, %s57_s21  ;;  %s133_s26 = sand.u32 1, %s8054_s11  }
   0xf   : > { %p60_p9 = scmp.eq.s32.totalorder %s59_s25, 0  ;;  %s6153_s27 = sshll.u32 %s133_s26, 12 }
  0x10   : > { %s6677_s28 = sshll.u32 %s8066_s14, 11  ;;  %s137_s4 = scalar_lea.vmem [#allocation2], %s6153_s27 }
  0x11   : > { %s8164_s29 = scalar_select %p60_p9, %s8054_s11, %s62_s20  }
  0x12   : > { %s143_s30 = sadd.s32 %s8070_s15, %s6677_s28  ;;  %s146_s5 = sshll.u32 %s137_s4, 4  ;;  %s8172_s5 = int_to_ptr.vmem [resolvable:$true] %s146_s5 }
  0x13   : > { %s6156_s3 = sshll.u32 %s143_s30, 6  ;;  %p8178_p10 = pnand %p7388_p8, %p8148_p5 }
  0x14   : > { %s8170_s8 = scalar_lea.hbm %s8900_s1, %s6156_s3  ;;  %s8183_s17 = scalar_lea.sflag [#allocation3], %s133_s26 }
  0x15   : > { %s7978_s20 = scalar_lea.hbm %s8170_s8, 65536  ;;  %p7980_p13 = pneg %p8178_p10 }
  0x16   : > { %p7979_p12 = scmp.ne.s32.totalorder %s8170_s8, %s7978_s20  ;;  %s7983_s24 = scalar_lea.hbm %s8900_s1, 262144 }
  0x17   : > { %p7984_p2 = scmp.lt.u32.totalorder %s8170_s8, %s8900_s1  ;;  %p7985_p3 = scmp.lt.u32.totalorder %s7983_s24, %s7978_s20 }
  0x18   : > { %p7981_p0 = pnand %p7980_p13, %p7979_p12  ;;  %p7987_p5 = scmp.lt.u32.totalorder %s7978_s20, %s8170_s8 }
  0x19   : > { %p7986_p4 = por %p7985_p3, %p7984_p2 }
  0x1a   : > { %p7982_p1 = pneg %p7981_p0 }
  0x1b   : > { %p7988_p6 = por %p7987_p5, %p7986_p4 }
  0x1d   : > { %p7989_p8 = pnand %p7988_p6, %p7982_p1 }
  0x1f   : > { %7992 = shalt.err (!%p7989_p8)
}
  0x20   : > { %s7993_s26 = scalar_lea.vmem %s8172_s5, 65536  ;;  %s8076_s28 = smov [#allocation2]  }
  0x21   : > { %p7994_p9 = scmp.ne.s32.totalorder %s8172_s5, %s7993_s26  ;;  %s7998_s30 = sshll.u32 %s8076_s28, 4  ;;  %s7999_s30 = int_to_ptr.vmem [resolvable:$false] %s7998_s30 }
  0x22   : > { %s8000_s3 = scalar_lea.vmem %s7999_s30, 131072  ;;  %p8001_p11 = scmp.lt.s32.totalorder %s8172_s5, %s7999_s30 }
  0x23   : > { %p7996_p12 = pnand %p7994_p9, %p7980_p13  ;;  %p8002_p2 = scmp.lt.s32.totalorder %s8000_s3, %s7993_s26 }
  0x25   : > { %p7997_p0 = pneg %p7996_p12  ;;  %p8003_p3 = por %p8002_p2, %p8001_p11 }
  0x27   : > { %p8004_p4 = pnand %p8003_p3, %p7997_p0 }
  0x29   : > { %8007 = shalt.err (!%p8004_p4)
}
  0x2a   : > { %s8077_s4 = smov 128   ;;  %s8078_s6 = smov 64  }
  0x2b   : > { %s8079_s7 = smov 4   ;;  %p154_p13 = scmp.lt.s32.totalorder %s8074_s16, 5 }
  0x2c   : > { %7387 = dma.hbm_to_vmem [thread:$0]  (!%p8178_p10), %s8170_s8, 65536, %s8172_s5, %s8183_s17, %s8077_s4, %s8078_s6, %s8079_s7  }
  0x2d   : > { %p8905_p1 = scmp.ge.s32.totalorder %s8074_s16, 1 }
  0x2f   : > { %p155_p5 = pnand %p8905_p1, %p154_p13 }
  0x30   : > { %s160_s20 = sand.u32 (!%p155_p5), 1, %s8050_s10  }
  0x31   : > { %158 = sbr.rel (%p155_p5) target bundleno = 815 (0x32f), region = 28  ;;  %s6158_s21 = sshll.u32 (!%p155_p5), %s160_s20, 12 }
  0x32   : > { %s161_s22 = scalar_lea.sflag (!%p155_p5), [#allocation3], %s160_s20  ;;  %s8215_s24 = scalar_lea.vmem (!%p155_p5), [#allocation2], %s6158_s21 }
  0x38   : > { %8041 = dma.done.wait (%p8154_p7), %s161_s22, 65536  }
  0x39   : > { %8043 = vsyncadd (%p8154_p7), %s161_s22, 4294901760  ;;  %s6159_s5 = sshll.u32 %s8058_s12, 6  ;;  %p194_p10 = scmp.lt.s32.totalorder %s8062_s13, 1 }
  0x3a   : > { %p189_p11 = scmp.lt.s32.totalorder %s6159_s5, 127  ;;  %p6161_p7 = scmp.ne.s32.totalorder %s8058_s12, 0 }
  0x3b   : > { %s8920_s13 = smov (!%p194_p10, %s8062_s13), 1  ;;  %v8080_v0 = vmov (!%p6161_p7), 0.0  }
  0x3c   : > { %s8922_s5 = smov (!%p189_p11, %s6159_s5), 127  ;;  %s6160_s8 = sshll.u32 %s8920_s13, 1 }
  0x3d   : > { %s8227_s25 = scalar_lea.vmem %s8899_s0, %s8922_s5  ;;  %s8232_s28 = scalar_lea.vmem %s8901_s2, %s6160_s8 }
  0x3e   : > { %202 = sbr.rel (%p6161_p7) target bundleno = 69 (0x45), region = 36  ;;  %203 = vst [vmem:[%s8232_s28] sm:$0x3] (!%p6161_p7), %v8080_v0 }
  0x45 PF: > { %v7458_v1 = vld [vmem:[%s8215_s24 + $0x40] sm:$0xff]   ;;  %v7462_v5 = vld [vmem:[%s8215_s24 + $0x48] sm:$0xff]   ;;  %v7466_v9 = vld [vmem:[%s8215_s24 + $0x50] sm:$0xff]   ;;  %v1249_v29 = vlaneseq  ;;  %v8081_v37 = vmov 1966171168   ;;  %p6674_p6 = scmp.ne.s32.totalorder %s8058_s12, 1 }
  0x46   : > { %v7459_v2 = vld [vmem:[%s8215_s24 + $0xc0] sm:$0xff]   ;;  %6678 = vmatprep.subr.bf16.mxu0 %v7458_v1  ;;  %v7463_v6 = vld [vmem:[%s8215_s24 + $0xc8] sm:$0xff]   ;;  %v7467_v10 = vld [vmem:[%s8215_s24 + $0xd0] sm:$0xff]   ;;  %v1247_v38 = vunpack.c.l.s4 %v8081_v37 }
  0x47   : > { %v7460_v3 = vld [vmem:[%s8215_s24] sm:$0xff]   ;;  %6700 = vmatprep.subr.bf16.mxu1 %v7459_v2  ;;  %v7464_v7 = vld [vmem:[%s8215_s24 + $0x8] sm:$0xff]   ;;  %v7468_v11 = vld [vmem:[%s8215_s24 + $0x10] sm:$0xff]   ;;  %v1250_v34 = vshrl.u32 %v1249_v29, 7 }
  0x48   : > { %v7461_v4 = vld [vmem:[%s8215_s24 + $0x80] sm:$0xff]   ;;  %6679 = vmatpush3.bf16.msra.mxu0 %v7460_v3  ;;  %v7465_v8 = vld [vmem:[%s8215_s24 + $0x88] sm:$0xff]   ;;  %v7469_v12 = vld [vmem:[%s8215_s24 + $0x90] sm:$0xff]   ;;  %v1248_v41 = vunpack.c.0.s8 %v1247_v38 }
  0x49   : > { %6701 = vmatpush3.bf16.msra.mxu1 %v7461_v4  ;;  %6680 = vmatprep.subr.bf16.mxu0 %v7462_v5  ;;  %v7470_v13 = vld [vmem:[%s8215_s24 + $0x58] sm:$0xff]   ;;  %v7474_v17 = vld [vmem:[%s8215_s24 + $0x60] sm:$0xff]   ;;  %v7478_v21 = vld [vmem:[%s8215_s24 + $0x68] sm:$0xff]  }
  0x4a   : > { %6702 = vmatprep.subr.bf16.mxu1 %v7463_v6  ;;  %v7471_v14 = vld [vmem:[%s8215_s24 + $0xd8] sm:$0xff]   ;;  %v7475_v18 = vld [vmem:[%s8215_s24 + $0xe0] sm:$0xff]   ;;  %v7479_v22 = vld [vmem:[%s8215_s24 + $0xe8] sm:$0xff]   ;;  %v8271_v42 = vsub.s32 %v1248_v41, %v1250_v34 }
  0x4b   : > { %v7472_v15 = vld [vmem:[%s8215_s24 + $0x18] sm:$0xff]   ;;  %v7476_v19 = vld [vmem:[%s8215_s24 + $0x20] sm:$0xff]   ;;  %v7480_v23 = vld [vmem:[%s8215_s24 + $0x28] sm:$0xff]  }
  0x4c   : > { %6681 = vmatpush3.bf16.msra.mxu0 %v7464_v7  ;;  %v7473_v16 = vld [vmem:[%s8215_s24 + $0x98] sm:$0xff]   ;;  %v7477_v20 = vld [vmem:[%s8215_s24 + $0xa0] sm:$0xff]   ;;  %v7481_v24 = vld [vmem:[%s8215_s24 + $0xa8] sm:$0xff]  }
  0x4d   : > { %6703 = vmatpush3.bf16.msra.mxu1 %v7465_v8  ;;  %6682 = vmatprep.subr.bf16.mxu0 %v7466_v9  ;;  %v7482_v25 = vld [vmem:[%s8215_s24 + $0x70] sm:$0xff]   ;;  %v7486_v30 = vld [vmem:[%s8215_s24 + $0x78] sm:$0xff]   ;;  %v205_v35 = vld [vmem:[%s8227_s25] sm:$0xff] }
  0x4e   : > { %6704 = vmatprep.subr.bf16.mxu1 %v7467_v10  ;;  %v7483_v26 = vld [vmem:[%s8215_s24 + $0xf0] sm:$0xff]   ;;  %v7487_v31 = vld [vmem:[%s8215_s24 + $0xf8] sm:$0xff]   ;;  %v7491_v36 = vld [vmem:[%s8215_s24 + $0x140] sm:$0xff]   ;;  %v1245_v40 = vcombine.high %v205_v35, %v205_v35  ;;  %v1252_v43 = vrot.slane %v205_v35, %v8271_v42 }
  0x4f   : > { %v7484_v27 = vld [vmem:[%s8215_s24 + $0x30] sm:$0xff]   ;;  %v7488_v32 = vld [vmem:[%s8215_s24 + $0x38] sm:$0xff]   ;;  %v7492_v39 = vld [vmem:[%s8215_s24 + $0x1c0] sm:$0xff]  }
  0x50   : > { %6683 = vmatpush3.bf16.msra.mxu0 %v7468_v11  ;;  %v7485_v28 = vld [vmem:[%s8215_s24 + $0xb0] sm:$0xff]   ;;  %v7489_v33 = vld [vmem:[%s8215_s24 + $0xb8] sm:$0xff]   ;;  %v8275_v44 = vrot.slane %v1245_v40, %v8271_v42  ;;  %v1260_v45 = vcombine.high %v1252_v43, %v1252_v43  ;;  %v1268_v46 = vrot.slane %v1252_v43, %v8271_v42  ;;  %v7493_v48 = vld [vmem:[%s8215_s24 + $0x100] sm:$0xff]  }
  0x51   : > { %6705 = vmatpush3.bf16.msra.mxu1 %v7469_v12  ;;  %6684 = vmatprep.subr.bf16.mxu0 %v7470_v13  ;;  %v7494_v50 = vld [vmem:[%s8215_s24 + $0x180] sm:$0xff]   ;;  %v7495_v53 = vld [vmem:[%s8215_s24 + $0x148] sm:$0xff]   ;;  %v7499_v59 = vld [vmem:[%s8215_s24 + $0x150] sm:$0xff]  }
  0x52   : > { %6706 = vmatprep.subr.bf16.mxu1 %v7471_v14  ;;  %v1261_v47 = vcombine.high %v8275_v44, %v8275_v44  ;;  %v1282_v49 = vrot.slane %v1260_v45, %v8271_v42  ;;  %v1290_v52 = vcombine.high %v1268_v46, %v1268_v46  ;;  %v7496_v55 = vld [vmem:[%s8215_s24 + $0x1c8] sm:$0xff]   ;;  %v7500_v60 = vld [vmem:[%s8215_s24 + $0x1d0] sm:$0xff]   ;;  %v7503_v63 = vld [vmem:[%s8215_s24 + $0x158] sm:$0xff]  }
  0x53   : > { %v7497_v56 = vld [vmem:[%s8215_s24 + $0x108] sm:$0xff]   ;;  %v7501_v61 = vld [vmem:[%s8215_s24 + $0x110] sm:$0xff]   ;;  %v7504_v0 = vld [vmem:[%s8215_s24 + $0x1d8] sm:$0xff]  }
  0x54   : > { %6685 = vmatpush3.bf16.msra.mxu0 %v7472_v15  ;;  %v1289_v51 = vrot.slane %v1261_v47, %v8271_v42  ;;  %4805 = vmatprep.mubr.bf16.mxu0 %v1282_v49  ;;  %v1292_v54 = vcombine.high %v1282_v49, %v1282_v49  ;;  %v7498_v58 = vld [vmem:[%s8215_s24 + $0x188] sm:$0xff]   ;;  %v7502_v62 = vld [vmem:[%s8215_s24 + $0x190] sm:$0xff]   ;;  %v7505_v1 = vld [vmem:[%s8215_s24 + $0x118] sm:$0xff]  }
  0x55   : > { %6707 = vmatpush3.bf16.msra.mxu1 %v7473_v16  ;;  %6686 = vmatprep.subr.bf16.mxu0 %v7474_v17  ;;  %v7506_v2 = vld [vmem:[%s8215_s24 + $0x198] sm:$0xff]   ;;  %v7507_v3 = vld [vmem:[%s8215_s24 + $0x160] sm:$0xff]   ;;  %v7511_v7 = vld [vmem:[%s8215_s24 + $0x168] sm:$0xff]  }
  0x56   : > { %6708 = vmatprep.subr.bf16.mxu1 %v7475_v18  ;;  %v1293_v57 = vcombine.high %v1289_v51, %v1289_v51  ;;  %4845 = vmatprep.mubr.bf16.mxu1 %v1292_v54  ;;  %v7508_v4 = vld [vmem:[%s8215_s24 + $0x1e0] sm:$0xff]   ;;  %v7512_v8 = vld [vmem:[%s8215_s24 + $0x1e8] sm:$0xff]   ;;  %v7515_v11 = vld [vmem:[%s8215_s24 + $0x170] sm:$0xff]  }
  0x57   : > { %v7509_v5 = vld [vmem:[%s8215_s24 + $0x120] sm:$0xff]   ;;  %v7513_v9 = vld [vmem:[%s8215_s24 + $0x128] sm:$0xff]   ;;  %v7516_v12 = vld [vmem:[%s8215_s24 + $0x1f0] sm:$0xff]  }
  0x58   : > { %6687 = vmatpush3.bf16.msra.mxu0 %v7476_v19  ;;  %v7510_v6 = vld [vmem:[%s8215_s24 + $0x1a0] sm:$0xff]   ;;  %v7514_v10 = vld [vmem:[%s8215_s24 + $0x1a8] sm:$0xff]   ;;  %v7517_v13 = vld [vmem:[%s8215_s24 + $0x130] sm:$0xff]   ;;  %v1275_v19 = vrot.slane %v8275_v44, %v8271_v42 }
  0x59   : > { %6709 = vmatpush3.bf16.msra.mxu1 %v7477_v20  ;;  %6688 = vmatprep.subr.bf16.mxu0 %v7478_v21  ;;  %v7518_v14 = vld [vmem:[%s8215_s24 + $0x1b0] sm:$0xff]   ;;  %v7519_v15 = vld [vmem:[%s8215_s24 + $0x178] sm:$0xff]   ;;  %v7523_v20 = vld [vmem:[%s8215_s24 + $0x240] sm:$0xff]  }
  0x5a   : > { %6710 = vmatprep.subr.bf16.mxu1 %v7479_v22  ;;  %v7520_v16 = vld [vmem:[%s8215_s24 + $0x1f8] sm:$0xff]   ;;  %v7524_v21 = vld [vmem:[%s8215_s24 + $0x2c0] sm:$0xff]   ;;  %v7531_v29 = vld [vmem:[%s8215_s24 + $0x250] sm:$0xff]  }
  0x5b   : > { %v7521_v17 = vld [vmem:[%s8215_s24 + $0x138] sm:$0xff]   ;;  %v7525_v22 = vld [vmem:[%s8215_s24 + $0x200] sm:$0xff]   ;;  %v7543_v41 = vld [vmem:[%s8215_s24 + $0x268] sm:$0xff]  }
  0x5c   : > { %6689 = vmatpush3.bf16.msra.mxu0 %v7480_v23  ;;  %v7522_v18 = vld [vmem:[%s8215_s24 + $0x1b8] sm:$0xff]   ;;  %v7526_v23 = vld [vmem:[%s8215_s24 + $0x280] sm:$0xff]   ;;  %v7544_v43 = vld [vmem:[%s8215_s24 + $0x2e8] sm:$0xff]  }
  0x5d   : > { %6711 = vmatpush3.bf16.msra.mxu1 %v7481_v24  ;;  %6690 = vmatprep.subr.bf16.mxu0 %v7482_v25  ;;  %v1291_v24 = vcombine.high %v1275_v19, %v1275_v19  ;;  %v7527_v25 = vld [vmem:[%s8215_s24 + $0x248] sm:$0xff]   ;;  %v7536_v34 = vld [vmem:[%s8215_s24 + $0x2d8] sm:$0xff]   ;;  %v7539_v37 = vld [vmem:[%s8215_s24 + $0x260] sm:$0xff]  }
  0x5e   : > { %6712 = vmatprep.subr.bf16.mxu1 %v7483_v26  ;;  %v7528_v26 = vld [vmem:[%s8215_s24 + $0x2c8] sm:$0xff]   ;;  %v7537_v35 = vld [vmem:[%s8215_s24 + $0x218] sm:$0xff]   ;;  %v7540_v38 = vld [vmem:[%s8215_s24 + $0x2e0] sm:$0xff]  }
  0x5f   : > { %v7542_v40 = vld [vmem:[%s8215_s24 + $0x2a0] sm:$0xff]   ;;  %v7545_v44 = vld [vmem:[%s8215_s24 + $0x228] sm:$0xff]  }
  0x60   : > { %6691 = vmatpush3.bf16.msra.mxu0 %v7484_v27  ;;  %v7529_v27 = vld [vmem:[%s8215_s24 + $0x208] sm:$0xff]  }
  0x61   : > { %6713 = vmatpush3.bf16.msra.mxu1 %v7485_v28  ;;  %6692 = vmatprep.subr.bf16.mxu0 %v7486_v30  ;;  %v7530_v28 = vld [vmem:[%s8215_s24 + $0x288] sm:$0xff]   ;;  %v7532_v30 = vld [vmem:[%s8215_s24 + $0x2d0] sm:$0xff]  }
  0x62   : > { %6714 = vmatprep.subr.bf16.mxu1 %v7487_v31  ;;  %v7533_v31 = vld [vmem:[%s8215_s24 + $0x210] sm:$0xff]   ;;  %v7546_v45 = vld [vmem:[%s8215_s24 + $0x2a8] sm:$0xff]  }
  0x63   : > { %v206_v47 = vld [vmem:[%s8227_s25 + $0x8] sm:$0xff] }
  0x64   : > { %6693 = vmatpush3.bf16.msra.mxu0 %v7488_v32  ;;  %v7534_v32 = vld [vmem:[%s8215_s24 + $0x290] sm:$0xff]   ;;  %v1301_v49 = vrot.slane %v206_v47, %v8271_v42 }
  0x65   : > { %6715 = vmatpush3.bf16.msra.mxu1 %v7489_v33  ;;  %6722 = vmatprep.subr.bf16.mxu0 %v7491_v36  ;;  %v7535_v33 = vld [vmem:[%s8215_s24 + $0x258] sm:$0xff]  }
  0x66   : > { %6744 = vmatprep.subr.bf16.mxu1 %v7492_v39  ;;  %v7538_v36 = vld [vmem:[%s8215_s24 + $0x298] sm:$0xff]   ;;  %v7541_v39 = vld [vmem:[%s8215_s24 + $0x220] sm:$0xff]  }
  0x67   : > { %4806 = vmatmul.mubr.bf16.vlgmr.msra.gmra.mrb[0].mxu0 %v1268_v46  ;;  %v7547_v46 = vld [vmem:[%s8215_s24 + $0x270] sm:$0xff]  }
  0x68   : > { %6723 = vmatpush3.bf16.msra.mxu0 %v7493_v48  ;;  %4846 = vmatmul.mubr.bf16.vlgmr.msra.gmra.mrb[0].mxu1 %v1290_v52  ;;  %v7548_v48 = vld [vmem:[%s8215_s24 + $0x2f0] sm:$0xff]  }
  0x69   : > { %6724 = vmatprep.subr.bf16.mxu0 %v7495_v53  ;;  %6745 = vmatpush3.bf16.msra.mxu1 %v7494_v50  ;;  %v1294_v50 = vcombine.high %v206_v47, %v206_v47  ;;  %v7550_v52 = vld [vmem:[%s8215_s24 + $0x2b0] sm:$0xff]   ;;  %v1309_v53 = vcombine.high %v1301_v49, %v1301_v49 }
  0x6a   : > { %4885 = vmatprep.mubr.bf16.mxu0 %v1289_v51  ;;  %6746 = vmatprep.subr.bf16.mxu1 %v7496_v55  ;;  %v7549_v51 = vld [vmem:[%s8215_s24 + $0x230] sm:$0xff]   ;;  %v7551_v55 = vld [vmem:[%s8215_s24 + $0x278] sm:$0xff]  }
  0x6b   : > { %4925 = vmatprep.mubr.bf16.mxu1 %v1293_v57  ;;  %v8345_v54 = vrot.slane %v1294_v50, %v8271_v42  ;;  %v1331_v57 = vrot.slane %v1309_v53, %v8271_v42  ;;  %v7598_v47 = vld [vmem:[%s8215_s24 + $0x410] sm:$0xff]   ;;  %v7601_v50 = vld [vmem:[%s8215_s24 + $0x4d8] sm:$0xff]   ;;  %v7604_v53 = vld [vmem:[%s8215_s24 + $0x460] sm:$0xff]  }
  0x6c   : > { %6725 = vmatpush3.bf16.msra.mxu0 %v7497_v56  ;;  %v7552_v56 = vld [vmem:[%s8215_s24 + $0x2f8] sm:$0xff]  }
  0x6d   : > { %6726 = vmatprep.subr.bf16.mxu0 %v7499_v59  ;;  %6747 = vmatpush3.bf16.msra.mxu1 %v7498_v58  ;;  %v1310_v58 = vcombine.high %v8345_v54, %v8345_v54  ;;  %v7553_v59 = vld [vmem:[%s8215_s24 + $0x238] sm:$0xff]  }
  0x6e   : > { %6748 = vmatprep.subr.bf16.mxu1 %v7500_v60  ;;  %v7554_v60 = vld [vmem:[%s8215_s24 + $0x2b8] sm:$0xff]  }
  0x70   : > { %6727 = vmatpush3.bf16.msra.mxu0 %v7501_v61  ;;  %v1341_v61 = vcombine.high %v1331_v57, %v1331_v57 }
  0x71   : > { %6728 = vmatprep.subr.bf16.mxu0 %v7503_v63  ;;  %6749 = vmatpush3.bf16.msra.mxu1 %v7502_v62  ;;  %v1317_v62 = vrot.slane %v1301_v49, %v8271_v42  ;;  %v7555_v63 = vld [vmem:[%s8215_s24 + $0x340] sm:$0xff]   ;;  %v7600_v49 = vld [vmem:[%s8215_s24 + $0x458] sm:$0xff]  }
  0x72   : > { %6750 = vmatprep.subr.bf16.mxu1 %v7504_v0  ;;  %v7556_v0 = vld [vmem:[%s8215_s24 + $0x3c0] sm:$0xff]  }
  0x74   : > { %6729 = vmatpush3.bf16.msra.mxu0 %v7505_v1  ;;  %v1338_v1 = vrot.slane %v1310_v58, %v8271_v42  ;;  %v7609_v58 = vld [vmem:[%s8215_s24 + $0x4e8] sm:$0xff]  }
  0x75   : > { %6730 = vmatprep.subr.bf16.mxu0 %v7507_v3  ;;  %6751 = vmatpush3.bf16.msra.mxu1 %v7506_v2  ;;  %v7557_v2 = vld [vmem:[%s8215_s24 + $0x300] sm:$0xff]  }
  0x76   : > { %6752 = vmatprep.subr.bf16.mxu1 %v7508_v4  ;;  %v7558_v3 = vld [vmem:[%s8215_s24 + $0x380] sm:$0xff]   ;;  %v1339_v4 = vcombine.high %v1317_v62, %v1317_v62 }
  0x78   : > { %6731 = vmatpush3.bf16.msra.mxu0 %v7509_v5  ;;  %v7559_v5 = vld [vmem:[%s8215_s24 + $0x348] sm:$0xff]  }
  0x79   : > { %6732 = vmatprep.subr.bf16.mxu0 %v7511_v7  ;;  %6753 = vmatpush3.bf16.msra.mxu1 %v7510_v6  ;;  %v7560_v6 = vld [vmem:[%s8215_s24 + $0x3c8] sm:$0xff]   ;;  %v1342_v7 = vcombine.high %v1338_v1, %v1338_v1 }
  0x7a   : > { %6754 = vmatprep.subr.bf16.mxu1 %v7512_v8  ;;  %v7561_v8 = vld [vmem:[%s8215_s24 + $0x308] sm:$0xff]  }
  0x7c   : > { %6733 = vmatpush3.bf16.msra.mxu0 %v7513_v9  ;;  %v7562_v9 = vld [vmem:[%s8215_s24 + $0x388] sm:$0xff]  }
  0x7d   : > { %6734 = vmatprep.subr.bf16.mxu0 %v7515_v11  ;;  %6755 = vmatpush3.bf16.msra.mxu1 %v7514_v10  ;;  %v7563_v10 = vld [vmem:[%s8215_s24 + $0x350] sm:$0xff]  }
  0x7e   : > { %6756 = vmatprep.subr.bf16.mxu1 %v7516_v12  ;;  %v7564_v11 = vld [vmem:[%s8215_s24 + $0x3d0] sm:$0xff]  }
  0x7f   : > { %v7565_v12 = vld [vmem:[%s8215_s24 + $0x310] sm:$0xff]  }
  0x80   : > { %6735 = vmatpush3.bf16.msra.mxu0 %v7517_v13  ;;  %v7566_v13 = vld [vmem:[%s8215_s24 + $0x390] sm:$0xff]  }
  0x81   : > { %6736 = vmatprep.subr.bf16.mxu0 %v7519_v15  ;;  %6757 = vmatpush3.bf16.msra.mxu1 %v7518_v14  ;;  %v7567_v14 = vld [vmem:[%s8215_s24 + $0x358] sm:$0xff]  }
  0x82   : > { %6758 = vmatprep.subr.bf16.mxu1 %v7520_v16  ;;  %v7568_v15 = vld [vmem:[%s8215_s24 + $0x3d8] sm:$0xff]  }
  0x83   : > { %v7569_v16 = vld [vmem:[%s8215_s24 + $0x318] sm:$0xff]  }
  0x84   : > { %6737 = vmatpush3.bf16.msra.mxu0 %v7521_v17  ;;  %v7570_v17 = vld [vmem:[%s8215_s24 + $0x398] sm:$0xff]  }
  0x85   : > { %6766 = vmatprep.subr.bf16.mxu0 %v7523_v20  ;;  %6759 = vmatpush3.bf16.msra.mxu1 %v7522_v18  ;;  %v7571_v18 = vld [vmem:[%s8215_s24 + $0x360] sm:$0xff]  }
  0x86   : > { %6788 = vmatprep.subr.bf16.mxu1 %v7524_v21  ;;  %v7573_v20 = vld [vmem:[%s8215_s24 + $0x320] sm:$0xff]  }
  0x87   : > { %4886 = vmatmul.mubr.bf16.vlgmr.msra.gmra.mrb[4].mxu0 %v1275_v19  ;;  %v7572_v19 = vld [vmem:[%s8215_s24 + $0x3e0] sm:$0xff]  }
  0x88   : > { %6767 = vmatpush3.bf16.msra.mxu0 %v7525_v22  ;;  %4926 = vmatmul.mubr.bf16.vlgmr.msra.gmra.mrb[4].mxu1 %v1291_v24  ;;  %v7574_v21 = vld [vmem:[%s8215_s24 + $0x3a0] sm:$0xff]   ;;  %v7575_v22 = vld [vmem:[%s8215_s24 + $0x368] sm:$0xff]  }
  0x89   : > { %6768 = vmatprep.subr.bf16.mxu0 %v7527_v25  ;;  %6789 = vmatpush3.bf16.msra.mxu1 %v7526_v23  ;;  %v7576_v23 = vld [vmem:[%s8215_s24 + $0x3e8] sm:$0xff]  }
  0x8a   : > { %6790 = vmatprep.subr.bf16.mxu1 %v7528_v26  ;;  %4965 = vmatprep.mubr.bf16.mxu0 %v1331_v57  ;;  %v7577_v24 = vld [vmem:[%s8215_s24 + $0x328] sm:$0xff]   ;;  %v7579_v26 = vld [vmem:[%s8215_s24 + $0x370] sm:$0xff]  }
  0x8b   : > { %5005 = vmatprep.mubr.bf16.mxu1 %v1341_v61  ;;  %v7578_v25 = vld [vmem:[%s8215_s24 + $0x3a8] sm:$0xff]   ;;  %v7612_v61 = vld [vmem:[%s8215_s24 + $0x470] sm:$0xff]  }
  0x8c   : > { %6769 = vmatpush3.bf16.msra.mxu0 %v7529_v27  ;;  %v7580_v27 = vld [vmem:[%s8215_s24 + $0x3f0] sm:$0xff]   ;;  %v7608_v57 = vld [vmem:[%s8215_s24 + $0x468] sm:$0xff]  }
  0x8d   : > { %6770 = vmatprep.subr.bf16.mxu0 %v7531_v29  ;;  %6791 = vmatpush3.bf16.msra.mxu1 %v7530_v28  ;;  %v7581_v28 = vld [vmem:[%s8215_s24 + $0x330] sm:$0xff]  }
  0x8e   : > { %6792 = vmatprep.subr.bf16.mxu1 %v7532_v30  ;;  %v7582_v29 = vld [vmem:[%s8215_s24 + $0x3b0] sm:$0xff]   ;;  %v7583_v30 = vld [vmem:[%s8215_s24 + $0x378] sm:$0xff]  }
  0x90   : > { %6771 = vmatpush3.bf16.msra.mxu0 %v7533_v31  ;;  %v7584_v31 = vld [vmem:[%s8215_s24 + $0x3f8] sm:$0xff]  }
  0x91   : > { %6772 = vmatprep.subr.bf16.mxu0 %v7535_v33  ;;  %6793 = vmatpush3.bf16.msra.mxu1 %v7534_v32  ;;  %v7585_v32 = vld [vmem:[%s8215_s24 + $0x338] sm:$0xff]  }
  0x92   : > { %6794 = vmatprep.subr.bf16.mxu1 %v7536_v34  ;;  %v7586_v33 = vld [vmem:[%s8215_s24 + $0x3b8] sm:$0xff]   ;;  %v1324_v34 = vrot.slane %v8345_v54, %v8271_v42  ;;  %v7605_v54 = vld [vmem:[%s8215_s24 + $0x4e0] sm:$0xff]  }
  0x94   : > { %6773 = vmatpush3.bf16.msra.mxu0 %v7537_v35  ;;  %v7588_v35 = vld [vmem:[%s8215_s24 + $0x440] sm:$0xff]  }
  0x95   : > { %6774 = vmatprep.subr.bf16.mxu0 %v7539_v37  ;;  %6795 = vmatpush3.bf16.msra.mxu1 %v7538_v36  ;;  %v7589_v36 = vld [vmem:[%s8215_s24 + $0x4c0] sm:$0xff]  }
  0x96   : > { %6796 = vmatprep.subr.bf16.mxu1 %v7540_v38  ;;  %v7590_v37 = vld [vmem:[%s8215_s24 + $0x400] sm:$0xff]  }
  0x97   : > { %v7591_v38 = vld [vmem:[%s8215_s24 + $0x480] sm:$0xff]  }
  0x98   : > { %6775 = vmatpush3.bf16.msra.mxu0 %v7541_v39  ;;  %v1340_v39 = vcombine.high %v1324_v34, %v1324_v34 }
  0x99   : > { %6776 = vmatprep.subr.bf16.mxu0 %v7543_v41  ;;  %6797 = vmatpush3.bf16.msra.mxu1 %v7542_v40  ;;  %v7592_v40 = vld [vmem:[%s8215_s24 + $0x448] sm:$0xff]  }
  0x9a   : > { %6798 = vmatprep.subr.bf16.mxu1 %v7544_v43  ;;  %v7593_v41 = vld [vmem:[%s8215_s24 + $0x4c8] sm:$0xff]  }
  0x9b   : > { %v7594_v43 = vld [vmem:[%s8215_s24 + $0x408] sm:$0xff]  }
  0x9c   : > { %6777 = vmatpush3.bf16.msra.mxu0 %v7545_v44  ;;  %v7595_v44 = vld [vmem:[%s8215_s24 + $0x488] sm:$0xff]  }
  0x9d   : > { %6778 = vmatprep.subr.bf16.mxu0 %v7547_v46  ;;  %6799 = vmatpush3.bf16.msra.mxu1 %v7546_v45  ;;  %v7596_v45 = vld [vmem:[%s8215_s24 + $0x450] sm:$0xff]  }
  0x9e   : > { %6800 = vmatprep.subr.bf16.mxu1 %v7548_v48  ;;  %v7597_v46 = vld [vmem:[%s8215_s24 + $0x4d0] sm:$0xff]  }
  0x9f   : > { %v7599_v48 = vld [vmem:[%s8215_s24 + $0x490] sm:$0xff]  }
  0xa0   : > { %6779 = vmatpush3.bf16.msra.mxu0 %v7549_v51  ;;  %v7602_v51 = vld [vmem:[%s8215_s24 + $0x418] sm:$0xff]  }
  0xa1   : > { %6780 = vmatprep.subr.bf16.mxu0 %v7551_v55  ;;  %6801 = vmatpush3.bf16.msra.mxu1 %v7550_v52  ;;  %v7603_v52 = vld [vmem:[%s8215_s24 + $0x498] sm:$0xff]   ;;  %v7606_v55 = vld [vmem:[%s8215_s24 + $0x420] sm:$0xff]  }
  0xa2   : > { %6802 = vmatprep.subr.bf16.mxu1 %v7552_v56  ;;  %v7607_v56 = vld [vmem:[%s8215_s24 + $0x4a0] sm:$0xff]  }
  0xa4   : > { %6781 = vmatpush3.bf16.msra.mxu0 %v7553_v59  ;;  %v7610_v59 = vld [vmem:[%s8215_s24 + $0x428] sm:$0xff]  }
  0xa5   : > { %6810 = vmatprep.subr.bf16.mxu0 %v7555_v63  ;;  %6803 = vmatpush3.bf16.msra.mxu1 %v7554_v60  ;;  %v7611_v60 = vld [vmem:[%s8215_s24 + $0x4a8] sm:$0xff]   ;;  %v7613_v63 = vld [vmem:[%s8215_s24 + $0x4f0] sm:$0xff]  }
  0xa6   : > { %6832 = vmatprep.subr.bf16.mxu1 %v7556_v0 }
  0xa7   : > { %4966 = vmatmul.mubr.bf16.vlgmr.msra.gmra.mrb[8].mxu0 %v1317_v62  ;;  %v207_v62 = vld [vmem:[%s8227_s25 + $0x10] sm:$0xff] }
  0xa8   : > { %6811 = vmatpush3.bf16.msra.mxu0 %v7557_v2  ;;  %5045 = vmatprep.mubr.bf16.mxu0 %v1338_v1  ;;  %v1350_v0 = vrot.slane %v207_v62, %v8271_v42  ;;  %v1343_v1 = vcombine.high %v207_v62, %v207_v62  ;;  %v7614_v2 = vld [vmem:[%s8215_s24 + $0x430] sm:$0xff]  }
  0xa9   : > { %5006 = vmatmul.mubr.bf16.vlgmr.msra.gmra.mrb[8].mxu1 %v1339_v4  ;;  %6812 = vmatprep.subr.bf16.mxu0 %v7559_v5  ;;  %v7663_v62 = vld [vmem:[%s8215_s24 + $0x610] sm:$0xff]  }
  0xaa   : > { %6833 = vmatpush3.bf16.msra.mxu1 %v7558_v3  ;;  %5085 = vmatprep.mubr.bf16.mxu1 %v1342_v7  ;;  %v7615_v3 = vld [vmem:[%s8215_s24 + $0x4b0] sm:$0xff]   ;;  %v1358_v4 = vcombine.high %v1350_v0, %v1350_v0  ;;  %v8421_v5 = vrot.slane %v1343_v1, %v8271_v42  ;;  %v7617_v7 = vld [vmem:[%s8215_s24 + $0x4f8] sm:$0xff]  }
  0xab   : > { %6834 = vmatprep.subr.bf16.mxu1 %v7560_v6  ;;  %v7616_v6 = vld [vmem:[%s8215_s24 + $0x478] sm:$0xff]  }
  0xac   : > { %6813 = vmatpush3.bf16.msra.mxu0 %v7561_v8  ;;  %v1380_v8 = vrot.slane %v1358_v4, %v8271_v42  ;;  %v7666_v1 = vld [vmem:[%s8215_s24 + $0x6d8] sm:$0xff]   ;;  %v7669_v4 = vld [vmem:[%s8215_s24 + $0x660] sm:$0xff]  }
  0xad   : > { %6814 = vmatprep.subr.bf16.mxu0 %v7563_v10  ;;  %v7618_v10 = vld [vmem:[%s8215_s24 + $0x438] sm:$0xff]  }
  0xae   : > { %6835 = vmatpush3.bf16.msra.mxu1 %v7562_v9  ;;  %v1359_v9 = vcombine.high %v8421_v5, %v8421_v5 }
  0xaf   : > { %6836 = vmatprep.subr.bf16.mxu1 %v7564_v11  ;;  %v7619_v11 = vld [vmem:[%s8215_s24 + $0x4b8] sm:$0xff]  }
  0xb0   : > { %6815 = vmatpush3.bf16.msra.mxu0 %v7565_v12  ;;  %v1390_v12 = vcombine.high %v1380_v8, %v1380_v8 }
  0xb1   : > { %6816 = vmatprep.subr.bf16.mxu0 %v7567_v14  ;;  %v7620_v14 = vld [vmem:[%s8215_s24 + $0x540] sm:$0xff]  }
  0xb2   : > { %6837 = vmatpush3.bf16.msra.mxu1 %v7566_v13  ;;  %v1366_v13 = vrot.slane %v1350_v0, %v8271_v42  ;;  %v7665_v0 = vld [vmem:[%s8215_s24 + $0x658] sm:$0xff]  }
  0xb3   : > { %6838 = vmatprep.subr.bf16.mxu1 %v7568_v15  ;;  %v7621_v15 = vld [vmem:[%s8215_s24 + $0x5c0] sm:$0xff]  }
  0xb4   : > { %6817 = vmatpush3.bf16.msra.mxu0 %v7569_v16  ;;  %v1387_v16 = vrot.slane %v1359_v9, %v8271_v42  ;;  %v7674_v9 = vld [vmem:[%s8215_s24 + $0x6e8] sm:$0xff]  }
  0xb5   : > { %6818 = vmatprep.subr.bf16.mxu0 %v7571_v18  ;;  %v7623_v18 = vld [vmem:[%s8215_s24 + $0x580] sm:$0xff]  }
  0xb6   : > { %6839 = vmatpush3.bf16.msra.mxu1 %v7570_v17  ;;  %v7622_v17 = vld [vmem:[%s8215_s24 + $0x500] sm:$0xff]  }
  0xb7   : > { %6840 = vmatprep.subr.bf16.mxu1 %v7572_v19  ;;  %v1388_v19 = vcombine.high %v1366_v13, %v1366_v13 }
  0xb8   : > { %6819 = vmatpush3.bf16.msra.mxu0 %v7573_v20  ;;  %v7624_v20 = vld [vmem:[%s8215_s24 + $0x548] sm:$0xff]  }
  0xb9   : > { %6820 = vmatprep.subr.bf16.mxu0 %v7575_v22  ;;  %v1391_v22 = vcombine.high %v1387_v16, %v1387_v16 }
  0xba   : > { %6841 = vmatpush3.bf16.msra.mxu1 %v7574_v21  ;;  %v7625_v21 = vld [vmem:[%s8215_s24 + $0x5c8] sm:$0xff]  }
  0xbb   : > { %6842 = vmatprep.subr.bf16.mxu1 %v7576_v23  ;;  %v7626_v23 = vld [vmem:[%s8215_s24 + $0x508] sm:$0xff]  }
  0xbc   : > { %6821 = vmatpush3.bf16.msra.mxu0 %v7577_v24  ;;  %v7627_v24 = vld [vmem:[%s8215_s24 + $0x588] sm:$0xff]  }
  0xbd   : > { %6822 = vmatprep.subr.bf16.mxu0 %v7579_v26  ;;  %v7629_v26 = vld [vmem:[%s8215_s24 + $0x5d0] sm:$0xff]  }
  0xbe   : > { %6843 = vmatpush3.bf16.msra.mxu1 %v7578_v25  ;;  %v7628_v25 = vld [vmem:[%s8215_s24 + $0x550] sm:$0xff]  }
  0xbf   : > { %6844 = vmatprep.subr.bf16.mxu1 %v7580_v27  ;;  %v7630_v27 = vld [vmem:[%s8215_s24 + $0x510] sm:$0xff]  }
  0xc0   : > { %6823 = vmatpush3.bf16.msra.mxu0 %v7581_v28  ;;  %v7631_v28 = vld [vmem:[%s8215_s24 + $0x590] sm:$0xff]  }
  0xc1   : > { %6824 = vmatprep.subr.bf16.mxu0 %v7583_v30  ;;  %v7633_v30 = vld [vmem:[%s8215_s24 + $0x5d8] sm:$0xff]  }
  0xc2   : > { %6845 = vmatpush3.bf16.msra.mxu1 %v7582_v29  ;;  %v7632_v29 = vld [vmem:[%s8215_s24 + $0x558] sm:$0xff]  }
  0xc3   : > { %6846 = vmatprep.subr.bf16.mxu1 %v7584_v31  ;;  %v7634_v31 = vld [vmem:[%s8215_s24 + $0x518] sm:$0xff]  }
  0xc4   : > { %6825 = vmatpush3.bf16.msra.mxu0 %v7585_v32  ;;  %v7635_v32 = vld [vmem:[%s8215_s24 + $0x598] sm:$0xff]  }
  0xc5   : > { %6854 = vmatprep.subr.bf16.mxu0 %v7588_v35  ;;  %v7638_v35 = vld [vmem:[%s8215_s24 + $0x520] sm:$0xff]  }
  0xc6   : > { %6847 = vmatpush3.bf16.msra.mxu1 %v7586_v33  ;;  %v7636_v33 = vld [vmem:[%s8215_s24 + $0x560] sm:$0xff]  }
  0xc7   : > { %5046 = vmatmul.mubr.bf16.vlgmr.msra.gmra.mrb[12].mxu0 %v1324_v34  ;;  %6876 = vmatprep.subr.bf16.mxu1 %v7589_v36  ;;  %v7637_v34 = vld [vmem:[%s8215_s24 + $0x5e0] sm:$0xff]  }
  0xc8   : > { %6855 = vmatpush3.bf16.msra.mxu0 %v7590_v37  ;;  %5125 = vmatprep.mubr.bf16.mxu0 %v1380_v8  ;;  %v7639_v36 = vld [vmem:[%s8215_s24 + $0x5a0] sm:$0xff]   ;;  %v7640_v37 = vld [vmem:[%s8215_s24 + $0x568] sm:$0xff]  }
  0xc9   : > { %5086 = vmatmul.mubr.bf16.vlgmr.msra.gmra.mrb[12].mxu1 %v1340_v39  ;;  %6856 = vmatprep.subr.bf16.mxu0 %v7592_v40  ;;  %v7642_v39 = vld [vmem:[%s8215_s24 + $0x528] sm:$0xff]  }
  0xca   : > { %6877 = vmatpush3.bf16.msra.mxu1 %v7591_v38  ;;  %5165 = vmatprep.mubr.bf16.mxu1 %v1390_v12  ;;  %v7641_v38 = vld [vmem:[%s8215_s24 + $0x5e8] sm:$0xff]   ;;  %v7677_v12 = vld [vmem:[%s8215_s24 + $0x670] sm:$0xff]  }
  0xcb   : > { %6878 = vmatprep.subr.bf16.mxu1 %v7593_v41  ;;  %v7643_v40 = vld [vmem:[%s8215_s24 + $0x5a8] sm:$0xff]   ;;  %v7644_v41 = vld [vmem:[%s8215_s24 + $0x570] sm:$0xff]  }
  0xcc   : > { %6857 = vmatpush3.bf16.msra.mxu0 %v7594_v43  ;;  %v7645_v43 = vld [vmem:[%s8215_s24 + $0x5f0] sm:$0xff]   ;;  %v7673_v8 = vld [vmem:[%s8215_s24 + $0x668] sm:$0xff]  }
  0xcd   : > { %6858 = vmatprep.subr.bf16.mxu0 %v7596_v45  ;;  %v7647_v45 = vld [vmem:[%s8215_s24 + $0x5b0] sm:$0xff]  }
  0xce   : > { %6879 = vmatpush3.bf16.msra.mxu1 %v7595_v44  ;;  %v7646_v44 = vld [vmem:[%s8215_s24 + $0x530] sm:$0xff]  }
  0xcf   : > { %6880 = vmatprep.subr.bf16.mxu1 %v7597_v46  ;;  %v7648_v46 = vld [vmem:[%s8215_s24 + $0x578] sm:$0xff]  }
  0xd0   : > { %6859 = vmatpush3.bf16.msra.mxu0 %v7598_v47  ;;  %v7649_v47 = vld [vmem:[%s8215_s24 + $0x5f8] sm:$0xff]  }
  0xd1   : > { %6860 = vmatprep.subr.bf16.mxu0 %v7600_v49  ;;  %v7651_v49 = vld [vmem:[%s8215_s24 + $0x5b8] sm:$0xff]  }
  0xd2   : > { %6881 = vmatpush3.bf16.msra.mxu1 %v7599_v48  ;;  %v7650_v48 = vld [vmem:[%s8215_s24 + $0x538] sm:$0xff]  }
  0xd3   : > { %6882 = vmatprep.subr.bf16.mxu1 %v7601_v50  ;;  %v1373_v50 = vrot.slane %v8421_v5, %v8271_v42  ;;  %v7670_v5 = vld [vmem:[%s8215_s24 + $0x6e0] sm:$0xff]  }
  0xd4   : > { %6861 = vmatpush3.bf16.msra.mxu0 %v7602_v51  ;;  %v7653_v51 = vld [vmem:[%s8215_s24 + $0x640] sm:$0xff]  }
  0xd5   : > { %6862 = vmatprep.subr.bf16.mxu0 %v7604_v53  ;;  %v7655_v53 = vld [vmem:[%s8215_s24 + $0x600] sm:$0xff]  }
  0xd6   : > { %6883 = vmatpush3.bf16.msra.mxu1 %v7603_v52  ;;  %v7654_v52 = vld [vmem:[%s8215_s24 + $0x6c0] sm:$0xff]  }
  0xd7   : > { %6884 = vmatprep.subr.bf16.mxu1 %v7605_v54  ;;  %v7656_v54 = vld [vmem:[%s8215_s24 + $0x680] sm:$0xff]  }
  0xd8   : > { %6863 = vmatpush3.bf16.msra.mxu0 %v7606_v55  ;;  %v1389_v55 = vcombine.high %v1373_v50, %v1373_v50 }
  0xd9   : > { %6864 = vmatprep.subr.bf16.mxu0 %v7608_v57  ;;  %v7658_v57 = vld [vmem:[%s8215_s24 + $0x6c8] sm:$0xff]  }
  0xda   : > { %6885 = vmatpush3.bf16.msra.mxu1 %v7607_v56  ;;  %v7657_v56 = vld [vmem:[%s8215_s24 + $0x648] sm:$0xff]  }
  0xdb   : > { %6886 = vmatprep.subr.bf16.mxu1 %v7609_v58  ;;  %v7659_v58 = vld [vmem:[%s8215_s24 + $0x608] sm:$0xff]  }
  0xdc   : > { %6865 = vmatpush3.bf16.msra.mxu0 %v7610_v59  ;;  %v7660_v59 = vld [vmem:[%s8215_s24 + $0x688] sm:$0xff]  }
  0xdd   : > { %6866 = vmatprep.subr.bf16.mxu0 %v7612_v61  ;;  %v7662_v61 = vld [vmem:[%s8215_s24 + $0x6d0] sm:$0xff]  }
  0xde   : > { %6887 = vmatpush3.bf16.msra.mxu1 %v7611_v60  ;;  %v7661_v60 = vld [vmem:[%s8215_s24 + $0x650] sm:$0xff]  }
  0xdf   : > { %6888 = vmatprep.subr.bf16.mxu1 %v7613_v63  ;;  %v7664_v63 = vld [vmem:[%s8215_s24 + $0x690] sm:$0xff]  }
  0xe0   : > { %6867 = vmatpush3.bf16.msra.mxu0 %v7614_v2  ;;  %v7667_v2 = vld [vmem:[%s8215_s24 + $0x618] sm:$0xff]  }
  0xe1   : > { %6868 = vmatprep.subr.bf16.mxu0 %v7616_v6  ;;  %v7671_v6 = vld [vmem:[%s8215_s24 + $0x620] sm:$0xff]  }
  0xe2   : > { %6889 = vmatpush3.bf16.msra.mxu1 %v7615_v3  ;;  %v7668_v3 = vld [vmem:[%s8215_s24 + $0x698] sm:$0xff]  }
  0xe3   : > { %6890 = vmatprep.subr.bf16.mxu1 %v7617_v7  ;;  %v7672_v7 = vld [vmem:[%s8215_s24 + $0x6a0] sm:$0xff]  }
  0xe4   : > { %6869 = vmatpush3.bf16.msra.mxu0 %v7618_v10  ;;  %v7675_v10 = vld [vmem:[%s8215_s24 + $0x628] sm:$0xff]  }
  0xe5   : > { %6898 = vmatprep.subr.bf16.mxu0 %v7620_v14  ;;  %v208_v14 = vld [vmem:[%s8227_s25 + $0x18] sm:$0xff] }
  0xe6   : > { %6891 = vmatpush3.bf16.msra.mxu1 %v7619_v11  ;;  %v7676_v11 = vld [vmem:[%s8215_s24 + $0x6a8] sm:$0xff]  }
  0xe7   : > { %5126 = vmatmul.mubr.bf16.vlgmr.msra.gmra.mrb[16].mxu0 %v1366_v13  ;;  %6920 = vmatprep.subr.bf16.mxu1 %v7621_v15  ;;  %v7678_v13 = vld [vmem:[%s8215_s24 + $0x6f0] sm:$0xff]  }
  0xe8   : > { %6899 = vmatpush3.bf16.msra.mxu0 %v7622_v17  ;;  %5205 = vmatprep.mubr.bf16.mxu0 %v1387_v16  ;;  %v7679_v15 = vld [vmem:[%s8215_s24 + $0x630] sm:$0xff]   ;;  %v1399_v16 = vrot.slane %v208_v14, %v8271_v42  ;;  %v1392_v17 = vcombine.high %v208_v14, %v208_v14  ;;  %v7719_v14 = vld [vmem:[%s8215_s24 + $0x8c0] sm:$0xff]  }
  0xe9   : > { %5166 = vmatmul.mubr.bf16.vlgmr.msra.gmra.mrb[16].mxu1 %v1388_v19  ;;  %6900 = vmatprep.subr.bf16.mxu0 %v7624_v20  ;;  %v7681_v19 = vld [vmem:[%s8215_s24 + $0x678] sm:$0xff]  }
  0xea   : > { %6921 = vmatpush3.bf16.msra.mxu1 %v7623_v18  ;;  %5245 = vmatprep.mubr.bf16.mxu1 %v1391_v22  ;;  %v7680_v18 = vld [vmem:[%s8215_s24 + $0x6b0] sm:$0xff]   ;;  %v1407_v20 = vcombine.high %v1399_v16, %v1399_v16  ;;  %v7682_v22 = vld [vmem:[%s8215_s24 + $0x6f8] sm:$0xff]  }
  0xeb   : > { %6922 = vmatprep.subr.bf16.mxu1 %v7625_v21  ;;  %v8498_v21 = vrot.slane %v1392_v17, %v8271_v42 }
  0xec   : > { %6901 = vmatpush3.bf16.msra.mxu0 %v7626_v23  ;;  %v7683_v23 = vld [vmem:[%s8215_s24 + $0x638] sm:$0xff]  }
  0xed   : > { %6902 = vmatprep.subr.bf16.mxu0 %v7628_v25  ;;  %v1408_v25 = vcombine.high %v8498_v21, %v8498_v21 }
  0xee   : > { %6923 = vmatpush3.bf16.msra.mxu1 %v7627_v24  ;;  %v1429_v24 = vrot.slane %v1407_v20, %v8271_v42  ;;  %v7724_v20 = vld [vmem:[%s8215_s24 + $0x808] sm:$0xff]  }
  0xef   : > { %6924 = vmatprep.subr.bf16.mxu1 %v7629_v26  ;;  %v7684_v26 = vld [vmem:[%s8215_s24 + $0x6b8] sm:$0xff]  }
  0xf0   : > { %6903 = vmatpush3.bf16.msra.mxu0 %v7630_v27  ;;  %v1439_v27 = vcombine.high %v1429_v24, %v1429_v24 }
  0xf1   : > { %6904 = vmatprep.subr.bf16.mxu0 %v7632_v29  ;;  %v7685_v29 = vld [vmem:[%s8215_s24 + $0x740] sm:$0xff]  }
  0xf2   : > { %6925 = vmatpush3.bf16.msra.mxu1 %v7631_v28  ;;  %v1415_v28 = vrot.slane %v1399_v16, %v8271_v42  ;;  %v7721_v16 = vld [vmem:[%s8215_s24 + $0x880] sm:$0xff]  }
  0xf3   : > { %6926 = vmatprep.subr.bf16.mxu1 %v7633_v30  ;;  %v7686_v30 = vld [vmem:[%s8215_s24 + $0x7c0] sm:$0xff]  }
  0xf4   : > { %6905 = vmatpush3.bf16.msra.mxu0 %v7634_v31  ;;  %v1436_v31 = vrot.slane %v1408_v25, %v8271_v42  ;;  %v7729_v25 = vld [vmem:[%s8215_s24 + $0x890] sm:$0xff]  }
  0xf5   : > { %6906 = vmatprep.subr.bf16.mxu0 %v7636_v33  ;;  %v7688_v33 = vld [vmem:[%s8215_s24 + $0x780] sm:$0xff]  }
  0xf6   : > { %6927 = vmatpush3.bf16.msra.mxu1 %v7635_v32  ;;  %v7687_v32 = vld [vmem:[%s8215_s24 + $0x700] sm:$0xff]  }
  0xf7   : > { %6928 = vmatprep.subr.bf16.mxu1 %v7637_v34  ;;  %v1437_v34 = vcombine.high %v1415_v28, %v1415_v28 }
  0xf8   : > { %6907 = vmatpush3.bf16.msra.mxu0 %v7638_v35  ;;  %v7689_v35 = vld [vmem:[%s8215_s24 + $0x748] sm:$0xff]  }
  0xf9   : > { %6908 = vmatprep.subr.bf16.mxu0 %v7640_v37  ;;  %v1440_v37 = vcombine.high %v1436_v31, %v1436_v31 }
  0xfa   : > { %6929 = vmatpush3.bf16.msra.mxu1 %v7639_v36  ;;  %v7690_v36 = vld [vmem:[%s8215_s24 + $0x7c8] sm:$0xff]  }
  0xfb   : > { %6930 = vmatprep.subr.bf16.mxu1 %v7641_v38  ;;  %v7691_v38 = vld [vmem:[%s8215_s24 + $0x708] sm:$0xff]  }
  0xfc   : > { %6909 = vmatpush3.bf16.msra.mxu0 %v7642_v39  ;;  %v7692_v39 = vld [vmem:[%s8215_s24 + $0x788] sm:$0xff]  }
  0xfd   : > { %6910 = vmatprep.subr.bf16.mxu0 %v7644_v41  ;;  %v7694_v41 = vld [vmem:[%s8215_s24 + $0x7d0] sm:$0xff]  }
  0xfe   : > { %6931 = vmatpush3.bf16.msra.mxu1 %v7643_v40  ;;  %v7693_v40 = vld [vmem:[%s8215_s24 + $0x750] sm:$0xff]  }
  0xff   : > { %6932 = vmatprep.subr.bf16.mxu1 %v7645_v43  ;;  %v7695_v43 = vld [vmem:[%s8215_s24 + $0x710] sm:$0xff]  }
 0x100   : > { %6911 = vmatpush3.bf16.msra.mxu0 %v7646_v44  ;;  %v7696_v44 = vld [vmem:[%s8215_s24 + $0x790] sm:$0xff]  }
 0x101   : > { %6912 = vmatprep.subr.bf16.mxu0 %v7648_v46  ;;  %v7698_v46 = vld [vmem:[%s8215_s24 + $0x7d8] sm:$0xff]  }
 0x102   : > { %6933 = vmatpush3.bf16.msra.mxu1 %v7647_v45  ;;  %v7697_v45 = vld [vmem:[%s8215_s24 + $0x758] sm:$0xff]  }
 0x103   : > { %6934 = vmatprep.subr.bf16.mxu1 %v7649_v47  ;;  %v7699_v47 = vld [vmem:[%s8215_s24 + $0x718] sm:$0xff]  }
 0x104   : > { %6913 = vmatpush3.bf16.msra.mxu0 %v7650_v48  ;;  %v7700_v48 = vld [vmem:[%s8215_s24 + $0x798] sm:$0xff]  }
 0x105   : > { %6942 = vmatprep.subr.bf16.mxu0 %v7653_v51  ;;  %v7703_v51 = vld [vmem:[%s8215_s24 + $0x720] sm:$0xff]  }
 0x106   : > { %6935 = vmatpush3.bf16.msra.mxu1 %v7651_v49  ;;  %v7701_v49 = vld [vmem:[%s8215_s24 + $0x760] sm:$0xff]  }
 0x107   : > { %5206 = vmatmul.mubr.bf16.vlgmr.msra.gmra.mrb[20].mxu0 %v1373_v50  ;;  %6964 = vmatprep.subr.bf16.mxu1 %v7654_v52  ;;  %v7702_v50 = vld [vmem:[%s8215_s24 + $0x7e0] sm:$0xff]  }
 0x108   : > { %6943 = vmatpush3.bf16.msra.mxu0 %v7655_v53  ;;  %5285 = vmatprep.mubr.bf16.mxu0 %v1429_v24  ;;  %v7704_v52 = vld [vmem:[%s8215_s24 + $0x7a0] sm:$0xff]   ;;  %v7705_v53 = vld [vmem:[%s8215_s24 + $0x768] sm:$0xff]   ;;  %v7728_v24 = vld [vmem:[%s8215_s24 + $0x810] sm:$0xff]  }
 0x109   : > { %5246 = vmatmul.mubr.bf16.vlgmr.msra.gmra.mrb[20].mxu1 %v1389_v55  ;;  %6944 = vmatprep.subr.bf16.mxu0 %v7657_v56  ;;  %v7707_v55 = vld [vmem:[%s8215_s24 + $0x728] sm:$0xff]  }
 0x10a   : > { %6965 = vmatpush3.bf16.msra.mxu1 %v7656_v54  ;;  %5325 = vmatprep.mubr.bf16.mxu1 %v1439_v27  ;;  %v7706_v54 = vld [vmem:[%s8215_s24 + $0x7e8] sm:$0xff]   ;;  %v7731_v27 = vld [vmem:[%s8215_s24 + $0x8d8] sm:$0xff]  }
 0x10b   : > { %6966 = vmatprep.subr.bf16.mxu1 %v7658_v57  ;;  %v7708_v56 = vld [vmem:[%s8215_s24 + $0x7a8] sm:$0xff]   ;;  %v7709_v57 = vld [vmem:[%s8215_s24 + $0x770] sm:$0xff]  }
 0x10c   : > { %6945 = vmatpush3.bf16.msra.mxu0 %v7659_v58 }
 0x10d   : > { %6946 = vmatprep.subr.bf16.mxu0 %v7661_v60 }
 0x10e   : > { %6967 = vmatpush3.bf16.msra.mxu1 %v7660_v59  ;;  %v7710_v59 = vld [vmem:[%s8215_s24 + $0x7f0] sm:$0xff]  }
 0x10f   : > { %6968 = vmatprep.subr.bf16.mxu1 %v7662_v61  ;;  %v7711_v61 = vld [vmem:[%s8215_s24 + $0x730] sm:$0xff]  }
 0x110   : > { %6947 = vmatpush3.bf16.msra.mxu0 %v7663_v62 }
 0x111   : > { %6948 = vmatprep.subr.bf16.mxu0 %v7665_v0 }
 0x112   : > { %6969 = vmatpush3.bf16.msra.mxu1 %v7664_v63 }
 0x113   : > { %6970 = vmatprep.subr.bf16.mxu1 %v7666_v1  ;;  %v7712_v1 = vld [vmem:[%s8215_s24 + $0x7b0] sm:$0xff]  }
 0x114   : > { %6949 = vmatpush3.bf16.msra.mxu0 %v7667_v2  ;;  %v7713_v2 = vld [vmem:[%s8215_s24 + $0x778] sm:$0xff]  }
 0x115   : > { %6950 = vmatprep.subr.bf16.mxu0 %v7669_v4 }
 0x116   : > { %6971 = vmatpush3.bf16.msra.mxu1 %v7668_v3 }
 0x117   : > { %6972 = vmatprep.subr.bf16.mxu1 %v7670_v5 }
 0x118   : > { %6951 = vmatpush3.bf16.msra.mxu0 %v7671_v6 }
 0x119   : > { %6952 = vmatprep.subr.bf16.mxu0 %v7673_v8 }
 0x11a   : > { %6973 = vmatpush3.bf16.msra.mxu1 %v7672_v7  ;;  %v7714_v7 = vld [vmem:[%s8215_s24 + $0x7f8] sm:$0xff]  }
 0x11b   : > { %6974 = vmatprep.subr.bf16.mxu1 %v7674_v9  ;;  %v7715_v9 = vld [vmem:[%s8215_s24 + $0x738] sm:$0xff]  }
 0x11c   : > { %6953 = vmatpush3.bf16.msra.mxu0 %v7675_v10 }
 0x11d   : > { %6954 = vmatprep.subr.bf16.mxu0 %v7677_v12  ;;  %v1422_v12 = vrot.slane %v8498_v21, %v8271_v42  ;;  %v7725_v21 = vld [vmem:[%s8215_s24 + $0x888] sm:$0xff]  }
 0x11e   : > { %6975 = vmatpush3.bf16.msra.mxu1 %v7676_v11  ;;  %v7716_v11 = vld [vmem:[%s8215_s24 + $0x7b8] sm:$0xff]  }
 0x11f   : > { %6976 = vmatprep.subr.bf16.mxu1 %v7678_v13  ;;  %v7718_v13 = vld [vmem:[%s8215_s24 + $0x840] sm:$0xff]   ;;  %v1438_v17 = vcombine.high %v1422_v12, %v1422_v12 }
 0x120   : > { %6955 = vmatpush3.bf16.msra.mxu0 %v7679_v15  ;;  %v7720_v15 = vld [vmem:[%s8215_s24 + $0x800] sm:$0xff]  }
 0x121   : > { %6956 = vmatprep.subr.bf16.mxu0 %v7681_v19  ;;  %v7723_v19 = vld [vmem:[%s8215_s24 + $0x8c8] sm:$0xff]  }
 0x122   : > { %6977 = vmatpush3.bf16.msra.mxu1 %v7680_v18  ;;  %v7722_v18 = vld [vmem:[%s8215_s24 + $0x848] sm:$0xff]  }
 0x123   : > { %6978 = vmatprep.subr.bf16.mxu1 %v7682_v22  ;;  %v7726_v22 = vld [vmem:[%s8215_s24 + $0x850] sm:$0xff]  }
 0x124   : > { %6957 = vmatpush3.bf16.msra.mxu0 %v7683_v23  ;;  %v7727_v23 = vld [vmem:[%s8215_s24 + $0x8d0] sm:$0xff]  }
 0x125   : > { %6986 = vmatprep.subr.bf16.mxu0 %v7685_v29  ;;  %v7733_v29 = vld [vmem:[%s8215_s24 + $0x898] sm:$0xff]  }
 0x126   : > { %6979 = vmatpush3.bf16.msra.mxu1 %v7684_v26  ;;  %v7730_v26 = vld [vmem:[%s8215_s24 + $0x858] sm:$0xff]  }
 0x127   : > { %5286 = vmatmul.mubr.bf16.vlgmr.msra.gmra.mrb[24].mxu0 %v1415_v28  ;;  %7008 = vmatprep.subr.bf16.mxu1 %v7686_v30  ;;  %v7732_v28 = vld [vmem:[%s8215_s24 + $0x818] sm:$0xff]   ;;  %v7734_v30 = vld [vmem:[%s8215_s24 + $0x860] sm:$0xff]  }
 0x128   : > { %6987 = vmatpush3.bf16.msra.mxu0 %v7687_v32  ;;  %5365 = vmatprep.mubr.bf16.mxu0 %v1436_v31  ;;  %v7735_v31 = vld [vmem:[%s8215_s24 + $0x8e0] sm:$0xff]  }
 0x129   : > { %5326 = vmatmul.mubr.bf16.vlgmr.msra.gmra.mrb[24].mxu1 %v1437_v34  ;;  %6988 = vmatprep.subr.bf16.mxu0 %v7689_v35  ;;  %v7736_v32 = vld [vmem:[%s8215_s24 + $0x820] sm:$0xff]   ;;  %v7738_v34 = vld [vmem:[%s8215_s24 + $0x868] sm:$0xff]  }
 0x12a   : > { %7009 = vmatpush3.bf16.msra.mxu1 %v7688_v33  ;;  %5405 = vmatprep.mubr.bf16.mxu1 %v1440_v37  ;;  %v7737_v33 = vld [vmem:[%s8215_s24 + $0x8a0] sm:$0xff]   ;;  %v7739_v35 = vld [vmem:[%s8215_s24 + $0x8e8] sm:$0xff]  }
 0x12b   : > { %7010 = vmatprep.subr.bf16.mxu1 %v7690_v36  ;;  %v7740_v36 = vld [vmem:[%s8215_s24 + $0x828] sm:$0xff]  }
 0x12c   : > { %6989 = vmatpush3.bf16.msra.mxu0 %v7691_v38  ;;  %v7741_v37 = vld [vmem:[%s8215_s24 + $0x8a8] sm:$0xff]   ;;  %v7742_v38 = vld [vmem:[%s8215_s24 + $0x870] sm:$0xff]  }
 0x12d   : > { %6990 = vmatprep.subr.bf16.mxu0 %v7693_v40  ;;  %v7743_v40 = vld [vmem:[%s8215_s24 + $0x8f0] sm:$0xff]  }
 0x12e   : > { %7011 = vmatpush3.bf16.msra.mxu1 %v7692_v39 }
 0x12f   : > { %7012 = vmatprep.subr.bf16.mxu1 %v7694_v41  ;;  %v209_v41 = vld [vmem:[%s8227_s25 + $0x20] sm:$0xff] }
 0x130   : > { %6991 = vmatpush3.bf16.msra.mxu0 %v7695_v43 }
 0x131   : > { %6992 = vmatprep.subr.bf16.mxu0 %v7697_v45  ;;  %v1448_v45 = vrot.slane %v209_v41, %v8271_v42 }
 0x132   : > { %7013 = vmatpush3.bf16.msra.mxu1 %v7696_v44  ;;  %v7744_v44 = vld [vmem:[%s8215_s24 + $0x830] sm:$0xff]  }
 0x133   : > { %7014 = vmatprep.subr.bf16.mxu1 %v7698_v46  ;;  %v1441_v46 = vcombine.high %v209_v41, %v209_v41 }
 0x134   : > { %6993 = vmatpush3.bf16.msra.mxu0 %v7699_v47 }
 0x135   : > { %6994 = vmatprep.subr.bf16.mxu0 %v7701_v49 }
 0x136   : > { %7015 = vmatpush3.bf16.msra.mxu1 %v7700_v48 }
 0x137   : > { %7016 = vmatprep.subr.bf16.mxu1 %v7702_v50 }
 0x138   : > { %6995 = vmatpush3.bf16.msra.mxu0 %v7703_v51 }
 0x139   : > { %6996 = vmatprep.subr.bf16.mxu0 %v7705_v53  ;;  %v7746_v53 = vld [vmem:[%s8215_s24 + $0x878] sm:$0xff]  }
 0x13a   : > { %7017 = vmatpush3.bf16.msra.mxu1 %v7704_v52  ;;  %v6694_v58 = vpop.f32.mrb[0].mxu0  ;;  %v7745_v52 = vld [vmem:[%s8215_s24 + $0x8b0] sm:$0xff]  }
 0x13b   : > { %v6695_v60 = vpop.f32.mrb[1].mxu0  ;;  %7018 = vmatprep.subr.bf16.mxu1 %v7706_v54  ;;  %v6716_v62 = vpop.f32.mrb[0].mxu1  ;;  %v1456_v54 = vcombine.high %v1448_v45, %v1448_v45 }
 0x13c   : > { %v6696_v63 = vadd.f32 %v6695_v60, %v6694_v58  ;;  %v6697_v0 = vpop.f32.mrb[2].mxu0  ;;  %6997 = vmatpush3.bf16.msra.mxu0 %v7707_v55  ;;  %v6717_v3 = vpop.f32.mrb[1].mxu1  ;;  %v8576_v55 = vrot.slane %v1441_v46, %v8271_v42 }
 0x13d   : > { %v6698_v4 = vpop.f32.mrb[3].mxu0  ;;  %6998 = vmatprep.subr.bf16.mxu0 %v7709_v57  ;;  %v6718_v5 = vadd.f32 %v6717_v3, %v6716_v62  ;;  %v6719_v6 = vpop.f32.mrb[2].mxu1  ;;  %v1478_v62 = vrot.slane %v1456_v54, %v8271_v42  ;;  %v1464_v3 = vrot.slane %v1448_v45, %v8271_v42  ;;  %v7784_v54 = vld [vmem:[%s8215_s24 + $0xac0] sm:$0xff]  }
 0x13e   : > { %7019 = vmatpush3.bf16.msra.mxu1 %v7708_v56  ;;  %v6720_v8 = vpop.f32.mrb[3].mxu1  ;;  %v7750_v4 = vld [vmem:[%s8215_s24 + $0x940] sm:$0xff]  }
 0x13f   : > { %7020 = vmatprep.subr.bf16.mxu1 %v7710_v59  ;;  %v8539_v10 = vadd.f32 %v6718_v5, %v6696_v63  ;;  %v7747_v59 = vld [vmem:[%s8215_s24 + $0x8f8] sm:$0xff]   ;;  %v1457_v63 = vcombine.high %v8576_v55, %v8576_v55  ;;  %v7751_v5 = vld [vmem:[%s8215_s24 + $0x9c0] sm:$0xff]  }
 0x140   : > { %6999 = vmatpush3.bf16.msra.mxu0 %v7711_v61  ;;  %v7748_v61 = vld [vmem:[%s8215_s24 + $0x838] sm:$0xff]   ;;  %v7753_v8 = vld [vmem:[%s8215_s24 + $0x980] sm:$0xff]  }
 0x141   : > { %7000 = vmatprep.subr.bf16.mxu0 %v7713_v2  ;;  %v1488_v2 = vcombine.high %v1478_v62, %v1478_v62  ;;  %v1485_v6 = vrot.slane %v1457_v63, %v8271_v42  ;;  %v7792_v63 = vld [vmem:[%s8215_s24 + $0xad0] sm:$0xff]  }
 0x142   : > { %7021 = vmatpush3.bf16.msra.mxu1 %v7712_v1  ;;  %v7749_v1 = vld [vmem:[%s8215_s24 + $0x8b8] sm:$0xff]  }
 0x143   : > { %7022 = vmatprep.subr.bf16.mxu1 %v7714_v7  ;;  %v7752_v7 = vld [vmem:[%s8215_s24 + $0x900] sm:$0xff]  }
 0x144   : > { %7001 = vmatpush3.bf16.msra.mxu0 %v7715_v9  ;;  %v1486_v9 = vcombine.high %v1464_v3, %v1464_v3 }
 0x145   : > { %7030 = vmatprep.subr.bf16.mxu0 %v7718_v13  ;;  %v7756_v13 = vld [vmem:[%s8215_s24 + $0x908] sm:$0xff]  }
 0x146   : > { %7023 = vmatpush3.bf16.msra.mxu1 %v7716_v11  ;;  %v7755_v11 = vld [vmem:[%s8215_s24 + $0x9c8] sm:$0xff]  }
 0x147   : > { %5366 = vmatmul.mubr.bf16.vlgmr.msra.gmra.mrb[28].mxu0 %v1422_v12  ;;  %7052 = vmatprep.subr.bf16.mxu1 %v7719_v14  ;;  %v1489_v12 = vcombine.high %v1485_v6, %v1485_v6  ;;  %v7757_v14 = vld [vmem:[%s8215_s24 + $0x988] sm:$0xff]  }
 0x148   : > { %7031 = vmatpush3.bf16.msra.mxu0 %v7720_v15  ;;  %5445 = vmatprep.mubr.bf16.mxu0 %v1478_v62  ;;  %v7758_v15 = vld [vmem:[%s8215_s24 + $0x950] sm:$0xff]  }
 0x149   : > { %5406 = vmatmul.mubr.bf16.vlgmr.msra.gmra.mrb[28].mxu1 %v1438_v17  ;;  %7032 = vmatprep.subr.bf16.mxu0 %v7722_v18  ;;  %v7760_v17 = vld [vmem:[%s8215_s24 + $0x910] sm:$0xff]  }
 0x14a   : > { %7053 = vmatpush3.bf16.msra.mxu1 %v7721_v16  ;;  %5485 = vmatprep.mubr.bf16.mxu1 %v1488_v2  ;;  %v7759_v16 = vld [vmem:[%s8215_s24 + $0x9d0] sm:$0xff]   ;;  %v7795_v2 = vld [vmem:[%s8215_s24 + $0xa58] sm:$0xff]  }
 0x14b   : > { %7054 = vmatprep.subr.bf16.mxu1 %v7723_v19  ;;  %v7761_v18 = vld [vmem:[%s8215_s24 + $0x990] sm:$0xff]   ;;  %v7762_v19 = vld [vmem:[%s8215_s24 + $0x958] sm:$0xff]  }
 0x14c   : > { %7033 = vmatpush3.bf16.msra.mxu0 %v7724_v20  ;;  %v7763_v20 = vld [vmem:[%s8215_s24 + $0x9d8] sm:$0xff]   ;;  %v7791_v62 = vld [vmem:[%s8215_s24 + $0xa50] sm:$0xff]  }
 0x14d   : > { %7034 = vmatprep.subr.bf16.mxu0 %v7726_v22  ;;  %v7765_v22 = vld [vmem:[%s8215_s24 + $0x998] sm:$0xff]  }
 0x14e   : > { %7055 = vmatpush3.bf16.msra.mxu1 %v7725_v21  ;;  %v7764_v21 = vld [vmem:[%s8215_s24 + $0x918] sm:$0xff]  }
 0x14f   : > { %7056 = vmatprep.subr.bf16.mxu1 %v7727_v23  ;;  %v7766_v23 = vld [vmem:[%s8215_s24 + $0x960] sm:$0xff]  }
 0x150   : > { %7035 = vmatpush3.bf16.msra.mxu0 %v7728_v24  ;;  %v7767_v24 = vld [vmem:[%s8215_s24 + $0x9e0] sm:$0xff]  }
 0x151   : > { %7036 = vmatprep.subr.bf16.mxu0 %v7730_v26  ;;  %v7769_v26 = vld [vmem:[%s8215_s24 + $0x9a0] sm:$0xff]  }
 0x152   : > { %7057 = vmatpush3.bf16.msra.mxu1 %v7729_v25  ;;  %v7768_v25 = vld [vmem:[%s8215_s24 + $0x920] sm:$0xff]  }
 0x153   : > { %7058 = vmatprep.subr.bf16.mxu1 %v7731_v27  ;;  %v7770_v27 = vld [vmem:[%s8215_s24 + $0x968] sm:$0xff]  }
 0x154   : > { %7037 = vmatpush3.bf16.msra.mxu0 %v7732_v28  ;;  %v7771_v28 = vld [vmem:[%s8215_s24 + $0x9e8] sm:$0xff]  }
 0x155   : > { %7038 = vmatprep.subr.bf16.mxu0 %v7734_v30  ;;  %v7773_v30 = vld [vmem:[%s8215_s24 + $0x9a8] sm:$0xff]  }
 0x156   : > { %7059 = vmatpush3.bf16.msra.mxu1 %v7733_v29  ;;  %v7772_v29 = vld [vmem:[%s8215_s24 + $0x928] sm:$0xff]  }
 0x157   : > { %7060 = vmatprep.subr.bf16.mxu1 %v7735_v31  ;;  %v7774_v31 = vld [vmem:[%s8215_s24 + $0x970] sm:$0xff]  }
 0x158   : > { %7039 = vmatpush3.bf16.msra.mxu0 %v7736_v32 }
 0x159   : > { %7040 = vmatprep.subr.bf16.mxu0 %v7738_v34 }
 0x15a   : > { %7061 = vmatpush3.bf16.msra.mxu1 %v7737_v33  ;;  %v6738_v39 = vpop.f32.mrb[4].mxu0  ;;  %v7775_v33 = vld [vmem:[%s8215_s24 + $0x9f0] sm:$0xff]  }
 0x15b   : > { %v6739_v43 = vpop.f32.mrb[5].mxu0  ;;  %7062 = vmatprep.subr.bf16.mxu1 %v7739_v35  ;;  %v6760_v47 = vpop.f32.mrb[4].mxu1  ;;  %v7776_v35 = vld [vmem:[%s8215_s24 + $0x930] sm:$0xff]  }
 0x15c   : > { %v6740_v48 = vadd.f32 %v6739_v43, %v6738_v39  ;;  %v6741_v49 = vpop.f32.mrb[6].mxu0  ;;  %7041 = vmatpush3.bf16.msra.mxu0 %v7740_v36  ;;  %v6761_v50 = vpop.f32.mrb[5].mxu1  ;;  %v7777_v39 = vld [vmem:[%s8215_s24 + $0x9b0] sm:$0xff]  }
 0x15d   : > { %v6742_v51 = vpop.f32.mrb[7].mxu0  ;;  %7042 = vmatprep.subr.bf16.mxu0 %v7742_v38  ;;  %v6762_v57 = vadd.f32 %v6761_v50, %v6760_v47  ;;  %v6763_v58 = vpop.f32.mrb[6].mxu1  ;;  %v7779_v47 = vld [vmem:[%s8215_s24 + $0x9f8] sm:$0xff]  }
 0x15e   : > { %v4888_v56 = vadd.f32 %v6740_v48, %v8539_v10  ;;  %7063 = vmatpush3.bf16.msra.mxu1 %v7741_v37  ;;  %v6764_v60 = vpop.f32.mrb[7].mxu1  ;;  %v7754_v10 = vld [vmem:[%s8215_s24 + $0x948] sm:$0xff]   ;;  %v7780_v49 = vld [vmem:[%s8215_s24 + $0x938] sm:$0xff]  }
 0x15f   : > { %7064 = vmatprep.subr.bf16.mxu1 %v7743_v40  ;;  %v7778_v40 = vld [vmem:[%s8215_s24 + $0x978] sm:$0xff]   ;;  %v7788_v60 = vld [vmem:[%s8215_s24 + $0xac8] sm:$0xff]  }
 0x160   : > { %v8584_v0 = vadd.f32 %v6762_v57, %v4888_v56  ;;  %7043 = vmatpush3.bf16.msra.mxu0 %v7744_v44  ;;  %v7781_v51 = vld [vmem:[%s8215_s24 + $0x9b8] sm:$0xff]   ;;  %v7785_v56 = vld [vmem:[%s8215_s24 + $0xa00] sm:$0xff]  }
 0x161   : > { %7044 = vmatprep.subr.bf16.mxu0 %v7746_v53  ;;  %v7783_v53 = vld [vmem:[%s8215_s24 + $0xa40] sm:$0xff]  }
 0x162   : > { %7065 = vmatpush3.bf16.msra.mxu1 %v7745_v52  ;;  %v1471_v52 = vrot.slane %v8576_v55, %v8271_v42  ;;  %v7786_v57 = vld [vmem:[%s8215_s24 + $0xa80] sm:$0xff]   ;;  %v7789_v55 = vld [vmem:[%s8215_s24 + $0xa08] sm:$0xff]  }
 0x163   : > { %7066 = vmatprep.subr.bf16.mxu1 %v7747_v59  ;;  %v7787_v59 = vld [vmem:[%s8215_s24 + $0xa48] sm:$0xff]  }
 0x164   : > { %7045 = vmatpush3.bf16.msra.mxu0 %v7748_v61  ;;  %v1487_v58 = vcombine.high %v1471_v52, %v1471_v52  ;;  %v7790_v61 = vld [vmem:[%s8215_s24 + $0xa88] sm:$0xff]  }
 0x165   : > { %7074 = vmatprep.subr.bf16.mxu0 %v7750_v4  ;;  %v7797_v4 = vld [vmem:[%s8215_s24 + $0xa18] sm:$0xff]  }
 0x166   : > { %7067 = vmatpush3.bf16.msra.mxu1 %v7749_v1  ;;  %v7794_v1 = vld [vmem:[%s8215_s24 + $0xa90] sm:$0xff]  }
 0x167   : > { %5446 = vmatmul.mubr.bf16.vlgmr.msra.gmra.mrb[32].mxu0 %v1464_v3  ;;  %7096 = vmatprep.subr.bf16.mxu1 %v7751_v5  ;;  %v7796_v3 = vld [vmem:[%s8215_s24 + $0xad8] sm:$0xff]  }
 0x168   : > { %7075 = vmatpush3.bf16.msra.mxu0 %v7752_v7  ;;  %5525 = vmatprep.mubr.bf16.mxu0 %v1485_v6  ;;  %v7798_v5 = vld [vmem:[%s8215_s24 + $0xa98] sm:$0xff]   ;;  %v7799_v6 = vld [vmem:[%s8215_s24 + $0xa60] sm:$0xff]  }
 0x169   : > { %5486 = vmatmul.mubr.bf16.vlgmr.msra.gmra.mrb[32].mxu1 %v1486_v9  ;;  %7076 = vmatprep.subr.bf16.mxu0 %v7754_v10  ;;  %v7800_v7 = vld [vmem:[%s8215_s24 + $0xae0] sm:$0xff]   ;;  %v7803_v10 = vld [vmem:[%s8215_s24 + $0xa68] sm:$0xff]  }
 0x16a   : > { %7097 = vmatpush3.bf16.msra.mxu1 %v7753_v8  ;;  %5565 = vmatprep.mubr.bf16.mxu1 %v1489_v12  ;;  %v7801_v8 = vld [vmem:[%s8215_s24 + $0xa20] sm:$0xff]   ;;  %v7805_v12 = vld [vmem:[%s8215_s24 + $0xa28] sm:$0xff]  }
 0x16b   : > { %7098 = vmatprep.subr.bf16.mxu1 %v7755_v11  ;;  %v7802_v9 = vld [vmem:[%s8215_s24 + $0xaa0] sm:$0xff]   ;;  %v7804_v11 = vld [vmem:[%s8215_s24 + $0xae8] sm:$0xff]  }
 0x16c   : > { %7077 = vmatpush3.bf16.msra.mxu0 %v7756_v13  ;;  %v7806_v13 = vld [vmem:[%s8215_s24 + $0xaa8] sm:$0xff]  }
 0x16d   : > { %7078 = vmatprep.subr.bf16.mxu0 %v7758_v15 }
 0x16e   : > { %7099 = vmatpush3.bf16.msra.mxu1 %v7757_v14  ;;  %v7807_v14 = vld [vmem:[%s8215_s24 + $0xa70] sm:$0xff]  }
 0x16f   : > { %7100 = vmatprep.subr.bf16.mxu1 %v7759_v16  ;;  %v7808_v16 = vld [vmem:[%s8215_s24 + $0xaf0] sm:$0xff]  }
 0x170   : > { %7079 = vmatpush3.bf16.msra.mxu0 %v7760_v17 }
 0x171   : > { %7080 = vmatprep.subr.bf16.mxu0 %v7762_v19  ;;  %v210_v19 = vld [vmem:[%s8227_s25 + $0x28] sm:$0xff] }
 0x172   : > { %7101 = vmatpush3.bf16.msra.mxu1 %v7761_v18  ;;  %v7809_v18 = vld [vmem:[%s8215_s24 + $0xa30] sm:$0xff]  }
 0x173   : > { %7102 = vmatprep.subr.bf16.mxu1 %v7763_v20 }
 0x174   : > { %7081 = vmatpush3.bf16.msra.mxu0 %v7764_v21 }
 0x175   : > { %7082 = vmatprep.subr.bf16.mxu0 %v7766_v23  ;;  %v1497_v23 = vrot.slane %v210_v19, %v8271_v42 }
 0x176   : > { %7103 = vmatpush3.bf16.msra.mxu1 %v7765_v22 }
 0x177   : > { %7104 = vmatprep.subr.bf16.mxu1 %v7767_v24  ;;  %v1490_v24 = vcombine.high %v210_v19, %v210_v19 }
 0x178   : > { %7083 = vmatpush3.bf16.msra.mxu0 %v7768_v25 }
 0x179   : > { %7084 = vmatprep.subr.bf16.mxu0 %v7770_v27  ;;  %v7810_v27 = vld [vmem:[%s8215_s24 + $0xab0] sm:$0xff]  }
 0x17a   : > { %7105 = vmatpush3.bf16.msra.mxu1 %v7769_v26  ;;  %v6782_v32 = vpop.f32.mrb[8].mxu0 }
 0x17b   : > { %v6783_v34 = vpop.f32.mrb[9].mxu0  ;;  %7106 = vmatprep.subr.bf16.mxu1 %v7771_v28  ;;  %v7811_v28 = vld [vmem:[%s8215_s24 + $0xa78] sm:$0xff]  }
 0x17c   : > { %v6804_v36 = vpop.f32.mrb[8].mxu1  ;;  %v6784_v37 = vadd.f32 %v6783_v34, %v6782_v32  ;;  %v6785_v38 = vpop.f32.mrb[10].mxu0  ;;  %7085 = vmatpush3.bf16.msra.mxu0 %v7772_v29  ;;  %v7812_v32 = vld [vmem:[%s8215_s24 + $0xaf8] sm:$0xff]  }
 0x17d   : > { %v6805_v41 = vpop.f32.mrb[9].mxu1  ;;  %v6786_v43 = vpop.f32.mrb[11].mxu0  ;;  %7086 = vmatprep.subr.bf16.mxu0 %v7774_v31  ;;  %v7814_v38 = vld [vmem:[%s8215_s24 + $0xab8] sm:$0xff]  }
 0x17e   : > { %v4968_v44 = vadd.f32 %v6784_v37, %v8584_v0  ;;  %v6806_v45 = vadd.f32 %v6805_v41, %v6804_v36  ;;  %v6807_v46 = vpop.f32.mrb[10].mxu1  ;;  %7107 = vmatpush3.bf16.msra.mxu1 %v7773_v30  ;;  %v7793_v0 = vld [vmem:[%s8215_s24 + $0xa10] sm:$0xff]   ;;  %v8661_v36 = vrot.slane %v1490_v24, %v8271_v42  ;;  %v7815_v41 = vld [vmem:[%s8215_s24 + $0xb40] sm:$0xff]   ;;  %v7845_v24 = vld [vmem:[%s8215_s24 + $0xb38] sm:$0xff]  }
 0x17f   : > { %v6808_v48 = vpop.f32.mrb[11].mxu1  ;;  %7108 = vmatprep.subr.bf16.mxu1 %v7775_v33  ;;  %v1505_v33 = vcombine.high %v1497_v23, %v1497_v23  ;;  %v7817_v46 = vld [vmem:[%s8215_s24 + $0xb00] sm:$0xff]  }
 0x180   : > { %v8621_v50 = vadd.f32 %v6806_v45, %v4968_v44  ;;  %7087 = vmatpush3.bf16.msra.mxu0 %v7776_v35  ;;  %v7813_v35 = vld [vmem:[%s8215_s24 + $0xa38] sm:$0xff]   ;;  %v1506_v43 = vcombine.high %v8661_v36, %v8661_v36  ;;  %v7816_v45 = vld [vmem:[%s8215_s24 + $0xbc0] sm:$0xff]  }
 0x181   : > { %7088 = vmatprep.subr.bf16.mxu0 %v7778_v40  ;;  %v1513_v40 = vrot.slane %v1497_v23, %v8271_v42  ;;  %v7818_v48 = vld [vmem:[%s8215_s24 + $0xb80] sm:$0xff]  }
 0x182   : > { %7109 = vmatpush3.bf16.msra.mxu1 %v7777_v39  ;;  %v1527_v39 = vrot.slane %v1505_v33, %v8271_v42  ;;  %v7852_v33 = vld [vmem:[%s8215_s24 + $0xc48] sm:$0xff]  }
 0x183   : > { %7110 = vmatprep.subr.bf16.mxu1 %v7779_v47  ;;  %v1534_v47 = vrot.slane %v1506_v43, %v8271_v42  ;;  %v7861_v43 = vld [vmem:[%s8215_s24 + $0xcd8] sm:$0xff]  }
 0x184   : > { %7089 = vmatpush3.bf16.msra.mxu0 %v7780_v49  ;;  %v1537_v44 = vcombine.high %v1527_v39, %v1527_v39  ;;  %v1535_v49 = vcombine.high %v1513_v40, %v1513_v40 }
 0x185   : > { %7118 = vmatprep.subr.bf16.mxu0 %v7783_v53  ;;  %v7821_v53 = vld [vmem:[%s8215_s24 + $0xb08] sm:$0xff]  }
 0x186   : > { %7111 = vmatpush3.bf16.msra.mxu1 %v7781_v51  ;;  %v7820_v51 = vld [vmem:[%s8215_s24 + $0xbc8] sm:$0xff]  }
 0x187   : > { %5526 = vmatmul.mubr.bf16.vlgmr.msra.gmra.mrb[36].mxu0 %v1471_v52  ;;  %7140 = vmatprep.subr.bf16.mxu1 %v7784_v54  ;;  %v1538_v52 = vcombine.high %v1534_v47, %v1534_v47  ;;  %v7822_v54 = vld [vmem:[%s8215_s24 + $0xb88] sm:$0xff]  }
 0x188   : > { %7119 = vmatpush3.bf16.msra.mxu0 %v7785_v56  ;;  %5605 = vmatprep.mubr.bf16.mxu0 %v1527_v39  ;;  %v7823_v56 = vld [vmem:[%s8215_s24 + $0xb50] sm:$0xff]  }
 0x189   : > { %5566 = vmatmul.mubr.bf16.vlgmr.msra.gmra.mrb[36].mxu1 %v1487_v58  ;;  %7120 = vmatprep.subr.bf16.mxu0 %v7787_v59  ;;  %v7825_v58 = vld [vmem:[%s8215_s24 + $0xb10] sm:$0xff]  }
 0x18a   : > { %7141 = vmatpush3.bf16.msra.mxu1 %v7786_v57  ;;  %5645 = vmatprep.mubr.bf16.mxu1 %v1537_v44  ;;  %v7824_v57 = vld [vmem:[%s8215_s24 + $0xbd0] sm:$0xff]   ;;  %v7862_v44 = vld [vmem:[%s8215_s24 + $0xc18] sm:$0xff]  }
 0x18b   : > { %7142 = vmatprep.subr.bf16.mxu1 %v7788_v60  ;;  %v7826_v59 = vld [vmem:[%s8215_s24 + $0xb90] sm:$0xff]   ;;  %v7827_v60 = vld [vmem:[%s8215_s24 + $0xb58] sm:$0xff]  }
 0x18c   : > { %7121 = vmatpush3.bf16.msra.mxu0 %v7789_v55  ;;  %v7828_v55 = vld [vmem:[%s8215_s24 + $0xbd8] sm:$0xff]   ;;  %v7858_v39 = vld [vmem:[%s8215_s24 + $0xc10] sm:$0xff]  }
 0x18d   : > { %7122 = vmatprep.subr.bf16.mxu0 %v7791_v62  ;;  %v7830_v62 = vld [vmem:[%s8215_s24 + $0xb98] sm:$0xff]  }
 0x18e   : > { %7143 = vmatpush3.bf16.msra.mxu1 %v7790_v61  ;;  %v7829_v61 = vld [vmem:[%s8215_s24 + $0xb18] sm:$0xff]  }
 0x18f   : > { %7144 = vmatprep.subr.bf16.mxu1 %v7792_v63  ;;  %v7831_v63 = vld [vmem:[%s8215_s24 + $0xb60] sm:$0xff]  }
 0x190   : > { %7123 = vmatpush3.bf16.msra.mxu0 %v7793_v0  ;;  %v7832_v0 = vld [vmem:[%s8215_s24 + $0xbe0] sm:$0xff]  }
 0x191   : > { %7124 = vmatprep.subr.bf16.mxu0 %v7795_v2  ;;  %v7834_v2 = vld [vmem:[%s8215_s24 + $0xba0] sm:$0xff]  }
 0x192   : > { %7145 = vmatpush3.bf16.msra.mxu1 %v7794_v1  ;;  %v7833_v1 = vld [vmem:[%s8215_s24 + $0xb20] sm:$0xff]  }
 0x193   : > { %7146 = vmatprep.subr.bf16.mxu1 %v7796_v3  ;;  %v7835_v3 = vld [vmem:[%s8215_s24 + $0xb68] sm:$0xff]  }
 0x194   : > { %7125 = vmatpush3.bf16.msra.mxu0 %v7797_v4  ;;  %v7836_v4 = vld [vmem:[%s8215_s24 + $0xbe8] sm:$0xff]  }
 0x195   : > { %7126 = vmatprep.subr.bf16.mxu0 %v7799_v6  ;;  %v7838_v6 = vld [vmem:[%s8215_s24 + $0xba8] sm:$0xff]  }
 0x196   : > { %7147 = vmatpush3.bf16.msra.mxu1 %v7798_v5  ;;  %v7837_v5 = vld [vmem:[%s8215_s24 + $0xb28] sm:$0xff]  }
 0x197   : > { %7148 = vmatprep.subr.bf16.mxu1 %v7800_v7  ;;  %v7839_v7 = vld [vmem:[%s8215_s24 + $0xb70] sm:$0xff]  }
 0x198   : > { %7127 = vmatpush3.bf16.msra.mxu0 %v7801_v8 }
 0x199   : > { %7128 = vmatprep.subr.bf16.mxu0 %v7803_v10 }
 0x19a   : > { %7149 = vmatpush3.bf16.msra.mxu1 %v7802_v9  ;;  %v6826_v15 = vpop.f32.mrb[12].mxu0  ;;  %v7840_v9 = vld [vmem:[%s8215_s24 + $0xbf0] sm:$0xff]  }
 0x19b   : > { %v6827_v17 = vpop.f32.mrb[13].mxu0  ;;  %7150 = vmatprep.subr.bf16.mxu1 %v7804_v11  ;;  %v7841_v11 = vld [vmem:[%s8215_s24 + $0xb30] sm:$0xff]  }
 0x19c   : > { %v6848_v20 = vpop.f32.mrb[12].mxu1  ;;  %v6828_v21 = vadd.f32 %v6827_v17, %v6826_v15  ;;  %v6829_v22 = vpop.f32.mrb[14].mxu0  ;;  %7129 = vmatpush3.bf16.msra.mxu0 %v7805_v12  ;;  %v7842_v15 = vld [vmem:[%s8215_s24 + $0xbb0] sm:$0xff]  }
 0x19d   : > { %v6849_v25 = vpop.f32.mrb[13].mxu1  ;;  %v6830_v26 = vpop.f32.mrb[15].mxu0  ;;  %7130 = vmatprep.subr.bf16.mxu0 %v7807_v14  ;;  %v7844_v22 = vld [vmem:[%s8215_s24 + $0xbf8] sm:$0xff]  }
 0x19e   : > { %v5048_v29 = vadd.f32 %v6828_v21, %v8621_v50  ;;  %v6850_v30 = vadd.f32 %v6849_v25, %v6848_v20  ;;  %v6851_v31 = vpop.f32.mrb[14].mxu1  ;;  %7151 = vmatpush3.bf16.msra.mxu1 %v7806_v13  ;;  %v7819_v50 = vld [vmem:[%s8215_s24 + $0xb48] sm:$0xff]   ;;  %v7846_v26 = vld [vmem:[%s8215_s24 + $0xbb8] sm:$0xff]  }
 0x19f   : > { %v6852_v34 = vpop.f32.mrb[15].mxu1  ;;  %7152 = vmatprep.subr.bf16.mxu1 %v7808_v16  ;;  %v7843_v16 = vld [vmem:[%s8215_s24 + $0xb78] sm:$0xff]   ;;  %v7851_v31 = vld [vmem:[%s8215_s24 + $0xc80] sm:$0xff]  }
 0x1a0   : > { %v8663_v37 = vadd.f32 %v6850_v30, %v5048_v29  ;;  %7131 = vmatpush3.bf16.msra.mxu0 %v7809_v18  ;;  %v7849_v29 = vld [vmem:[%s8215_s24 + $0xcc0] sm:$0xff]   ;;  %v7853_v34 = vld [vmem:[%s8215_s24 + $0xcc8] sm:$0xff]  }
 0x1a1   : > { %7132 = vmatprep.subr.bf16.mxu0 %v7811_v28  ;;  %v7848_v28 = vld [vmem:[%s8215_s24 + $0xc40] sm:$0xff]  }
 0x1a2   : > { %7153 = vmatpush3.bf16.msra.mxu1 %v7810_v27  ;;  %v1520_v27 = vrot.slane %v8661_v36, %v8271_v42  ;;  %v7850_v30 = vld [vmem:[%s8215_s24 + $0xc00] sm:$0xff]   ;;  %v7855_v36 = vld [vmem:[%s8215_s24 + $0xc88] sm:$0xff]  }
 0x1a3   : > { %7154 = vmatprep.subr.bf16.mxu1 %v7812_v32 }
 0x1a4   : > { %7133 = vmatpush3.bf16.msra.mxu0 %v7813_v35  ;;  %v1536_v32 = vcombine.high %v1520_v27, %v1520_v27  ;;  %v7854_v35 = vld [vmem:[%s8215_s24 + $0xc08] sm:$0xff]  }
 0x1a5   : > { %7162 = vmatprep.subr.bf16.mxu0 %v7815_v41  ;;  %v7860_v41 = vld [vmem:[%s8215_s24 + $0xc58] sm:$0xff]  }
 0x1a6   : > { %7155 = vmatpush3.bf16.msra.mxu1 %v7814_v38  ;;  %v7857_v38 = vld [vmem:[%s8215_s24 + $0xcd0] sm:$0xff]  }
 0x1a7   : > { %5606 = vmatmul.mubr.bf16.vlgmr.msra.gmra.mrb[40].mxu0 %v1513_v40  ;;  %7184 = vmatprep.subr.bf16.mxu1 %v7816_v45  ;;  %v7859_v40 = vld [vmem:[%s8215_s24 + $0xc90] sm:$0xff]   ;;  %v7863_v45 = vld [vmem:[%s8215_s24 + $0xc98] sm:$0xff]  }
 0x1a8   : > { %7163 = vmatpush3.bf16.msra.mxu0 %v7817_v46  ;;  %5685 = vmatprep.mubr.bf16.mxu0 %v1534_v47  ;;  %v7864_v46 = vld [vmem:[%s8215_s24 + $0xc60] sm:$0xff]  }
 0x1a9   : > { %5646 = vmatmul.mubr.bf16.vlgmr.msra.gmra.mrb[40].mxu1 %v1535_v49  ;;  %7164 = vmatprep.subr.bf16.mxu0 %v7819_v50  ;;  %v7865_v47 = vld [vmem:[%s8215_s24 + $0xce0] sm:$0xff]   ;;  %v7868_v50 = vld [vmem:[%s8215_s24 + $0xc68] sm:$0xff]  }
 0x1aa   : > { %7185 = vmatpush3.bf16.msra.mxu1 %v7818_v48  ;;  %5725 = vmatprep.mubr.bf16.mxu1 %v1538_v52  ;;  %v7866_v48 = vld [vmem:[%s8215_s24 + $0xc20] sm:$0xff]   ;;  %v7870_v52 = vld [vmem:[%s8215_s24 + $0xc28] sm:$0xff]  }
 0x1ab   : > { %7186 = vmatprep.subr.bf16.mxu1 %v7820_v51  ;;  %v7867_v49 = vld [vmem:[%s8215_s24 + $0xca0] sm:$0xff]   ;;  %v7869_v51 = vld [vmem:[%s8215_s24 + $0xce8] sm:$0xff]  }
 0x1ac   : > { %7165 = vmatpush3.bf16.msra.mxu0 %v7821_v53  ;;  %v7871_v53 = vld [vmem:[%s8215_s24 + $0xca8] sm:$0xff]  }
 0x1ad   : > { %7166 = vmatprep.subr.bf16.mxu0 %v7823_v56 }
 0x1ae   : > { %7187 = vmatpush3.bf16.msra.mxu1 %v7822_v54  ;;  %v7872_v54 = vld [vmem:[%s8215_s24 + $0xc70] sm:$0xff]  }
 0x1af   : > { %7188 = vmatprep.subr.bf16.mxu1 %v7824_v57  ;;  %v7873_v57 = vld [vmem:[%s8215_s24 + $0xcf0] sm:$0xff]  }
 0x1b0   : > { %7167 = vmatpush3.bf16.msra.mxu0 %v7825_v58 }
 0x1b1   : > { %7168 = vmatprep.subr.bf16.mxu0 %v7827_v60 }
 0x1b2   : > { %7189 = vmatpush3.bf16.msra.mxu1 %v7826_v59  ;;  %v7874_v59 = vld [vmem:[%s8215_s24 + $0xc30] sm:$0xff]  }
 0x1b3   : > { %7190 = vmatprep.subr.bf16.mxu1 %v7828_v55 }
 0x1b4   : > { %7169 = vmatpush3.bf16.msra.mxu0 %v7829_v61 }
 0x1b5   : > { %7170 = vmatprep.subr.bf16.mxu0 %v7831_v63  ;;  %v7876_v63 = vld [vmem:[%s8215_s24 + $0xc78] sm:$0xff]  }
 0x1b6   : > { %7191 = vmatpush3.bf16.msra.mxu1 %v7830_v62  ;;  %v7875_v62 = vld [vmem:[%s8215_s24 + $0xcb0] sm:$0xff]  }
 0x1b7   : > { %7192 = vmatprep.subr.bf16.mxu1 %v7832_v0  ;;  %v211_v0 = vld [vmem:[%s8227_s25 + $0x30] sm:$0xff] }
 0x1b8   : > { %7171 = vmatpush3.bf16.msra.mxu0 %v7833_v1 }
 0x1b9   : > { %7172 = vmatprep.subr.bf16.mxu0 %v7835_v3  ;;  %v1546_v3 = vrot.slane %v211_v0, %v8271_v42 }
 0x1ba   : > { %7193 = vmatpush3.bf16.msra.mxu1 %v7834_v2  ;;  %v6870_v8 = vpop.f32.mrb[16].mxu0 }
 0x1bb   : > { %v6871_v10 = vpop.f32.mrb[17].mxu0  ;;  %7194 = vmatprep.subr.bf16.mxu1 %v7836_v4  ;;  %v1539_v4 = vcombine.high %v211_v0, %v211_v0  ;;  %v7910_v0 = vld [vmem:[%s8215_s24 + $0xd38] sm:$0xff]  }
 0x1bc   : > { %v6892_v12 = vpop.f32.mrb[16].mxu1  ;;  %v6872_v13 = vadd.f32 %v6871_v10, %v6870_v8  ;;  %v6873_v14 = vpop.f32.mrb[18].mxu0  ;;  %7173 = vmatpush3.bf16.msra.mxu0 %v7837_v5  ;;  %v7877_v8 = vld [vmem:[%s8215_s24 + $0xcf8] sm:$0xff]  }
 0x1bd   : > { %v6893_v17 = vpop.f32.mrb[17].mxu1  ;;  %v6874_v18 = vpop.f32.mrb[19].mxu0  ;;  %7174 = vmatprep.subr.bf16.mxu0 %v7839_v7  ;;  %v7878_v10 = vld [vmem:[%s8215_s24 + $0xc38] sm:$0xff]  }
 0x1be   : > { %v5128_v19 = vadd.f32 %v6872_v13, %v8663_v37  ;;  %v6894_v20 = vadd.f32 %v6893_v17, %v6892_v12  ;;  %v6895_v21 = vpop.f32.mrb[18].mxu1  ;;  %7195 = vmatpush3.bf16.msra.mxu1 %v7838_v6  ;;  %v7856_v37 = vld [vmem:[%s8215_s24 + $0xc50] sm:$0xff]   ;;  %v8743_v12 = vrot.slane %v1539_v4, %v8271_v42  ;;  %v7879_v14 = vld [vmem:[%s8215_s24 + $0xcb8] sm:$0xff]   ;;  %v7880_v17 = vld [vmem:[%s8215_s24 + $0xd40] sm:$0xff]  }
 0x1bf   : > { %v6896_v23 = vpop.f32.mrb[19].mxu1  ;;  %7196 = vmatprep.subr.bf16.mxu1 %v7840_v9  ;;  %v7882_v21 = vld [vmem:[%s8215_s24 + $0xd00] sm:$0xff]  }
 0x1c0   : > { %v8703_v25 = vadd.f32 %v6894_v20, %v5128_v19  ;;  %7175 = vmatpush3.bf16.msra.mxu0 %v7841_v11  ;;  %v1554_v11 = vcombine.high %v1546_v3, %v1546_v3  ;;  %v1555_v18 = vcombine.high %v8743_v12, %v8743_v12  ;;  %v7881_v19 = vld [vmem:[%s8215_s24 + $0xdc0] sm:$0xff]  }
 0x1c1   : > { %7176 = vmatprep.subr.bf16.mxu0 %v7843_v16  ;;  %v1562_v16 = vrot.slane %v1546_v3, %v8271_v42  ;;  %v7883_v23 = vld [vmem:[%s8215_s24 + $0xd80] sm:$0xff]   ;;  %v1569_v3 = vrot.slane %v8743_v12, %v8271_v42  ;;  %v7920_v12 = vld [vmem:[%s8215_s24 + $0xe88] sm:$0xff]  }
 0x1c2   : > { %7197 = vmatpush3.bf16.msra.mxu1 %v7842_v15  ;;  %v1576_v15 = vrot.slane %v1554_v11, %v8271_v42  ;;  %v7913_v4 = vld [vmem:[%s8215_s24 + $0xe40] sm:$0xff]   ;;  %v7919_v11 = vld [vmem:[%s8215_s24 + $0xe08] sm:$0xff]  }
 0x1c3   : > { %7198 = vmatprep.subr.bf16.mxu1 %v7844_v22  ;;  %v1583_v22 = vrot.slane %v1555_v18, %v8271_v42  ;;  %v7926_v18 = vld [vmem:[%s8215_s24 + $0xed8] sm:$0xff]  }
 0x1c4   : > { %7177 = vmatpush3.bf16.msra.mxu0 %v7845_v24  ;;  %v1586_v20 = vcombine.high %v1576_v15, %v1576_v15  ;;  %v1584_v24 = vcombine.high %v1562_v16, %v1562_v16 }
 0x1c5   : > { %7206 = vmatprep.subr.bf16.mxu0 %v7848_v28  ;;  %v7886_v28 = vld [vmem:[%s8215_s24 + $0xd08] sm:$0xff]  }
 0x1c6   : > { %7199 = vmatpush3.bf16.msra.mxu1 %v7846_v26  ;;  %v7885_v26 = vld [vmem:[%s8215_s24 + $0xdc8] sm:$0xff]  }
 0x1c7   : > { %5686 = vmatmul.mubr.bf16.vlgmr.msra.gmra.mrb[44].mxu0 %v1520_v27  ;;  %7228 = vmatprep.subr.bf16.mxu1 %v7849_v29  ;;  %v1587_v27 = vcombine.high %v1583_v22, %v1583_v22  ;;  %v7887_v29 = vld [vmem:[%s8215_s24 + $0xd88] sm:$0xff]  }
 0x1c8   : > { %7207 = vmatpush3.bf16.msra.mxu0 %v7850_v30  ;;  %5765 = vmatprep.mubr.bf16.mxu0 %v1576_v15  ;;  %v7888_v30 = vld [vmem:[%s8215_s24 + $0xd50] sm:$0xff]  }
 0x1c9   : > { %5726 = vmatmul.mubr.bf16.vlgmr.msra.gmra.mrb[44].mxu1 %v1536_v32  ;;  %7208 = vmatprep.subr.bf16.mxu0 %v7852_v33  ;;  %v7890_v32 = vld [vmem:[%s8215_s24 + $0xd10] sm:$0xff]  }
 0x1ca   : > { %7229 = vmatpush3.bf16.msra.mxu1 %v7851_v31  ;;  %5805 = vmatprep.mubr.bf16.mxu1 %v1586_v20  ;;  %v7889_v31 = vld [vmem:[%s8215_s24 + $0xdd0] sm:$0xff]   ;;  %v7928_v20 = vld [vmem:[%s8215_s24 + $0xe98] sm:$0xff]  }
 0x1cb   : > { %7230 = vmatprep.subr.bf16.mxu1 %v7853_v34  ;;  %v7891_v33 = vld [vmem:[%s8215_s24 + $0xd90] sm:$0xff]   ;;  %v7892_v34 = vld [vmem:[%s8215_s24 + $0xd58] sm:$0xff]  }
 0x1cc   : > { %7209 = vmatpush3.bf16.msra.mxu0 %v7854_v35  ;;  %v7893_v35 = vld [vmem:[%s8215_s24 + $0xdd8] sm:$0xff]   ;;  %v7923_v15 = vld [vmem:[%s8215_s24 + $0xe10] sm:$0xff]  }
 0x1cd   : > { %7210 = vmatprep.subr.bf16.mxu0 %v7856_v37  ;;  %v7895_v37 = vld [vmem:[%s8215_s24 + $0xd98] sm:$0xff]  }
 0x1ce   : > { %7231 = vmatpush3.bf16.msra.mxu1 %v7855_v36  ;;  %v7894_v36 = vld [vmem:[%s8215_s24 + $0xd18] sm:$0xff]  }
 0x1cf   : > { %7232 = vmatprep.subr.bf16.mxu1 %v7857_v38  ;;  %v7896_v38 = vld [vmem:[%s8215_s24 + $0xd60] sm:$0xff]  }
 0x1d0   : > { %7211 = vmatpush3.bf16.msra.mxu0 %v7858_v39  ;;  %v7897_v39 = vld [vmem:[%s8215_s24 + $0xde0] sm:$0xff]  }
 0x1d1   : > { %7212 = vmatprep.subr.bf16.mxu0 %v7860_v41  ;;  %v7899_v41 = vld [vmem:[%s8215_s24 + $0xda0] sm:$0xff]  }
 0x1d2   : > { %7233 = vmatpush3.bf16.msra.mxu1 %v7859_v40  ;;  %v7898_v40 = vld [vmem:[%s8215_s24 + $0xd20] sm:$0xff]  }
 0x1d3   : > { %7234 = vmatprep.subr.bf16.mxu1 %v7861_v43  ;;  %v7900_v43 = vld [vmem:[%s8215_s24 + $0xd68] sm:$0xff]  }
 0x1d4   : > { %7213 = vmatpush3.bf16.msra.mxu0 %v7862_v44  ;;  %v7901_v44 = vld [vmem:[%s8215_s24 + $0xde8] sm:$0xff]  }
 0x1d5   : > { %7214 = vmatprep.subr.bf16.mxu0 %v7864_v46  ;;  %v7903_v46 = vld [vmem:[%s8215_s24 + $0xda8] sm:$0xff]  }
 0x1d6   : > { %7235 = vmatpush3.bf16.msra.mxu1 %v7863_v45  ;;  %v7902_v45 = vld [vmem:[%s8215_s24 + $0xd28] sm:$0xff]  }
 0x1d7   : > { %7236 = vmatprep.subr.bf16.mxu1 %v7865_v47  ;;  %v7904_v47 = vld [vmem:[%s8215_s24 + $0xd70] sm:$0xff]  }
 0x1d8   : > { %7215 = vmatpush3.bf16.msra.mxu0 %v7866_v48 }
 0x1d9   : > { %7216 = vmatprep.subr.bf16.mxu0 %v7868_v50 }
 0x1da   : > { %7237 = vmatpush3.bf16.msra.mxu1 %v7867_v49  ;;  %v6914_v56 = vpop.f32.mrb[20].mxu0  ;;  %v7905_v49 = vld [vmem:[%s8215_s24 + $0xdf0] sm:$0xff]  }
 0x1db   : > { %v6915_v58 = vpop.f32.mrb[21].mxu0  ;;  %7238 = vmatprep.subr.bf16.mxu1 %v7869_v51  ;;  %v7906_v51 = vld [vmem:[%s8215_s24 + $0xd30] sm:$0xff]  }
 0x1dc   : > { %v6936_v60 = vpop.f32.mrb[20].mxu1  ;;  %v6916_v55 = vadd.f32 %v6915_v58, %v6914_v56  ;;  %v6917_v61 = vpop.f32.mrb[22].mxu0  ;;  %7217 = vmatpush3.bf16.msra.mxu0 %v7870_v52  ;;  %v7907_v56 = vld [vmem:[%s8215_s24 + $0xdb0] sm:$0xff]  }
 0x1dd   : > { %v6937_v1 = vpop.f32.mrb[21].mxu1  ;;  %v6918_v2 = vpop.f32.mrb[23].mxu0  ;;  %7218 = vmatprep.subr.bf16.mxu0 %v7872_v54 }
 0x1de   : > { %v5208_v5 = vadd.f32 %v6916_v55, %v8703_v25  ;;  %v6938_v6 = vadd.f32 %v6937_v1, %v6936_v60  ;;  %v6939_v7 = vpop.f32.mrb[22].mxu1  ;;  %7239 = vmatpush3.bf16.msra.mxu1 %v7871_v53  ;;  %v7884_v25 = vld [vmem:[%s8215_s24 + $0xd48] sm:$0xff]   ;;  %v7911_v2 = vld [vmem:[%s8215_s24 + $0xdb8] sm:$0xff]  }
 0x1df   : > { %v6940_v9 = vpop.f32.mrb[23].mxu1  ;;  %7240 = vmatprep.subr.bf16.mxu1 %v7873_v57  ;;  %v7908_v57 = vld [vmem:[%s8215_s24 + $0xd78] sm:$0xff]   ;;  %v7916_v7 = vld [vmem:[%s8215_s24 + $0xe80] sm:$0xff]  }
 0x1e0   : > { %v8745_v13 = vadd.f32 %v6938_v6, %v5208_v5  ;;  %7219 = vmatpush3.bf16.msra.mxu0 %v7874_v59  ;;  %v7914_v5 = vld [vmem:[%s8215_s24 + $0xec0] sm:$0xff]   ;;  %v7917_v9 = vld [vmem:[%s8215_s24 + $0xe48] sm:$0xff]  }
 0x1e1   : > { %7220 = vmatprep.subr.bf16.mxu0 %v7876_v63  ;;  %v7915_v6 = vld [vmem:[%s8215_s24 + $0xe00] sm:$0xff]  }
 0x1e2   : > { %7241 = vmatpush3.bf16.msra.mxu1 %v7875_v62  ;;  %v7909_v62 = vld [vmem:[%s8215_s24 + $0xdf8] sm:$0xff]  }
 0x1e3   : > { %7242 = vmatprep.subr.bf16.mxu1 %v7877_v8  ;;  %v1585_v8 = vcombine.high %v1569_v3, %v1569_v3 }
 0x1e4   : > { %7221 = vmatpush3.bf16.msra.mxu0 %v7878_v10  ;;  %v7918_v10 = vld [vmem:[%s8215_s24 + $0xec8] sm:$0xff]  }
 0x1e5   : > { %7250 = vmatprep.subr.bf16.mxu0 %v7880_v17  ;;  %v7925_v17 = vld [vmem:[%s8215_s24 + $0xe58] sm:$0xff]  }
 0x1e6   : > { %7243 = vmatpush3.bf16.msra.mxu1 %v7879_v14  ;;  %v7922_v14 = vld [vmem:[%s8215_s24 + $0xed0] sm:$0xff]  }
 0x1e7   : > { %5766 = vmatmul.mubr.bf16.vlgmr.msra.gmra.mrb[48].mxu0 %v1562_v16  ;;  %7272 = vmatprep.subr.bf16.mxu1 %v7881_v19  ;;  %v7924_v16 = vld [vmem:[%s8215_s24 + $0xe90] sm:$0xff]   ;;  %v7927_v19 = vld [vmem:[%s8215_s24 + $0xe18] sm:$0xff]  }
 0x1e8   : > { %7251 = vmatpush3.bf16.msra.mxu0 %v7882_v21  ;;  %5845 = vmatprep.mubr.bf16.mxu0 %v1583_v22  ;;  %v7929_v21 = vld [vmem:[%s8215_s24 + $0xe60] sm:$0xff]  }
 0x1e9   : > { %5806 = vmatmul.mubr.bf16.vlgmr.msra.gmra.mrb[48].mxu1 %v1584_v24  ;;  %7252 = vmatprep.subr.bf16.mxu0 %v7884_v25  ;;  %v7930_v22 = vld [vmem:[%s8215_s24 + $0xee0] sm:$0xff]   ;;  %v7933_v25 = vld [vmem:[%s8215_s24 + $0xe68] sm:$0xff]  }
 0x1ea   : > { %7273 = vmatpush3.bf16.msra.mxu1 %v7883_v23  ;;  %5885 = vmatprep.mubr.bf16.mxu1 %v1587_v27  ;;  %v7931_v23 = vld [vmem:[%s8215_s24 + $0xe20] sm:$0xff]   ;;  %v7935_v27 = vld [vmem:[%s8215_s24 + $0xe28] sm:$0xff]  }
 0x1eb   : > { %7274 = vmatprep.subr.bf16.mxu1 %v7885_v26  ;;  %v7932_v24 = vld [vmem:[%s8215_s24 + $0xea0] sm:$0xff]   ;;  %v7934_v26 = vld [vmem:[%s8215_s24 + $0xee8] sm:$0xff]  }
 0x1ec   : > { %7253 = vmatpush3.bf16.msra.mxu0 %v7886_v28  ;;  %v7936_v28 = vld [vmem:[%s8215_s24 + $0xea8] sm:$0xff]  }
 0x1ed   : > { %7254 = vmatprep.subr.bf16.mxu0 %v7888_v30 }
 0x1ee   : > { %7275 = vmatpush3.bf16.msra.mxu1 %v7887_v29  ;;  %v7937_v29 = vld [vmem:[%s8215_s24 + $0xe70] sm:$0xff]  }
 0x1ef   : > { %7276 = vmatprep.subr.bf16.mxu1 %v7889_v31  ;;  %v7938_v31 = vld [vmem:[%s8215_s24 + $0xef0] sm:$0xff]  }
 0x1f0   : > { %7255 = vmatpush3.bf16.msra.mxu0 %v7890_v32 }
 0x1f1   : > { %7256 = vmatprep.subr.bf16.mxu0 %v7892_v34 }
 0x1f2   : > { %7277 = vmatpush3.bf16.msra.mxu1 %v7891_v33  ;;  %v7939_v33 = vld [vmem:[%s8215_s24 + $0xe30] sm:$0xff]  }
 0x1f3   : > { %7278 = vmatprep.subr.bf16.mxu1 %v7893_v35 }
 0x1f4   : > { %7257 = vmatpush3.bf16.msra.mxu0 %v7894_v36 }
 0x1f5   : > { %7258 = vmatprep.subr.bf16.mxu0 %v7896_v38  ;;  %v7941_v38 = vld [vmem:[%s8215_s24 + $0xe78] sm:$0xff]  }
 0x1f6   : > { %7279 = vmatpush3.bf16.msra.mxu1 %v7895_v37  ;;  %v7940_v37 = vld [vmem:[%s8215_s24 + $0xeb0] sm:$0xff]  }
 0x1f7   : > { %7280 = vmatprep.subr.bf16.mxu1 %v7897_v39 }
 0x1f8   : > { %7259 = vmatpush3.bf16.msra.mxu0 %v7898_v40 }
 0x1f9   : > { %7260 = vmatprep.subr.bf16.mxu0 %v7900_v43 }
 0x1fa   : > { %7281 = vmatpush3.bf16.msra.mxu1 %v7899_v41  ;;  %v6958_v48 = vpop.f32.mrb[24].mxu0 }
 0x1fb   : > { %v6959_v50 = vpop.f32.mrb[25].mxu0  ;;  %7282 = vmatprep.subr.bf16.mxu1 %v7901_v44 }
 0x1fc   : > { %v6980_v52 = vpop.f32.mrb[24].mxu1  ;;  %v6960_v53 = vadd.f32 %v6959_v50, %v6958_v48  ;;  %v6961_v54 = vpop.f32.mrb[26].mxu0  ;;  %7261 = vmatpush3.bf16.msra.mxu0 %v7902_v45  ;;  %v212_v45 = vld [vmem:[%s8227_s25 + $0x38] sm:$0xff] }
 0x1fd   : > { %v6981_v58 = vpop.f32.mrb[25].mxu1  ;;  %v6962_v59 = vpop.f32.mrb[27].mxu0  ;;  %7262 = vmatprep.subr.bf16.mxu0 %v7904_v47  ;;  %v7942_v47 = vld [vmem:[%s8215_s24 + $0xef8] sm:$0xff]   ;;  %v1595_v48 = vrot.slane %v212_v45, %v8271_v42  ;;  %v7945_v54 = vld [vmem:[%s8215_s24 + $0xf40] sm:$0xff]  }
 0x1fe   : > { %v5288_v60 = vadd.f32 %v6960_v53, %v8745_v13  ;;  %v6982_v55 = vadd.f32 %v6981_v58, %v6980_v52  ;;  %v6983_v61 = vpop.f32.mrb[26].mxu1  ;;  %7283 = vmatpush3.bf16.msra.mxu1 %v7903_v46  ;;  %v7921_v13 = vld [vmem:[%s8215_s24 + $0xe50] sm:$0xff]   ;;  %v7946_v59 = vld [vmem:[%s8215_s24 + $0xfc0] sm:$0xff]  }
 0x1ff   : > { %v6984_v63 = vpop.f32.mrb[27].mxu1  ;;  %7284 = vmatprep.subr.bf16.mxu1 %v7905_v49  ;;  %v1588_v49 = vcombine.high %v212_v45, %v212_v45  ;;  %v1603_v52 = vcombine.high %v1595_v48, %v1595_v48  ;;  %v1611_v53 = vrot.slane %v1595_v48, %v8271_v42 }
 0x200   : > { %v8785_v1 = vadd.f32 %v6982_v55, %v5288_v60  ;;  %7263 = vmatpush3.bf16.msra.mxu0 %v7906_v51  ;;  %v7943_v51 = vld [vmem:[%s8215_s24 + $0xe38] sm:$0xff]   ;;  %v7947_v55 = vld [vmem:[%s8215_s24 + $0xf00] sm:$0xff]   ;;  %v7949_v63 = vld [vmem:[%s8215_s24 + $0xf48] sm:$0xff]  }
 0x201   : > { %7264 = vmatprep.subr.bf16.mxu0 %v7908_v57  ;;  %v7944_v57 = vld [vmem:[%s8215_s24 + $0xeb8] sm:$0xff]   ;;  %v1625_v58 = vrot.slane %v1603_v52, %v8271_v42 }
 0x202   : > { %7285 = vmatpush3.bf16.msra.mxu1 %v7907_v56  ;;  %v8829_v56 = vrot.slane %v1588_v49, %v8271_v42 }
 0x203   : > { %7286 = vmatprep.subr.bf16.mxu1 %v7909_v62  ;;  %v1635_v61 = vcombine.high %v1625_v58, %v1625_v58  ;;  %v1633_v62 = vcombine.high %v1611_v53, %v1611_v53 }
 0x204   : > { %7265 = vmatpush3.bf16.msra.mxu0 %v7910_v0  ;;  %v1604_v60 = vcombine.high %v8829_v56, %v8829_v56 }
 0x205   : > { %7294 = vmatprep.subr.bf16.mxu0 %v7913_v4  ;;  %v7951_v4 = vld [vmem:[%s8215_s24 + $0xf08] sm:$0xff]  }
 0x206   : > { %7287 = vmatpush3.bf16.msra.mxu1 %v7911_v2  ;;  %v1632_v0 = vrot.slane %v1604_v60, %v8271_v42  ;;  %v7950_v2 = vld [vmem:[%s8215_s24 + $0xfc8] sm:$0xff]  }
 0x207   : > { %5846 = vmatmul.mubr.bf16.vlgmr.msra.gmra.mrb[52].mxu0 %v1569_v3  ;;  %7316 = vmatprep.subr.bf16.mxu1 %v7914_v5  ;;  %v7953_v5 = vld [vmem:[%s8215_s24 + $0xf50] sm:$0xff]  }
 0x208   : > { %7295 = vmatpush3.bf16.msra.mxu0 %v7915_v6  ;;  %5925 = vmatprep.mubr.bf16.mxu0 %v1625_v58  ;;  %v1636_v3 = vcombine.high %v1632_v0, %v1632_v0  ;;  %v7952_v6 = vld [vmem:[%s8215_s24 + $0xf88] sm:$0xff]  }
 0x209   : > { %5886 = vmatmul.mubr.bf16.vlgmr.msra.gmra.mrb[52].mxu1 %v1585_v8  ;;  %7296 = vmatprep.subr.bf16.mxu0 %v7917_v9  ;;  %v7955_v8 = vld [vmem:[%s8215_s24 + $0xf10] sm:$0xff]   ;;  %v7957_v9 = vld [vmem:[%s8215_s24 + $0xf58] sm:$0xff]  }
 0x20a   : > { %7317 = vmatpush3.bf16.msra.mxu1 %v7916_v7  ;;  %5965 = vmatprep.mubr.bf16.mxu1 %v1635_v61  ;;  %v7954_v7 = vld [vmem:[%s8215_s24 + $0xfd0] sm:$0xff]  }
 0x20b   : > { %7318 = vmatprep.subr.bf16.mxu1 %v7918_v10  ;;  %v7956_v10 = vld [vmem:[%s8215_s24 + $0xf90] sm:$0xff]  }
 0x20c   : > { %7297 = vmatpush3.bf16.msra.mxu0 %v7919_v11  ;;  %v7958_v11 = vld [vmem:[%s8215_s24 + $0xfd8] sm:$0xff]  }
 0x20d   : > { %7298 = vmatprep.subr.bf16.mxu0 %v7921_v13  ;;  %v7961_v13 = vld [vmem:[%s8215_s24 + $0xf60] sm:$0xff]  }
 0x20e   : > { %7319 = vmatpush3.bf16.msra.mxu1 %v7920_v12  ;;  %v7959_v12 = vld [vmem:[%s8215_s24 + $0xf18] sm:$0xff]  }
 0x20f   : > { %7320 = vmatprep.subr.bf16.mxu1 %v7922_v14  ;;  %v7960_v14 = vld [vmem:[%s8215_s24 + $0xf98] sm:$0xff]  }
 0x210   : > { %7299 = vmatpush3.bf16.msra.mxu0 %v7923_v15  ;;  %v7962_v15 = vld [vmem:[%s8215_s24 + $0xfe0] sm:$0xff]  }
 0x211   : > { %7300 = vmatprep.subr.bf16.mxu0 %v7925_v17  ;;  %v7965_v17 = vld [vmem:[%s8215_s24 + $0xf68] sm:$0xff]  }
 0x212   : > { %7321 = vmatpush3.bf16.msra.mxu1 %v7924_v16  ;;  %v7963_v16 = vld [vmem:[%s8215_s24 + $0xf20] sm:$0xff]  }
 0x213   : > { %7322 = vmatprep.subr.bf16.mxu1 %v7926_v18  ;;  %v7964_v18 = vld [vmem:[%s8215_s24 + $0xfa0] sm:$0xff]  }
 0x214   : > { %7301 = vmatpush3.bf16.msra.mxu0 %v7927_v19  ;;  %v7966_v19 = vld [vmem:[%s8215_s24 + $0xfe8] sm:$0xff]  }
 0x215   : > { %7302 = vmatprep.subr.bf16.mxu0 %v7929_v21  ;;  %v7969_v21 = vld [vmem:[%s8215_s24 + $0xf70] sm:$0xff]  }
 0x216   : > { %7323 = vmatpush3.bf16.msra.mxu1 %v7928_v20  ;;  %v7967_v20 = vld [vmem:[%s8215_s24 + $0xf28] sm:$0xff]  }
 0x217   : > { %7324 = vmatprep.subr.bf16.mxu1 %v7930_v22 }
 0x218   : > { %7303 = vmatpush3.bf16.msra.mxu0 %v7931_v23  ;;  %v7968_v23 = vld [vmem:[%s8215_s24 + $0xfa8] sm:$0xff]  }
 0x219   : > { %7304 = vmatprep.subr.bf16.mxu0 %v7933_v25  ;;  %v7970_v25 = vld [vmem:[%s8215_s24 + $0xff0] sm:$0xff]  }
 0x21a   : > { %7325 = vmatpush3.bf16.msra.mxu1 %v7932_v24  ;;  %v7002_v30 = vpop.f32.mrb[28].mxu0 }
 0x21b   : > { %v7003_v32 = vpop.f32.mrb[29].mxu0  ;;  %7326 = vmatprep.subr.bf16.mxu1 %v7934_v26 }
 0x21c   : > { %v7024_v34 = vpop.f32.mrb[28].mxu1  ;;  %v7004_v35 = vadd.f32 %v7003_v32, %v7002_v30  ;;  %v7005_v36 = vpop.f32.mrb[30].mxu0  ;;  %7305 = vmatpush3.bf16.msra.mxu0 %v7935_v27  ;;  %v7973_v30 = vld [vmem:[%s8215_s24 + $0xf78] sm:$0xff]  }
 0x21d   : > { %v7025_v39 = vpop.f32.mrb[29].mxu1  ;;  %v7006_v40 = vpop.f32.mrb[31].mxu0  ;;  %7306 = vmatprep.subr.bf16.mxu0 %v7937_v29  ;;  %v7971_v29 = vld [vmem:[%s8215_s24 + $0xf30] sm:$0xff]  }
 0x21e   : > { %v5368_v41 = vadd.f32 %v7004_v35, %v8785_v1  ;;  %v7026_v43 = vadd.f32 %v7025_v39, %v7024_v34  ;;  %v7027_v44 = vpop.f32.mrb[30].mxu1  ;;  %7327 = vmatpush3.bf16.msra.mxu1 %v7936_v28  ;;  %v7948_v1 = vld [vmem:[%s8215_s24 + $0xf80] sm:$0xff]   ;;  %v7972_v36 = vld [vmem:[%s8215_s24 + $0xfb0] sm:$0xff]   ;;  %v7975_v40 = vld [vmem:[%s8215_s24 + $0xf38] sm:$0xff]  }
 0x21f   : > { %v7028_v46 = vpop.f32.mrb[31].mxu1  ;;  %7328 = vmatprep.subr.bf16.mxu1 %v7938_v31 }
 0x220   : > { %v8823_v50 = vadd.f32 %v7026_v43, %v5368_v41  ;;  %7307 = vmatpush3.bf16.msra.mxu0 %v7939_v33  ;;  %v1618_v41 = vrot.slane %v8829_v56, %v8271_v42  ;;  %v7976_v43 = vld [vmem:[%s8215_s24 + $0xfb8] sm:$0xff]  }
 0x221   : > { %7308 = vmatprep.subr.bf16.mxu0 %v7941_v38  ;;  %v7974_v38 = vld [vmem:[%s8215_s24 + $0xff8] sm:$0xff]  }
 0x222   : > { %7329 = vmatpush3.bf16.msra.mxu1 %v7940_v37  ;;  %v1634_v44 = vcombine.high %v1618_v41, %v1618_v41 }
 0x223   : > { %7330 = vmatprep.subr.bf16.mxu1 %v7942_v47 }
 0x224   : > { %7309 = vmatpush3.bf16.msra.mxu0 %v7943_v51 }
 0x225   : > { %7338 = vmatprep.subr.bf16.mxu0 %v7945_v54 }
 0x226   : > { %7331 = vmatpush3.bf16.msra.mxu1 %v7944_v57 }
 0x227   : > { %5926 = vmatmul.mubr.bf16.vlgmr.msra.gmra.mrb[56].mxu0 %v1611_v53  ;;  %7360 = vmatprep.subr.bf16.mxu1 %v7946_v59 }
 0x228   : > { %7339 = vmatpush3.bf16.msra.mxu0 %v7947_v55  ;;  %6005 = vmatprep.mubr.bf16.mxu0 %v1632_v0 }
 0x229   : > { %5966 = vmatmul.mubr.bf16.vlgmr.msra.gmra.mrb[56].mxu1 %v1633_v62  ;;  %7340 = vmatprep.subr.bf16.mxu0 %v7949_v63 }
 0x22a   : > { %7361 = vmatpush3.bf16.msra.mxu1 %v7948_v1  ;;  %6045 = vmatprep.mubr.bf16.mxu1 %v1636_v3 }
 0x22b   : > { %7362 = vmatprep.subr.bf16.mxu1 %v7950_v2 }
 0x22c   : > { %7341 = vmatpush3.bf16.msra.mxu0 %v7951_v4 }
 0x22d   : > { %7342 = vmatprep.subr.bf16.mxu0 %v7953_v5 }
 0x22e   : > { %7363 = vmatpush3.bf16.msra.mxu1 %v7952_v6 }
 0x22f   : > { %7364 = vmatprep.subr.bf16.mxu1 %v7954_v7 }
 0x230   : > { %7343 = vmatpush3.bf16.msra.mxu0 %v7955_v8 }
 0x231   : > { %7344 = vmatprep.subr.bf16.mxu0 %v7957_v9 }
 0x232   : > { %7365 = vmatpush3.bf16.msra.mxu1 %v7956_v10 }
 0x233   : > { %7366 = vmatprep.subr.bf16.mxu1 %v7958_v11 }
 0x234   : > { %7345 = vmatpush3.bf16.msra.mxu0 %v7959_v12 }
 0x235   : > { %7346 = vmatprep.subr.bf16.mxu0 %v7961_v13 }
 0x236   : > { %7367 = vmatpush3.bf16.msra.mxu1 %v7960_v14 }
 0x237   : > { %7368 = vmatprep.subr.bf16.mxu1 %v7962_v15 }
 0x238   : > { %7347 = vmatpush3.bf16.msra.mxu0 %v7963_v16 }
 0x239   : > { %7348 = vmatprep.subr.bf16.mxu0 %v7965_v17 }
 0x23a   : > { %7369 = vmatpush3.bf16.msra.mxu1 %v7964_v18  ;;  %v7046_v22 = vpop.f32.mrb[32].mxu0 }
 0x23b   : > { %v7047_v24 = vpop.f32.mrb[33].mxu0  ;;  %7370 = vmatprep.subr.bf16.mxu1 %v7966_v19 }
 0x23c   : > { %v7068_v26 = vpop.f32.mrb[32].mxu1  ;;  %v7048_v27 = vadd.f32 %v7047_v24, %v7046_v22  ;;  %v7049_v28 = vpop.f32.mrb[34].mxu0  ;;  %7349 = vmatpush3.bf16.msra.mxu0 %v7967_v20 }
 0x23d   : > { %v7069_v31 = vpop.f32.mrb[33].mxu1  ;;  %v7050_v32 = vpop.f32.mrb[35].mxu0  ;;  %7350 = vmatprep.subr.bf16.mxu0 %v7969_v21 }
 0x23e   : > { %v5448_v33 = vadd.f32 %v7048_v27, %v8823_v50  ;;  %v7070_v34 = vadd.f32 %v7069_v31, %v7068_v26  ;;  %v7071_v35 = vpop.f32.mrb[34].mxu1  ;;  %7371 = vmatpush3.bf16.msra.mxu1 %v7968_v23 }
 0x23f   : > { %v7072_v37 = vpop.f32.mrb[35].mxu1  ;;  %7372 = vmatprep.subr.bf16.mxu1 %v7970_v25 }
 0x240   : > { %v5488_v39 = vadd.f32 %v7070_v34, %v5448_v33  ;;  %7351 = vmatpush3.bf16.msra.mxu0 %v7971_v29 }
 0x241   : > { %7352 = vmatprep.subr.bf16.mxu0 %v7973_v30 }
 0x242   : > { %7373 = vmatpush3.bf16.msra.mxu1 %v7972_v36 }
 0x243   : > { %7374 = vmatprep.subr.bf16.mxu1 %v7974_v38 }
 0x244   : > { %7353 = vmatpush3.bf16.msra.mxu0 %v7975_v40 }
 0x246   : > { %7375 = vmatpush3.bf16.msra.mxu1 %v7976_v43 }
 0x247   : > { %6006 = vmatmul.mubr.bf16.vlgmr.msra.gmra.mrb[60].mxu0 %v1618_v41 }
 0x249   : > { %6046 = vmatmul.mubr.bf16.vlgmr.msra.gmra.mrb[60].mxu1 %v1634_v44 }
 0x25a   : > { %v7090_v45 = vpop.f32.mrb[36].mxu0 }
 0x25b   : > { %v7091_v46 = vpop.f32.mrb[37].mxu0 }
 0x25c   : > { %v7112_v47 = vpop.f32.mrb[36].mxu1  ;;  %v7092_v48 = vadd.f32 %v7091_v46, %v7090_v45  ;;  %v7093_v49 = vpop.f32.mrb[38].mxu0 }
 0x25d   : > { %v7113_v50 = vpop.f32.mrb[37].mxu1  ;;  %v7094_v51 = vpop.f32.mrb[39].mxu0 }
 0x25e   : > { %v5528_v52 = vadd.f32 %v7092_v48, %v5488_v39  ;;  %v7114_v53 = vadd.f32 %v7113_v50, %v7112_v47  ;;  %v7115_v54 = vpop.f32.mrb[38].mxu1 }
 0x25f   : > { %v7116_v57 = vpop.f32.mrb[39].mxu1 }
 0x260   : > { %v5568_v42 = vadd.f32 %v7114_v53, %v5528_v52 }
 0x27a   : > { %v7134_v56 = vpop.f32.mrb[40].mxu0 }
 0x27b   : > { %v7135_v58 = vpop.f32.mrb[41].mxu0 }
 0x27c   : > { %v7156_v59 = vpop.f32.mrb[40].mxu1  ;;  %v7136_v60 = vadd.f32 %v7135_v58, %v7134_v56  ;;  %v7137_v55 = vpop.f32.mrb[42].mxu0 }
 0x27d   : > { %v7157_v61 = vpop.f32.mrb[41].mxu1  ;;  %v7138_v62 = vpop.f32.mrb[43].mxu0 }
 0x27e   : > { %v5608_v63 = vadd.f32 %v7136_v60, %v5568_v42  ;;  %v7158_v0 = vadd.f32 %v7157_v61, %v7156_v59  ;;  %v7159_v1 = vpop.f32.mrb[42].mxu1  ;;  %v204_v62 = vld [vmem:[%s8232_s28] sm:$0x3] }
 0x27f   : > { %v7160_v2 = vpop.f32.mrb[43].mxu1 }
 0x280   : > { %v5648_v3 = vadd.f32 %v7158_v0, %v5608_v63 }
 0x29a   : > { %v7178_v4 = vpop.f32.mrb[44].mxu0 }
 0x29b   : > { %v7179_v5 = vpop.f32.mrb[45].mxu0 }
 0x29c   : > { %v7200_v6 = vpop.f32.mrb[44].mxu1  ;;  %v7180_v7 = vadd.f32 %v7179_v5, %v7178_v4  ;;  %v7181_v8 = vpop.f32.mrb[46].mxu0 }
 0x29d   : > { %v7201_v9 = vpop.f32.mrb[45].mxu1  ;;  %v7182_v10 = vpop.f32.mrb[47].mxu0 }
 0x29e   : > { %v5688_v11 = vadd.f32 %v7180_v7, %v5648_v3  ;;  %v7202_v12 = vadd.f32 %v7201_v9, %v7200_v6  ;;  %v7203_v13 = vpop.f32.mrb[46].mxu1 }
 0x29f   : > { %v7204_v14 = vpop.f32.mrb[47].mxu1 }
 0x2a0   : > { %v5728_v15 = vadd.f32 %v7202_v12, %v5688_v11 }
 0x2ba   : > { %v7222_v16 = vpop.f32.mrb[48].mxu0 }
 0x2bb   : > { %v7223_v17 = vpop.f32.mrb[49].mxu0 }
 0x2bc   : > { %v7244_v18 = vpop.f32.mrb[48].mxu1  ;;  %v7224_v19 = vadd.f32 %v7223_v17, %v7222_v16  ;;  %v7225_v20 = vpop.f32.mrb[50].mxu0 }
 0x2bd   : > { %v7245_v21 = vpop.f32.mrb[49].mxu1  ;;  %v7226_v22 = vpop.f32.mrb[51].mxu0 }
 0x2be   : > { %v5768_v23 = vadd.f32 %v7224_v19, %v5728_v15  ;;  %v7246_v24 = vadd.f32 %v7245_v21, %v7244_v18  ;;  %v7247_v25 = vpop.f32.mrb[50].mxu1 }
 0x2bf   : > { %v7248_v26 = vpop.f32.mrb[51].mxu1 }
 0x2c0   : > { %v5808_v27 = vadd.f32 %v7246_v24, %v5768_v23 }
 0x2da   : > { %v7266_v28 = vpop.f32.mrb[52].mxu0 }
 0x2db   : > { %v7267_v29 = vpop.f32.mrb[53].mxu0 }
 0x2dc   : > { %v7288_v30 = vpop.f32.mrb[52].mxu1  ;;  %v7268_v31 = vadd.f32 %v7267_v29, %v7266_v28  ;;  %v7269_v32 = vpop.f32.mrb[54].mxu0 }
 0x2dd   : > { %v7289_v33 = vpop.f32.mrb[53].mxu1  ;;  %v7270_v34 = vpop.f32.mrb[55].mxu0 }
 0x2de   : > { %v5848_v35 = vadd.f32 %v7268_v31, %v5808_v27  ;;  %v7290_v36 = vadd.f32 %v7289_v33, %v7288_v30  ;;  %v7291_v37 = vpop.f32.mrb[54].mxu1 }
 0x2df   : > { %v7292_v38 = vpop.f32.mrb[55].mxu1 }
 0x2e0   : > { %v5888_v39 = vadd.f32 %v7290_v36, %v5848_v35 }
 0x2fa   : > { %v7310_v40 = vpop.f32.mrb[56].mxu0 }
 0x2fb   : > { %v7311_v41 = vpop.f32.mrb[57].mxu0 }
 0x2fc   : > { %v7332_v43 = vpop.f32.mrb[56].mxu1  ;;  %v7312_v44 = vadd.f32 %v7311_v41, %v7310_v40  ;;  %v7313_v45 = vpop.f32.mrb[58].mxu0 }
 0x2fd   : > { %v7333_v46 = vpop.f32.mrb[57].mxu1  ;;  %v7314_v47 = vpop.f32.mrb[59].mxu0 }
 0x2fe   : > { %v5928_v48 = vadd.f32 %v7312_v44, %v5888_v39  ;;  %v7334_v49 = vadd.f32 %v7333_v46, %v7332_v43  ;;  %v7335_v50 = vpop.f32.mrb[58].mxu1 }
 0x2ff   : > { %v7336_v51 = vpop.f32.mrb[59].mxu1 }
 0x300   : > { %v5968_v52 = vadd.f32 %v7334_v49, %v5928_v48 }
 0x31a   : > { %v7354_v53 = vpop.f32.mrb[60].mxu0 }
 0x31b   : > { %v7355_v54 = vpop.f32.mrb[61].mxu0 }
 0x31c   : > { %v7376_v57 = vpop.f32.mrb[60].mxu1  ;;  %v7356_v42 = vadd.f32 %v7355_v54, %v7354_v53  ;;  %v7357_v56 = vpop.f32.mrb[62].mxu0 }
 0x31d   : > { %v7377_v58 = vpop.f32.mrb[61].mxu1  ;;  %v7358_v59 = vpop.f32.mrb[63].mxu0 }
 0x31e   : > { %v6008_v60 = vadd.f32 %v7356_v42, %v5968_v52  ;;  %v7378_v55 = vadd.f32 %v7377_v58, %v7376_v57  ;;  %v7379_v61 = vpop.f32.mrb[62].mxu1  ;;  %6058 = sbr.rel (%p6674_p6) target bundleno = 815 (0x32f), region = 40 }
 0x31f   : > { %v7380_v63 = vpop.f32.mrb[63].mxu1 }
 0x320   : > { %v6048_v0 = vadd.f32 %v7378_v55, %v6008_v60 }
 0x322   : > { %v6053_v1 = vadd.f32 %v6048_v0, %v204_v62 }
 0x324   : > { %6054 = vst [vmem:[%s8232_s28] sm:$0x3] %v6053_v1 }
 0x32b   : > { %v6059_v2 = vld [vmem:[%s8232_s28] sm:$0x3] }
 0x32c   : > { %v6060_v3 = vmax.f32 %v6059_v2, 0.0 }
 0x32e   : > { %6061 = vst [vmem:[%s8232_s28] sm:$0x3] %v6060_v3 }
 0x32f PF: > { %s15_s16 = sadd.s32 1, %s8074_s16   ;;  %s8906_s9 = smov %s8050_s10 }
 0x330   : > { %p12_p8 = scmp.ge.s32.totalorder %s15_s16, 6   ;;  %s8907_s10 = smov %s8054_s11 }
 0x331   : > { %s8908_s11 = smov %s8164_s29  ;;  %s8909_s12 = smov %s8066_s14 }
 0x332   : > { %s8910_s13 = smov %s8070_s15  ;;  %s8911_s14 = smov %s8914_s18 }
 0x333   : > { %s8912_s15 = smov %s8918_s19  ;;  %14 = sbr.rel (!%p12_p8) target bundleno = 5 (0x5), region = 79 }
 0x33a   :  { %6081 = vsyncpa [#allocation3], 1 }
 0x33b   :  { %6083 = vsyncpa [#allocation3 + $0x1], 1 }

// kernel: conv2_forward.3
= control target key start
LH: loop header
LB: loop body
LE: loop exit
PB: predicated region body
PF: predicated region fallthrough
CT: control target
= control target key end

     0   :  { %8 = vsyncpa [#allocation4], 0  ;;  %s13066_s0 = inlined_call_operand.vmem [shape: f32[2,18,18,3], index: 0, kind: input, shape index: {}]   ;;  %s13067_s1 = inlined_call_operand.hbm [shape: f32[9,3,64], index: 1, kind: input, shape index: {}]   ;;  %s13068_s2 = inlined_call_operand.hbm [shape: f32[9,64,64], index: 2, kind: input, shape index: {}]   ;;  %s13069_s3 = inlined_call_operand.vmem [shape: bf16[2,256,64], index: 3, kind: output, shape index: {}]  }
   0x1   :  { %9 = vsyncpa [#allocation6], 0  ;;  %s11067_s12 = smov 0  }
   0x2 LB: > { %s11040_s13 = smov [#allocation3]   ;;  %s11073_s15 = sadd.s32 4294967295, %s11038_s12   ;;  %s11038_s12 = sphi %s11067_s12, %s15_s12  }
   0x3   : > { %s126_s14 = sshll.u32 %s11040_s13, 4  ;;  %p7476_p0 = scmp.ge.s32.totalorder %s11038_s12, 1  ;;  %s127_s14 = int_to_ptr.vmem [resolvable:$true] %s126_s14 }
   0x4   : > { %p114_p1 = scmp.lt.s32.totalorder %s11038_s12, 3  ;;  %p13070_p3 = scmp.eq.s32.totalorder %s11073_s15, 0 }
   0x5   : > { %s11041_s17 = smov [#allocation5]   ;;  %s10968_s22 = scalar_lea.hbm %s13067_s1, 576 }
   0x6   : > { %p11077_p2 = pnand %p7476_p0, %p114_p1  ;;  %s139_s18 = sshll.u32 %s11041_s17, 4  ;;  %s11090_s18 = int_to_ptr.vmem [resolvable:$true] %s139_s18 }
   0x7   : > { %p10969_p6 = scmp.ne.s32.totalorder %s13067_s1, %s10968_s22  ;;  %p10975_p10 = scmp.lt.u32.totalorder %s10968_s22, %s13067_s1 }
   0x8   : > { %s13072_s16 = scalar_select %p11077_p2, 1, 0 }
   0x9   : > { %p10942_p4 = pneg %p11077_p2 }
   0xb   : > { %p11086_p5 = pnand %p13070_p3, %p10942_p4 }
   0xd   : > { %p10970_p7 = pneg %p11086_p5 }
   0xf   : > { %p10971_p8 = pnand %p10970_p7, %p10969_p6 }
  0x11   : > { %p10972_p9 = pneg %p10971_p8 }
  0x13   : > { %p10977_p11 = pnand %p10975_p10, %p10972_p9 }
  0x15   : > { %10980 = shalt.err (!%p10977_p11)
}
  0x16   : > { %s10981_s27 = scalar_lea.vmem %s127_s14, 576  ;;  %p10989_p1 = scmp.lt.s32.totalorder %s127_s14, %s127_s14 }
  0x17   : > { %p10982_p12 = scmp.ne.s32.totalorder %s127_s14, %s10981_s27  ;;  %p10990_p4 = scmp.lt.s32.totalorder %s10981_s27, %s10981_s27 }
  0x19   : > { %p10984_p13 = pnand %p10982_p12, %p10970_p7  ;;  %p10991_p3 = por %p10990_p4, %p10989_p1 }
  0x1b   : > { %p10985_p0 = pneg %p10984_p13 }
  0x1d   : > { %p10992_p2 = pnand %p10991_p3, %p10985_p0 }
  0x1f   : > { %10995 = shalt.err (!%p10992_p2)
}
  0x20   : > { %s11042_s28 = smov 64   ;;  %s11043_s29 = smov 4  }
  0x21   : > { %10945 = dma.hbm_to_vmem [thread:$0]  (!%p11086_p5), %s13067_s1, 576, %s127_s14, [#allocation4], %s11042_s28, %s11042_s28, %s11043_s29  }
  0x22   : > { %s10996_s7 = scalar_lea.hbm %s13068_s2, 9216 }
  0x23   : > { %p10997_p6 = scmp.ne.s32.totalorder %s13068_s2, %s10996_s7  ;;  %p11003_p8 = scmp.lt.u32.totalorder %s10996_s7, %s13068_s2 }
  0x25   : > { %p10999_p2 = pnand %p10997_p6, %p10970_p7 }
  0x27   : > { %p11000_p3 = pneg %p10999_p2 }
  0x29   : > { %p11005_p9 = pnand %p11003_p8, %p11000_p3 }
  0x2b   : > { %11008 = shalt.err (!%p11005_p9)
}
  0x2c   : > { %s11009_s13 = scalar_lea.vmem %s11090_s18, 9216  ;;  %p11017_p13 = scmp.lt.s32.totalorder %s11090_s18, %s11090_s18 }
  0x2d   : > { %p11010_p10 = scmp.ne.s32.totalorder %s11090_s18, %s11009_s13  ;;  %p11018_p0 = scmp.lt.s32.totalorder %s11009_s13, %s11009_s13 }
  0x2f   : > { %p11012_p11 = pnand %p11010_p10, %p10970_p7  ;;  %p11019_p1 = por %p11018_p0, %p11017_p13 }
  0x31   : > { %p11013_p12 = pneg %p11012_p11 }
  0x33   : > { %p11020_p4 = pnand %p11019_p1, %p11013_p12 }
  0x35   : > { %11023 = shalt.err (!%p11020_p4)
}
  0x36   : > { %s11044_s14 = smov 128   ;;  %s11045_s17 = smov 8  }
  0x37   : > { %10948 = dma.hbm_to_vmem [thread:$0]  (!%p11086_p5), %s13068_s2, 9216, %s11090_s18, [#allocation6], %s11044_s14, %s11044_s14, %s11045_s17  }
  0x38   : > { %p13074_p6 = scmp.ne.s32.totalorder %s13072_s16, 0 }
  0x39   : > { %p13075_p7 = scmp.eq.s32.totalorder (!%p13074_p6), %s11073_s15, 0 }
  0x3a   : > { %163 = sbr.rel (%p13074_p6) target bundleno = 1062 (0x426), region = 32 }
  0x41   : > { %11029 = dma.done.wait (%p13075_p7), [#allocation4], 576   ;;  %p13076_p2 = pmov %p13075_p7 }
  0x43   : > { %11031 = vsyncadd (%p13076_p2), [#allocation4], 4294966720  ;;  %p13077_p3 = pmov %p13076_p2 }
  0x44   : > { %p13078_p8 = pmov %p13076_p2 }
  0x45   : > { %11033 = dma.done.wait (%p13077_p3), [#allocation6], 9216  }
  0x46   : > { %11035 = vsyncadd (%p13078_p8), [#allocation6], 4294958080  ;;  %p191_p9 = scmp.lt.s32.totalorder %s11073_s15, 1  ;;  %vm346_vm0 = vcmask 1042432   ;;  %vm297_vm1 = vcmask 23552   ;;  %vm201_vm2 = vcmask 523264  }
  0x47   : > { %v296_v0 = vld [vmem:[#allocation3 + $0xc] sm:$0x7]  ;;  %v294_v5 = vld [vmem:[#allocation3] sm:$0x7]  ;;  %v650_v18 = vld [vmem:[#allocation3 + $0x18] sm:$0x7] }
  0x48   : > { %s13080_s15 = smov (!%p191_p9, %s11073_s15), 1  ;;  %v2032_v1 = vld [vmem:[#allocation3 + $0xc] sm:$0x7]  ;;  %8945 = vmatprep.subr.msk.mxu0 %vm346_vm0, %v296_v0  ;;  %v2031_v7 = vld [vmem:[#allocation3] sm:$0x7]  ;;  %vm5554_vm3 = vcmask 519168  }
  0x49   : > { %s10933_s16 = smul.u32 432, %s13080_s15  ;;  %9179 = vmatprep.subr.msk.mxu1 %vm346_vm0, %v2032_v1  ;;  %8946 = vmatpush3.msk.msra.mxu0 %vm346_vm0, %v296_v0  ;;  %v2383_v20 = vld [vmem:[#allocation3 + $0x18] sm:$0x7]  ;;  %v842_v40 = vld [vmem:[#allocation3 + $0x4] sm:$0x7]  ;;  %s8174_s23 = sshll.u32 %s13080_s15, 7 }
  0x4a   : > { %9180 = vmatpush3.msk.msra.mxu1 %vm346_vm0, %v2032_v1  ;;  %8971 = vmatprep.subr.msk.mxu0 %vm346_vm0, %v294_v5  ;;  %v2574_v41 = vld [vmem:[#allocation3 + $0x4] sm:$0x7]  ;;  %v1056_v42 = vld [vmem:[#allocation3 + $0x10] sm:$0x7]  ;;  %v11483_v52 = vld [vmem:[#allocation3 + $0x1c] sm:$0x7]  ;;  %s12997_s26 = scalar_lea.vmem %s13069_s3, %s8174_s23 }
  0x4b   : > { %s11157_s22 = scalar_lea.vmem %s13066_s0, %s10933_s16  ;;  %9205 = vmatprep.subr.msk.mxu1 %vm346_vm0, %v2031_v7  ;;  %v2787_v43 = vld [vmem:[#allocation3 + $0x10] sm:$0x7]  ;;  %v11489_v54 = vld [vmem:[#allocation3 + $0x1c] sm:$0x7] }
  0x4c   : > { %v11160_v2 = vld [vmem:[%s11157_s22 + $0x18] sm:$0xff]  ;;  %v11168_v4 = vld [vmem:[%s11157_s22 + $0x20] sm:$0xff]  ;;  %v11183_v8 = vld [vmem:[%s11157_s22 + $0x30] sm:$0xff] }
  0x4d   : > { %v11165_v3 = vld [vmem:[%s11157_s22 + $0xd8] sm:$0xff]  ;;  %8947 = vmatprep.mubr.msk.f32.mxu0 %vm297_vm1, %v11160_v2  ;;  %v11174_v6 = vld [vmem:[%s11157_s22 + $0xe0] sm:$0xff]  ;;  %v11186_v9 = vld [vmem:[%s11157_s22 + $0xf0] sm:$0xff] }
  0x4e   : > { %9181 = vmatprep.mubr.msk.f32.mxu1 %vm297_vm1, %v11165_v3  ;;  %8948 = vmatmul.mubr.msk.f32.vlgmr.msra.gmra.mrb[0].mxu0 %vm297_vm1, %v11168_v4  ;;  %v11192_v10 = vld [vmem:[%s11157_s22 + $0x38] sm:$0xff]  ;;  %v11200_v12 = vld [vmem:[%s11157_s22 + $0x48] sm:$0xff]  ;;  %v11216_v14 = vld [vmem:[%s11157_s22 + $0x50] sm:$0xff] }
  0x4f   : > { %9182 = vmatmul.mubr.msk.f32.vlgmr.msra.gmra.mrb[0].mxu1 %vm297_vm1, %v11174_v6  ;;  %8972 = vmatpush3.msk.msra.mxu0 %vm346_vm0, %v294_v5  ;;  %v11197_v11 = vld [vmem:[%s11157_s22 + $0xf8] sm:$0xff]  ;;  %v11207_v13 = vld [vmem:[%s11157_s22 + $0x108] sm:$0xff]  ;;  %v11221_v15 = vld [vmem:[%s11157_s22 + $0x110] sm:$0xff] }
  0x50   : > { %9206 = vmatpush3.msk.msra.mxu1 %vm346_vm0, %v2031_v7  ;;  %8950 = vmatprep.mubr.msk.f32.mxu0 %vm297_vm1, %v11183_v8  ;;  %v11224_v16 = vld [vmem:[%s11157_s22 + $0x60] sm:$0xff]  ;;  %v11236_v19 = vld [vmem:[%s11157_s22 + $0x68] sm:$0xff]  ;;  %v11244_v22 = vld [vmem:[%s11157_s22 + $0x78] sm:$0xff] }
  0x51   : > { %9184 = vmatprep.mubr.msk.f32.mxu1 %vm297_vm1, %v11186_v9  ;;  %v11227_v17 = vld [vmem:[%s11157_s22 + $0x120] sm:$0xff]  ;;  %v11241_v21 = vld [vmem:[%s11157_s22 + $0x128] sm:$0xff]  ;;  %8997 = vmatprep.subr.msk.mxu0 %vm346_vm0, %v650_v18  ;;  %v11248_v23 = vld [vmem:[%s11157_s22 + $0x138] sm:$0xff] }
  0x52   : > { %8951 = vmatmul.mubr.msk.f32.gmra.mrb[2].mxu0 %vm297_vm1, %v11192_v10  ;;  %9231 = vmatprep.subr.msk.mxu1 %vm346_vm0, %v2383_v20  ;;  %v11258_v24 = vld [vmem:[%s11157_s22 + $0x80] sm:$0xff]  ;;  %v11266_v26 = vld [vmem:[%s11157_s22 + $0x90] sm:$0xff]  ;;  %v11278_v28 = vld [vmem:[%s11157_s22 + $0x98] sm:$0xff] }
  0x53   : > { %9185 = vmatmul.mubr.msk.f32.gmra.mrb[2].mxu1 %vm297_vm1, %v11197_v11  ;;  %8953 = vmatprep.mubr.msk.f32.mxu0 %vm297_vm1, %v11200_v12  ;;  %v11263_v25 = vld [vmem:[%s11157_s22 + $0x140] sm:$0xff]  ;;  %v11269_v27 = vld [vmem:[%s11157_s22 + $0x150] sm:$0xff]  ;;  %v11283_v29 = vld [vmem:[%s11157_s22 + $0x158] sm:$0xff] }
  0x54   : > { %9187 = vmatprep.mubr.msk.f32.mxu1 %vm297_vm1, %v11207_v13  ;;  %v11286_v30 = vld [vmem:[%s11157_s22 + $0xa8] sm:$0xff]  ;;  %v11298_v32 = vld [vmem:[%s11157_s22 + $0xb0] sm:$0xff]  ;;  %v11306_v34 = vld [vmem:[%s11157_s22 + $0xc0] sm:$0xff] }
  0x55   : > { %v11289_v31 = vld [vmem:[%s11157_s22 + $0x168] sm:$0xff]  ;;  %v11303_v33 = vld [vmem:[%s11157_s22 + $0x170] sm:$0xff]  ;;  %v11309_v35 = vld [vmem:[%s11157_s22 + $0x180] sm:$0xff] }
  0x56   : > { %8954 = vmatmul.mubr.msk.f32.gmra.mrb[4].mxu0 %vm297_vm1, %v11216_v14  ;;  %v11318_v36 = vld [vmem:[%s11157_s22 + $0xc8] sm:$0xff]  ;;  %v274_v38 = vld [vmem:[%s11157_s22] sm:$0xff]  ;;  %v7657_v44 = vld [vmem:[%s11157_s22 + $0x198] sm:$0xff] }
  0x57   : > { %9188 = vmatmul.mubr.msk.f32.gmra.mrb[4].mxu1 %vm297_vm1, %v11221_v15  ;;  %8956 = vmatprep.mubr.msk.f32.mxu0 %vm297_vm1, %v11224_v16  ;;  %v11323_v37 = vld [vmem:[%s11157_s22 + $0x188] sm:$0xff]  ;;  %v7658_v45 = vld [vmem:[%s11157_s22 + $0x1a0] sm:$0xff]  ;;  %v11498_v56 = vld [vmem:[%s11157_s22 + $0x31] sm:$0xff] }
  0x58   : > { %9190 = vmatprep.mubr.msk.f32.mxu1 %vm297_vm1, %v11227_v17  ;;  %v275_v39 = vld [vmem:[%s11157_s22 + $0x8] sm:$0xff]  ;;  %v11477_v50 = vld [vmem:[%s11157_s22 + $0x19] sm:$0xff]  ;;  %v11503_v57 = vld [vmem:[%s11157_s22 + $0xf1] sm:$0xff] }
  0x59   : > { %v821_v46 = vld [vmem:[%s11157_s22 + $0x1] sm:$0xff]  ;;  %v822_v48 = vld [vmem:[%s11157_s22 + $0x9] sm:$0xff]  ;;  %v11481_v51 = vld [vmem:[%s11157_s22 + $0xd9] sm:$0xff] }
  0x5a   : > { %8957 = vmatmul.mubr.msk.f32.gmra.mrb[6].mxu0 %vm297_vm1, %v11236_v19  ;;  %v11464_v47 = vld [vmem:[%s11157_s22 + $0xc1] sm:$0xff]  ;;  %v11474_v49 = vld [vmem:[%s11157_s22 + $0xc9] sm:$0xff]  ;;  %v11515_v58 = vld [vmem:[%s11157_s22 + $0x39] sm:$0xff] }
  0x5b   : > { %9191 = vmatmul.mubr.msk.f32.gmra.mrb[6].mxu1 %vm297_vm1, %v11241_v21  ;;  %8959 = vmatprep.mubr.msk.f32.mxu0 %vm297_vm1, %v11244_v22  ;;  %v824_v53 = vld [vmem:[%s11157_s22 + $0x21] sm:$0xff]  ;;  %v11520_v59 = vld [vmem:[%s11157_s22 + $0xf9] sm:$0xff]  ;;  %v11523_v60 = vld [vmem:[%s11157_s22 + $0x49] sm:$0xff] }
  0x5c   : > { %9193 = vmatprep.mubr.msk.f32.mxu1 %vm297_vm1, %v11248_v23  ;;  %v11495_v55 = vld [vmem:[%s11157_s22 + $0xe1] sm:$0xff]  ;;  %v11526_v61 = vld [vmem:[%s11157_s22 + $0x109] sm:$0xff]  ;;  %v11535_v62 = vld [vmem:[%s11157_s22 + $0x51] sm:$0xff] }
  0x5d   : > { %v11540_v63 = vld [vmem:[%s11157_s22 + $0x111] sm:$0xff]  ;;  %v11543_v0 = vld [vmem:[%s11157_s22 + $0x61] sm:$0xff]  ;;  %v11566_v5 = vld [vmem:[%s11157_s22 + $0x139] sm:$0xff] }
  0x5e   : > { %8960 = vmatmul.mubr.msk.f32.gmra.mrb[8].mxu0 %vm297_vm1, %v11258_v24  ;;  %v11546_v1 = vld [vmem:[%s11157_s22 + $0x121] sm:$0xff] }
  0x5f   : > { %9194 = vmatmul.mubr.msk.f32.gmra.mrb[8].mxu1 %vm297_vm1, %v11263_v25  ;;  %8962 = vmatprep.mubr.msk.f32.mxu0 %vm297_vm1, %v11266_v26  ;;  %v11580_v7 = vld [vmem:[%s11157_s22 + $0x141] sm:$0xff] }
  0x60   : > { %9196 = vmatprep.mubr.msk.f32.mxu1 %vm297_vm1, %v11269_v27 }
  0x62   : > { %8963 = vmatmul.mubr.msk.f32.gmra.mrb[10].mxu0 %vm297_vm1, %v11278_v28 }
  0x63   : > { %9197 = vmatmul.mubr.msk.f32.gmra.mrb[10].mxu1 %vm297_vm1, %v11283_v29  ;;  %8965 = vmatprep.mubr.msk.f32.mxu0 %vm297_vm1, %v11286_v30 }
  0x64   : > { %9199 = vmatprep.mubr.msk.f32.mxu1 %vm297_vm1, %v11289_v31 }
  0x66   : > { %8966 = vmatmul.mubr.msk.f32.gmra.mrb[12].mxu0 %vm297_vm1, %v11298_v32 }
  0x67   : > { %9200 = vmatmul.mubr.msk.f32.gmra.mrb[12].mxu1 %vm297_vm1, %v11303_v33  ;;  %8968 = vmatprep.mubr.msk.f32.mxu0 %vm297_vm1, %v11306_v34 }
  0x68   : > { %9202 = vmatprep.mubr.msk.f32.mxu1 %vm297_vm1, %v11309_v35 }
  0x6a   : > { %8969 = vmatmul.mubr.msk.f32.gmra.mrb[14].mxu0 %vm297_vm1, %v11318_v36 }
  0x6b   : > { %9203 = vmatmul.mubr.msk.f32.gmra.mrb[14].mxu1 %vm297_vm1, %v11323_v37  ;;  %8973 = vmatprep.mubr.msk.f32.mxu0 %vm297_vm1, %v274_v38  ;;  %v11979_v38 = vld [vmem:[%s11157_s22 + $0xfa] sm:$0xff] }
  0x6c   : > { %9207 = vmatprep.mubr.msk.f32.mxu1 %vm297_vm1, %v11306_v34 }
  0x6e   : > { %8974 = vmatmul.mubr.msk.f32.vlgmr.msra.gmra.mrb[0].mxu0 %vm297_vm1, %v275_v39  ;;  %v11982_v39 = vld [vmem:[%s11157_s22 + $0x4a] sm:$0xff] }
  0x6f   : > { %9208 = vmatmul.mubr.msk.f32.vlgmr.msra.gmra.mrb[0].mxu1 %vm297_vm1, %v11318_v36  ;;  %8998 = vmatpush3.msk.msra.mxu0 %vm346_vm0, %v650_v18  ;;  %v11690_v18 = vld [vmem:[%s11157_s22 + $0x181] sm:$0xff] }
  0x70   : > { %9232 = vmatpush3.msk.msra.mxu1 %vm346_vm0, %v2383_v20  ;;  %8976 = vmatprep.mubr.msk.f32.mxu0 %vm297_vm1, %v11160_v2  ;;  %v11555_v2 = vld [vmem:[%s11157_s22 + $0x69] sm:$0xff]  ;;  %v11046_v20 = vmov 0.0  }
  0x71   : > { %9210 = vmatprep.mubr.msk.f32.mxu1 %vm297_vm1, %v11165_v3  ;;  %9023 = vmatprep.subr.msk.mxu0 %vm346_vm0, %v842_v40  ;;  %208 = vst.msk [vmem:[#allocation2 + $0x30] sm:$0xff] %vm201_vm2, %v11046_v20  ;;  %202 = vst.msk [vmem:[#allocation2] sm:$0xff] %vm201_vm2, %v11046_v20 }
  0x72   : > { %8977 = vmatmul.mubr.msk.f32.gmra.mrb[2].mxu0 %vm297_vm1, %v11168_v4  ;;  %9257 = vmatprep.subr.msk.mxu1 %vm346_vm0, %v2574_v41  ;;  %v11563_v4 = vld [vmem:[%s11157_s22 + $0x79] sm:$0xff]  ;;  %203 = vst.msk [vmem:[#allocation2 + $0x8] sm:$0xff] %vm201_vm2, %v11046_v20  ;;  %204 = vst.msk [vmem:[#allocation2 + $0x10] sm:$0xff] %vm201_vm2, %v11046_v20 }
  0x73   : > { %9211 = vmatmul.mubr.msk.f32.gmra.mrb[2].mxu1 %vm297_vm1, %v11174_v6  ;;  %8979 = vmatprep.mubr.msk.f32.mxu0 %vm297_vm1, %v11183_v8  ;;  %205 = vst.msk [vmem:[#allocation2 + $0x18] sm:$0xff] %vm201_vm2, %v11046_v20  ;;  %206 = vst.msk [vmem:[#allocation2 + $0x20] sm:$0xff] %vm201_vm2, %v11046_v20 }
  0x74   : > { %9213 = vmatprep.mubr.msk.f32.mxu1 %vm297_vm1, %v11186_v9  ;;  %207 = vst.msk [vmem:[#allocation2 + $0x28] sm:$0xff] %vm201_vm2, %v11046_v20  ;;  %209 = vst.msk [vmem:[#allocation2 + $0x38] sm:$0xff] %vm201_vm2, %v11046_v20 }
  0x75   : > { %210 = vst.msk [vmem:[#allocation2 + $0x40] sm:$0xff] %vm201_vm2, %v11046_v20  ;;  %211 = vst.msk [vmem:[#allocation2 + $0x48] sm:$0xff] %vm201_vm2, %v11046_v20 }
  0x76   : > { %8980 = vmatmul.mubr.msk.f32.gmra.mrb[4].mxu0 %vm297_vm1, %v11192_v10  ;;  %212 = vst.msk [vmem:[#allocation2 + $0x50] sm:$0xff] %vm201_vm2, %v11046_v20  ;;  %213 = vst.msk [vmem:[#allocation2 + $0x58] sm:$0xff] %vm201_vm2, %v11046_v20 }
  0x77   : > { %9214 = vmatmul.mubr.msk.f32.gmra.mrb[4].mxu1 %vm297_vm1, %v11197_v11  ;;  %8982 = vmatprep.mubr.msk.f32.mxu0 %vm297_vm1, %v11200_v12  ;;  %214 = vst.msk [vmem:[#allocation2 + $0x60] sm:$0xff] %vm201_vm2, %v11046_v20  ;;  %215 = vst.msk [vmem:[#allocation2 + $0x68] sm:$0xff] %vm201_vm2, %v11046_v20 }
  0x78   : > { %9216 = vmatprep.mubr.msk.f32.mxu1 %vm297_vm1, %v11207_v13  ;;  %216 = vst.msk [vmem:[#allocation2 + $0x70] sm:$0xff] %vm201_vm2, %v11046_v20  ;;  %217 = vst.msk [vmem:[#allocation2 + $0x78] sm:$0xff] %vm201_vm2, %v11046_v20 }
  0x79   : > { %218 = vst.msk [vmem:[#allocation2 + $0x80] sm:$0xff] %vm201_vm2, %v11046_v20  ;;  %219 = vst.msk [vmem:[#allocation2 + $0x88] sm:$0xff] %vm201_vm2, %v11046_v20 }
  0x7a   : > { %8983 = vmatmul.mubr.msk.f32.gmra.mrb[6].mxu0 %vm297_vm1, %v11216_v14  ;;  %220 = vst.msk [vmem:[#allocation2 + $0x90] sm:$0xff] %vm201_vm2, %v11046_v20  ;;  %221 = vst.msk [vmem:[#allocation2 + $0x98] sm:$0xff] %vm201_vm2, %v11046_v20 }
  0x7b   : > { %9217 = vmatmul.mubr.msk.f32.gmra.mrb[6].mxu1 %vm297_vm1, %v11221_v15  ;;  %8985 = vmatprep.mubr.msk.f32.mxu0 %vm297_vm1, %v11224_v16  ;;  %222 = vst.msk [vmem:[#allocation2 + $0xa0] sm:$0xff] %vm201_vm2, %v11046_v20  ;;  %223 = vst.msk [vmem:[#allocation2 + $0xa8] sm:$0xff] %vm201_vm2, %v11046_v20 }
  0x7c   : > { %9219 = vmatprep.mubr.msk.f32.mxu1 %vm297_vm1, %v11227_v17  ;;  %224 = vst.msk [vmem:[#allocation2 + $0xb0] sm:$0xff] %vm201_vm2, %v11046_v20  ;;  %225 = vst.msk [vmem:[#allocation2 + $0xb8] sm:$0xff] %vm201_vm2, %v11046_v20 }
  0x7d   : > { %226 = vst.msk [vmem:[#allocation2 + $0xc0] sm:$0xff] %vm201_vm2, %v11046_v20  ;;  %227 = vst.msk [vmem:[#allocation2 + $0xc8] sm:$0xff] %vm201_vm2, %v11046_v20 }
  0x7e   : > { %8986 = vmatmul.mubr.msk.f32.gmra.mrb[8].mxu0 %vm297_vm1, %v11236_v19  ;;  %228 = vst.msk [vmem:[#allocation2 + $0xd0] sm:$0xff] %vm201_vm2, %v11046_v20  ;;  %229 = vst.msk [vmem:[#allocation2 + $0xd8] sm:$0xff] %vm201_vm2, %v11046_v20 }
  0x7f   : > { %9220 = vmatmul.mubr.msk.f32.gmra.mrb[8].mxu1 %vm297_vm1, %v11241_v21  ;;  %8988 = vmatprep.mubr.msk.f32.mxu0 %vm297_vm1, %v11244_v22  ;;  %230 = vst.msk [vmem:[#allocation2 + $0xe0] sm:$0xff] %vm201_vm2, %v11046_v20  ;;  %231 = vst.msk [vmem:[#allocation2 + $0xe8] sm:$0xff] %vm201_vm2, %v11046_v20 }
  0x80   : > { %9222 = vmatprep.mubr.msk.f32.mxu1 %vm297_vm1, %v11248_v23  ;;  %232 = vst.msk [vmem:[#allocation2 + $0xf0] sm:$0xff] %vm201_vm2, %v11046_v20  ;;  %233 = vst.msk [vmem:[#allocation2 + $0xf8] sm:$0xff] %vm201_vm2, %v11046_v20 }
  0x81   : > { %234 = vst.msk [vmem:[#allocation2 + $0x100] sm:$0xff] %vm201_vm2, %v11046_v20  ;;  %235 = vst.msk [vmem:[#allocation2 + $0x108] sm:$0xff] %vm201_vm2, %v11046_v20 }
  0x82   : > { %8989 = vmatmul.mubr.msk.f32.gmra.mrb[10].mxu0 %vm297_vm1, %v11258_v24  ;;  %236 = vst.msk [vmem:[#allocation2 + $0x110] sm:$0xff] %vm201_vm2, %v11046_v20  ;;  %237 = vst.msk [vmem:[#allocation2 + $0x118] sm:$0xff] %vm201_vm2, %v11046_v20 }
  0x83   : > { %9223 = vmatmul.mubr.msk.f32.gmra.mrb[10].mxu1 %vm297_vm1, %v11263_v25  ;;  %8991 = vmatprep.mubr.msk.f32.mxu0 %vm297_vm1, %v11266_v26  ;;  %238 = vst.msk [vmem:[#allocation2 + $0x120] sm:$0xff] %vm201_vm2, %v11046_v20  ;;  %239 = vst.msk [vmem:[#allocation2 + $0x128] sm:$0xff] %vm201_vm2, %v11046_v20 }
  0x84   : > { %9225 = vmatprep.mubr.msk.f32.mxu1 %vm297_vm1, %v11269_v27  ;;  %240 = vst.msk [vmem:[#allocation2 + $0x130] sm:$0xff] %vm201_vm2, %v11046_v20  ;;  %241 = vst.msk [vmem:[#allocation2 + $0x138] sm:$0xff] %vm201_vm2, %v11046_v20 }
  0x85   : > { %242 = vst.msk [vmem:[#allocation2 + $0x140] sm:$0xff] %vm201_vm2, %v11046_v20  ;;  %243 = vst.msk [vmem:[#allocation2 + $0x148] sm:$0xff] %vm201_vm2, %v11046_v20 }
  0x86   : > { %8992 = vmatmul.mubr.msk.f32.gmra.mrb[12].mxu0 %vm297_vm1, %v11278_v28  ;;  %244 = vst.msk [vmem:[#allocation2 + $0x150] sm:$0xff] %vm201_vm2, %v11046_v20  ;;  %245 = vst.msk [vmem:[#allocation2 + $0x158] sm:$0xff] %vm201_vm2, %v11046_v20 }
  0x87   : > { %9226 = vmatmul.mubr.msk.f32.gmra.mrb[12].mxu1 %vm297_vm1, %v11283_v29  ;;  %8994 = vmatprep.mubr.msk.f32.mxu0 %vm297_vm1, %v11286_v30  ;;  %246 = vst.msk [vmem:[#allocation2 + $0x160] sm:$0xff] %vm201_vm2, %v11046_v20  ;;  %247 = vst.msk [vmem:[#allocation2 + $0x168] sm:$0xff] %vm201_vm2, %v11046_v20 }
  0x88   : > { %9228 = vmatprep.mubr.msk.f32.mxu1 %vm297_vm1, %v11289_v31  ;;  %248 = vst.msk [vmem:[#allocation2 + $0x170] sm:$0xff] %vm201_vm2, %v11046_v20  ;;  %249 = vst.msk [vmem:[#allocation2 + $0x178] sm:$0xff] %vm201_vm2, %v11046_v20 }
  0x89   : > { %250 = vst.msk [vmem:[#allocation2 + $0x180] sm:$0xff] %vm201_vm2, %v11046_v20  ;;  %251 = vst.msk [vmem:[#allocation2 + $0x188] sm:$0xff] %vm201_vm2, %v11046_v20 }
  0x8a   : > { %8995 = vmatmul.mubr.msk.f32.gmra.mrb[14].mxu0 %vm297_vm1, %v11298_v32  ;;  %252 = vst.msk [vmem:[#allocation2 + $0x190] sm:$0xff] %vm201_vm2, %v11046_v20  ;;  %253 = vst.msk [vmem:[#allocation2 + $0x198] sm:$0xff] %vm201_vm2, %v11046_v20 }
  0x8b   : > { %9229 = vmatmul.mubr.msk.f32.gmra.mrb[14].mxu1 %vm297_vm1, %v11303_v33  ;;  %8999 = vmatprep.mubr.msk.f32.mxu0 %vm297_vm1, %v11183_v8  ;;  %v11583_v8 = vld [vmem:[%s11157_s22 + $0x91] sm:$0xff]  ;;  %254 = vst.msk [vmem:[#allocation2 + $0x1a0] sm:$0xff] %vm201_vm2, %v11046_v20  ;;  %255 = vst.msk [vmem:[#allocation2 + $0x1a8] sm:$0xff] %vm201_vm2, %v11046_v20 }
  0x8c   : > { %9233 = vmatprep.mubr.msk.f32.mxu1 %vm297_vm1, %v11186_v9  ;;  %v11586_v9 = vld [vmem:[%s11157_s22 + $0x151] sm:$0xff]  ;;  %256 = vst.msk [vmem:[#allocation2 + $0x1b0] sm:$0xff] %vm201_vm2, %v11046_v20  ;;  %257 = vst.msk [vmem:[#allocation2 + $0x1b8] sm:$0xff] %vm201_vm2, %v11046_v20 }
  0x8d   : > { %258 = vst.msk [vmem:[#allocation2 + $0x1c0] sm:$0xff] %vm201_vm2, %v11046_v20  ;;  %259 = vst.msk [vmem:[#allocation2 + $0x1c8] sm:$0xff] %vm201_vm2, %v11046_v20 }
  0x8e   : > { %9000 = vmatmul.mubr.msk.f32.vlgmr.msra.gmra.mrb[0].mxu0 %vm297_vm1, %v11192_v10  ;;  %v11595_v10 = vld [vmem:[%s11157_s22 + $0x99] sm:$0xff]  ;;  %260 = vst.msk [vmem:[#allocation2 + $0x1d0] sm:$0xff] %vm201_vm2, %v11046_v20  ;;  %261 = vst.msk [vmem:[#allocation2 + $0x1d8] sm:$0xff] %vm201_vm2, %v11046_v20 }
  0x8f   : > { %9234 = vmatmul.mubr.msk.f32.vlgmr.msra.gmra.mrb[0].mxu1 %vm297_vm1, %v11197_v11  ;;  %9024 = vmatpush3.msk.msra.mxu0 %vm346_vm0, %v842_v40  ;;  %v11600_v11 = vld [vmem:[%s11157_s22 + $0x159] sm:$0xff]  ;;  %262 = vst.msk [vmem:[#allocation2 + $0x1e0] sm:$0xff] %vm201_vm2, %v11046_v20  ;;  %263 = vst.msk [vmem:[#allocation2 + $0x1e8] sm:$0xff] %vm201_vm2, %v11046_v20  ;;  %v11985_v40 = vld [vmem:[%s11157_s22 + $0x10a] sm:$0xff] }
  0x90   : > { %9258 = vmatpush3.msk.msra.mxu1 %vm346_vm0, %v2574_v41  ;;  %9002 = vmatprep.mubr.msk.f32.mxu0 %vm297_vm1, %v11200_v12  ;;  %v11603_v12 = vld [vmem:[%s11157_s22 + $0xa9] sm:$0xff]  ;;  %264 = vst.msk [vmem:[#allocation2 + $0x1f0] sm:$0xff] %vm201_vm2, %v11046_v20  ;;  %265 = vst.msk [vmem:[#allocation2 + $0x1f8] sm:$0xff] %vm201_vm2, %v11046_v20  ;;  %v11994_v41 = vld [vmem:[%s11157_s22 + $0x52] sm:$0xff] }
  0x91   : > { %9236 = vmatprep.mubr.msk.f32.mxu1 %vm297_vm1, %v11207_v13  ;;  %9049 = vmatprep.subr.msk.mxu0 %vm346_vm0, %v1056_v42  ;;  %v11606_v13 = vld [vmem:[%s11157_s22 + $0x169] sm:$0xff]  ;;  %266 = vst.msk [vmem:[#allocation2 + $0x200] sm:$0xff] %vm201_vm2, %v11046_v20  ;;  %267 = vst.msk [vmem:[#allocation2 + $0x208] sm:$0xff] %vm201_vm2, %v11046_v20 }
  0x92   : > { %9003 = vmatmul.mubr.msk.f32.gmra.mrb[2].mxu0 %vm297_vm1, %v11216_v14  ;;  %9283 = vmatprep.subr.msk.mxu1 %vm346_vm0, %v2787_v43  ;;  %v11615_v14 = vld [vmem:[%s11157_s22 + $0xb1] sm:$0xff]  ;;  %268 = vst.msk [vmem:[#allocation2 + $0x210] sm:$0xff] %vm201_vm2, %v11046_v20  ;;  %269 = vst.msk [vmem:[#allocation2 + $0x218] sm:$0xff] %vm201_vm2, %v11046_v20 }
  0x93   : > { %9237 = vmatmul.mubr.msk.f32.gmra.mrb[2].mxu1 %vm297_vm1, %v11221_v15  ;;  %9005 = vmatprep.mubr.msk.f32.mxu0 %vm297_vm1, %v11224_v16  ;;  %v11620_v15 = vld [vmem:[%s11157_s22 + $0x171] sm:$0xff]  ;;  %v11631_v16 = vld [vmem:[#allocation3 + $0x8] sm:$0x7]  ;;  %270 = vst.msk [vmem:[#allocation2 + $0x220] sm:$0xff] %vm201_vm2, %v11046_v20  ;;  %271 = vst.msk [vmem:[#allocation2 + $0x228] sm:$0xff] %vm201_vm2, %v11046_v20 }
  0x94   : > { %9239 = vmatprep.mubr.msk.f32.mxu1 %vm297_vm1, %v11227_v17  ;;  %v11637_v17 = vld [vmem:[#allocation3 + $0x8] sm:$0x7]  ;;  %272 = vst.msk [vmem:[#allocation2 + $0x230] sm:$0xff] %vm201_vm2, %v11046_v20  ;;  %273 = vst.msk [vmem:[#allocation2 + $0x238] sm:$0xff] %vm201_vm2, %v11046_v20 }
  0x96   : > { %9006 = vmatmul.mubr.msk.f32.gmra.mrb[4].mxu0 %vm297_vm1, %v11236_v19  ;;  %v11701_v19 = vld [vmem:[%s11157_s22 + $0x189] sm:$0xff] }
  0x97   : > { %9240 = vmatmul.mubr.msk.f32.gmra.mrb[4].mxu1 %vm297_vm1, %v11241_v21  ;;  %9008 = vmatprep.mubr.msk.f32.mxu0 %vm297_vm1, %v11244_v22  ;;  %v1634_v21 = vld [vmem:[#allocation3 + $0x14] sm:$0x7] }
  0x98   : > { %9242 = vmatprep.mubr.msk.f32.mxu1 %vm297_vm1, %v11248_v23  ;;  %v3362_v22 = vld [vmem:[#allocation3 + $0x14] sm:$0x7]  ;;  %v7728_v23 = vld [vmem:[%s11157_s22 + $0x199] sm:$0xff] }
  0x9a   : > { %9009 = vmatmul.mubr.msk.f32.gmra.mrb[6].mxu0 %vm297_vm1, %v11258_v24  ;;  %v7729_v24 = vld [vmem:[%s11157_s22 + $0x1a1] sm:$0xff] }
  0x9b   : > { %9243 = vmatmul.mubr.msk.f32.gmra.mrb[6].mxu1 %vm297_vm1, %v11263_v25  ;;  %9011 = vmatprep.mubr.msk.f32.mxu0 %vm297_vm1, %v11266_v26  ;;  %v1399_v25 = vld [vmem:[%s11157_s22 + $0x2] sm:$0xff] }
  0x9c   : > { %9245 = vmatprep.mubr.msk.f32.mxu1 %vm297_vm1, %v11269_v27  ;;  %v11920_v26 = vld [vmem:[%s11157_s22 + $0xc2] sm:$0xff]  ;;  %v1400_v27 = vld [vmem:[%s11157_s22 + $0xa] sm:$0xff] }
  0x9e   : > { %9012 = vmatmul.mubr.msk.f32.gmra.mrb[8].mxu0 %vm297_vm1, %v11278_v28  ;;  %v11930_v28 = vld [vmem:[%s11157_s22 + $0xca] sm:$0xff] }
  0x9f   : > { %9246 = vmatmul.mubr.msk.f32.gmra.mrb[8].mxu1 %vm297_vm1, %v11283_v29  ;;  %9014 = vmatprep.mubr.msk.f32.mxu0 %vm297_vm1, %v11286_v30  ;;  %v11933_v29 = vld [vmem:[%s11157_s22 + $0x1a] sm:$0xff] }
  0xa0   : > { %9248 = vmatprep.mubr.msk.f32.mxu1 %vm297_vm1, %v11289_v31  ;;  %v11937_v30 = vld [vmem:[%s11157_s22 + $0xda] sm:$0xff] }
  0xa1   : > { %v11939_v31 = vld [vmem:[#allocation3 + $0x20] sm:$0x7] }
  0xa2   : > { %9015 = vmatmul.mubr.msk.f32.gmra.mrb[10].mxu0 %vm297_vm1, %v11298_v32  ;;  %v11945_v32 = vld [vmem:[%s11157_s22 + $0x22] sm:$0xff] }
  0xa3   : > { %9249 = vmatmul.mubr.msk.f32.gmra.mrb[10].mxu1 %vm297_vm1, %v11303_v33  ;;  %9017 = vmatprep.mubr.msk.f32.mxu0 %vm297_vm1, %v11306_v34  ;;  %v11947_v33 = vld [vmem:[#allocation3 + $0x20] sm:$0x7] }
  0xa4   : > { %9251 = vmatprep.mubr.msk.f32.mxu1 %vm297_vm1, %v11309_v35  ;;  %v11953_v34 = vld [vmem:[%s11157_s22 + $0xe2] sm:$0xff]  ;;  %v11956_v35 = vld [vmem:[%s11157_s22 + $0x32] sm:$0xff] }
  0xa6   : > { %9018 = vmatmul.mubr.msk.f32.gmra.mrb[12].mxu0 %vm297_vm1, %v11318_v36  ;;  %v11961_v36 = vld [vmem:[%s11157_s22 + $0xf2] sm:$0xff] }
  0xa7   : > { %9252 = vmatmul.mubr.msk.f32.gmra.mrb[12].mxu1 %vm297_vm1, %v11323_v37  ;;  %9020 = vmatprep.mubr.msk.f32.mxu0 %vm297_vm1, %v11165_v3  ;;  %v11560_v3 = vld [vmem:[%s11157_s22 + $0x129] sm:$0xff]  ;;  %v11974_v37 = vld [vmem:[%s11157_s22 + $0x3a] sm:$0xff] }
  0xa8   : > { %9254 = vmatprep.mubr.msk.f32.mxu1 %vm297_vm1, %v7657_v44  ;;  %v12005_v44 = vld [vmem:[%s11157_s22 + $0x122] sm:$0xff] }
  0xaa   : > { %9021 = vmatmul.mubr.msk.f32.gmra.mrb[14].mxu0 %vm297_vm1, %v11174_v6  ;;  %v11575_v6 = vld [vmem:[%s11157_s22 + $0x81] sm:$0xff] }
  0xab   : > { %9255 = vmatmul.mubr.msk.f32.gmra.mrb[14].mxu1 %vm297_vm1, %v7658_v45  ;;  %9025 = vmatprep.mubr.msk.f32.mxu0 %vm297_vm1, %v821_v46  ;;  %v12014_v45 = vld [vmem:[%s11157_s22 + $0x6a] sm:$0xff] }
  0xac   : > { %9259 = vmatprep.mubr.msk.f32.mxu1 %vm297_vm1, %v11464_v47  ;;  %v12019_v46 = vld [vmem:[%s11157_s22 + $0x12a] sm:$0xff] }
  0xae   : > { %9026 = vmatmul.mubr.msk.f32.vlgmr.msra.gmra.mrb[0].mxu0 %vm297_vm1, %v822_v48  ;;  %v12025_v48 = vld [vmem:[%s11157_s22 + $0x13a] sm:$0xff] }
  0xaf   : > { %9260 = vmatmul.mubr.msk.f32.vlgmr.msra.gmra.mrb[0].mxu1 %vm297_vm1, %v11474_v49  ;;  %9050 = vmatpush3.msk.msra.mxu0 %vm346_vm0, %v1056_v42  ;;  %v11999_v42 = vld [vmem:[%s11157_s22 + $0x112] sm:$0xff] }
  0xb0   : > { %9284 = vmatpush3.msk.msra.mxu1 %vm346_vm0, %v2787_v43  ;;  %9028 = vmatprep.mubr.msk.f32.mxu0 %vm297_vm1, %v11477_v50  ;;  %v12002_v43 = vld [vmem:[%s11157_s22 + $0x62] sm:$0xff] }
  0xb1   : > { %9262 = vmatprep.mubr.msk.f32.mxu1 %vm297_vm1, %v11481_v51  ;;  %9075 = vmatprep.subr.msk.mxu0 %vm346_vm0, %v11483_v52 }
  0xb2   : > { %9029 = vmatmul.mubr.msk.f32.gmra.mrb[2].mxu0 %vm297_vm1, %v824_v53  ;;  %9309 = vmatprep.subr.msk.mxu1 %vm346_vm0, %v11489_v54 }
  0xb3   : > { %9263 = vmatmul.mubr.msk.f32.gmra.mrb[2].mxu1 %vm297_vm1, %v11495_v55  ;;  %9031 = vmatprep.mubr.msk.f32.mxu0 %vm297_vm1, %v11498_v56 }
  0xb4   : > { %9265 = vmatprep.mubr.msk.f32.mxu1 %vm297_vm1, %v11503_v57 }
  0xb6   : > { %9032 = vmatmul.mubr.msk.f32.gmra.mrb[4].mxu0 %vm297_vm1, %v11515_v58 }
  0xb7   : > { %9266 = vmatmul.mubr.msk.f32.gmra.mrb[4].mxu1 %vm297_vm1, %v11520_v59  ;;  %9034 = vmatprep.mubr.msk.f32.mxu0 %vm297_vm1, %v11523_v60 }
  0xb8   : > { %9268 = vmatprep.mubr.msk.f32.mxu1 %vm297_vm1, %v11526_v61 }
  0xba   : > { %9035 = vmatmul.mubr.msk.f32.gmra.mrb[6].mxu0 %vm297_vm1, %v11535_v62 }
  0xbb   : > { %9269 = vmatmul.mubr.msk.f32.gmra.mrb[6].mxu1 %vm297_vm1, %v11540_v63  ;;  %9037 = vmatprep.mubr.msk.f32.mxu0 %vm297_vm1, %v11543_v0 }
  0xbc   : > { %9271 = vmatprep.mubr.msk.f32.mxu1 %vm297_vm1, %v11546_v1 }
  0xbe   : > { %9038 = vmatmul.mubr.msk.f32.gmra.mrb[8].mxu0 %vm297_vm1, %v11555_v2 }
  0xbf   : > { %9272 = vmatmul.mubr.msk.f32.gmra.mrb[8].mxu1 %vm297_vm1, %v11560_v3  ;;  %9040 = vmatprep.mubr.msk.f32.mxu0 %vm297_vm1, %v11563_v4 }
  0xc0   : > { %9274 = vmatprep.mubr.msk.f32.mxu1 %vm297_vm1, %v11566_v5 }
  0xc2   : > { %9041 = vmatmul.mubr.msk.f32.gmra.mrb[10].mxu0 %vm297_vm1, %v11575_v6 }
  0xc3   : > { %9275 = vmatmul.mubr.msk.f32.gmra.mrb[10].mxu1 %vm297_vm1, %v11580_v7  ;;  %9043 = vmatprep.mubr.msk.f32.mxu0 %vm297_vm1, %v11583_v8 }
  0xc4   : > { %9277 = vmatprep.mubr.msk.f32.mxu1 %vm297_vm1, %v11586_v9 }
  0xc6   : > { %9044 = vmatmul.mubr.msk.f32.gmra.mrb[12].mxu0 %vm297_vm1, %v11595_v10 }
  0xc7   : > { %9278 = vmatmul.mubr.msk.f32.gmra.mrb[12].mxu1 %vm297_vm1, %v11600_v11  ;;  %9046 = vmatprep.mubr.msk.f32.mxu0 %vm297_vm1, %v11603_v12 }
  0xc8   : > { %9280 = vmatprep.mubr.msk.f32.mxu1 %vm297_vm1, %v11606_v13 }
  0xca   : > { %9047 = vmatmul.mubr.msk.f32.gmra.mrb[14].mxu0 %vm297_vm1, %v11615_v14 }
  0xcb   : > { %9281 = vmatmul.mubr.msk.f32.gmra.mrb[14].mxu1 %vm297_vm1, %v11620_v15  ;;  %9051 = vmatprep.mubr.msk.f32.mxu0 %vm297_vm1, %v11477_v50  ;;  %v12039_v50 = vld [vmem:[%s11157_s22 + $0x142] sm:$0xff] }
  0xcc   : > { %9285 = vmatprep.mubr.msk.f32.mxu1 %vm297_vm1, %v11481_v51 }
  0xce   : > { %9052 = vmatmul.mubr.msk.f32.vlgmr.msra.gmra.mrb[0].mxu0 %vm297_vm1, %v824_v53  ;;  %v12054_v53 = vld [vmem:[%s11157_s22 + $0x9a] sm:$0xff] }
  0xcf   : > { %9286 = vmatmul.mubr.msk.f32.vlgmr.msra.gmra.mrb[0].mxu1 %vm297_vm1, %v11495_v55  ;;  %9076 = vmatpush3.msk.msra.mxu0 %vm346_vm0, %v11483_v52  ;;  %v12045_v52 = vld [vmem:[%s11157_s22 + $0x152] sm:$0xff] }
  0xd0   : > { %9310 = vmatpush3.msk.msra.mxu1 %vm346_vm0, %v11489_v54  ;;  %9054 = vmatprep.mubr.msk.f32.mxu0 %vm297_vm1, %v11498_v56  ;;  %v12059_v54 = vld [vmem:[%s11157_s22 + $0x15a] sm:$0xff] }
  0xd1   : > { %9288 = vmatprep.mubr.msk.f32.mxu1 %vm297_vm1, %v11503_v57  ;;  %9101 = vmatprep.subr.msk.mxu0 %vm346_vm0, %v11631_v16 }
  0xd2   : > { %9055 = vmatmul.mubr.msk.f32.gmra.mrb[2].mxu0 %vm297_vm1, %v11515_v58  ;;  %9335 = vmatprep.subr.msk.mxu1 %vm346_vm0, %v11637_v17 }
  0xd3   : > { %9289 = vmatmul.mubr.msk.f32.gmra.mrb[2].mxu1 %vm297_vm1, %v11520_v59  ;;  %9057 = vmatprep.mubr.msk.f32.mxu0 %vm297_vm1, %v11523_v60 }
  0xd4   : > { %9291 = vmatprep.mubr.msk.f32.mxu1 %vm297_vm1, %v11526_v61 }
  0xd6   : > { %9058 = vmatmul.mubr.msk.f32.gmra.mrb[4].mxu0 %vm297_vm1, %v11535_v62 }
  0xd7   : > { %9292 = vmatmul.mubr.msk.f32.gmra.mrb[4].mxu1 %vm297_vm1, %v11540_v63  ;;  %9060 = vmatprep.mubr.msk.f32.mxu0 %vm297_vm1, %v11543_v0 }
  0xd8   : > { %9294 = vmatprep.mubr.msk.f32.mxu1 %vm297_vm1, %v11546_v1 }
  0xda   : > { %9061 = vmatmul.mubr.msk.f32.gmra.mrb[6].mxu0 %vm297_vm1, %v11555_v2 }
  0xdb   : > { %9295 = vmatmul.mubr.msk.f32.gmra.mrb[6].mxu1 %vm297_vm1, %v11560_v3  ;;  %9063 = vmatprep.mubr.msk.f32.mxu0 %vm297_vm1, %v11563_v4 }
  0xdc   : > { %9297 = vmatprep.mubr.msk.f32.mxu1 %vm297_vm1, %v11566_v5 }
  0xde   : > { %9064 = vmatmul.mubr.msk.f32.gmra.mrb[8].mxu0 %vm297_vm1, %v11575_v6 }
  0xdf   : > { %9298 = vmatmul.mubr.msk.f32.gmra.mrb[8].mxu1 %vm297_vm1, %v11580_v7  ;;  %9066 = vmatprep.mubr.msk.f32.mxu0 %vm297_vm1, %v11583_v8 }
  0xe0   : > { %9300 = vmatprep.mubr.msk.f32.mxu1 %vm297_vm1, %v11586_v9 }
  0xe2   : > { %9067 = vmatmul.mubr.msk.f32.gmra.mrb[10].mxu0 %vm297_vm1, %v11595_v10 }
  0xe3   : > { %9301 = vmatmul.mubr.msk.f32.gmra.mrb[10].mxu1 %vm297_vm1, %v11600_v11  ;;  %9069 = vmatprep.mubr.msk.f32.mxu0 %vm297_vm1, %v11603_v12 }
  0xe4   : > { %9303 = vmatprep.mubr.msk.f32.mxu1 %vm297_vm1, %v11606_v13 }
  0xe6   : > { %9070 = vmatmul.mubr.msk.f32.gmra.mrb[12].mxu0 %vm297_vm1, %v11615_v14 }
  0xe7   : > { %9304 = vmatmul.mubr.msk.f32.gmra.mrb[12].mxu1 %vm297_vm1, %v11620_v15  ;;  %9072 = vmatprep.mubr.msk.f32.mxu0 %vm297_vm1, %v11464_v47 }
  0xe8   : > { %9306 = vmatprep.mubr.msk.f32.mxu1 %vm297_vm1, %v11690_v18 }
  0xea   : > { %9073 = vmatmul.mubr.msk.f32.gmra.mrb[14].mxu0 %vm297_vm1, %v11474_v49 }
  0xeb   : > { %9307 = vmatmul.mubr.msk.f32.gmra.mrb[14].mxu1 %vm297_vm1, %v11701_v19  ;;  %9077 = vmatprep.mubr.msk.f32.mxu0 %vm297_vm1, %v11498_v56  ;;  %v12065_v56 = vld [vmem:[%s11157_s22 + $0x16a] sm:$0xff] }
  0xec   : > { %9311 = vmatprep.mubr.msk.f32.mxu1 %vm297_vm1, %v11503_v57  ;;  %v12074_v57 = vld [vmem:[%s11157_s22 + $0xb2] sm:$0xff] }
  0xee   : > { %9078 = vmatmul.mubr.msk.f32.vlgmr.msra.gmra.mrb[0].mxu0 %vm297_vm1, %v11515_v58  ;;  %v12079_v58 = vld [vmem:[%s11157_s22 + $0x172] sm:$0xff] }
  0xef   : > { %9312 = vmatmul.mubr.msk.f32.vlgmr.msra.gmra.mrb[0].mxu1 %vm297_vm1, %v11520_v59  ;;  %9102 = vmatpush3.msk.msra.mxu0 %vm346_vm0, %v11631_v16  ;;  %v3766_v59 = vld [vmem:[#allocation5 + $0xc0] sm:$0xff] }
  0xf0   : > { %9336 = vmatpush3.msk.msra.mxu1 %vm346_vm0, %v11637_v17  ;;  %9080 = vmatprep.mubr.msk.f32.mxu0 %vm297_vm1, %v11523_v60  ;;  %v3767_v60 = vld [vmem:[#allocation5 + $0xc8] sm:$0xff] }
  0xf1   : > { %9314 = vmatprep.mubr.msk.f32.mxu1 %vm297_vm1, %v11526_v61  ;;  %9127 = vmatprep.subr.msk.mxu0 %vm346_vm0, %v1634_v21  ;;  %v10133_v61 = vpack.c.bf16 %v3767_v60, %v3766_v59 }
  0xf2   : > { %9081 = vmatmul.mubr.msk.f32.gmra.mrb[2].mxu0 %vm297_vm1, %v11535_v62  ;;  %9361 = vmatprep.subr.msk.mxu1 %vm346_vm0, %v3362_v22  ;;  %v7797_v62 = vld [vmem:[%s11157_s22 + $0x182] sm:$0xff] }
  0xf3   : > { %9315 = vmatmul.mubr.msk.f32.gmra.mrb[2].mxu1 %vm297_vm1, %v11540_v63  ;;  %9083 = vmatprep.mubr.msk.f32.mxu0 %vm297_vm1, %v11543_v0  ;;  %v7798_v63 = vld [vmem:[%s11157_s22 + $0x18a] sm:$0xff]  ;;  %v3768_v0 = vld [vmem:[#allocation5 + $0xd0] sm:$0xff] }
  0xf4   : > { %9317 = vmatprep.mubr.msk.f32.mxu1 %vm297_vm1, %v11546_v1  ;;  %v3769_v1 = vld [vmem:[#allocation5 + $0xd8] sm:$0xff] }
  0xf6   : > { %9084 = vmatmul.mubr.msk.f32.gmra.mrb[4].mxu0 %vm297_vm1, %v11555_v2  ;;  %v10137_v2 = vpack.c.bf16 %v3769_v1, %v3768_v0 }
  0xf7   : > { %9318 = vmatmul.mubr.msk.f32.gmra.mrb[4].mxu1 %vm297_vm1, %v11560_v3  ;;  %9086 = vmatprep.mubr.msk.f32.mxu0 %vm297_vm1, %v11563_v4  ;;  %v3770_v3 = vld [vmem:[#allocation5 + $0xe0] sm:$0xff]  ;;  %v3771_v4 = vld [vmem:[#allocation5 + $0xe8] sm:$0xff] }
  0xf8   : > { %9320 = vmatprep.mubr.msk.f32.mxu1 %vm297_vm1, %v11566_v5  ;;  %v10141_v5 = vpack.c.bf16 %v3771_v4, %v3770_v3 }
  0xfa   : > { %9087 = vmatmul.mubr.msk.f32.gmra.mrb[6].mxu0 %vm297_vm1, %v11575_v6  ;;  %v7799_v6 = vld [vmem:[%s11157_s22 + $0x19a] sm:$0xff] }
  0xfb   : > { %9321 = vmatmul.mubr.msk.f32.gmra.mrb[6].mxu1 %vm297_vm1, %v11580_v7  ;;  %9089 = vmatprep.mubr.msk.f32.mxu0 %vm297_vm1, %v11583_v8  ;;  %v7800_v7 = vld [vmem:[%s11157_s22 + $0x1a2] sm:$0xff]  ;;  %v3772_v8 = vld [vmem:[#allocation5 + $0xf0] sm:$0xff] }
  0xfc   : > { %9323 = vmatprep.mubr.msk.f32.mxu1 %vm297_vm1, %v11586_v9  ;;  %v3773_v9 = vld [vmem:[#allocation5 + $0xf8] sm:$0xff] }
  0xfe   : > { %9090 = vmatmul.mubr.msk.f32.gmra.mrb[8].mxu0 %vm297_vm1, %v11595_v10  ;;  %v10145_v10 = vpack.c.bf16 %v3773_v9, %v3772_v8  ;;  %v4119_v9 = vld [vmem:[#allocation5 + $0x180] sm:$0xff] }
  0xff   : > { %9324 = vmatmul.mubr.msk.f32.gmra.mrb[8].mxu1 %vm297_vm1, %v11600_v11  ;;  %9092 = vmatprep.mubr.msk.f32.mxu0 %vm297_vm1, %v11603_v12  ;;  %v3757_v11 = vld [vmem:[#allocation5] sm:$0xff]  ;;  %v3758_v12 = vld [vmem:[#allocation5 + $0x8] sm:$0xff] }
 0x100   : > { %9326 = vmatprep.mubr.msk.f32.mxu1 %vm297_vm1, %v11606_v13  ;;  %v10149_v13 = vpack.c.bf16 %v3758_v12, %v3757_v11 }
 0x102   : > { %9093 = vmatmul.mubr.msk.f32.gmra.mrb[10].mxu0 %vm297_vm1, %v11615_v14 }
 0x103   : > { %9327 = vmatmul.mubr.msk.f32.gmra.mrb[10].mxu1 %vm297_vm1, %v11620_v15  ;;  %9095 = vmatprep.mubr.msk.f32.mxu0 %vm297_vm1, %v11464_v47  ;;  %v12022_v47 = vld [vmem:[%s11157_s22 + $0x7a] sm:$0xff] }
 0x104   : > { %9329 = vmatprep.mubr.msk.f32.mxu1 %vm297_vm1, %v11690_v18 }
 0x106   : > { %9096 = vmatmul.mubr.msk.f32.gmra.mrb[12].mxu0 %vm297_vm1, %v11474_v49  ;;  %v12034_v49 = vld [vmem:[%s11157_s22 + $0x82] sm:$0xff] }
 0x107   : > { %9330 = vmatmul.mubr.msk.f32.gmra.mrb[12].mxu1 %vm297_vm1, %v11701_v19  ;;  %9098 = vmatprep.mubr.msk.f32.mxu0 %vm297_vm1, %v11481_v51  ;;  %v12042_v51 = vld [vmem:[%s11157_s22 + $0x92] sm:$0xff] }
 0x108   : > { %9332 = vmatprep.mubr.msk.f32.mxu1 %vm297_vm1, %v7728_v23 }
 0x10a   : > { %9099 = vmatmul.mubr.msk.f32.gmra.mrb[14].mxu0 %vm297_vm1, %v11495_v55  ;;  %v12062_v55 = vld [vmem:[%s11157_s22 + $0xaa] sm:$0xff] }
 0x10b   : > { %9333 = vmatmul.mubr.msk.f32.gmra.mrb[14].mxu1 %vm297_vm1, %v7729_v24  ;;  %9103 = vmatprep.mubr.msk.f32.mxu0 %vm297_vm1, %v1399_v25 }
 0x10c   : > { %9337 = vmatprep.mubr.msk.f32.mxu1 %vm297_vm1, %v11920_v26 }
 0x10e   : > { %9104 = vmatmul.mubr.msk.f32.vlgmr.msra.gmra.mrb[0].mxu0 %vm297_vm1, %v1400_v27 }
 0x10f   : > { %9338 = vmatmul.mubr.msk.f32.vlgmr.msra.gmra.mrb[0].mxu1 %vm297_vm1, %v11930_v28  ;;  %9128 = vmatpush3.msk.msra.mxu0 %vm346_vm0, %v1634_v21 }
 0x110   : > { %9362 = vmatpush3.msk.msra.mxu1 %vm346_vm0, %v3362_v22  ;;  %9106 = vmatprep.mubr.msk.f32.mxu0 %vm297_vm1, %v11933_v29 }
 0x111   : > { %9340 = vmatprep.mubr.msk.f32.mxu1 %vm297_vm1, %v11937_v30  ;;  %9153 = vmatprep.subr.msk.mxu0 %vm346_vm0, %v11939_v31 }
 0x112   : > { %9107 = vmatmul.mubr.msk.f32.gmra.mrb[2].mxu0 %vm297_vm1, %v11945_v32  ;;  %9387 = vmatprep.subr.msk.mxu1 %vm346_vm0, %v11947_v33 }
 0x113   : > { %9341 = vmatmul.mubr.msk.f32.gmra.mrb[2].mxu1 %vm297_vm1, %v11953_v34  ;;  %9109 = vmatprep.mubr.msk.f32.mxu0 %vm297_vm1, %v11956_v35 }
 0x114   : > { %9343 = vmatprep.mubr.msk.f32.mxu1 %vm297_vm1, %v11961_v36 }
 0x116   : > { %9110 = vmatmul.mubr.msk.f32.gmra.mrb[4].mxu0 %vm297_vm1, %v11974_v37 }
 0x117   : > { %9344 = vmatmul.mubr.msk.f32.gmra.mrb[4].mxu1 %vm297_vm1, %v11979_v38  ;;  %9112 = vmatprep.mubr.msk.f32.mxu0 %vm297_vm1, %v11982_v39 }
 0x118   : > { %9346 = vmatprep.mubr.msk.f32.mxu1 %vm297_vm1, %v11985_v40 }
 0x11a   : > { %9113 = vmatmul.mubr.msk.f32.gmra.mrb[6].mxu0 %vm297_vm1, %v11994_v41 }
 0x11b   : > { %9347 = vmatmul.mubr.msk.f32.gmra.mrb[6].mxu1 %vm297_vm1, %v11999_v42  ;;  %9115 = vmatprep.mubr.msk.f32.mxu0 %vm297_vm1, %v12002_v43 }
 0x11c   : > { %9349 = vmatprep.mubr.msk.f32.mxu1 %vm297_vm1, %v12005_v44 }
 0x11e   : > { %9116 = vmatmul.mubr.msk.f32.gmra.mrb[8].mxu0 %vm297_vm1, %v12014_v45 }
 0x11f   : > { %9350 = vmatmul.mubr.msk.f32.gmra.mrb[8].mxu1 %vm297_vm1, %v12019_v46  ;;  %9118 = vmatprep.mubr.msk.f32.mxu0 %vm297_vm1, %v12022_v47 }
 0x120   : > { %9352 = vmatprep.mubr.msk.f32.mxu1 %vm297_vm1, %v12025_v48 }
 0x122   : > { %9119 = vmatmul.mubr.msk.f32.gmra.mrb[10].mxu0 %vm297_vm1, %v12034_v49 }
 0x123   : > { %9353 = vmatmul.mubr.msk.f32.gmra.mrb[10].mxu1 %vm297_vm1, %v12039_v50  ;;  %9121 = vmatprep.mubr.msk.f32.mxu0 %vm297_vm1, %v12042_v51 }
 0x124   : > { %9355 = vmatprep.mubr.msk.f32.mxu1 %vm297_vm1, %v12045_v52 }
 0x126   : > { %9122 = vmatmul.mubr.msk.f32.gmra.mrb[12].mxu0 %vm297_vm1, %v12054_v53 }
 0x127   : > { %9356 = vmatmul.mubr.msk.f32.gmra.mrb[12].mxu1 %vm297_vm1, %v12059_v54  ;;  %9124 = vmatprep.mubr.msk.f32.mxu0 %vm297_vm1, %v12062_v55 }
 0x128   : > { %9358 = vmatprep.mubr.msk.f32.mxu1 %vm297_vm1, %v12065_v56 }
 0x12a   : > { %9125 = vmatmul.mubr.msk.f32.gmra.mrb[14].mxu0 %vm297_vm1, %v12074_v57 }
 0x12b   : > { %9359 = vmatmul.mubr.msk.f32.gmra.mrb[14].mxu1 %vm297_vm1, %v12079_v58  ;;  %9129 = vmatprep.mubr.msk.f32.mxu0 %vm297_vm1, %v11933_v29 }
 0x12c   : > { %9363 = vmatprep.mubr.msk.f32.mxu1 %vm297_vm1, %v11937_v30 }
 0x12e   : > { %9130 = vmatmul.mubr.msk.f32.vlgmr.msra.gmra.mrb[0].mxu0 %vm297_vm1, %v11945_v32  ;;  %v3760_v32 = vld [vmem:[#allocation5 + $0x18] sm:$0xff] }
 0x12f   : > { %9364 = vmatmul.mubr.msk.f32.vlgmr.msra.gmra.mrb[0].mxu1 %vm297_vm1, %v11953_v34  ;;  %9154 = vmatpush3.msk.msra.mxu0 %vm346_vm0, %v11939_v31  ;;  %v3759_v31 = vld [vmem:[#allocation5 + $0x10] sm:$0xff] }
 0x130   : > { %9388 = vmatpush3.msk.msra.mxu1 %vm346_vm0, %v11947_v33  ;;  %9132 = vmatprep.mubr.msk.f32.mxu0 %vm297_vm1, %v11956_v35 }
 0x131   : > { %9366 = vmatprep.mubr.msk.f32.mxu1 %vm297_vm1, %v11961_v36  ;;  %10134 = vmatprep.subr.bf16.mxu0 %v10133_v61 }
 0x132   : > { %9133 = vmatmul.mubr.msk.f32.gmra.mrb[2].mxu0 %vm297_vm1, %v11974_v37  ;;  %10278 = vmatprep.subr.bf16.mxu1 %v10133_v61 }
 0x133   : > { %9367 = vmatmul.mubr.msk.f32.gmra.mrb[2].mxu1 %vm297_vm1, %v11979_v38  ;;  %9135 = vmatprep.mubr.msk.f32.mxu0 %vm297_vm1, %v11982_v39 }
 0x134   : > { %9369 = vmatprep.mubr.msk.f32.mxu1 %vm297_vm1, %v11985_v40 }
 0x136   : > { %9136 = vmatmul.mubr.msk.f32.gmra.mrb[4].mxu0 %vm297_vm1, %v11994_v41 }
 0x137   : > { %9370 = vmatmul.mubr.msk.f32.gmra.mrb[4].mxu1 %vm297_vm1, %v11999_v42  ;;  %9138 = vmatprep.mubr.msk.f32.mxu0 %vm297_vm1, %v12002_v43 }
 0x138   : > { %9372 = vmatprep.mubr.msk.f32.mxu1 %vm297_vm1, %v12005_v44 }
 0x13a   : > { %9139 = vmatmul.mubr.msk.f32.gmra.mrb[6].mxu0 %vm297_vm1, %v12014_v45 }
 0x13b   : > { %9373 = vmatmul.mubr.msk.f32.gmra.mrb[6].mxu1 %vm297_vm1, %v12019_v46  ;;  %9141 = vmatprep.mubr.msk.f32.mxu0 %vm297_vm1, %v12022_v47 }
 0x13c   : > { %9375 = vmatprep.mubr.msk.f32.mxu1 %vm297_vm1, %v12025_v48 }
 0x13e   : > { %9142 = vmatmul.mubr.msk.f32.gmra.mrb[8].mxu0 %vm297_vm1, %v12034_v49 }
 0x13f   : > { %9376 = vmatmul.mubr.msk.f32.gmra.mrb[8].mxu1 %vm297_vm1, %v12039_v50  ;;  %9144 = vmatprep.mubr.msk.f32.mxu0 %vm297_vm1, %v12042_v51 }
 0x140   : > { %9378 = vmatprep.mubr.msk.f32.mxu1 %vm297_vm1, %v12045_v52 }
 0x142   : > { %9145 = vmatmul.mubr.msk.f32.gmra.mrb[10].mxu0 %vm297_vm1, %v12054_v53 }
 0x143   : > { %9379 = vmatmul.mubr.msk.f32.gmra.mrb[10].mxu1 %vm297_vm1, %v12059_v54  ;;  %9147 = vmatprep.mubr.msk.f32.mxu0 %vm297_vm1, %v12062_v55 }
 0x144   : > { %9381 = vmatprep.mubr.msk.f32.mxu1 %vm297_vm1, %v12065_v56 }
 0x146   : > { %9148 = vmatmul.mubr.msk.f32.gmra.mrb[12].mxu0 %vm297_vm1, %v12074_v57 }
 0x147   : > { %9382 = vmatmul.mubr.msk.f32.gmra.mrb[12].mxu1 %vm297_vm1, %v12079_v58  ;;  %9150 = vmatprep.mubr.msk.f32.mxu0 %vm297_vm1, %v11920_v26 }
 0x148   : > { %9384 = vmatprep.mubr.msk.f32.mxu1 %vm297_vm1, %v7797_v62 }
 0x14a   : > { %9151 = vmatmul.mubr.msk.f32.gmra.mrb[14].mxu0 %vm297_vm1, %v11930_v28 }
 0x14b   : > { %9385 = vmatmul.mubr.msk.f32.gmra.mrb[14].mxu1 %vm297_vm1, %v7798_v63  ;;  %9155 = vmatprep.mubr.msk.f32.mxu0 %vm297_vm1, %v11956_v35 }
 0x14c   : > { %9389 = vmatprep.mubr.msk.f32.mxu1 %vm297_vm1, %v11961_v36 }
 0x14e   : > { %9156 = vmatmul.mubr.msk.f32.vlgmr.msra.gmra.mrb[0].mxu0 %vm297_vm1, %v11974_v37 }
 0x14f   : > { %9390 = vmatmul.mubr.msk.f32.vlgmr.msra.gmra.mrb[0].mxu1 %vm297_vm1, %v11979_v38  ;;  %9158 = vmatprep.mubr.msk.f32.mxu0 %vm297_vm1, %v11982_v39 }
 0x150   : > { %9392 = vmatprep.mubr.msk.f32.mxu1 %vm297_vm1, %v11985_v40  ;;  %10136 = vmatpush3.bf16.msra.mxu0 %v10133_v61 }
 0x151   : > { %10280 = vmatpush3.bf16.msra.mxu1 %v10133_v61  ;;  %10138 = vmatprep.subr.bf16.mxu0 %v10137_v2 }
 0x152   : > { %9159 = vmatmul.mubr.msk.f32.gmra.mrb[2].mxu0 %vm297_vm1, %v11994_v41  ;;  %10282 = vmatprep.subr.bf16.mxu1 %v10137_v2 }
 0x153   : > { %9393 = vmatmul.mubr.msk.f32.gmra.mrb[2].mxu1 %vm297_vm1, %v11999_v42  ;;  %9161 = vmatprep.mubr.msk.f32.mxu0 %vm297_vm1, %v12002_v43  ;;  %v10153_v42 = vpack.c.bf16 %v3760_v32, %v3759_v31  ;;  %v3761_v43 = vld [vmem:[#allocation5 + $0x20] sm:$0xff] }
 0x154   : > { %9395 = vmatprep.mubr.msk.f32.mxu1 %vm297_vm1, %v12005_v44  ;;  %10140 = vmatpush3.bf16.msra.mxu0 %v10137_v2 }
 0x155   : > { %10284 = vmatpush3.bf16.msra.mxu1 %v10137_v2  ;;  %10142 = vmatprep.subr.bf16.mxu0 %v10141_v5 }
 0x156   : > { %9162 = vmatmul.mubr.msk.f32.gmra.mrb[4].mxu0 %vm297_vm1, %v12014_v45  ;;  %10286 = vmatprep.subr.bf16.mxu1 %v10141_v5 }
 0x157   : > { %9396 = vmatmul.mubr.msk.f32.gmra.mrb[4].mxu1 %vm297_vm1, %v12019_v46  ;;  %9164 = vmatprep.mubr.msk.f32.mxu0 %vm297_vm1, %v12022_v47  ;;  %v3762_v47 = vld [vmem:[#allocation5 + $0x28] sm:$0xff] }
 0x158   : > { %9398 = vmatprep.mubr.msk.f32.mxu1 %vm297_vm1, %v12025_v48  ;;  %10144 = vmatpush3.bf16.msra.mxu0 %v10141_v5 }
 0x159   : > { %10288 = vmatpush3.bf16.msra.mxu1 %v10141_v5  ;;  %10146 = vmatprep.subr.bf16.mxu0 %v10145_v10 }
 0x15a   : > { %9165 = vmatmul.mubr.msk.f32.gmra.mrb[6].mxu0 %vm297_vm1, %v12034_v49  ;;  %10290 = vmatprep.subr.bf16.mxu1 %v10145_v10 }
 0x15b   : > { %9399 = vmatmul.mubr.msk.f32.gmra.mrb[6].mxu1 %vm297_vm1, %v12039_v50  ;;  %9167 = vmatprep.mubr.msk.f32.mxu0 %vm297_vm1, %v12042_v51 }
 0x15c   : > { %9401 = vmatprep.mubr.msk.f32.mxu1 %vm297_vm1, %v12045_v52  ;;  %10148 = vmatpush3.bf16.msra.mxu0 %v10145_v10 }
 0x15d   : > { %10292 = vmatpush3.bf16.msra.mxu1 %v10145_v10  ;;  %10150 = vmatprep.subr.bf16.mxu0 %v10149_v13 }
 0x15e   : > { %9168 = vmatmul.mubr.msk.f32.gmra.mrb[8].mxu0 %vm297_vm1, %v12054_v53  ;;  %10294 = vmatprep.subr.bf16.mxu1 %v10149_v13 }
 0x15f   : > { %9402 = vmatmul.mubr.msk.f32.gmra.mrb[8].mxu1 %vm297_vm1, %v12059_v54  ;;  %9170 = vmatprep.mubr.msk.f32.mxu0 %vm297_vm1, %v12062_v55 }
 0x160   : > { %9404 = vmatprep.mubr.msk.f32.mxu1 %vm297_vm1, %v12065_v56 }
 0x162   : > { %9171 = vmatmul.mubr.msk.f32.gmra.mrb[10].mxu0 %vm297_vm1, %v12074_v57  ;;  %v10157_v57 = vpack.c.bf16 %v3762_v47, %v3761_v43 }
 0x163   : > { %9405 = vmatmul.mubr.msk.f32.gmra.mrb[10].mxu1 %vm297_vm1, %v12079_v58  ;;  %9173 = vmatprep.mubr.msk.f32.mxu0 %vm297_vm1, %v11920_v26  ;;  %v3763_v58 = vld [vmem:[#allocation5 + $0x30] sm:$0xff] }
 0x164   : > { %9407 = vmatprep.mubr.msk.f32.mxu1 %vm297_vm1, %v7797_v62  ;;  %v3764_v62 = vld [vmem:[#allocation5 + $0x38] sm:$0xff] }
 0x165   : > { %v10161_v8 = vpack.c.bf16 %v3764_v62, %v3763_v58 }
 0x166   : > { %9174 = vmatmul.mubr.msk.f32.gmra.mrb[12].mxu0 %vm297_vm1, %v11930_v28 }
 0x167   : > { %9408 = vmatmul.mubr.msk.f32.gmra.mrb[12].mxu1 %vm297_vm1, %v7798_v63  ;;  %9176 = vmatprep.mubr.msk.f32.mxu0 %vm297_vm1, %v11937_v30 }
 0x168   : > { %9410 = vmatprep.mubr.msk.f32.mxu1 %vm297_vm1, %v7799_v6 }
 0x16a   : > { %9177 = vmatmul.mubr.msk.f32.gmra.mrb[14].mxu0 %vm297_vm1, %v11953_v34 }
 0x16b   : > { %9411 = vmatmul.mubr.msk.f32.gmra.mrb[14].mxu1 %vm297_vm1, %v7800_v7 }
 0x221   : > { %v9157_v14 = vpop.f32.mrb[0].mxu0 }
 0x222   : > { %v1978_v15 = vmax.f32 %v9157_v14, 0.0  ;;  %v9391_v16 = vpop.f32.mrb[0].mxu1  ;;  %v1882_v17 = vpop.f32.mrb[1].mxu0 }
 0x223   : > { %v3705_v18 = vmax.f32 %v9391_v16, 0.0  ;;  %v1977_v19 = vmax.f32 %v1882_v17, 0.0  ;;  %v3609_v20 = vpop.f32.mrb[1].mxu1 }
 0x224   : > { %1995 = vst.msk [vmem:[#allocation2 + $0x30] sm:$0xff] %vm201_vm2, %v1978_v15  ;;  %v3704_v21 = vmax.f32 %v3609_v20, 0.0 }
 0x225   : > { %3722 = vst.msk [vmem:[#allocation2 + $0x130] sm:$0xff] %vm201_vm2, %v3705_v18  ;;  %1994 = vst.msk [vmem:[#allocation2 + $0x28] sm:$0xff] %vm201_vm2, %v1977_v19  ;;  %v9160_v22 = vpop.f32.mrb[2].mxu0 }
 0x226   : > { %3721 = vst.msk [vmem:[#allocation2 + $0x128] sm:$0xff] %vm201_vm2, %v3704_v21  ;;  %v1980_v23 = vmax.f32 %v9160_v22, 0.0  ;;  %v9394_v24 = vpop.f32.mrb[2].mxu1  ;;  %v1892_v25 = vpop.f32.mrb[3].mxu0 }
 0x227   : > { %v3707_v26 = vmax.f32 %v9394_v24, 0.0  ;;  %v1979_v27 = vmax.f32 %v1892_v25, 0.0  ;;  %v3619_v28 = vpop.f32.mrb[3].mxu1 }
 0x228   : > { %1997 = vst.msk [vmem:[#allocation2 + $0x50] sm:$0xff] %vm201_vm2, %v1980_v23  ;;  %v3706_v29 = vmax.f32 %v3619_v28, 0.0 }
 0x229   : > { %3724 = vst.msk [vmem:[#allocation2 + $0x150] sm:$0xff] %vm201_vm2, %v3707_v26  ;;  %1996 = vst.msk [vmem:[#allocation2 + $0x48] sm:$0xff] %vm201_vm2, %v1979_v27  ;;  %v9163_v30 = vpop.f32.mrb[4].mxu0 }
 0x22a   : > { %3723 = vst.msk [vmem:[#allocation2 + $0x148] sm:$0xff] %vm201_vm2, %v3706_v29  ;;  %v1982_v33 = vmax.f32 %v9163_v30, 0.0  ;;  %v9397_v34 = vpop.f32.mrb[4].mxu1  ;;  %v1902_v35 = vpop.f32.mrb[5].mxu0 }
 0x22b   : > { %v3709_v36 = vmax.f32 %v9397_v34, 0.0  ;;  %v1981_v37 = vmax.f32 %v1902_v35, 0.0  ;;  %v3629_v38 = vpop.f32.mrb[5].mxu1 }
 0x22c   : > { %1999 = vst.msk [vmem:[#allocation2 + $0x70] sm:$0xff] %vm201_vm2, %v1982_v33  ;;  %v3708_v39 = vmax.f32 %v3629_v38, 0.0  ;;  %v12224_v40 = vld [vmem:[#allocation2 + $0x27] sm:$0xff]  ;;  %v12226_v41 = vld [vmem:[#allocation2 + $0x2f] sm:$0xff] }
 0x22d   : > { %3726 = vst.msk [vmem:[#allocation2 + $0x170] sm:$0xff] %vm201_vm2, %v3709_v36  ;;  %1998 = vst.msk [vmem:[#allocation2 + $0x68] sm:$0xff] %vm201_vm2, %v1981_v37  ;;  %v9166_v44 = vpop.f32.mrb[6].mxu0  ;;  %9429 = vmatprep.mubr.msk.f32.mxu0 %vm201_vm2, %v12224_v40  ;;  %v12232_v45 = vld [vmem:[#allocation2 + $0x127] sm:$0xff]  ;;  %v12234_v46 = vld [vmem:[#allocation2 + $0x12f] sm:$0xff] }
 0x22e   : > { %3725 = vst.msk [vmem:[#allocation2 + $0x168] sm:$0xff] %vm201_vm2, %v3708_v39  ;;  %v1984_v48 = vmax.f32 %v9166_v44, 0.0  ;;  %v9400_v49 = vpop.f32.mrb[6].mxu1  ;;  %9789 = vmatprep.mubr.msk.f32.mxu1 %vm201_vm2, %v12232_v45  ;;  %v1912_v50 = vpop.f32.mrb[7].mxu0  ;;  %9430 = vmatmul.mubr.msk.f32.vlgmr.msra.gmra.mrb[16].mxu0 %vm201_vm2, %v12226_v41 }
 0x22f   : > { %v3711_v51 = vmax.f32 %v9400_v49, 0.0  ;;  %v1983_v52 = vmax.f32 %v1912_v50, 0.0  ;;  %v3639_v53 = vpop.f32.mrb[7].mxu1  ;;  %9790 = vmatmul.mubr.msk.f32.vlgmr.msra.gmra.mrb[16].mxu1 %vm201_vm2, %v12234_v46  ;;  %10152 = vmatpush3.bf16.msra.mxu0 %v10149_v13 }
 0x230   : > { %2001 = vst.msk [vmem:[#allocation2 + $0x90] sm:$0xff] %vm201_vm2, %v1984_v48  ;;  %v3710_v54 = vmax.f32 %v3639_v53, 0.0  ;;  %10296 = vmatpush3.bf16.msra.mxu1 %v10149_v13  ;;  %v12244_v55 = vld [vmem:[#allocation2 + $0x47] sm:$0xff]  ;;  %v12246_v56 = vld [vmem:[#allocation2 + $0x4f] sm:$0xff]  ;;  %10154 = vmatprep.subr.bf16.mxu0 %v10153_v42 }
 0x231   : > { %3728 = vst.msk [vmem:[#allocation2 + $0x190] sm:$0xff] %vm201_vm2, %v3711_v51  ;;  %2000 = vst.msk [vmem:[#allocation2 + $0x88] sm:$0xff] %vm201_vm2, %v1983_v52  ;;  %v9169_v59 = vpop.f32.mrb[8].mxu0  ;;  %9432 = vmatprep.mubr.msk.f32.mxu0 %vm201_vm2, %v12244_v55  ;;  %v12252_v60 = vld [vmem:[#allocation2 + $0x147] sm:$0xff]  ;;  %v12254_v61 = vld [vmem:[#allocation2 + $0x14f] sm:$0xff]  ;;  %10298 = vmatprep.subr.bf16.mxu1 %v10153_v42 }
 0x232   : > { %3727 = vst.msk [vmem:[#allocation2 + $0x188] sm:$0xff] %vm201_vm2, %v3710_v54  ;;  %v1986_v63 = vmax.f32 %v9169_v59, 0.0  ;;  %v9403_v0 = vpop.f32.mrb[8].mxu1  ;;  %9792 = vmatprep.mubr.msk.f32.mxu1 %vm201_vm2, %v12252_v60  ;;  %v1922_v1 = vpop.f32.mrb[9].mxu0  ;;  %9433 = vmatmul.mubr.msk.f32.gmra.mrb[18].mxu0 %vm201_vm2, %v12246_v56  ;;  %v4120_v13 = vld [vmem:[#allocation5 + $0x188] sm:$0xff] }
 0x233   : > { %v3713_v2 = vmax.f32 %v9403_v0, 0.0  ;;  %v1985_v3 = vmax.f32 %v1922_v1, 0.0  ;;  %v3649_v4 = vpop.f32.mrb[9].mxu1  ;;  %9793 = vmatmul.mubr.msk.f32.gmra.mrb[18].mxu1 %vm201_vm2, %v12254_v61  ;;  %10156 = vmatpush3.bf16.msra.mxu0 %v10153_v42  ;;  %v12288_v23 = vpack.c.bf16 %v4120_v13, %v4119_v9  ;;  %v3737_v0 = vld [vmem:[#allocation2 + $0x7] sm:$0xff] }
 0x234   : > { %2003 = vst.msk [vmem:[#allocation2 + $0xb0] sm:$0xff] %vm201_vm2, %v1986_v63  ;;  %v3712_v5 = vmax.f32 %v3649_v4, 0.0  ;;  %v12264_v6 = vld [vmem:[#allocation2 + $0x67] sm:$0xff]  ;;  %v12266_v7 = vld [vmem:[#allocation2 + $0x6f] sm:$0xff]  ;;  %10300 = vmatpush3.bf16.msra.mxu1 %v10153_v42  ;;  %10158 = vmatprep.subr.bf16.mxu0 %v10157_v57  ;;  %v4122_v4 = vld [vmem:[#allocation5 + $0x198] sm:$0xff] }
 0x235   : > { %3730 = vst.msk [vmem:[#allocation2 + $0x1b0] sm:$0xff] %vm201_vm2, %v3713_v2  ;;  %2002 = vst.msk [vmem:[#allocation2 + $0xa8] sm:$0xff] %vm201_vm2, %v1985_v3  ;;  %v9172_v10 = vpop.f32.mrb[10].mxu0  ;;  %9435 = vmatprep.mubr.msk.f32.mxu0 %vm201_vm2, %v12264_v6  ;;  %v12272_v11 = vld [vmem:[#allocation2 + $0x167] sm:$0xff]  ;;  %v12274_v12 = vld [vmem:[#allocation2 + $0x16f] sm:$0xff]  ;;  %10302 = vmatprep.subr.bf16.mxu1 %v10157_v57 }
 0x236   : > { %3729 = vst.msk [vmem:[#allocation2 + $0x1a8] sm:$0xff] %vm201_vm2, %v3712_v5  ;;  %v1988_v14 = vmax.f32 %v9172_v10, 0.0  ;;  %v9406_v15 = vpop.f32.mrb[10].mxu1  ;;  %9795 = vmatprep.mubr.msk.f32.mxu1 %vm201_vm2, %v12272_v11  ;;  %v1932_v16 = vpop.f32.mrb[11].mxu0  ;;  %9436 = vmatmul.mubr.msk.f32.gmra.mrb[20].mxu0 %vm201_vm2, %v12266_v7  ;;  %v4121_v3 = vld [vmem:[#allocation5 + $0x190] sm:$0xff]  ;;  %v4123_v9 = vld [vmem:[#allocation5 + $0x1a0] sm:$0xff] }
 0x237   : > { %v3715_v17 = vmax.f32 %v9406_v15, 0.0  ;;  %v1987_v18 = vmax.f32 %v1932_v16, 0.0  ;;  %v3659_v19 = vpop.f32.mrb[11].mxu1  ;;  %9796 = vmatmul.mubr.msk.f32.gmra.mrb[20].mxu1 %vm201_vm2, %v12274_v12  ;;  %10160 = vmatpush3.bf16.msra.mxu0 %v10157_v57  ;;  %v3738_v5 = vld [vmem:[#allocation2 + $0xf] sm:$0xff]  ;;  %v4126_v15 = vld [vmem:[#allocation5 + $0x1b8] sm:$0xff] }
 0x238   : > { %2005 = vst.msk [vmem:[#allocation2 + $0xd0] sm:$0xff] %vm201_vm2, %v1988_v14  ;;  %v3714_v20 = vmax.f32 %v3659_v19, 0.0  ;;  %v12284_v21 = vld [vmem:[#allocation2 + $0x87] sm:$0xff]  ;;  %v12286_v22 = vld [vmem:[#allocation2 + $0x8f] sm:$0xff]  ;;  %10304 = vmatpush3.bf16.msra.mxu1 %v10157_v57  ;;  %10162 = vmatprep.subr.bf16.mxu0 %v10161_v8  ;;  %v4318_v19 = vld [vmem:[#allocation5 + $0x58] sm:$0xff] }
 0x239   : > { %3732 = vst.msk [vmem:[#allocation2 + $0x1d0] sm:$0xff] %vm201_vm2, %v3715_v17  ;;  %2004 = vst.msk [vmem:[#allocation2 + $0xc8] sm:$0xff] %vm201_vm2, %v1987_v18  ;;  %v9175_v24 = vpop.f32.mrb[12].mxu0  ;;  %9438 = vmatprep.mubr.msk.f32.mxu0 %vm201_vm2, %v12284_v21  ;;  %v12294_v25 = vld [vmem:[#allocation2 + $0x187] sm:$0xff]  ;;  %v12296_v26 = vld [vmem:[#allocation2 + $0x18f] sm:$0xff]  ;;  %10306 = vmatprep.subr.bf16.mxu1 %v10161_v8 }
 0x23a   : > { %3731 = vst.msk [vmem:[#allocation2 + $0x1c8] sm:$0xff] %vm201_vm2, %v3714_v20  ;;  %v1990_v27 = vmax.f32 %v9175_v24, 0.0  ;;  %v9409_v28 = vpop.f32.mrb[12].mxu1  ;;  %9798 = vmatprep.mubr.msk.f32.mxu1 %vm201_vm2, %v12294_v25  ;;  %v1942_v29 = vpop.f32.mrb[13].mxu0  ;;  %9439 = vmatmul.mubr.msk.f32.gmra.mrb[22].mxu0 %vm201_vm2, %v12286_v22  ;;  %v4124_v10 = vld [vmem:[#allocation5 + $0x1a8] sm:$0xff]  ;;  %v4125_v14 = vld [vmem:[#allocation5 + $0x1b0] sm:$0xff] }
 0x23b   : > { %v3717_v30 = vmax.f32 %v9409_v28, 0.0  ;;  %v1989_v31 = vmax.f32 %v1942_v29, 0.0  ;;  %v3669_v32 = vpop.f32.mrb[13].mxu1  ;;  %9799 = vmatmul.mubr.msk.f32.gmra.mrb[22].mxu1 %vm201_vm2, %v12296_v26  ;;  %10164 = vmatpush3.bf16.msra.mxu0 %v10161_v8  ;;  %v10173_v13 = vpack.c.bf16 %v4124_v10, %v4123_v9  ;;  %v4316_v16 = vld [vmem:[#allocation5 + $0x48] sm:$0xff]  ;;  %v4317_v18 = vld [vmem:[#allocation5 + $0x50] sm:$0xff]  ;;  %v4537_v29 = vld [vmem:[#allocation5 + $0x120] sm:$0xff] }
 0x23c   : > { %2007 = vst.msk [vmem:[#allocation2 + $0xf0] sm:$0xff] %vm201_vm2, %v1990_v27  ;;  %v3716_v33 = vmax.f32 %v3669_v32, 0.0  ;;  %v12306_v34 = vld [vmem:[#allocation2 + $0xa7] sm:$0xff]  ;;  %v12308_v35 = vld [vmem:[#allocation2 + $0xaf] sm:$0xff]  ;;  %10308 = vmatpush3.bf16.msra.mxu1 %v10161_v8  ;;  %10166 = vmatprep.subr.bf16.mxu0 %v12288_v23  ;;  %v10169_v8 = vpack.c.bf16 %v4122_v4, %v4121_v3  ;;  %v10185_v20 = vpack.c.bf16 %v4318_v19, %v4317_v18  ;;  %v4716_v19 = vld [vmem:[#allocation5 + $0x1f8] sm:$0xff] }
 0x23d   : > { %3734 = vst.msk [vmem:[#allocation2 + $0x1f0] sm:$0xff] %vm201_vm2, %v3717_v30  ;;  %2006 = vst.msk [vmem:[#allocation2 + $0xe8] sm:$0xff] %vm201_vm2, %v1989_v31  ;;  %v9178_v36 = vpop.f32.mrb[14].mxu0  ;;  %9441 = vmatprep.mubr.msk.f32.mxu0 %vm201_vm2, %v12306_v34  ;;  %v12315_v37 = vld [vmem:[#allocation2 + $0x1a7] sm:$0xff]  ;;  %v12317_v38 = vld [vmem:[#allocation2 + $0x1af] sm:$0xff]  ;;  %10310 = vmatprep.subr.bf16.mxu1 %v12288_v23 }
 0x23e   : > { %3733 = vst.msk [vmem:[#allocation2 + $0x1e8] sm:$0xff] %vm201_vm2, %v3716_v33  ;;  %v1992_v39 = vmax.f32 %v9178_v36, 0.0  ;;  %v9412_v42 = vpop.f32.mrb[14].mxu1  ;;  %9801 = vmatprep.mubr.msk.f32.mxu1 %vm201_vm2, %v12315_v37  ;;  %v1952_v43 = vpop.f32.mrb[15].mxu0  ;;  %9442 = vmatmul.mubr.msk.f32.gmra.mrb[24].mxu0 %vm201_vm2, %v12308_v35  ;;  %v4320_v24 = vld [vmem:[#allocation5 + $0x68] sm:$0xff]  ;;  %v4715_v18 = vld [vmem:[#allocation5 + $0x1f0] sm:$0xff] }
 0x23f   : > { %v3719_v44 = vmax.f32 %v9412_v42, 0.0  ;;  %v1991_v47 = vmax.f32 %v1952_v43, 0.0  ;;  %v3679_v48 = vpop.f32.mrb[15].mxu1  ;;  %9802 = vmatmul.mubr.msk.f32.gmra.mrb[24].mxu1 %vm201_vm2, %v12317_v38  ;;  %v4295_v28 = vld [vmem:[#allocation2 + $0x10] sm:$0xff]  ;;  %v12513_v31 = vld [vmem:[#allocation2 + $0x28] sm:$0xff] }
 0x240   : > { %2009 = vst.msk [vmem:[#allocation2 + $0x110] sm:$0xff] %vm201_vm2, %v1992_v39  ;;  %v3718_v49 = vmax.f32 %v3679_v48, 0.0  ;;  %v12328_v50 = vld [vmem:[#allocation2 + $0xc7] sm:$0xff]  ;;  %v12330_v51 = vld [vmem:[#allocation2 + $0xcf] sm:$0xff] }
 0x241   : > { %3736 = vst.msk [vmem:[#allocation2 + $0x210] sm:$0xff] %vm201_vm2, %v3719_v44  ;;  %2008 = vst.msk [vmem:[#allocation2 + $0x108] sm:$0xff] %vm201_vm2, %v1991_v47  ;;  %9444 = vmatprep.mubr.msk.f32.mxu0 %vm201_vm2, %v12328_v50  ;;  %v12336_v52 = vld [vmem:[#allocation2 + $0x1c7] sm:$0xff]  ;;  %v12338_v53 = vld [vmem:[#allocation2 + $0x1cf] sm:$0xff] }
 0x242   : > { %3735 = vst.msk [vmem:[#allocation2 + $0x208] sm:$0xff] %vm201_vm2, %v3718_v49  ;;  %9804 = vmatprep.mubr.msk.f32.mxu1 %vm201_vm2, %v12336_v52  ;;  %9445 = vmatmul.mubr.msk.f32.gmra.mrb[26].mxu0 %vm201_vm2, %v12330_v51  ;;  %v12519_v32 = vld [vmem:[#allocation2 + $0x128] sm:$0xff]  ;;  %v12523_v33 = vld [vmem:[#allocation2 + $0x30] sm:$0xff] }
 0x243   : > { %9805 = vmatmul.mubr.msk.f32.gmra.mrb[26].mxu1 %vm201_vm2, %v12338_v53  ;;  %v12527_v36 = vld [vmem:[#allocation2 + $0x130] sm:$0xff]  ;;  %v12535_v39 = vld [vmem:[#allocation2 + $0x148] sm:$0xff] }
 0x244   : > { %v12347_v54 = vld [vmem:[#allocation2 + $0xe7] sm:$0xff]  ;;  %v12349_v57 = vld [vmem:[#allocation2 + $0xef] sm:$0xff] }
 0x245   : > { %9447 = vmatprep.mubr.msk.f32.mxu0 %vm201_vm2, %v12347_v54  ;;  %v12353_v58 = vld [vmem:[#allocation2 + $0x1e7] sm:$0xff]  ;;  %v12355_v59 = vld [vmem:[#allocation2 + $0x1ef] sm:$0xff] }
 0x246   : > { %9807 = vmatprep.mubr.msk.f32.mxu1 %vm201_vm2, %v12353_v58  ;;  %9448 = vmatmul.mubr.msk.f32.gmra.mrb[28].mxu0 %vm201_vm2, %v12349_v57  ;;  %v12539_v42 = vld [vmem:[#allocation2 + $0x50] sm:$0xff]  ;;  %v4709_v44 = vld [vmem:[#allocation5 + $0x1c0] sm:$0xff] }
 0x247   : > { %9808 = vmatmul.mubr.msk.f32.gmra.mrb[28].mxu1 %vm201_vm2, %v12355_v59  ;;  %v12511_v30 = vld [vmem:[#allocation2 + $0x110] sm:$0xff]  ;;  %v12545_v48 = vld [vmem:[#allocation2 + $0x68] sm:$0xff] }
 0x248   : > { %v12363_v62 = vld [vmem:[#allocation2 + $0x107] sm:$0xff]  ;;  %v12365_v63 = vld [vmem:[#allocation2 + $0x10f] sm:$0xff] }
 0x249   : > { %9450 = vmatprep.mubr.msk.f32.mxu0 %vm201_vm2, %v12363_v62  ;;  %v12369_v1 = vld [vmem:[#allocation2 + $0x207] sm:$0xff]  ;;  %v12371_v2 = vld [vmem:[#allocation2 + $0x20f] sm:$0xff] }
 0x24a   : > { %9810 = vmatprep.mubr.msk.f32.mxu1 %vm201_vm2, %v12369_v1  ;;  %9451 = vmatmul.mubr.msk.f32.gmra.mrb[30].mxu0 %vm201_vm2, %v12365_v63  ;;  %v12505_v27 = vld [vmem:[#allocation2 + $0x108] sm:$0xff]  ;;  %v12543_v47 = vld [vmem:[#allocation2 + $0x150] sm:$0xff] }
 0x24b   : > { %9811 = vmatmul.mubr.msk.f32.gmra.mrb[30].mxu1 %vm201_vm2, %v12371_v2  ;;  %9469 = vmatprep.mubr.msk.f32.mxu0 %vm201_vm2, %v3737_v0  ;;  %v4710_v49 = vld [vmem:[#allocation5 + $0x1c8] sm:$0xff] }
 0x24c   : > { %9829 = vmatprep.mubr.msk.f32.mxu1 %vm201_vm2, %v12363_v62  ;;  %v12587_v0 = vld [vmem:[#allocation2 + $0xb0] sm:$0xff]  ;;  %v12599_v3 = vld [vmem:[#allocation2 + $0x1c8] sm:$0xff] }
 0x24d   : > { %v12603_v4 = vld [vmem:[#allocation2 + $0xd0] sm:$0xff]  ;;  %v12615_v9 = vld [vmem:[#allocation2 + $0x1e8] sm:$0xff] }
 0x24e   : > { %9470 = vmatmul.mubr.msk.f32.vlgmr.msra.gmra.mrb[16].mxu0 %vm201_vm2, %v3738_v5  ;;  %v12607_v5 = vld [vmem:[#allocation2 + $0x1d0] sm:$0xff] }
 0x24f   : > { %9830 = vmatmul.mubr.msk.f32.vlgmr.msra.gmra.mrb[16].mxu1 %vm201_vm2, %v12365_v63  ;;  %9472 = vmatprep.mubr.msk.f32.mxu0 %vm201_vm2, %v12224_v40  ;;  %v10177_v40 = vpack.c.bf16 %v4126_v15, %v4125_v14  ;;  %v12619_v10 = vld [vmem:[#allocation2 + $0xf0] sm:$0xff]  ;;  %v4712_v15 = vld [vmem:[#allocation5 + $0x1d8] sm:$0xff] }
 0x250   : > { %10168 = vmatpush3.bf16.msra.mxu0 %v12288_v23  ;;  %9832 = vmatprep.mubr.msk.f32.mxu1 %vm201_vm2, %v12232_v45  ;;  %v4711_v14 = vld [vmem:[#allocation5 + $0x1d0] sm:$0xff] }
 0x251   : > { %10312 = vmatpush3.bf16.msra.mxu1 %v12288_v23  ;;  %10170 = vmatprep.subr.bf16.mxu0 %v10169_v8  ;;  %v4319_v23 = vld [vmem:[#allocation5 + $0x60] sm:$0xff] }
 0x252   : > { %9473 = vmatmul.mubr.msk.f32.gmra.mrb[18].mxu0 %vm201_vm2, %v12226_v41  ;;  %10314 = vmatprep.subr.bf16.mxu1 %v10169_v8  ;;  %v4315_v41 = vld [vmem:[#allocation5 + $0x40] sm:$0xff] }
 0x253   : > { %9833 = vmatmul.mubr.msk.f32.gmra.mrb[18].mxu1 %vm201_vm2, %v12234_v46  ;;  %9475 = vmatprep.mubr.msk.f32.mxu0 %vm201_vm2, %v12244_v55  ;;  %v10181_v17 = vpack.c.bf16 %v4316_v16, %v4315_v41  ;;  %v4713_v41 = vld [vmem:[#allocation5 + $0x1e0] sm:$0xff]  ;;  %v4714_v16 = vld [vmem:[#allocation5 + $0x1e8] sm:$0xff] }
 0x254   : > { %9835 = vmatprep.mubr.msk.f32.mxu1 %vm201_vm2, %v12252_v60  ;;  %10172 = vmatpush3.bf16.msra.mxu0 %v10169_v8 }
 0x255   : > { %10316 = vmatpush3.bf16.msra.mxu1 %v10169_v8  ;;  %10174 = vmatprep.subr.bf16.mxu0 %v10173_v13  ;;  %v12609_v8 = vld [vmem:[#allocation2 + $0xe8] sm:$0xff] }
 0x256   : > { %9476 = vmatmul.mubr.msk.f32.gmra.mrb[20].mxu0 %vm201_vm2, %v12246_v56  ;;  %10318 = vmatprep.subr.bf16.mxu1 %v10173_v13 }
 0x257   : > { %9836 = vmatmul.mubr.msk.f32.gmra.mrb[20].mxu1 %vm201_vm2, %v12254_v61  ;;  %9478 = vmatprep.mubr.msk.f32.mxu0 %vm201_vm2, %v12264_v6 }
 0x258   : > { %9838 = vmatprep.mubr.msk.f32.mxu1 %vm201_vm2, %v12272_v11  ;;  %10176 = vmatpush3.bf16.msra.mxu0 %v10173_v13 }
 0x259   : > { %10320 = vmatpush3.bf16.msra.mxu1 %v10173_v13  ;;  %10178 = vmatprep.subr.bf16.mxu0 %v10177_v40  ;;  %v12623_v13 = vld [vmem:[#allocation2 + $0x1f0] sm:$0xff] }
 0x25a   : > { %9479 = vmatmul.mubr.msk.f32.gmra.mrb[22].mxu0 %vm201_vm2, %v12266_v7  ;;  %10322 = vmatprep.subr.bf16.mxu1 %v10177_v40 }
 0x25b   : > { %9839 = vmatmul.mubr.msk.f32.gmra.mrb[22].mxu1 %vm201_vm2, %v12274_v12  ;;  %9481 = vmatprep.mubr.msk.f32.mxu0 %vm201_vm2, %v12284_v21 }
 0x25c   : > { %9841 = vmatprep.mubr.msk.f32.mxu1 %vm201_vm2, %v12294_v25  ;;  %10180 = vmatpush3.bf16.msra.mxu0 %v10177_v40 }
 0x25d   : > { %10324 = vmatpush3.bf16.msra.mxu1 %v10177_v40  ;;  %10182 = vmatprep.subr.bf16.mxu0 %v10181_v17  ;;  %v10217_v40 = vpack.c.bf16 %v4712_v15, %v4711_v14  ;;  %v12837_v14 = vld [vmem:[#allocation2 + $0xc9] sm:$0xff] }
 0x25e   : > { %9482 = vmatmul.mubr.msk.f32.gmra.mrb[24].mxu0 %vm201_vm2, %v12286_v22  ;;  %10326 = vmatprep.subr.bf16.mxu1 %v10181_v17  ;;  %v12843_v15 = vld [vmem:[#allocation2 + $0x1c9] sm:$0xff] }
 0x25f   : > { %9842 = vmatmul.mubr.msk.f32.gmra.mrb[24].mxu1 %vm201_vm2, %v12296_v26  ;;  %9484 = vmatprep.mubr.msk.f32.mxu0 %vm201_vm2, %v12306_v34 }
 0x260   : > { %9844 = vmatprep.mubr.msk.f32.mxu1 %vm201_vm2, %v12315_v37 }
 0x262   : > { %9485 = vmatmul.mubr.msk.f32.gmra.mrb[26].mxu0 %vm201_vm2, %v12308_v35 }
 0x263   : > { %9845 = vmatmul.mubr.msk.f32.gmra.mrb[26].mxu1 %vm201_vm2, %v12317_v38  ;;  %9487 = vmatprep.mubr.msk.f32.mxu0 %vm201_vm2, %v12328_v50 }
 0x264   : > { %9847 = vmatprep.mubr.msk.f32.mxu1 %vm201_vm2, %v12336_v52 }
 0x266   : > { %9488 = vmatmul.mubr.msk.f32.gmra.mrb[28].mxu0 %vm201_vm2, %v12330_v51 }
 0x267   : > { %9848 = vmatmul.mubr.msk.f32.gmra.mrb[28].mxu1 %vm201_vm2, %v12338_v53  ;;  %9490 = vmatprep.mubr.msk.f32.mxu0 %vm201_vm2, %v12347_v54 }
 0x268   : > { %9850 = vmatprep.mubr.msk.f32.mxu1 %vm201_vm2, %v12353_v58 }
 0x26a   : > { %9491 = vmatmul.mubr.msk.f32.gmra.mrb[30].mxu0 %vm201_vm2, %v12349_v57 }
 0x26b   : > { %9851 = vmatmul.mubr.msk.f32.gmra.mrb[30].mxu1 %vm201_vm2, %v12355_v59  ;;  %9509 = vmatprep.mubr.msk.f32.mxu0 %vm201_vm2, %v12244_v55  ;;  %v10189_v55 = vpack.c.bf16 %v4320_v24, %v4319_v23  ;;  %v4905_v23 = vld [vmem:[#allocation5 + $0x80] sm:$0xff]  ;;  %v4906_v24 = vld [vmem:[#allocation5 + $0x88] sm:$0xff] }
 0x26c   : > { %9869 = vmatprep.mubr.msk.f32.mxu1 %vm201_vm2, %v12252_v60  ;;  %v4322_v60 = vld [vmem:[#allocation5 + $0x78] sm:$0xff] }
 0x26e   : > { %9510 = vmatmul.mubr.msk.f32.vlgmr.msra.gmra.mrb[16].mxu0 %vm201_vm2, %v12246_v56  ;;  %v4321_v56 = vld [vmem:[#allocation5 + $0x70] sm:$0xff] }
 0x26f   : > { %9870 = vmatmul.mubr.msk.f32.vlgmr.msra.gmra.mrb[16].mxu1 %vm201_vm2, %v12254_v61  ;;  %9512 = vmatprep.mubr.msk.f32.mxu0 %vm201_vm2, %v12264_v6  ;;  %v10193_v61 = vpack.c.bf16 %v4322_v60, %v4321_v56  ;;  %v4533_v6 = vld [vmem:[#allocation5 + $0x100] sm:$0xff]  ;;  %v6144_v60 = vld [vmem:[#allocation2 + $0x210] sm:$0xff] }
 0x270   : > { %10184 = vmatpush3.bf16.msra.mxu0 %v10181_v17  ;;  %9872 = vmatprep.mubr.msk.f32.mxu1 %vm201_vm2, %v12272_v11  ;;  %v6143_v56 = vld [vmem:[#allocation2 + $0x208] sm:$0xff] }
 0x271   : > { %10328 = vmatpush3.bf16.msra.mxu1 %v10181_v17  ;;  %10186 = vmatprep.subr.bf16.mxu0 %v10185_v20  ;;  %v10221_v17 = vpack.c.bf16 %v4714_v16, %v4713_v41  ;;  %v12851_v41 = vld [vmem:[#allocation2 + $0x1d1] sm:$0xff]  ;;  %v12853_v16 = vld [vmem:[#allocation2 + $0xe9] sm:$0xff] }
 0x272   : > { %9513 = vmatmul.mubr.msk.f32.gmra.mrb[18].mxu0 %vm201_vm2, %v12266_v7  ;;  %10330 = vmatprep.subr.bf16.mxu1 %v10185_v20  ;;  %v4534_v7 = vld [vmem:[#allocation5 + $0x108] sm:$0xff] }
 0x273   : > { %9873 = vmatmul.mubr.msk.f32.gmra.mrb[18].mxu1 %vm201_vm2, %v12274_v12  ;;  %9515 = vmatprep.mubr.msk.f32.mxu0 %vm201_vm2, %v12284_v21  ;;  %v10197_v11 = vpack.c.bf16 %v4534_v7, %v4533_v6  ;;  %v5590_v12 = vld [vmem:[#allocation2 + $0x227] sm:$0xff]  ;;  %v5591_v21 = vld [vmem:[#allocation2 + $0x22f] sm:$0xff]  ;;  %v4908_v6 = vld [vmem:[#allocation5 + $0x98] sm:$0xff] }
 0x274   : > { %9875 = vmatprep.mubr.msk.f32.mxu1 %vm201_vm2, %v12294_v25  ;;  %10188 = vmatpush3.bf16.msra.mxu0 %v10185_v20  ;;  %v4535_v25 = vld [vmem:[#allocation5 + $0x110] sm:$0xff] }
 0x275   : > { %10332 = vmatpush3.bf16.msra.mxu1 %v10185_v20  ;;  %10190 = vmatprep.subr.bf16.mxu0 %v10189_v55  ;;  %v10225_v20 = vpack.c.bf16 %v4716_v19, %v4715_v18  ;;  %v12863_v18 = vld [vmem:[#allocation2 + $0xf1] sm:$0xff] }
 0x276   : > { %9516 = vmatmul.mubr.msk.f32.gmra.mrb[20].mxu0 %vm201_vm2, %v12286_v22  ;;  %10334 = vmatprep.subr.bf16.mxu1 %v10189_v55  ;;  %v4294_v22 = vld [vmem:[#allocation2 + $0x8] sm:$0xff]  ;;  %v12867_v19 = vld [vmem:[#allocation2 + $0x1f1] sm:$0xff] }
 0x277   : > { %9876 = vmatmul.mubr.msk.f32.gmra.mrb[20].mxu1 %vm201_vm2, %v12296_v26  ;;  %9518 = vmatprep.mubr.msk.f32.mxu0 %vm201_vm2, %v12306_v34  ;;  %v4536_v26 = vld [vmem:[#allocation5 + $0x118] sm:$0xff] }
 0x278   : > { %9878 = vmatprep.mubr.msk.f32.mxu1 %vm201_vm2, %v12315_v37  ;;  %10192 = vmatpush3.bf16.msra.mxu0 %v10189_v55  ;;  %v12529_v37 = vld [vmem:[#allocation2 + $0x48] sm:$0xff] }
 0x279   : > { %10336 = vmatpush3.bf16.msra.mxu1 %v10189_v55  ;;  %10194 = vmatprep.subr.bf16.mxu0 %v10193_v61  ;;  %v10229_v55 = vpack.c.bf16 %v4906_v24, %v4905_v23  ;;  %v5302_v23 = vld [vmem:[#allocation5 + $0x218] sm:$0xff] }
 0x27a   : > { %9519 = vmatmul.mubr.msk.f32.gmra.mrb[22].mxu0 %vm201_vm2, %v12308_v35  ;;  %10338 = vmatprep.subr.bf16.mxu1 %v10193_v61  ;;  %v4539_v35 = vld [vmem:[#allocation5 + $0x130] sm:$0xff] }
 0x27b   : > { %9879 = vmatmul.mubr.msk.f32.gmra.mrb[22].mxu1 %vm201_vm2, %v12317_v38  ;;  %9521 = vmatprep.mubr.msk.f32.mxu0 %vm201_vm2, %v12328_v50  ;;  %v4540_v38 = vld [vmem:[#allocation5 + $0x138] sm:$0xff]  ;;  %v12551_v50 = vld [vmem:[#allocation2 + $0x168] sm:$0xff] }
 0x27c   : > { %9881 = vmatprep.mubr.msk.f32.mxu1 %vm201_vm2, %v12336_v52  ;;  %10196 = vmatpush3.bf16.msra.mxu0 %v10193_v61  ;;  %v10209_v43 = vpack.c.bf16 %v4540_v38, %v4539_v35  ;;  %v10213_v52 = vpack.c.bf16 %v4710_v49, %v4709_v44  ;;  %v12749_v35 = vld [vmem:[#allocation2 + $0x109] sm:$0xff]  ;;  %v12757_v38 = vld [vmem:[#allocation2 + $0x111] sm:$0xff] }
 0x27d   : > { %10340 = vmatpush3.bf16.msra.mxu1 %v10193_v61  ;;  %10198 = vmatprep.subr.bf16.mxu0 %v10197_v11  ;;  %v4907_v61 = vld [vmem:[#allocation5 + $0x90] sm:$0xff] }
 0x27e   : > { %9522 = vmatmul.mubr.msk.f32.gmra.mrb[24].mxu0 %vm201_vm2, %v12330_v51  ;;  %10342 = vmatprep.subr.bf16.mxu1 %v10197_v11  ;;  %v12555_v51 = vld [vmem:[#allocation2 + $0x70] sm:$0xff]  ;;  %v10233_v7 = vpack.c.bf16 %v4908_v6, %v4907_v61  ;;  %v5306_v6 = vld [vmem:[#allocation5 + $0x238] sm:$0xff] }
 0x27f   : > { %9882 = vmatmul.mubr.msk.f32.gmra.mrb[24].mxu1 %vm201_vm2, %v12338_v53  ;;  %9524 = vmatprep.mubr.msk.f32.mxu0 %vm201_vm2, %v12347_v54  ;;  %v12559_v53 = vld [vmem:[#allocation2 + $0x170] sm:$0xff]  ;;  %v12561_v54 = vld [vmem:[#allocation2 + $0x88] sm:$0xff] }
 0x280   : > { %9884 = vmatprep.mubr.msk.f32.mxu1 %vm201_vm2, %v12353_v58  ;;  %v12571_v58 = vld [vmem:[#allocation2 + $0x90] sm:$0xff] }
 0x281   : > { %v12769_v44 = vld [vmem:[#allocation2 + $0x131] sm:$0xff] }
 0x282   : > { %9525 = vmatmul.mubr.msk.f32.gmra.mrb[26].mxu0 %vm201_vm2, %v12349_v57  ;;  %v12567_v57 = vld [vmem:[#allocation2 + $0x188] sm:$0xff]  ;;  %v5129_v49 = vld [vmem:[#allocation5 + $0x170] sm:$0xff] }
 0x283   : > { %9885 = vmatmul.mubr.msk.f32.gmra.mrb[26].mxu1 %vm201_vm2, %v12355_v59  ;;  %9527 = vmatprep.mubr.msk.f32.mxu0 %vm201_vm2, %v12363_v62  ;;  %v12575_v59 = vld [vmem:[#allocation2 + $0x190] sm:$0xff]  ;;  %v12577_v62 = vld [vmem:[#allocation2 + $0xa8] sm:$0xff] }
 0x284   : > { %9887 = vmatprep.mubr.msk.f32.mxu1 %vm201_vm2, %v12369_v1  ;;  %v12591_v1 = vld [vmem:[#allocation2 + $0x1b0] sm:$0xff] }
 0x285   : > { %v5305_v61 = vld [vmem:[#allocation5 + $0x230] sm:$0xff] }
 0x286   : > { %9528 = vmatmul.mubr.msk.f32.gmra.mrb[28].mxu0 %vm201_vm2, %v12365_v63  ;;  %v12583_v63 = vld [vmem:[#allocation2 + $0x1a8] sm:$0xff] }
 0x287   : > { %9888 = vmatmul.mubr.msk.f32.gmra.mrb[28].mxu1 %vm201_vm2, %v12371_v2  ;;  %9530 = vmatprep.mubr.msk.f32.mxu0 %vm201_vm2, %v12232_v45  ;;  %v10201_v45 = vpack.c.bf16 %v4536_v26, %v4535_v25  ;;  %v12593_v2 = vld [vmem:[#allocation2 + $0xc8] sm:$0xff]  ;;  %v4912_v25 = vld [vmem:[#allocation5 + $0xb8] sm:$0xff] }
 0x288   : > { %9890 = vmatprep.mubr.msk.f32.mxu1 %vm201_vm2, %v5590_v12  ;;  %v4910_v12 = vld [vmem:[#allocation5 + $0xa8] sm:$0xff] }
 0x28a   : > { %9531 = vmatmul.mubr.msk.f32.gmra.mrb[30].mxu0 %vm201_vm2, %v12234_v46  ;;  %v4538_v46 = vld [vmem:[#allocation5 + $0x128] sm:$0xff] }
 0x28b   : > { %9891 = vmatmul.mubr.msk.f32.gmra.mrb[30].mxu1 %vm201_vm2, %v5591_v21  ;;  %9549 = vmatprep.mubr.msk.f32.mxu0 %vm201_vm2, %v4294_v22  ;;  %v10205_v34 = vpack.c.bf16 %v4538_v46, %v4537_v29  ;;  %v4911_v22 = vld [vmem:[#allocation5 + $0xb0] sm:$0xff] }
 0x28c   : > { %9909 = vmatprep.mubr.msk.f32.mxu1 %vm201_vm2, %v12505_v27  ;;  %v10241_v26 = vpack.c.bf16 %v4912_v25, %v4911_v22  ;;  %v6146_v46 = vld [vmem:[#allocation2 + $0x230] sm:$0xff] }
 0x28d   : > { %v6733_v22 = vld [vmem:[#allocation2 + $0x231] sm:$0xff] }
 0x28e   : > { %9550 = vmatmul.mubr.msk.f32.vlgmr.msra.gmra.mrb[16].mxu0 %vm201_vm2, %v4295_v28  ;;  %v5123_v28 = vld [vmem:[#allocation5 + $0x140] sm:$0xff] }
 0x28f   : > { %9910 = vmatmul.mubr.msk.f32.vlgmr.msra.gmra.mrb[16].mxu1 %vm201_vm2, %v12511_v30  ;;  %9552 = vmatprep.mubr.msk.f32.mxu0 %vm201_vm2, %v12513_v31 }
 0x290   : > { %10200 = vmatpush3.bf16.msra.mxu0 %v10197_v11  ;;  %9912 = vmatprep.mubr.msk.f32.mxu1 %vm201_vm2, %v12519_v32 }
 0x291   : > { %10344 = vmatpush3.bf16.msra.mxu1 %v10197_v11  ;;  %10202 = vmatprep.subr.bf16.mxu0 %v10201_v45  ;;  %v4909_v11 = vld [vmem:[#allocation5 + $0xa0] sm:$0xff] }
 0x292   : > { %9553 = vmatmul.mubr.msk.f32.gmra.mrb[18].mxu0 %vm201_vm2, %v12523_v33  ;;  %10346 = vmatprep.subr.bf16.mxu1 %v10201_v45  ;;  %v10237_v21 = vpack.c.bf16 %v4910_v12, %v4909_v11  ;;  %v6730_v11 = vld [vmem:[#allocation2 + $0x209] sm:$0xff]  ;;  %v6731_v12 = vld [vmem:[#allocation2 + $0x211] sm:$0xff] }
 0x293   : > { %9913 = vmatmul.mubr.msk.f32.gmra.mrb[18].mxu1 %vm201_vm2, %v12527_v36  ;;  %9555 = vmatprep.mubr.msk.f32.mxu0 %vm201_vm2, %v12529_v37 }
 0x294   : > { %9915 = vmatprep.mubr.msk.f32.mxu1 %vm201_vm2, %v12535_v39  ;;  %10204 = vmatpush3.bf16.msra.mxu0 %v10201_v45 }
 0x295   : > { %10348 = vmatpush3.bf16.msra.mxu1 %v10201_v45  ;;  %10206 = vmatprep.subr.bf16.mxu0 %v10205_v34  ;;  %v5124_v45 = vld [vmem:[#allocation5 + $0x148] sm:$0xff] }
 0x296   : > { %9556 = vmatmul.mubr.msk.f32.gmra.mrb[20].mxu0 %vm201_vm2, %v12539_v42  ;;  %10350 = vmatprep.subr.bf16.mxu1 %v10205_v34  ;;  %v10245_v29 = vpack.c.bf16 %v5124_v45, %v5123_v28 }
 0x297   : > { %9916 = vmatmul.mubr.msk.f32.gmra.mrb[20].mxu1 %vm201_vm2, %v12543_v47  ;;  %9558 = vmatprep.mubr.msk.f32.mxu0 %vm201_vm2, %v12545_v48 }
 0x298   : > { %9918 = vmatprep.mubr.msk.f32.mxu1 %vm201_vm2, %v12551_v50  ;;  %10208 = vmatpush3.bf16.msra.mxu0 %v10205_v34 }
 0x299   : > { %10352 = vmatpush3.bf16.msra.mxu1 %v10205_v34  ;;  %10210 = vmatprep.subr.bf16.mxu0 %v10209_v43  ;;  %v5125_v34 = vld [vmem:[#allocation5 + $0x150] sm:$0xff] }
 0x29a   : > { %9559 = vmatmul.mubr.msk.f32.gmra.mrb[22].mxu0 %vm201_vm2, %v12555_v51  ;;  %10354 = vmatprep.subr.bf16.mxu1 %v10209_v43 }
 0x29b   : > { %9919 = vmatmul.mubr.msk.f32.gmra.mrb[22].mxu1 %vm201_vm2, %v12559_v53  ;;  %9561 = vmatprep.mubr.msk.f32.mxu0 %vm201_vm2, %v12561_v54 }
 0x29c   : > { %9921 = vmatprep.mubr.msk.f32.mxu1 %vm201_vm2, %v12567_v57  ;;  %10212 = vmatpush3.bf16.msra.mxu0 %v10209_v43 }
 0x29d   : > { %10356 = vmatpush3.bf16.msra.mxu1 %v10209_v43  ;;  %10214 = vmatprep.subr.bf16.mxu0 %v10213_v52  ;;  %v12767_v43 = vld [vmem:[#allocation2 + $0x31] sm:$0xff] }
 0x29e   : > { %9562 = vmatmul.mubr.msk.f32.gmra.mrb[24].mxu0 %vm201_vm2, %v12571_v58  ;;  %10358 = vmatprep.subr.bf16.mxu1 %v10213_v52 }
 0x29f   : > { %9922 = vmatmul.mubr.msk.f32.gmra.mrb[24].mxu1 %vm201_vm2, %v12575_v59  ;;  %9564 = vmatprep.mubr.msk.f32.mxu0 %vm201_vm2, %v12577_v62 }
 0x2a0   : > { %9924 = vmatprep.mubr.msk.f32.mxu1 %vm201_vm2, %v12583_v63 }
 0x2a2   : > { %9565 = vmatmul.mubr.msk.f32.gmra.mrb[26].mxu0 %vm201_vm2, %v12587_v0 }
 0x2a3   : > { %9925 = vmatmul.mubr.msk.f32.gmra.mrb[26].mxu1 %vm201_vm2, %v12591_v1  ;;  %9567 = vmatprep.mubr.msk.f32.mxu0 %vm201_vm2, %v12593_v2 }
 0x2a4   : > { %9927 = vmatprep.mubr.msk.f32.mxu1 %vm201_vm2, %v12599_v3 }
 0x2a6   : > { %9568 = vmatmul.mubr.msk.f32.gmra.mrb[28].mxu0 %vm201_vm2, %v12603_v4 }
 0x2a7   : > { %9928 = vmatmul.mubr.msk.f32.gmra.mrb[28].mxu1 %vm201_vm2, %v12607_v5  ;;  %9570 = vmatprep.mubr.msk.f32.mxu0 %vm201_vm2, %v12609_v8 }
 0x2a8   : > { %9930 = vmatprep.mubr.msk.f32.mxu1 %vm201_vm2, %v12615_v9 }
 0x2aa   : > { %9571 = vmatmul.mubr.msk.f32.gmra.mrb[30].mxu0 %vm201_vm2, %v12619_v10 }
 0x2ab   : > { %9931 = vmatmul.mubr.msk.f32.gmra.mrb[30].mxu1 %vm201_vm2, %v12623_v13  ;;  %9589 = vmatprep.mubr.msk.f32.mxu0 %vm201_vm2, %v12513_v31  ;;  %v6145_v31 = vld [vmem:[#allocation2 + $0x228] sm:$0xff] }
 0x2ac   : > { %9949 = vmatprep.mubr.msk.f32.mxu1 %vm201_vm2, %v12519_v32 }
 0x2ae   : > { %9590 = vmatmul.mubr.msk.f32.vlgmr.msra.gmra.mrb[16].mxu0 %vm201_vm2, %v12523_v33  ;;  %v4884_v33 = vld [vmem:[#allocation2 + $0x9] sm:$0xff] }
 0x2af   : > { %9950 = vmatmul.mubr.msk.f32.vlgmr.msra.gmra.mrb[16].mxu1 %vm201_vm2, %v12527_v36  ;;  %9592 = vmatprep.mubr.msk.f32.mxu0 %vm201_vm2, %v12529_v37 }
 0x2b0   : > { %10216 = vmatpush3.bf16.msra.mxu0 %v10213_v52  ;;  %9952 = vmatprep.mubr.msk.f32.mxu1 %vm201_vm2, %v12535_v39 }
 0x2b1   : > { %10360 = vmatpush3.bf16.msra.mxu1 %v10213_v52  ;;  %10218 = vmatprep.subr.bf16.mxu0 %v10217_v40  ;;  %v12783_v52 = vld [vmem:[#allocation2 + $0x51] sm:$0xff] }
 0x2b2   : > { %9593 = vmatmul.mubr.msk.f32.gmra.mrb[18].mxu0 %vm201_vm2, %v12539_v42  ;;  %10362 = vmatprep.subr.bf16.mxu1 %v10217_v40 }
 0x2b3   : > { %9953 = vmatmul.mubr.msk.f32.gmra.mrb[18].mxu1 %vm201_vm2, %v12543_v47  ;;  %9595 = vmatprep.mubr.msk.f32.mxu0 %vm201_vm2, %v12545_v48 }
 0x2b4   : > { %9955 = vmatprep.mubr.msk.f32.mxu1 %vm201_vm2, %v12551_v50  ;;  %10220 = vmatpush3.bf16.msra.mxu0 %v10217_v40 }
 0x2b5   : > { %10364 = vmatpush3.bf16.msra.mxu1 %v10217_v40  ;;  %10222 = vmatprep.subr.bf16.mxu0 %v10221_v17  ;;  %v12847_v40 = vld [vmem:[#allocation2 + $0xd1] sm:$0xff] }
 0x2b6   : > { %9596 = vmatmul.mubr.msk.f32.gmra.mrb[20].mxu0 %vm201_vm2, %v12555_v51  ;;  %10366 = vmatprep.subr.bf16.mxu1 %v10221_v17 }
 0x2b7   : > { %9956 = vmatmul.mubr.msk.f32.gmra.mrb[20].mxu1 %vm201_vm2, %v12559_v53  ;;  %9598 = vmatprep.mubr.msk.f32.mxu0 %vm201_vm2, %v12561_v54 }
 0x2b8   : > { %9958 = vmatprep.mubr.msk.f32.mxu1 %vm201_vm2, %v12567_v57  ;;  %10224 = vmatpush3.bf16.msra.mxu0 %v10221_v17 }
 0x2b9   : > { %10368 = vmatpush3.bf16.msra.mxu1 %v10221_v17  ;;  %10226 = vmatprep.subr.bf16.mxu0 %v10225_v20  ;;  %v12859_v17 = vld [vmem:[#allocation2 + $0x1e9] sm:$0xff] }
 0x2ba   : > { %9599 = vmatmul.mubr.msk.f32.gmra.mrb[22].mxu0 %vm201_vm2, %v12571_v58  ;;  %10370 = vmatprep.subr.bf16.mxu1 %v10225_v20 }
 0x2bb   : > { %9959 = vmatmul.mubr.msk.f32.gmra.mrb[22].mxu1 %vm201_vm2, %v12575_v59  ;;  %9601 = vmatprep.mubr.msk.f32.mxu0 %vm201_vm2, %v12577_v62 }
 0x2bc   : > { %9961 = vmatprep.mubr.msk.f32.mxu1 %vm201_vm2, %v12583_v63  ;;  %10228 = vmatpush3.bf16.msra.mxu0 %v10225_v20 }
 0x2bd   : > { %10372 = vmatpush3.bf16.msra.mxu1 %v10225_v20  ;;  %10230 = vmatprep.subr.bf16.mxu0 %v10229_v55  ;;  %v5301_v20 = vld [vmem:[#allocation5 + $0x210] sm:$0xff] }
 0x2be   : > { %9602 = vmatmul.mubr.msk.f32.gmra.mrb[24].mxu0 %vm201_vm2, %v12587_v0  ;;  %10374 = vmatprep.subr.bf16.mxu1 %v10229_v55  ;;  %v10265_v24 = vpack.c.bf16 %v5302_v23, %v5301_v20 }
 0x2bf   : > { %9962 = vmatmul.mubr.msk.f32.gmra.mrb[24].mxu1 %vm201_vm2, %v12591_v1  ;;  %9604 = vmatprep.mubr.msk.f32.mxu0 %vm201_vm2, %v12593_v2 }
 0x2c0   : > { %9964 = vmatprep.mubr.msk.f32.mxu1 %vm201_vm2, %v12599_v3 }
 0x2c2   : > { %9605 = vmatmul.mubr.msk.f32.gmra.mrb[26].mxu0 %vm201_vm2, %v12603_v4 }
 0x2c3   : > { %9965 = vmatmul.mubr.msk.f32.gmra.mrb[26].mxu1 %vm201_vm2, %v12607_v5  ;;  %9607 = vmatprep.mubr.msk.f32.mxu0 %vm201_vm2, %v12609_v8 }
 0x2c4   : > { %9967 = vmatprep.mubr.msk.f32.mxu1 %vm201_vm2, %v12615_v9 }
 0x2c6   : > { %9608 = vmatmul.mubr.msk.f32.gmra.mrb[28].mxu0 %vm201_vm2, %v12619_v10 }
 0x2c7   : > { %9968 = vmatmul.mubr.msk.f32.gmra.mrb[28].mxu1 %vm201_vm2, %v12623_v13  ;;  %9610 = vmatprep.mubr.msk.f32.mxu0 %vm201_vm2, %v12505_v27 }
 0x2c8   : > { %9970 = vmatprep.mubr.msk.f32.mxu1 %vm201_vm2, %v6143_v56 }
 0x2ca   : > { %9611 = vmatmul.mubr.msk.f32.gmra.mrb[30].mxu0 %vm201_vm2, %v12511_v30 }
 0x2cb   : > { %9971 = vmatmul.mubr.msk.f32.gmra.mrb[30].mxu1 %vm201_vm2, %v6144_v60  ;;  %9629 = vmatprep.mubr.msk.f32.mxu0 %vm201_vm2, %v12529_v37 }
 0x2cc   : > { %9989 = vmatprep.mubr.msk.f32.mxu1 %vm201_vm2, %v12535_v39  ;;  %v5128_v39 = vld [vmem:[#allocation5 + $0x168] sm:$0xff] }
 0x2ce   : > { %9630 = vmatmul.mubr.msk.f32.vlgmr.msra.gmra.mrb[16].mxu0 %vm201_vm2, %v12539_v42  ;;  %v12763_v42 = vld [vmem:[#allocation2 + $0x129] sm:$0xff] }
 0x2cf   : > { %9990 = vmatmul.mubr.msk.f32.vlgmr.msra.gmra.mrb[16].mxu1 %vm201_vm2, %v12543_v47  ;;  %9632 = vmatprep.mubr.msk.f32.mxu0 %vm201_vm2, %v12545_v48  ;;  %v12773_v48 = vld [vmem:[#allocation2 + $0x49] sm:$0xff] }
 0x2d0   : > { %10232 = vmatpush3.bf16.msra.mxu0 %v10229_v55  ;;  %9992 = vmatprep.mubr.msk.f32.mxu1 %vm201_vm2, %v12551_v50  ;;  %v5130_v50 = vld [vmem:[#allocation5 + $0x178] sm:$0xff] }
 0x2d1   : > { %10376 = vmatpush3.bf16.msra.mxu1 %v10229_v55  ;;  %10234 = vmatprep.subr.bf16.mxu0 %v10233_v7  ;;  %v5303_v55 = vld [vmem:[#allocation5 + $0x220] sm:$0xff] }
 0x2d2   : > { %9633 = vmatmul.mubr.msk.f32.gmra.mrb[18].mxu0 %vm201_vm2, %v12555_v51  ;;  %10378 = vmatprep.subr.bf16.mxu1 %v10233_v7  ;;  %v12779_v51 = vld [vmem:[#allocation2 + $0x149] sm:$0xff] }
 0x2d3   : > { %9993 = vmatmul.mubr.msk.f32.gmra.mrb[18].mxu1 %vm201_vm2, %v12559_v53  ;;  %9635 = vmatprep.mubr.msk.f32.mxu0 %vm201_vm2, %v12561_v54  ;;  %v12785_v53 = vld [vmem:[#allocation2 + $0x151] sm:$0xff]  ;;  %v10257_v54 = vpack.c.bf16 %v5130_v50, %v5129_v49 }
 0x2d4   : > { %9995 = vmatprep.mubr.msk.f32.mxu1 %vm201_vm2, %v12567_v57  ;;  %10236 = vmatpush3.bf16.msra.mxu0 %v10233_v7  ;;  %v12789_v57 = vld [vmem:[#allocation2 + $0x69] sm:$0xff] }
 0x2d5   : > { %10380 = vmatpush3.bf16.msra.mxu1 %v10233_v7  ;;  %10238 = vmatprep.subr.bf16.mxu0 %v10237_v21  ;;  %v10273_v7 = vpack.c.bf16 %v5306_v6, %v5305_v61 }
 0x2d6   : > { %9636 = vmatmul.mubr.msk.f32.gmra.mrb[20].mxu0 %vm201_vm2, %v12571_v58  ;;  %10382 = vmatprep.subr.bf16.mxu1 %v10237_v21  ;;  %v5299_v58 = vld [vmem:[#allocation5 + $0x200] sm:$0xff] }
 0x2d7   : > { %9996 = vmatmul.mubr.msk.f32.gmra.mrb[20].mxu1 %vm201_vm2, %v12575_v59  ;;  %9638 = vmatprep.mubr.msk.f32.mxu0 %vm201_vm2, %v12577_v62  ;;  %v5300_v59 = vld [vmem:[#allocation5 + $0x208] sm:$0xff] }
 0x2d8   : > { %9998 = vmatprep.mubr.msk.f32.mxu1 %vm201_vm2, %v12583_v63  ;;  %10240 = vmatpush3.bf16.msra.mxu0 %v10237_v21  ;;  %v12795_v62 = vld [vmem:[#allocation2 + $0x169] sm:$0xff]  ;;  %v12799_v63 = vld [vmem:[#allocation2 + $0x71] sm:$0xff] }
 0x2d9   : > { %10384 = vmatpush3.bf16.msra.mxu1 %v10237_v21  ;;  %10242 = vmatprep.subr.bf16.mxu0 %v10241_v26  ;;  %v6732_v21 = vld [vmem:[#allocation2 + $0x229] sm:$0xff] }
 0x2da   : > { %9639 = vmatmul.mubr.msk.f32.gmra.mrb[22].mxu0 %vm201_vm2, %v12587_v0  ;;  %10386 = vmatprep.subr.bf16.mxu1 %v10241_v26  ;;  %v10261_v0 = vpack.c.bf16 %v5300_v59, %v5299_v58 }
 0x2db   : > { %9999 = vmatmul.mubr.msk.f32.gmra.mrb[22].mxu1 %vm201_vm2, %v12591_v1  ;;  %9641 = vmatprep.mubr.msk.f32.mxu0 %vm201_vm2, %v12593_v2  ;;  %v12803_v1 = vld [vmem:[#allocation2 + $0x171] sm:$0xff]  ;;  %v12805_v2 = vld [vmem:[#allocation2 + $0x89] sm:$0xff] }
 0x2dc   : > { %10001 = vmatprep.mubr.msk.f32.mxu1 %vm201_vm2, %v12599_v3  ;;  %10244 = vmatpush3.bf16.msra.mxu0 %v10241_v26  ;;  %v12811_v3 = vld [vmem:[#allocation2 + $0x189] sm:$0xff] }
 0x2dd   : > { %10388 = vmatpush3.bf16.msra.mxu1 %v10241_v26  ;;  %10246 = vmatprep.subr.bf16.mxu0 %v10245_v29 }
 0x2de   : > { %9642 = vmatmul.mubr.msk.f32.gmra.mrb[24].mxu0 %vm201_vm2, %v12603_v4  ;;  %10390 = vmatprep.subr.bf16.mxu1 %v10245_v29  ;;  %v12815_v4 = vld [vmem:[#allocation2 + $0x91] sm:$0xff] }
 0x2df   : > { %10002 = vmatmul.mubr.msk.f32.gmra.mrb[24].mxu1 %vm201_vm2, %v12607_v5  ;;  %9644 = vmatprep.mubr.msk.f32.mxu0 %vm201_vm2, %v12609_v8  ;;  %v12819_v5 = vld [vmem:[#allocation2 + $0x191] sm:$0xff]  ;;  %v12821_v8 = vld [vmem:[#allocation2 + $0xa9] sm:$0xff] }
 0x2e0   : > { %10004 = vmatprep.mubr.msk.f32.mxu1 %vm201_vm2, %v12615_v9  ;;  %v12827_v9 = vld [vmem:[#allocation2 + $0x1a9] sm:$0xff] }
 0x2e2   : > { %9645 = vmatmul.mubr.msk.f32.gmra.mrb[26].mxu0 %vm201_vm2, %v12619_v10  ;;  %v12831_v10 = vld [vmem:[#allocation2 + $0xb1] sm:$0xff] }
 0x2e3   : > { %10005 = vmatmul.mubr.msk.f32.gmra.mrb[26].mxu1 %vm201_vm2, %v12623_v13  ;;  %9647 = vmatprep.mubr.msk.f32.mxu0 %vm201_vm2, %v12505_v27  ;;  %v5126_v27 = vld [vmem:[#allocation5 + $0x158] sm:$0xff]  ;;  %v12835_v13 = vld [vmem:[#allocation2 + $0x1b1] sm:$0xff] }
 0x2e4   : > { %10007 = vmatprep.mubr.msk.f32.mxu1 %vm201_vm2, %v6143_v56  ;;  %v10249_v37 = vpack.c.bf16 %v5126_v27, %v5125_v34  ;;  %v5304_v56 = vld [vmem:[#allocation5 + $0x228] sm:$0xff] }
 0x2e6   : > { %9648 = vmatmul.mubr.msk.f32.gmra.mrb[28].mxu0 %vm201_vm2, %v12511_v30  ;;  %v4885_v30 = vld [vmem:[#allocation2 + $0x11] sm:$0xff] }
 0x2e7   : > { %10008 = vmatmul.mubr.msk.f32.gmra.mrb[28].mxu1 %vm201_vm2, %v6144_v60  ;;  %9650 = vmatprep.mubr.msk.f32.mxu0 %vm201_vm2, %v12519_v32  ;;  %v12754_v32 = vld [vmem:[#allocation2 + $0x29] sm:$0xff]  ;;  %v10269_v60 = vpack.c.bf16 %v5304_v56, %v5303_v55 }
 0x2e8   : > { %10010 = vmatprep.mubr.msk.f32.mxu1 %vm201_vm2, %v6145_v31 }
 0x2ea   : > { %9651 = vmatmul.mubr.msk.f32.gmra.mrb[30].mxu0 %vm201_vm2, %v12527_v36  ;;  %v5127_v36 = vld [vmem:[#allocation5 + $0x160] sm:$0xff] }
 0x2eb   : > { %10011 = vmatmul.mubr.msk.f32.gmra.mrb[30].mxu1 %vm201_vm2, %v6146_v46  ;;  %9669 = vmatprep.mubr.msk.f32.mxu0 %vm201_vm2, %v4884_v33  ;;  %v10253_v47 = vpack.c.bf16 %v5128_v39, %v5127_v36 }
 0x2ec   : > { %10029 = vmatprep.mubr.msk.f32.mxu1 %vm201_vm2, %v12749_v35 }
 0x2ee   : > { %9670 = vmatmul.mubr.msk.f32.vlgmr.msra.gmra.mrb[16].mxu0 %vm201_vm2, %v4885_v30 }
 0x2ef   : > { %10030 = vmatmul.mubr.msk.f32.vlgmr.msra.gmra.mrb[16].mxu1 %vm201_vm2, %v12757_v38  ;;  %9672 = vmatprep.mubr.msk.f32.mxu0 %vm201_vm2, %v12754_v32 }
 0x2f0   : > { %10248 = vmatpush3.bf16.msra.mxu0 %v10245_v29  ;;  %10032 = vmatprep.mubr.msk.f32.mxu1 %vm201_vm2, %v12763_v42 }
 0x2f1   : > { %10392 = vmatpush3.bf16.msra.mxu1 %v10245_v29  ;;  %10250 = vmatprep.subr.bf16.mxu0 %v10249_v37 }
 0x2f2   : > { %9673 = vmatmul.mubr.msk.f32.gmra.mrb[18].mxu0 %vm201_vm2, %v12767_v43  ;;  %10394 = vmatprep.subr.bf16.mxu1 %v10249_v37 }
 0x2f3   : > { %10033 = vmatmul.mubr.msk.f32.gmra.mrb[18].mxu1 %vm201_vm2, %v12769_v44  ;;  %9675 = vmatprep.mubr.msk.f32.mxu0 %vm201_vm2, %v12773_v48 }
 0x2f4   : > { %10035 = vmatprep.mubr.msk.f32.mxu1 %vm201_vm2, %v12779_v51  ;;  %10252 = vmatpush3.bf16.msra.mxu0 %v10249_v37 }
 0x2f5   : > { %10396 = vmatpush3.bf16.msra.mxu1 %v10249_v37  ;;  %10254 = vmatprep.subr.bf16.mxu0 %v10253_v47 }
 0x2f6   : > { %9676 = vmatmul.mubr.msk.f32.gmra.mrb[20].mxu0 %vm201_vm2, %v12783_v52  ;;  %10398 = vmatprep.subr.bf16.mxu1 %v10253_v47 }
 0x2f7   : > { %10036 = vmatmul.mubr.msk.f32.gmra.mrb[20].mxu1 %vm201_vm2, %v12785_v53  ;;  %9678 = vmatprep.mubr.msk.f32.mxu0 %vm201_vm2, %v12789_v57 }
 0x2f8   : > { %10038 = vmatprep.mubr.msk.f32.mxu1 %vm201_vm2, %v12795_v62  ;;  %10256 = vmatpush3.bf16.msra.mxu0 %v10253_v47 }
 0x2f9   : > { %10400 = vmatpush3.bf16.msra.mxu1 %v10253_v47  ;;  %10258 = vmatprep.subr.bf16.mxu0 %v10257_v54 }
 0x2fa   : > { %9679 = vmatmul.mubr.msk.f32.gmra.mrb[22].mxu0 %vm201_vm2, %v12799_v63  ;;  %10402 = vmatprep.subr.bf16.mxu1 %v10257_v54 }
 0x2fb   : > { %10039 = vmatmul.mubr.msk.f32.gmra.mrb[22].mxu1 %vm201_vm2, %v12803_v1  ;;  %9681 = vmatprep.mubr.msk.f32.mxu0 %vm201_vm2, %v12805_v2 }
 0x2fc   : > { %10041 = vmatprep.mubr.msk.f32.mxu1 %vm201_vm2, %v12811_v3  ;;  %10260 = vmatpush3.bf16.msra.mxu0 %v10257_v54 }
 0x2fd   : > { %10404 = vmatpush3.bf16.msra.mxu1 %v10257_v54  ;;  %10262 = vmatprep.subr.bf16.mxu0 %v10261_v0 }
 0x2fe   : > { %9682 = vmatmul.mubr.msk.f32.gmra.mrb[24].mxu0 %vm201_vm2, %v12815_v4  ;;  %10406 = vmatprep.subr.bf16.mxu1 %v10261_v0 }
 0x2ff   : > { %10042 = vmatmul.mubr.msk.f32.gmra.mrb[24].mxu1 %vm201_vm2, %v12819_v5  ;;  %9684 = vmatprep.mubr.msk.f32.mxu0 %vm201_vm2, %v12821_v8 }
 0x300   : > { %10044 = vmatprep.mubr.msk.f32.mxu1 %vm201_vm2, %v12827_v9 }
 0x302   : > { %9685 = vmatmul.mubr.msk.f32.gmra.mrb[26].mxu0 %vm201_vm2, %v12831_v10 }
 0x303   : > { %10045 = vmatmul.mubr.msk.f32.gmra.mrb[26].mxu1 %vm201_vm2, %v12835_v13  ;;  %9687 = vmatprep.mubr.msk.f32.mxu0 %vm201_vm2, %v12837_v14 }
 0x304   : > { %10047 = vmatprep.mubr.msk.f32.mxu1 %vm201_vm2, %v12843_v15 }
 0x306   : > { %9688 = vmatmul.mubr.msk.f32.gmra.mrb[28].mxu0 %vm201_vm2, %v12847_v40 }
 0x307   : > { %10048 = vmatmul.mubr.msk.f32.gmra.mrb[28].mxu1 %vm201_vm2, %v12851_v41  ;;  %9690 = vmatprep.mubr.msk.f32.mxu0 %vm201_vm2, %v12853_v16 }
 0x308   : > { %10050 = vmatprep.mubr.msk.f32.mxu1 %vm201_vm2, %v12859_v17 }
 0x30a   : > { %9691 = vmatmul.mubr.msk.f32.gmra.mrb[30].mxu0 %vm201_vm2, %v12863_v18 }
 0x30b   : > { %10051 = vmatmul.mubr.msk.f32.gmra.mrb[30].mxu1 %vm201_vm2, %v12867_v19  ;;  %9709 = vmatprep.mubr.msk.f32.mxu0 %vm201_vm2, %v12754_v32 }
 0x30c   : > { %10069 = vmatprep.mubr.msk.f32.mxu1 %vm201_vm2, %v12763_v42 }
 0x30e   : > { %9710 = vmatmul.mubr.msk.f32.vlgmr.msra.gmra.mrb[16].mxu0 %vm201_vm2, %v12767_v43 }
 0x30f   : > { %10070 = vmatmul.mubr.msk.f32.vlgmr.msra.gmra.mrb[16].mxu1 %vm201_vm2, %v12769_v44  ;;  %9712 = vmatprep.mubr.msk.f32.mxu0 %vm201_vm2, %v12773_v48 }
 0x310   : > { %10264 = vmatpush3.bf16.msra.mxu0 %v10261_v0  ;;  %10072 = vmatprep.mubr.msk.f32.mxu1 %vm201_vm2, %v12779_v51 }
 0x311   : > { %10408 = vmatpush3.bf16.msra.mxu1 %v10261_v0  ;;  %10266 = vmatprep.subr.bf16.mxu0 %v10265_v24 }
 0x312   : > { %9713 = vmatmul.mubr.msk.f32.gmra.mrb[18].mxu0 %vm201_vm2, %v12783_v52  ;;  %10410 = vmatprep.subr.bf16.mxu1 %v10265_v24 }
 0x313   : > { %10073 = vmatmul.mubr.msk.f32.gmra.mrb[18].mxu1 %vm201_vm2, %v12785_v53  ;;  %9715 = vmatprep.mubr.msk.f32.mxu0 %vm201_vm2, %v12789_v57 }
 0x314   : > { %10075 = vmatprep.mubr.msk.f32.mxu1 %vm201_vm2, %v12795_v62  ;;  %10268 = vmatpush3.bf16.msra.mxu0 %v10265_v24 }
 0x315   : > { %10412 = vmatpush3.bf16.msra.mxu1 %v10265_v24  ;;  %10270 = vmatprep.subr.bf16.mxu0 %v10269_v60 }
 0x316   : > { %9716 = vmatmul.mubr.msk.f32.gmra.mrb[20].mxu0 %vm201_vm2, %v12799_v63  ;;  %10414 = vmatprep.subr.bf16.mxu1 %v10269_v60 }
 0x317   : > { %10076 = vmatmul.mubr.msk.f32.gmra.mrb[20].mxu1 %vm201_vm2, %v12803_v1  ;;  %9718 = vmatprep.mubr.msk.f32.mxu0 %vm201_vm2, %v12805_v2 }
 0x318   : > { %10078 = vmatprep.mubr.msk.f32.mxu1 %vm201_vm2, %v12811_v3  ;;  %10272 = vmatpush3.bf16.msra.mxu0 %v10269_v60 }
 0x319   : > { %10416 = vmatpush3.bf16.msra.mxu1 %v10269_v60  ;;  %10274 = vmatprep.subr.bf16.mxu0 %v10273_v7 }
 0x31a   : > { %9719 = vmatmul.mubr.msk.f32.gmra.mrb[22].mxu0 %vm201_vm2, %v12815_v4  ;;  %10418 = vmatprep.subr.bf16.mxu1 %v10273_v7 }
 0x31b   : > { %10079 = vmatmul.mubr.msk.f32.gmra.mrb[22].mxu1 %vm201_vm2, %v12819_v5  ;;  %9721 = vmatprep.mubr.msk.f32.mxu0 %vm201_vm2, %v12821_v8 }
 0x31c   : > { %10081 = vmatprep.mubr.msk.f32.mxu1 %vm201_vm2, %v12827_v9  ;;  %10276 = vmatpush3.bf16.msra.mxu0 %v10273_v7 }
 0x31d   : > { %10420 = vmatpush3.bf16.msra.mxu1 %v10273_v7 }
 0x31e   : > { %9722 = vmatmul.mubr.msk.f32.gmra.mrb[24].mxu0 %vm201_vm2, %v12831_v10 }
 0x31f   : > { %10082 = vmatmul.mubr.msk.f32.gmra.mrb[24].mxu1 %vm201_vm2, %v12835_v13  ;;  %9724 = vmatprep.mubr.msk.f32.mxu0 %vm201_vm2, %v12837_v14 }
 0x320   : > { %10084 = vmatprep.mubr.msk.f32.mxu1 %vm201_vm2, %v12843_v15 }
 0x322   : > { %9725 = vmatmul.mubr.msk.f32.gmra.mrb[26].mxu0 %vm201_vm2, %v12847_v40 }
 0x323   : > { %10085 = vmatmul.mubr.msk.f32.gmra.mrb[26].mxu1 %vm201_vm2, %v12851_v41  ;;  %9727 = vmatprep.mubr.msk.f32.mxu0 %vm201_vm2, %v12853_v16 }
 0x324   : > { %10087 = vmatprep.mubr.msk.f32.mxu1 %vm201_vm2, %v12859_v17 }
 0x326   : > { %9728 = vmatmul.mubr.msk.f32.gmra.mrb[28].mxu0 %vm201_vm2, %v12863_v18 }
 0x327   : > { %10088 = vmatmul.mubr.msk.f32.gmra.mrb[28].mxu1 %vm201_vm2, %v12867_v19  ;;  %9730 = vmatprep.mubr.msk.f32.mxu0 %vm201_vm2, %v12749_v35 }
 0x328   : > { %10090 = vmatprep.mubr.msk.f32.mxu1 %vm201_vm2, %v6730_v11 }
 0x32a   : > { %9731 = vmatmul.mubr.msk.f32.gmra.mrb[30].mxu0 %vm201_vm2, %v12757_v38 }
 0x32b   : > { %10091 = vmatmul.mubr.msk.f32.gmra.mrb[30].mxu1 %vm201_vm2, %v6731_v12  ;;  %9749 = vmatprep.mubr.msk.f32.mxu0 %vm201_vm2, %v12773_v48 }
 0x32c   : > { %10109 = vmatprep.mubr.msk.f32.mxu1 %vm201_vm2, %v12779_v51 }
 0x32e   : > { %9750 = vmatmul.mubr.msk.f32.vlgmr.msra.gmra.mrb[16].mxu0 %vm201_vm2, %v12783_v52 }
 0x32f   : > { %10110 = vmatmul.mubr.msk.f32.vlgmr.msra.gmra.mrb[16].mxu1 %vm201_vm2, %v12785_v53  ;;  %9752 = vmatprep.mubr.msk.f32.mxu0 %vm201_vm2, %v12789_v57 }
 0x330   : > { %10112 = vmatprep.mubr.msk.f32.mxu1 %vm201_vm2, %v12795_v62 }
 0x332   : > { %9753 = vmatmul.mubr.msk.f32.gmra.mrb[18].mxu0 %vm201_vm2, %v12799_v63 }
 0x333   : > { %10113 = vmatmul.mubr.msk.f32.gmra.mrb[18].mxu1 %vm201_vm2, %v12803_v1  ;;  %9755 = vmatprep.mubr.msk.f32.mxu0 %vm201_vm2, %v12805_v2 }
 0x334   : > { %10115 = vmatprep.mubr.msk.f32.mxu1 %vm201_vm2, %v12811_v3 }
 0x336   : > { %9756 = vmatmul.mubr.msk.f32.gmra.mrb[20].mxu0 %vm201_vm2, %v12815_v4 }
 0x337   : > { %10116 = vmatmul.mubr.msk.f32.gmra.mrb[20].mxu1 %vm201_vm2, %v12819_v5  ;;  %9758 = vmatprep.mubr.msk.f32.mxu0 %vm201_vm2, %v12821_v8 }
 0x338   : > { %10118 = vmatprep.mubr.msk.f32.mxu1 %vm201_vm2, %v12827_v9 }
 0x33a   : > { %9759 = vmatmul.mubr.msk.f32.gmra.mrb[22].mxu0 %vm201_vm2, %v12831_v10 }
 0x33b   : > { %10119 = vmatmul.mubr.msk.f32.gmra.mrb[22].mxu1 %vm201_vm2, %v12835_v13  ;;  %9761 = vmatprep.mubr.msk.f32.mxu0 %vm201_vm2, %v12837_v14 }
 0x33c   : > { %10121 = vmatprep.mubr.msk.f32.mxu1 %vm201_vm2, %v12843_v15 }
 0x33e   : > { %9762 = vmatmul.mubr.msk.f32.gmra.mrb[24].mxu0 %vm201_vm2, %v12847_v40 }
 0x33f   : > { %10122 = vmatmul.mubr.msk.f32.gmra.mrb[24].mxu1 %vm201_vm2, %v12851_v41  ;;  %9764 = vmatprep.mubr.msk.f32.mxu0 %vm201_vm2, %v12853_v16 }
 0x340   : > { %10124 = vmatprep.mubr.msk.f32.mxu1 %vm201_vm2, %v12859_v17 }
 0x342   : > { %9765 = vmatmul.mubr.msk.f32.gmra.mrb[26].mxu0 %vm201_vm2, %v12863_v18 }
 0x343   : > { %10125 = vmatmul.mubr.msk.f32.gmra.mrb[26].mxu1 %vm201_vm2, %v12867_v19  ;;  %9767 = vmatprep.mubr.msk.f32.mxu0 %vm201_vm2, %v12749_v35 }
 0x344   : > { %10127 = vmatprep.mubr.msk.f32.mxu1 %vm201_vm2, %v6730_v11 }
 0x346   : > { %9768 = vmatmul.mubr.msk.f32.gmra.mrb[28].mxu0 %vm201_vm2, %v12757_v38 }
 0x347   : > { %10128 = vmatmul.mubr.msk.f32.gmra.mrb[28].mxu1 %vm201_vm2, %v6731_v12  ;;  %9770 = vmatprep.mubr.msk.f32.mxu0 %vm201_vm2, %v12763_v42 }
 0x348   : > { %10130 = vmatprep.mubr.msk.f32.mxu1 %vm201_vm2, %v6732_v21 }
 0x34a   : > { %9771 = vmatmul.mubr.msk.f32.gmra.mrb[30].mxu0 %vm201_vm2, %v12769_v44 }
 0x34b   : > { %10131 = vmatmul.mubr.msk.f32.gmra.mrb[30].mxu1 %vm201_vm2, %v6733_v22 }
 0x401   : > { %v9751_v25 = vpop.f32.mrb[16].mxu0 }
 0x402   : > { %v5475_v26 = vmax.f32 %v9751_v25, 0.0  ;;  %v10111_v28 = vpop.f32.mrb[16].mxu1  ;;  %v5379_v45 = vpop.f32.mrb[17].mxu0 }
 0x403   : > { %v7302_v29 = vmax.f32 %v10111_v28, 0.0  ;;  %v5474_v31 = vmax.f32 %v5379_v45, 0.0  ;;  %v7206_v46 = vpop.f32.mrb[17].mxu1 }
 0x404   : > { %v8176_v33 = vpack.c.bf16 %v5475_v26, %v5475_v26  ;;  %v7301_v34 = vmax.f32 %v7206_v46, 0.0 }
 0x405   : > { %v8192_v27 = vpack.c.bf16 %v7302_v29, %v7302_v29  ;;  %v8175_v35 = vpack.c.bf16 %v5474_v31, %v5474_v31  ;;  %v9754_v30 = vpop.f32.mrb[18].mxu0 }
 0x406   : > { %5556 = vst.msk [vmem:[%s12997_s26 + $0x4] sm:$0xf] %vm5554_vm3, %v8176_v33  ;;  %v8191_v32 = vpack.c.bf16 %v7301_v34, %v7301_v34  ;;  %v5477_v37 = vmax.f32 %v9754_v30, 0.0  ;;  %v10114_v38 = vpop.f32.mrb[18].mxu1  ;;  %v5389_v36 = vpop.f32.mrb[19].mxu0 }
 0x407   : > { %7382 = vst.msk [vmem:[%s12997_s26 + $0x44] sm:$0xf] %vm5554_vm3, %v8192_v27  ;;  %5555 = vst.msk [vmem:[%s12997_s26] sm:$0xf] %vm5554_vm3, %v8175_v35  ;;  %v7304_v39 = vmax.f32 %v10114_v38, 0.0  ;;  %v5476_v42 = vmax.f32 %v5389_v36, 0.0 }
 0x408   : > { %v7216_v43 = vpop.f32.mrb[19].mxu1  ;;  %7381 = vst.msk [vmem:[%s12997_s26 + $0x40] sm:$0xf] %vm5554_vm3, %v8191_v32  ;;  %v8178_v44 = vpack.c.bf16 %v5477_v37, %v5477_v37 }
 0x409   : > { %v7303_v47 = vmax.f32 %v7216_v43, 0.0  ;;  %v8194_v48 = vpack.c.bf16 %v7304_v39, %v7304_v39  ;;  %v8177_v49 = vpack.c.bf16 %v5476_v42, %v5476_v42  ;;  %v9757_v50 = vpop.f32.mrb[20].mxu0 }
 0x40a   : > { %5558 = vst.msk [vmem:[%s12997_s26 + $0xc] sm:$0xf] %vm5554_vm3, %v8178_v44  ;;  %v5479_v52 = vmax.f32 %v9757_v50, 0.0  ;;  %v10117_v53 = vpop.f32.mrb[20].mxu1  ;;  %v5399_v54 = vpop.f32.mrb[21].mxu0 }
 0x40b   : > { %v8193_v51 = vpack.c.bf16 %v7303_v47, %v7303_v47  ;;  %7384 = vst.msk [vmem:[%s12997_s26 + $0x4c] sm:$0xf] %vm5554_vm3, %v8194_v48  ;;  %5557 = vst.msk [vmem:[%s12997_s26 + $0x8] sm:$0xf] %vm5554_vm3, %v8177_v49  ;;  %v7306_v57 = vmax.f32 %v10117_v53, 0.0  ;;  %v5478_v58 = vmax.f32 %v5399_v54, 0.0 }
 0x40c   : > { %v7226_v59 = vpop.f32.mrb[21].mxu1  ;;  %v8180_v62 = vpack.c.bf16 %v5479_v52, %v5479_v52 }
 0x40d   : > { %7383 = vst.msk [vmem:[%s12997_s26 + $0x48] sm:$0xf] %vm5554_vm3, %v8193_v51  ;;  %v7305_v63 = vmax.f32 %v7226_v59, 0.0  ;;  %v8196_v0 = vpack.c.bf16 %v7306_v57, %v7306_v57  ;;  %v8179_v1 = vpack.c.bf16 %v5478_v58, %v5478_v58  ;;  %v9760_v2 = vpop.f32.mrb[22].mxu0 }
 0x40e   : > { %5560 = vst.msk [vmem:[%s12997_s26 + $0x14] sm:$0xf] %vm5554_vm3, %v8180_v62  ;;  %v5481_v4 = vmax.f32 %v9760_v2, 0.0  ;;  %v10120_v5 = vpop.f32.mrb[22].mxu1  ;;  %v5409_v8 = vpop.f32.mrb[23].mxu0 }
 0x40f   : > { %v8195_v3 = vpack.c.bf16 %v7305_v63, %v7305_v63  ;;  %7386 = vst.msk [vmem:[%s12997_s26 + $0x54] sm:$0xf] %vm5554_vm3, %v8196_v0  ;;  %5559 = vst.msk [vmem:[%s12997_s26 + $0x10] sm:$0xf] %vm5554_vm3, %v8179_v1  ;;  %v7308_v9 = vmax.f32 %v10120_v5, 0.0  ;;  %v5480_v10 = vmax.f32 %v5409_v8, 0.0 }
 0x410   : > { %v7236_v13 = vpop.f32.mrb[23].mxu1  ;;  %v8182_v14 = vpack.c.bf16 %v5481_v4, %v5481_v4 }
 0x411   : > { %7385 = vst.msk [vmem:[%s12997_s26 + $0x50] sm:$0xf] %vm5554_vm3, %v8195_v3  ;;  %v7307_v15 = vmax.f32 %v7236_v13, 0.0  ;;  %v8198_v40 = vpack.c.bf16 %v7308_v9, %v7308_v9  ;;  %v8181_v41 = vpack.c.bf16 %v5480_v10, %v5480_v10  ;;  %v9763_v16 = vpop.f32.mrb[24].mxu0 }
 0x412   : > { %5562 = vst.msk [vmem:[%s12997_s26 + $0x1c] sm:$0xf] %vm5554_vm3, %v8182_v14  ;;  %v5483_v18 = vmax.f32 %v9763_v16, 0.0  ;;  %v10123_v19 = vpop.f32.mrb[24].mxu1  ;;  %v5419_v20 = vpop.f32.mrb[25].mxu0 }
 0x413   : > { %v8197_v17 = vpack.c.bf16 %v7307_v15, %v7307_v15  ;;  %7388 = vst.msk [vmem:[%s12997_s26 + $0x5c] sm:$0xf] %vm5554_vm3, %v8198_v40  ;;  %5561 = vst.msk [vmem:[%s12997_s26 + $0x18] sm:$0xf] %vm5554_vm3, %v8181_v41  ;;  %v7310_v23 = vmax.f32 %v10123_v19, 0.0  ;;  %v5482_v24 = vmax.f32 %v5419_v20, 0.0 }
 0x414   : > { %v7246_v55 = vpop.f32.mrb[25].mxu1  ;;  %v8184_v56 = vpack.c.bf16 %v5483_v18, %v5483_v18 }
 0x415   : > { %7387 = vst.msk [vmem:[%s12997_s26 + $0x58] sm:$0xf] %vm5554_vm3, %v8197_v17  ;;  %v7309_v60 = vmax.f32 %v7246_v55, 0.0  ;;  %v8200_v61 = vpack.c.bf16 %v7310_v23, %v7310_v23  ;;  %v8183_v6 = vpack.c.bf16 %v5482_v24, %v5482_v24  ;;  %v9766_v7 = vpop.f32.mrb[26].mxu0 }
 0x416   : > { %5564 = vst.msk [vmem:[%s12997_s26 + $0x24] sm:$0xf] %vm5554_vm3, %v8184_v56  ;;  %v5485_v12 = vmax.f32 %v9766_v7, 0.0  ;;  %v10126_v21 = vpop.f32.mrb[26].mxu1  ;;  %v5429_v22 = vpop.f32.mrb[27].mxu0 }
 0x417   : > { %v8199_v11 = vpack.c.bf16 %v7309_v60, %v7309_v60  ;;  %7390 = vst.msk [vmem:[%s12997_s26 + $0x64] sm:$0xf] %vm5554_vm3, %v8200_v61  ;;  %5563 = vst.msk [vmem:[%s12997_s26 + $0x20] sm:$0xf] %vm5554_vm3, %v8183_v6  ;;  %v7312_v25 = vmax.f32 %v10126_v21, 0.0  ;;  %v5484_v26 = vmax.f32 %v5429_v22, 0.0 }
 0x418   : > { %v7256_v28 = vpop.f32.mrb[27].mxu1  ;;  %v8186_v45 = vpack.c.bf16 %v5485_v12, %v5485_v12 }
 0x419   : > { %7389 = vst.msk [vmem:[%s12997_s26 + $0x60] sm:$0xf] %vm5554_vm3, %v8199_v11  ;;  %v7311_v29 = vmax.f32 %v7256_v28, 0.0  ;;  %v8202_v31 = vpack.c.bf16 %v7312_v25, %v7312_v25  ;;  %v8185_v46 = vpack.c.bf16 %v5484_v26, %v5484_v26  ;;  %v9769_v33 = vpop.f32.mrb[28].mxu0 }
 0x41a   : > { %5566 = vst.msk [vmem:[%s12997_s26 + $0x2c] sm:$0xf] %vm5554_vm3, %v8186_v45  ;;  %v5487_v27 = vmax.f32 %v9769_v33, 0.0  ;;  %v10129_v35 = vpop.f32.mrb[28].mxu1  ;;  %v5439_v30 = vpop.f32.mrb[29].mxu0 }
 0x41b   : > { %v8201_v34 = vpack.c.bf16 %v7311_v29, %v7311_v29  ;;  %7392 = vst.msk [vmem:[%s12997_s26 + $0x6c] sm:$0xf] %vm5554_vm3, %v8202_v31  ;;  %5565 = vst.msk [vmem:[%s12997_s26 + $0x28] sm:$0xf] %vm5554_vm3, %v8185_v46  ;;  %v7314_v32 = vmax.f32 %v10129_v35, 0.0  ;;  %v5486_v37 = vmax.f32 %v5439_v30, 0.0 }
 0x41c   : > { %v7266_v38 = vpop.f32.mrb[29].mxu1  ;;  %v8188_v36 = vpack.c.bf16 %v5487_v27, %v5487_v27 }
 0x41d   : > { %7391 = vst.msk [vmem:[%s12997_s26 + $0x68] sm:$0xf] %vm5554_vm3, %v8201_v34  ;;  %v7313_v39 = vmax.f32 %v7266_v38, 0.0  ;;  %v8204_v42 = vpack.c.bf16 %v7314_v32, %v7314_v32  ;;  %v8187_v43 = vpack.c.bf16 %v5486_v37, %v5486_v37  ;;  %v9772_v44 = vpop.f32.mrb[30].mxu0 }
 0x41e   : > { %5568 = vst.msk [vmem:[%s12997_s26 + $0x34] sm:$0xf] %vm5554_vm3, %v8188_v36  ;;  %v5489_v48 = vmax.f32 %v9772_v44, 0.0  ;;  %v10132_v49 = vpop.f32.mrb[30].mxu1  ;;  %v5449_v50 = vpop.f32.mrb[31].mxu0 }
 0x41f   : > { %v8203_v47 = vpack.c.bf16 %v7313_v39, %v7313_v39  ;;  %7394 = vst.msk [vmem:[%s12997_s26 + $0x74] sm:$0xf] %vm5554_vm3, %v8204_v42  ;;  %5567 = vst.msk [vmem:[%s12997_s26 + $0x30] sm:$0xf] %vm5554_vm3, %v8187_v43  ;;  %v7316_v51 = vmax.f32 %v10132_v49, 0.0  ;;  %v5488_v52 = vmax.f32 %v5449_v50, 0.0 }
 0x420   : > { %v7276_v53 = vpop.f32.mrb[31].mxu1  ;;  %v8190_v54 = vpack.c.bf16 %v5489_v48, %v5489_v48 }
 0x421   : > { %7393 = vst.msk [vmem:[%s12997_s26 + $0x70] sm:$0xf] %vm5554_vm3, %v8203_v47  ;;  %v7315_v57 = vmax.f32 %v7276_v53, 0.0  ;;  %v8206_v58 = vpack.c.bf16 %v7316_v51, %v7316_v51  ;;  %v8189_v59 = vpack.c.bf16 %v5488_v52, %v5488_v52 }
 0x422   : > { %5570 = vst.msk [vmem:[%s12997_s26 + $0x3c] sm:$0xf] %vm5554_vm3, %v8190_v54 }
 0x423   : > { %v8205_v62 = vpack.c.bf16 %v7315_v57, %v7315_v57  ;;  %7396 = vst.msk [vmem:[%s12997_s26 + $0x7c] sm:$0xf] %vm5554_vm3, %v8206_v58  ;;  %5569 = vst.msk [vmem:[%s12997_s26 + $0x38] sm:$0xf] %vm5554_vm3, %v8189_v59 }
 0x425   : > { %7395 = vst.msk [vmem:[%s12997_s26 + $0x78] sm:$0xf] %vm5554_vm3, %v8205_v62 }
 0x426 PF: > { %s15_s12 = sadd.s32 1, %s11038_s12  }
 0x427   : > { %p12_p5 = scmp.ge.s32.totalorder %s15_s12, 4  }
 0x429   :  { %14 = sbr.rel (!%p12_p5) target bundleno = 2 (0x2), region = 91 }
 0x430   :  { %7418 = vsyncpa [#allocation4], 1 }
 0x431   :  { %7420 = vsyncpa [#allocation4 + $0x1], 1 }
 0x432   :  { %7421 = vsyncpa [#allocation6], 1 }

</bundles_post_ra>
